<compile_context>
chip_gen: v7x
topology: tpu7x:2x2x1
jax: 0.10.0
libtpu: 0.0.40
codegen_flags: <defaults>
</compile_context>

<pallas_src>
import functools

import numpy as np

import jax
import jax.numpy as jnp
from jax.experimental import pallas as pl
from jax.experimental.pallas import tpu as pltpu


def _round_up(x, m):
    return ((x + m - 1) // m) * m


# ----------------------------------------------------------------------------
# Pallas kernel 1: conv-as-matmul  [Cout, K] @ [K, tm]  (+bias, +optional ReLU)
# Output tile is (Cout, tm) with tm on lanes -> lane-dense stores.
# ----------------------------------------------------------------------------
def _convmm_kernel(w_ref, p_ref, b_ref, o_ref, *, relu):
    acc = jnp.dot(w_ref[...], p_ref[...], preferred_element_type=jnp.float32)
    acc = acc + b_ref[...]                       # (Cout, tm) + (Cout, 1)
    if relu:
        acc = jnp.maximum(acc, 0.0)
    o_ref[...] = acc.astype(o_ref.dtype)


def _pallas_convmm(w2d, patches_T, b2d, *, relu):
    """w2d: [Cout, K], patches_T: [K, M], b2d: [Cout, 1] -> [Cout, M] f32."""
    Cout, K = w2d.shape
    M = patches_T.shape[1]

    Mp = _round_up(M, 128)
    if Mp <= 1024:
        tm = Mp                      # single grid step (step-overhead bound)
    else:
        tm = 512                     # large M: >=2 parallel tiles (megacore)
        Mp = _round_up(Mp, tm)
    if Mp != M:
        patches_T = jnp.pad(patches_T, ((0, 0), (0, Mp - M)))

    out = pl.pallas_call(
        functools.partial(_convmm_kernel, relu=relu),
        out_shape=jax.ShapeDtypeStruct((Cout, Mp), jnp.float32),
        grid_spec=pltpu.PrefetchScalarGridSpec(
            num_scalar_prefetch=0,
            grid=(Mp // tm,),
            in_specs=[
                pl.BlockSpec((Cout, K), lambda i: (0, 0)),
                pl.BlockSpec((K, tm), lambda i: (0, i)),
                pl.BlockSpec((Cout, 1), lambda i: (0, 0)),
            ],
            out_specs=pl.BlockSpec((Cout, tm), lambda i: (0, i)),
        ),
        compiler_params=pltpu.CompilerParams(dimension_semantics=("parallel",)),
    )(w2d, patches_T, b2d)
    if Mp != M:
        out = out[:, :M]
    return out


def _im2col_cnhw(x, k, stride, pad):
    """x: [C, N, H, W] -> patches_T [C*k*k, N*Ho*Wo] (feature order c, kh, kw)."""
    C, N, H, W = x.shape
    xp = jnp.pad(x, ((0, 0), (0, 0), (pad, pad), (pad, pad)))
    Ho = (H + 2 * pad - k) // stride + 1
    Wo = (W + 2 * pad - k) // stride + 1
    cols = []
    for i in range(k):
        for j in range(k):
            cols.append(xp[:, :, i:i + stride * Ho:stride, j:j + stride * Wo:stride])
    cols = jnp.stack(cols, axis=1)                 # [C, k*k, N, Ho, Wo]
    return cols.reshape(C * k * k, N * Ho * Wo), Ho, Wo


def conv2d_cnhw_pallas(x, weight, bias, *, stride, pad, relu):
    """x: [Cin, N, H, W]; weight: [Cout, Cin, k, k]; bias: [Cout].
       Returns [Cout, N, Ho, Wo] (channel-major, no host transposes)."""
    Cin, N, H, W = x.shape
    Cout, _, k, _ = weight.shape
    patches_T, Ho, Wo = _im2col_cnhw(x, k, stride, pad)    # [K, M]
    w2d = weight.reshape(Cout, Cin * k * k)                # [Cout, K]
    b2d = bias.reshape(Cout, 1)
    out = _pallas_convmm(w2d, patches_T, b2d, relu=relu)   # [Cout, M]
    return out.reshape(Cout, N, Ho, Wo)


# ----------------------------------------------------------------------------
# Pallas kernel 2: fused bilinear upsample (align_corners=True) + argmax(C)
#                  + column crop (crop + lane padding folded into wxT).
# Grid = (N, row-bands); the channel axis is an unrolled in-kernel loop.
# ----------------------------------------------------------------------------
def _upsample_argmax_kernel(wy_ref, src_ref, wx_ref, out_ref, srcx_ref,
                            *, n_cls, wp, chunk):
    # x-interpolation (+ crop, already folded into wx): pack all channels
    # side-by-side on lanes -> srcx_all [Hs, n_cls*wp]  (wp is 128-aligned)
    for c in range(n_cls):
        srcx_ref[:, c * wp:(c + 1) * wp] = jnp.dot(
            src_ref[c, 0], wx_ref[...], preferred_element_type=jnp.float32)

    # y-interpolation: ONE wide MXU call for the whole row band, all channels.
    up_all = jnp.dot(wy_ref[...], srcx_ref[...],
                     preferred_element_type=jnp.float32)      # [th, n_cls*wp]

    # argmax over channels in 128-lane chunks: running max/argmax stay small
    # (register friendly) and every slice/store is 128-aligned and unmasked.
    for j in range(wp // chunk):
        lo = j * chunk
        best_val = up_all[:, lo:lo + chunk]                   # channel 0
        best_idx = jnp.zeros(best_val.shape, jnp.int32)
        for c in range(1, n_cls):
            u = up_all[:, c * wp + lo:c * wp + lo + chunk]
            better = u > best_val          # strict '>' => first max wins
            best_val = jnp.where(better, u, best_val)
            best_idx = jnp.where(better, jnp.int32(c), best_idx)
        out_ref[0, :, lo:lo + chunk] = best_idx


def upsample_argmax_crop_pallas(logits_cnhw, wy, wxT_pad, *, th=256):
    """logits_cnhw: [C, N, Hs, Ws] f32; wy: [out_h, Hs]; wxT_pad: [Ws, Wp].
       Returns int32 [N, out_h, Wp]: argmax over C of the bilinearly-upsampled
       (align_corners=True) logits; columns already cropped/zero-padded via
       wxT_pad (caller slices the valid Wc columns)."""
    C, N, Hs, Ws = logits_cnhw.shape
    out_h = wy.shape[0]
    Wp = wxT_pad.shape[1]
    assert out_h % th == 0 and Wp % 128 == 0
    return pl.pallas_call(
        functools.partial(_upsample_argmax_kernel, n_cls=C, wp=Wp, chunk=128),
        out_shape=jax.ShapeDtypeStruct((N, out_h, Wp), jnp.int32),
        grid_spec=pltpu.PrefetchScalarGridSpec(
            num_scalar_prefetch=0,
            grid=(N, out_h // th),            # 2 row-bands (>=2 parallel items)
            in_specs=[
                pl.BlockSpec((th, Hs), lambda n, i: (i, 0)),
                pl.BlockSpec((C, 1, Hs, Ws), lambda n, i: (0, n, 0, 0)),
                pl.BlockSpec((Ws, Wp), lambda n, i: (0, 0)),
            ],
            out_specs=pl.BlockSpec((1, th, Wp), lambda n, i: (n, i, 0)),
            scratch_shapes=[pltpu.VMEM((Hs, C * Wp), jnp.float32)],
        ),
        compiler_params=pltpu.CompilerParams(
            dimension_semantics=("parallel", "parallel")),
    )(wy, logits_cnhw, wxT_pad)


def _interp_matrix_np(out_size, in_size):
    """Row-stochastic bilinear interpolation matrix, align_corners=True.
       Built with numpy at trace time -> baked as a constant."""
    if in_size == 1:
        return np.ones((out_size, 1), np.float32)
    coords = np.arange(out_size, dtype=np.float64) * (in_size - 1) / (out_size - 1)
    lo = np.clip(np.floor(coords).astype(np.int64), 0, in_size - 2)
    w = coords - lo
    m = np.zeros((out_size, in_size), np.float64)
    rows = np.arange(out_size)
    m[rows, lo] += 1.0 - w
    m[rows, lo + 1] += w
    return m.astype(np.float32)


# ----------------------------------------------------------------------------
# ParseModel forward
# ----------------------------------------------------------------------------
def parse_model_forward(frame, params):
    """frame: [N, 3, H, W] float32 (NCHW).  Matches
       F.interpolate(logits, (512,512), bilinear, align_corners=True)
       -> argmax(1) -> [..., 112:400] -> squeeze()  (int32 vs torch int64)."""
    # single entry transpose; stem stays channel-major end-to-end
    x = jnp.transpose(frame, (1, 0, 2, 3))                         # [3, N, H, W]
    x = conv2d_cnhw_pallas(x, params["w1"], params["b1"],
                           stride=2, pad=1, relu=True)             # [16, N, H/2, W/2]
    logits = conv2d_cnhw_pallas(x, params["w2"], params["b2"],
                                stride=2, pad=1, relu=False)       # [7, N, Hs, Ws]

    C, N, Hs, Ws = logits.shape
    out_h, out_w = 512, 512
    c0, c1 = 112, 400
    Wc = c1 - c0                                                   # 288
    Wp = _round_up(Wc, 128)                                        # 384 (lane-dense)

    wy = jnp.asarray(_interp_matrix_np(out_h, Hs))                 # [512, Hs]
    wxT_full = _interp_matrix_np(out_w, Ws).T                      # [Ws, 512]
    wxT_pad = np.zeros((Ws, Wp), np.float32)
    wxT_pad[:, :Wc] = wxT_full[:, c0:c1]                           # crop fused + zero pad
    wxT_pad = jnp.asarray(wxT_pad)

    idx = upsample_argmax_crop_pallas(logits, wy, wxT_pad)         # [N, 512, Wp] int32
    return jnp.squeeze(idx[:, :, :Wc])                             # [512, 288] for N=1


if __name__ == "__main__":
    key = jax.random.PRNGKey(0)
    k_frame, k_w1, k_b1, k_w2, k_b2 = jax.random.split(key, 5)

    # small NCHW image batch consistent with the module
    frame = jax.random.normal(k_frame, (1, 3, 64, 64), dtype=jnp.float32)

    params = {
        "w1": 0.1 * jax.random.normal(k_w1, (16, 3, 3, 3), dtype=jnp.float32),
        "b1": 0.1 * jax.random.normal(k_b1, (16,), dtype=jnp.float32),
        "w2": 0.1 * jax.random.normal(k_w2, (7, 16, 3, 3), dtype=jnp.float32),
        "b2": 0.1 * jax.random.normal(k_b2, (7,), dtype=jnp.float32),
    }

    fwd = jax.jit(parse_model_forward)
    out = fwd(frame, params)
    out = jax.block_until_ready(out)
    assert out.shape == (512, 288), out.shape
    assert out.dtype == jnp.int32, out.dtype
    print("KERNEL_OK")
</pallas_src>

<mosaic_0001>
module attributes {stable_mosaic.version = 11 : i64} {
  func.func @_convmm_kernel(%arg0: i32, %arg1: memref<16x27xf32, #tpu.memory_space<vmem>>, %arg2: memref<27x1024xf32, #tpu.memory_space<vmem>>, %arg3: memref<16x1xf32, #tpu.memory_space<vmem>>, %arg4: memref<16x1024xf32, #tpu.memory_space<vmem>>) attributes {dimension_semantics = [#tpu.dimension_semantics<parallel>], iteration_bounds = array<i64: 1>, scalar_prefetch = 0 : i64, scratch_operands = 0 : i64, tpu.core_type = #tpu.core_type<tc>, window_params = [{pipeline_mode = #tpu.pipeline_mode<synchronous>, transform_indices = @transform_0, window_bounds = array<i64: 16, 27>}, {transform_indices = @transform_1, window_bounds = array<i64: 27, 1024>}, {pipeline_mode = #tpu.pipeline_mode<synchronous>, transform_indices = @transform_2, window_bounds = array<i64: 16, 1>}, {transform_indices = @transform_3, window_bounds = array<i64: 16, 1024>}]} {
    %c0 = arith.constant 0 : index
    %c0_0 = arith.constant 0 : index
    %0 = vector.load %arg1[%c0, %c0_0] : memref<16x27xf32, #tpu.memory_space<vmem>>, vector<16x27xf32>
    %c0_1 = arith.constant 0 : index
    %c0_2 = arith.constant 0 : index
    %1 = vector.load %arg2[%c0_1, %c0_2] : memref<27x1024xf32, #tpu.memory_space<vmem>>, vector<27x1024xf32>
    %cst = arith.constant dense<0.000000e+00> : vector<16x1024xf32>
    %2 = tpu.matmul %0, %1, %cst {dimension_numbers = #tpu.dot_dimension_numbers<[1], [0], [0], [1], [0, 0, 1, 1], [], []>} : vector<16x27xf32>, vector<27x1024xf32>, vector<16x1024xf32> -> vector<16x1024xf32>
    %c0_3 = arith.constant 0 : index
    %c0_4 = arith.constant 0 : index
    %3 = vector.load %arg3[%c0_3, %c0_4] : memref<16x1xf32, #tpu.memory_space<vmem>>, vector<16x1xf32>
    %4 = vector.broadcast %3 : vector<16x1xf32> to vector<16x1024xf32>
    %5 = arith.addf %2, %4 : vector<16x1024xf32>
    %cst_5 = arith.constant 0.000000e+00 : f32
    %6 = vector.broadcast %cst_5 : f32 to vector<16x1024xf32>
    %7 = arith.maximumf %5, %6 : vector<16x1024xf32>
    %c0_6 = arith.constant 0 : index
    %c0_7 = arith.constant 0 : index
    %8 = vector.load %arg4[%c0_6, %c0_7] : memref<16x1024xf32, #tpu.memory_space<vmem>>, vector<16x1024xf32>
    tpu.vector_store %arg4[%c0_6, %c0_7], %7 {strides = array<i32>} : memref<16x1024xf32, #tpu.memory_space<vmem>>, vector<16x1024xf32>,
    return
  }
  func.func @transform_0(%arg0: i32) -> (i32, i32) {
    %c0_i32 = arith.constant 0 : i32
    %c0_i32_0 = arith.constant 0 : i32
    %c0_i32_1 = arith.constant 0 : i32
    return %c0_i32, %c0_i32_0 : i32, i32
  }
  func.func @transform_1(%arg0: i32) -> (i32, i32) {
    %c0_i32 = arith.constant 0 : i32
    %c0_i32_0 = arith.constant 0 : i32
    return %c0_i32, %arg0 : i32, i32
  }
  func.func @transform_2(%arg0: i32) -> (i32, i32) {
    %c0_i32 = arith.constant 0 : i32
    %c0_i32_0 = arith.constant 0 : i32
    %c0_i32_1 = arith.constant 0 : i32
    return %c0_i32, %c0_i32_0 : i32, i32
  }
  func.func @transform_3(%arg0: i32) -> (i32, i32) {
    %c0_i32 = arith.constant 0 : i32
    %c0_i32_0 = arith.constant 0 : i32
    return %c0_i32, %arg0 : i32, i32
  }
}

module attributes {stable_mosaic.version = 11 : i64} {
  func.func @_convmm_kernel(%arg0: i32, %arg1: memref<7x144xf32, #tpu.memory_space<vmem>>, %arg2: memref<144x256xf32, #tpu.memory_space<vmem>>, %arg3: memref<7x1xf32, #tpu.memory_space<vmem>>, %arg4: memref<7x256xf32, #tpu.memory_space<vmem>>) attributes {dimension_semantics = [#tpu.dimension_semantics<parallel>], iteration_bounds = array<i64: 1>, scalar_prefetch = 0 : i64, scratch_operands = 0 : i64, tpu.core_type = #tpu.core_type<tc>, window_params = [{pipeline_mode = #tpu.pipeline_mode<synchronous>, transform_indices = @transform_0, window_bounds = array<i64: 7, 144>}, {transform_indices = @transform_1, window_bounds = array<i64: 144, 256>}, {pipeline_mode = #tpu.pipeline_mode<synchronous>, transform_indices = @transform_2, window_bounds = array<i64: 7, 1>}, {transform_indices = @transform_3, window_bounds = array<i64: 7, 256>}]} {
    %c0 = arith.constant 0 : index
    %c0_0 = arith.constant 0 : index
    %0 = vector.load %arg1[%c0, %c0_0] : memref<7x144xf32, #tpu.memory_space<vmem>>, vector<7x144xf32>
    %c0_1 = arith.constant 0 : index
    %c0_2 = arith.constant 0 : index
    %1 = vector.load %arg2[%c0_1, %c0_2] : memref<144x256xf32, #tpu.memory_space<vmem>>, vector<144x256xf32>
    %cst = arith.constant dense<0.000000e+00> : vector<7x256xf32>
    %2 = tpu.matmul %0, %1, %cst {dimension_numbers = #tpu.dot_dimension_numbers<[1], [0], [0], [1], [0, 0, 1, 1], [], []>} : vector<7x144xf32>, vector<144x256xf32>, vector<7x256xf32> -> vector<7x256xf32>
    %c0_3 = arith.constant 0 : index
    %c0_4 = arith.constant 0 : index
    %3 = vector.load %arg3[%c0_3, %c0_4] : memref<7x1xf32, #tpu.memory_space<vmem>>, vector<7x1xf32>
    %4 = vector.broadcast %3 : vector<7x1xf32> to vector<7x256xf32>
    %5 = arith.addf %2, %4 : vector<7x256xf32>
    %c0_5 = arith.constant 0 : index
    %c0_6 = arith.constant 0 : index
    %6 = vector.load %arg4[%c0_5, %c0_6] : memref<7x256xf32, #tpu.memory_space<vmem>>, vector<7x256xf32>
    tpu.vector_store %arg4[%c0_5, %c0_6], %5 {strides = array<i32>} : memref<7x256xf32, #tpu.memory_space<vmem>>, vector<7x256xf32>,
    return
  }
  func.func @transform_0(%arg0: i32) -> (i32, i32) {
    %c0_i32 = arith.constant 0 : i32
    %c0_i32_0 = arith.constant 0 : i32
    %c0_i32_1 = arith.constant 0 : i32
    return %c0_i32, %c0_i32_0 : i32, i32
  }
  func.func @transform_1(%arg0: i32) -> (i32, i32) {
    %c0_i32 = arith.constant 0 : i32
    %c0_i32_0 = arith.constant 0 : i32
    return %c0_i32, %arg0 : i32, i32
  }
  func.func @transform_2(%arg0: i32) -> (i32, i32) {
    %c0_i32 = arith.constant 0 : i32
    %c0_i32_0 = arith.constant 0 : i32
    %c0_i32_1 = arith.constant 0 : i32
    return %c0_i32, %c0_i32_0 : i32, i32
  }
  func.func @transform_3(%arg0: i32) -> (i32, i32) {
    %c0_i32 = arith.constant 0 : i32
    %c0_i32_0 = arith.constant 0 : i32
    return %c0_i32, %arg0 : i32, i32
  }
}

module attributes {stable_mosaic.version = 11 : i64} {
  func.func @_upsample_argmax_kernel(%arg0: i32, %arg1: i32, %arg2: memref<256x16xf32, #tpu.memory_space<vmem>>, %arg3: memref<7x1x16x16xf32, #tpu.memory_space<vmem>>, %arg4: memref<16x384xf32, #tpu.memory_space<vmem>>, %arg5: memref<1x256x384xi32, #tpu.memory_space<vmem>>, %arg6: memref<16x2688xf32, #tpu.memory_space<vmem>>) attributes {dimension_semantics = [#tpu.dimension_semantics<parallel>, #tpu.dimension_semantics<parallel>], iteration_bounds = array<i64: 1, 2>, scalar_prefetch = 0 : i64, scratch_operands = 1 : i64, tpu.core_type = #tpu.core_type<tc>, window_params = [{transform_indices = @transform_0, window_bounds = array<i64: 256, 16>}, {transform_indices = @transform_1, window_bounds = array<i64: 7, 1, 16, 16>}, {pipeline_mode = #tpu.pipeline_mode<synchronous>, transform_indices = @transform_2, window_bounds = array<i64: 16, 384>}, {transform_indices = @transform_3, window_bounds = array<i64: 1, 256, 384>}]} {
    %c0 = arith.constant 0 : index
    %c0_0 = arith.constant 0 : index
    %c0_1 = arith.constant 0 : index
    %c0_2 = arith.constant 0 : index
    %0 = vector.load %arg3[%c0, %c0_0, %c0_1, %c0_2] : memref<7x1x16x16xf32, #tpu.memory_space<vmem>>, vector<1x1x16x16xf32>
    %1 = vector.shape_cast %0 : vector<1x1x16x16xf32> to vector<16x16xf32>
    %c0_3 = arith.constant 0 : index
    %c0_4 = arith.constant 0 : index
    %2 = vector.load %arg4[%c0_3, %c0_4] : memref<16x384xf32, #tpu.memory_space<vmem>>, vector<16x384xf32>
    %cst = arith.constant dense<0.000000e+00> : vector<16x384xf32>
    %3 = tpu.matmul %1, %2, %cst {dimension_numbers = #tpu.dot_dimension_numbers<[1], [0], [0], [1], [0, 0, 1, 1], [], []>} : vector<16x16xf32>, vector<16x384xf32>, vector<16x384xf32> -> vector<16x384xf32>
    %c0_5 = arith.constant 0 : index
    %c0_6 = arith.constant 0 : index
    %4 = vector.load %arg6[%c0_5, %c0_6] : memref<16x2688xf32, #tpu.memory_space<vmem>>, vector<16x384xf32>
    tpu.vector_store %arg6[%c0_5, %c0_6], %3 {strides = array<i32>} : memref<16x2688xf32, #tpu.memory_space<vmem>>, vector<16x384xf32>,
    %c1 = arith.constant 1 : index
    %c0_7 = arith.constant 0 : index
    %c0_8 = arith.constant 0 : index
    %c0_9 = arith.constant 0 : index
    %5 = vector.load %arg3[%c1, %c0_7, %c0_8, %c0_9] : memref<7x1x16x16xf32, #tpu.memory_space<vmem>>, vector<1x1x16x16xf32>
    %6 = vector.shape_cast %5 : vector<1x1x16x16xf32> to vector<16x16xf32>
    %c0_10 = arith.constant 0 : index
    %c0_11 = arith.constant 0 : index
    %7 = vector.load %arg4[%c0_10, %c0_11] : memref<16x384xf32, #tpu.memory_space<vmem>>, vector<16x384xf32>
    %cst_12 = arith.constant dense<0.000000e+00> : vector<16x384xf32>
    %8 = tpu.matmul %6, %7, %cst_12 {dimension_numbers = #tpu.dot_dimension_numbers<[1], [0], [0], [1], [0, 0, 1, 1], [], []>} : vector<16x16xf32>, vector<16x384xf32>, vector<16x384xf32> -> vector<16x384xf32>
    %c0_13 = arith.constant 0 : index
    %c384 = arith.constant 384 : index
    %9 = vector.load %arg6[%c0_13, %c384] : memref<16x2688xf32, #tpu.memory_space<vmem>>, vector<16x384xf32>
    tpu.vector_store %arg6[%c0_13, %c384], %8 {strides = array<i32>} : memref<16x2688xf32, #tpu.memory_space<vmem>>, vector<16x384xf32>,
    %c2 = arith.constant 2 : index
    %c0_14 = arith.constant 0 : index
    %c0_15 = arith.constant 0 : index
    %c0_16 = arith.constant 0 : index
    %10 = vector.load %arg3[%c2, %c0_14, %c0_15, %c0_16] : memref<7x1x16x16xf32, #tpu.memory_space<vmem>>, vector<1x1x16x16xf32>
    %11 = vector.shape_cast %10 : vector<1x1x16x16xf32> to vector<16x16xf32>
    %c0_17 = arith.constant 0 : index
    %c0_18 = arith.constant 0 : index
    %12 = vector.load %arg4[%c0_17, %c0_18] : memref<16x384xf32, #tpu.memory_space<vmem>>, vector<16x384xf32>
    %cst_19 = arith.constant dense<0.000000e+00> : vector<16x384xf32>
    %13 = tpu.matmul %11, %12, %cst_19 {dimension_numbers = #tpu.dot_dimension_numbers<[1], [0], [0], [1], [0, 0, 1, 1], [], []>} : vector<16x16xf32>, vector<16x384xf32>, vector<16x384xf32> -> vector<16x384xf32>
    %c0_20 = arith.constant 0 : index
    %c768 = arith.constant 768 : index
    %14 = vector.load %arg6[%c0_20, %c768] : memref<16x2688xf32, #tpu.memory_space<vmem>>, vector<16x384xf32>
    tpu.vector_store %arg6[%c0_20, %c768], %13 {strides = array<i32>} : memref<16x2688xf32, #tpu.memory_space<vmem>>, vector<16x384xf32>,
    %c3 = arith.constant 3 : index
    %c0_21 = arith.constant 0 : index
    %c0_22 = arith.constant 0 : index
    %c0_23 = arith.constant 0 : index
    %15 = vector.load %arg3[%c3, %c0_21, %c0_22, %c0_23] : memref<7x1x16x16xf32, #tpu.memory_space<vmem>>, vector<1x1x16x16xf32>
    %16 = vector.shape_cast %15 : vector<1x1x16x16xf32> to vector<16x16xf32>
    %c0_24 = arith.constant 0 : index
    %c0_25 = arith.constant 0 : index
    %17 = vector.load %arg4[%c0_24, %c0_25] : memref<16x384xf32, #tpu.memory_space<vmem>>, vector<16x384xf32>
    %cst_26 = arith.constant dense<0.000000e+00> : vector<16x384xf32>
    %18 = tpu.matmul %16, %17, %cst_26 {dimension_numbers = #tpu.dot_dimension_numbers<[1], [0], [0], [1], [0, 0, 1, 1], [], []>} : vector<16x16xf32>, vector<16x384xf32>, vector<16x384xf32> -> vector<16x384xf32>
    %c0_27 = arith.constant 0 : index
    %c1152 = arith.constant 1152 : index
    %19 = vector.load %arg6[%c0_27, %c1152] : memref<16x2688xf32, #tpu.memory_space<vmem>>, vector<16x384xf32>
    tpu.vector_store %arg6[%c0_27, %c1152], %18 {strides = array<i32>} : memref<16x2688xf32, #tpu.memory_space<vmem>>, vector<16x384xf32>,
    %c4 = arith.constant 4 : index
    %c0_28 = arith.constant 0 : index
    %c0_29 = arith.constant 0 : index
    %c0_30 = arith.constant 0 : index
    %20 = vector.load %arg3[%c4, %c0_28, %c0_29, %c0_30] : memref<7x1x16x16xf32, #tpu.memory_space<vmem>>, vector<1x1x16x16xf32>
    %21 = vector.shape_cast %20 : vector<1x1x16x16xf32> to vector<16x16xf32>
    %c0_31 = arith.constant 0 : index
    %c0_32 = arith.constant 0 : index
    %22 = vector.load %arg4[%c0_31, %c0_32] : memref<16x384xf32, #tpu.memory_space<vmem>>, vector<16x384xf32>
    %cst_33 = arith.constant dense<0.000000e+00> : vector<16x384xf32>
    %23 = tpu.matmul %21, %22, %cst_33 {dimension_numbers = #tpu.dot_dimension_numbers<[1], [0], [0], [1], [0, 0, 1, 1], [], []>} : vector<16x16xf32>, vector<16x384xf32>, vector<16x384xf32> -> vector<16x384xf32>
    %c0_34 = arith.constant 0 : index
    %c1536 = arith.constant 1536 : index
    %24 = vector.load %arg6[%c0_34, %c1536] : memref<16x2688xf32, #tpu.memory_space<vmem>>, vector<16x384xf32>
    tpu.vector_store %arg6[%c0_34, %c1536], %23 {strides = array<i32>} : memref<16x2688xf32, #tpu.memory_space<vmem>>, vector<16x384xf32>,
    %c5 = arith.constant 5 : index
    %c0_35 = arith.constant 0 : index
    %c0_36 = arith.constant 0 : index
    %c0_37 = arith.constant 0 : index
    %25 = vector.load %arg3[%c5, %c0_35, %c0_36, %c0_37] : memref<7x1x16x16xf32, #tpu.memory_space<vmem>>, vector<1x1x16x16xf32>
    %26 = vector.shape_cast %25 : vector<1x1x16x16xf32> to vector<16x16xf32>
    %c0_38 = arith.constant 0 : index
    %c0_39 = arith.constant 0 : index
    %27 = vector.load %arg4[%c0_38, %c0_39] : memref<16x384xf32, #tpu.memory_space<vmem>>, vector<16x384xf32>
    %cst_40 = arith.constant dense<0.000000e+00> : vector<16x384xf32>
    %28 = tpu.matmul %26, %27, %cst_40 {dimension_numbers = #tpu.dot_dimension_numbers<[1], [0], [0], [1], [0, 0, 1, 1], [], []>} : vector<16x16xf32>, vector<16x384xf32>, vector<16x384xf32> -> vector<16x384xf32>
    %c0_41 = arith.constant 0 : index
    %c1920 = arith.constant 1920 : index
    %29 = vector.load %arg6[%c0_41, %c1920] : memref<16x2688xf32, #tpu.memory_space<vmem>>, vector<16x384xf32>
    tpu.vector_store %arg6[%c0_41, %c1920], %28 {strides = array<i32>} : memref<16x2688xf32, #tpu.memory_space<vmem>>, vector<16x384xf32>,
    %c6 = arith.constant 6 : index
    %c0_42 = arith.constant 0 : index
    %c0_43 = arith.constant 0 : index
    %c0_44 = arith.constant 0 : index
    %30 = vector.load %arg3[%c6, %c0_42, %c0_43, %c0_44] : memref<7x1x16x16xf32, #tpu.memory_space<vmem>>, vector<1x1x16x16xf32>
    %31 = vector.shape_cast %30 : vector<1x1x16x16xf32> to vector<16x16xf32>
    %c0_45 = arith.constant 0 : index
    %c0_46 = arith.constant 0 : index
    %32 = vector.load %arg4[%c0_45, %c0_46] : memref<16x384xf32, #tpu.memory_space<vmem>>, vector<16x384xf32>
    %cst_47 = arith.constant dense<0.000000e+00> : vector<16x384xf32>
    %33 = tpu.matmul %31, %32, %cst_47 {dimension_numbers = #tpu.dot_dimension_numbers<[1], [0], [0], [1], [0, 0, 1, 1], [], []>} : vector<16x16xf32>, vector<16x384xf32>, vector<16x384xf32> -> vector<16x384xf32>
    %c0_48 = arith.constant 0 : index
    %c2304 = arith.constant 2304 : index
    %34 = vector.load %arg6[%c0_48, %c2304] : memref<16x2688xf32, #tpu.memory_space<vmem>>, vector<16x384xf32>
    tpu.vector_store %arg6[%c0_48, %c2304], %33 {strides = array<i32>} : memref<16x2688xf32, #tpu.memory_space<vmem>>, vector<16x384xf32>,
    %c0_49 = arith.constant 0 : index
    %c0_50 = arith.constant 0 : index
    %35 = vector.load %arg2[%c0_49, %c0_50] : memref<256x16xf32, #tpu.memory_space<vmem>>, vector<256x16xf32>
    %c0_51 = arith.constant 0 : index
    %c0_52 = arith.constant 0 : index
    %36 = vector.load %arg6[%c0_51, %c0_52] : memref<16x2688xf32, #tpu.memory_space<vmem>>, vector<16x2688xf32>
    %cst_53 = arith.constant dense<0.000000e+00> : vector<256x2688xf32>
    %37 = tpu.matmul %35, %36, %cst_53 {dimension_numbers = #tpu.dot_dimension_numbers<[1], [0], [0], [1], [0, 0, 1, 1], [], []>} : vector<256x16xf32>, vector<16x2688xf32>, vector<256x2688xf32> -> vector<256x2688xf32>
    %38 = vector.extract_strided_slice %37 {offsets = [0, 0], sizes = [256, 128], strides = [1, 1]} : vector<256x2688xf32> to vector<256x128xf32>
    %c0_i32 = arith.constant 0 : i32
    %39 = vector.broadcast %c0_i32 : i32 to vector<256x128xi32>
    %40 = vector.extract_strided_slice %37 {offsets = [0, 384], sizes = [256, 128], strides = [1, 1]} : vector<256x2688xf32> to vector<256x128xf32>
    %41 = arith.cmpf ogt, %40, %38 : vector<256x128xf32>
    %42 = arith.select %41, %40, %38 : vector<256x128xi1>, vector<256x128xf32>
    %c1_i32 = arith.constant 1 : i32
    %43 = vector.broadcast %c1_i32 : i32 to vector<256x128xi32>
    %44 = arith.select %41, %43, %39 : vector<256x128xi1>, vector<256x128xi32>
    %45 = vector.extract_strided_slice %37 {offsets = [0, 768], sizes = [256, 128], strides = [1, 1]} : vector<256x2688xf32> to vector<256x128xf32>
    %46 = arith.cmpf ogt, %45, %42 : vector<256x128xf32>
    %47 = arith.select %46, %45, %42 : vector<256x128xi1>, vector<256x128xf32>
    %c2_i32 = arith.constant 2 : i32
    %48 = vector.broadcast %c2_i32 : i32 to vector<256x128xi32>
    %49 = arith.select %46, %48, %44 : vector<256x128xi1>, vector<256x128xi32>
    %50 = vector.extract_strided_slice %37 {offsets = [0, 1152], sizes = [256, 128], strides = [1, 1]} : vector<256x2688xf32> to vector<256x128xf32>
    %51 = arith.cmpf ogt, %50, %47 : vector<256x128xf32>
    %52 = arith.select %51, %50, %47 : vector<256x128xi1>, vector<256x128xf32>
    %c3_i32 = arith.constant 3 : i32
    %53 = vector.broadcast %c3_i32 : i32 to vector<256x128xi32>
    %54 = arith.select %51, %53, %49 : vector<256x128xi1>, vector<256x128xi32>
    %55 = vector.extract_strided_slice %37 {offsets = [0, 1536], sizes = [256, 128], strides = [1, 1]} : vector<256x2688xf32> to vector<256x128xf32>
    %56 = arith.cmpf ogt, %55, %52 : vector<256x128xf32>
    %57 = arith.select %56, %55, %52 : vector<256x128xi1>, vector<256x128xf32>
    %c4_i32 = arith.constant 4 : i32
    %58 = vector.broadcast %c4_i32 : i32 to vector<256x128xi32>
    %59 = arith.select %56, %58, %54 : vector<256x128xi1>, vector<256x128xi32>
    %60 = vector.extract_strided_slice %37 {offsets = [0, 1920], sizes = [256, 128], strides = [1, 1]} : vector<256x2688xf32> to vector<256x128xf32>
    %61 = arith.cmpf ogt, %60, %57 : vector<256x128xf32>
    %62 = arith.select %61, %60, %57 : vector<256x128xi1>, vector<256x128xf32>
    %c5_i32 = arith.constant 5 : i32
    %63 = vector.broadcast %c5_i32 : i32 to vector<256x128xi32>
    %64 = arith.select %61, %63, %59 : vector<256x128xi1>, vector<256x128xi32>
    %65 = vector.extract_strided_slice %37 {offsets = [0, 2304], sizes = [256, 128], strides = [1, 1]} : vector<256x2688xf32> to vector<256x128xf32>
    %66 = arith.cmpf ogt, %65, %62 : vector<256x128xf32>
    %c6_i32 = arith.constant 6 : i32
    %67 = vector.broadcast %c6_i32 : i32 to vector<256x128xi32>
    %68 = arith.select %66, %67, %64 : vector<256x128xi1>, vector<256x128xi32>
    %c0_54 = arith.constant 0 : index
    %c0_55 = arith.constant 0 : index
    %c0_56 = arith.constant 0 : index
    %69 = vector.load %arg5[%c0_54, %c0_55, %c0_56] : memref<1x256x384xi32, #tpu.memory_space<vmem>>, vector<1x256x128xi32>
    %70 = vector.shape_cast %69 : vector<1x256x128xi32> to vector<256x128xi32>
    %71 = vector.shape_cast %68 : vector<256x128xi32> to vector<1x256x128xi32>
    tpu.vector_store %arg5[%c0_54, %c0_55, %c0_56], %71 {strides = array<i32>} : memref<1x256x384xi32, #tpu.memory_space<vmem>>, vector<1x256x128xi32>,
    %72 = vector.extract_strided_slice %37 {offsets = [0, 128], sizes = [256, 128], strides = [1, 1]} : vector<256x2688xf32> to vector<256x128xf32>
    %c0_i32_57 = arith.constant 0 : i32
    %73 = vector.broadcast %c0_i32_57 : i32 to vector<256x128xi32>
    %74 = vector.extract_strided_slice %37 {offsets = [0, 512], sizes = [256, 128], strides = [1, 1]} : vector<256x2688xf32> to vector<256x128xf32>
    %75 = arith.cmpf ogt, %74, %72 : vector<256x128xf32>
    %76 = arith.select %75, %74, %72 : vector<256x128xi1>, vector<256x128xf32>
    %c1_i32_58 = arith.constant 1 : i32
    %77 = vector.broadcast %c1_i32_58 : i32 to vector<256x128xi32>
    %78 = arith.select %75, %77, %73 : vector<256x128xi1>, vector<256x128xi32>
    %79 = vector.extract_strided_slice %37 {offsets = [0, 896], sizes = [256, 128], strides = [1, 1]} : vector<256x2688xf32> to vector<256x128xf32>
    %80 = arith.cmpf ogt, %79, %76 : vector<256x128xf32>
    %81 = arith.select %80, %79, %76 : vector<256x128xi1>, vector<256x128xf32>
    %c2_i32_59 = arith.constant 2 : i32
    %82 = vector.broadcast %c2_i32_59 : i32 to vector<256x128xi32>
    %83 = arith.select %80, %82, %78 : vector<256x128xi1>, vector<256x128xi32>
    %84 = vector.extract_strided_slice %37 {offsets = [0, 1280], sizes = [256, 128], strides = [1, 1]} : vector<256x2688xf32> to vector<256x128xf32>
    %85 = arith.cmpf ogt, %84, %81 : vector<256x128xf32>
    %86 = arith.select %85, %84, %81 : vector<256x128xi1>, vector<256x128xf32>
    %c3_i32_60 = arith.constant 3 : i32
    %87 = vector.broadcast %c3_i32_60 : i32 to vector<256x128xi32>
    %88 = arith.select %85, %87, %83 : vector<256x128xi1>, vector<256x128xi32>
    %89 = vector.extract_strided_slice %37 {offsets = [0, 1664], sizes = [256, 128], strides = [1, 1]} : vector<256x2688xf32> to vector<256x128xf32>
    %90 = arith.cmpf ogt, %89, %86 : vector<256x128xf32>
    %91 = arith.select %90, %89, %86 : vector<256x128xi1>, vector<256x128xf32>
    %c4_i32_61 = arith.constant 4 : i32
    %92 = vector.broadcast %c4_i32_61 : i32 to vector<256x128xi32>
    %93 = arith.select %90, %92, %88 : vector<256x128xi1>, vector<256x128xi32>
    %94 = vector.extract_strided_slice %37 {offsets = [0, 2048], sizes = [256, 128], strides = [1, 1]} : vector<256x2688xf32> to vector<256x128xf32>
    %95 = arith.cmpf ogt, %94, %91 : vector<256x128xf32>
    %96 = arith.select %95, %94, %91 : vector<256x128xi1>, vector<256x128xf32>
    %c5_i32_62 = arith.constant 5 : i32
    %97 = vector.broadcast %c5_i32_62 : i32 to vector<256x128xi32>
    %98 = arith.select %95, %97, %93 : vector<256x128xi1>, vector<256x128xi32>
    %99 = vector.extract_strided_slice %37 {offsets = [0, 2432], sizes = [256, 128], strides = [1, 1]} : vector<256x2688xf32> to vector<256x128xf32>
    %100 = arith.cmpf ogt, %99, %96 : vector<256x128xf32>
    %c6_i32_63 = arith.constant 6 : i32
    %101 = vector.broadcast %c6_i32_63 : i32 to vector<256x128xi32>
    %102 = arith.select %100, %101, %98 : vector<256x128xi1>, vector<256x128xi32>
    %c0_64 = arith.constant 0 : index
    %c0_65 = arith.constant 0 : index
    %c128 = arith.constant 128 : index
    %103 = vector.load %arg5[%c0_64, %c0_65, %c128] : memref<1x256x384xi32, #tpu.memory_space<vmem>>, vector<1x256x128xi32>
    %104 = vector.shape_cast %103 : vector<1x256x128xi32> to vector<256x128xi32>
    %105 = vector.shape_cast %102 : vector<256x128xi32> to vector<1x256x128xi32>
    tpu.vector_store %arg5[%c0_64, %c0_65, %c128], %105 {strides = array<i32>} : memref<1x256x384xi32, #tpu.memory_space<vmem>>, vector<1x256x128xi32>,
    %106 = vector.extract_strided_slice %37 {offsets = [0, 256], sizes = [256, 128], strides = [1, 1]} : vector<256x2688xf32> to vector<256x128xf32>
    %c0_i32_66 = arith.constant 0 : i32
    %107 = vector.broadcast %c0_i32_66 : i32 to vector<256x128xi32>
    %108 = vector.extract_strided_slice %37 {offsets = [0, 640], sizes = [256, 128], strides = [1, 1]} : vector<256x2688xf32> to vector<256x128xf32>
    %109 = arith.cmpf ogt, %108, %106 : vector<256x128xf32>
    %110 = arith.select %109, %108, %106 : vector<256x128xi1>, vector<256x128xf32>
    %c1_i32_67 = arith.constant 1 : i32
    %111 = vector.broadcast %c1_i32_67 : i32 to vector<256x128xi32>
    %112 = arith.select %109, %111, %107 : vector<256x128xi1>, vector<256x128xi32>
    %113 = vector.extract_strided_slice %37 {offsets = [0, 1024], sizes = [256, 128], strides = [1, 1]} : vector<256x2688xf32> to vector<256x128xf32>
    %114 = arith.cmpf ogt, %113, %110 : vector<256x128xf32>
    %115 = arith.select %114, %113, %110 : vector<256x128xi1>, vector<256x128xf32>
    %c2_i32_68 = arith.constant 2 : i32
    %116 = vector.broadcast %c2_i32_68 : i32 to vector<256x128xi32>
    %117 = arith.select %114, %116, %112 : vector<256x128xi1>, vector<256x128xi32>
    %118 = vector.extract_strided_slice %37 {offsets = [0, 1408], sizes = [256, 128], strides = [1, 1]} : vector<256x2688xf32> to vector<256x128xf32>
    %119 = arith.cmpf ogt, %118, %115 : vector<256x128xf32>
    %120 = arith.select %119, %118, %115 : vector<256x128xi1>, vector<256x128xf32>
    %c3_i32_69 = arith.constant 3 : i32
    %121 = vector.broadcast %c3_i32_69 : i32 to vector<256x128xi32>
    %122 = arith.select %119, %121, %117 : vector<256x128xi1>, vector<256x128xi32>
    %123 = vector.extract_strided_slice %37 {offsets = [0, 1792], sizes = [256, 128], strides = [1, 1]} : vector<256x2688xf32> to vector<256x128xf32>
    %124 = arith.cmpf ogt, %123, %120 : vector<256x128xf32>
    %125 = arith.select %124, %123, %120 : vector<256x128xi1>, vector<256x128xf32>
    %c4_i32_70 = arith.constant 4 : i32
    %126 = vector.broadcast %c4_i32_70 : i32 to vector<256x128xi32>
    %127 = arith.select %124, %126, %122 : vector<256x128xi1>, vector<256x128xi32>
    %128 = vector.extract_strided_slice %37 {offsets = [0, 2176], sizes = [256, 128], strides = [1, 1]} : vector<256x2688xf32> to vector<256x128xf32>
    %129 = arith.cmpf ogt, %128, %125 : vector<256x128xf32>
    %130 = arith.select %129, %128, %125 : vector<256x128xi1>, vector<256x128xf32>
    %c5_i32_71 = arith.constant 5 : i32
    %131 = vector.broadcast %c5_i32_71 : i32 to vector<256x128xi32>
    %132 = arith.select %129, %131, %127 : vector<256x128xi1>, vector<256x128xi32>
    %133 = vector.extract_strided_slice %37 {offsets = [0, 2560], sizes = [256, 128], strides = [1, 1]} : vector<256x2688xf32> to vector<256x128xf32>
    %134 = arith.cmpf ogt, %133, %130 : vector<256x128xf32>
    %c6_i32_72 = arith.constant 6 : i32
    %135 = vector.broadcast %c6_i32_72 : i32 to vector<256x128xi32>
    %136 = arith.select %134, %135, %132 : vector<256x128xi1>, vector<256x128xi32>
    %c0_73 = arith.constant 0 : index
    %c0_74 = arith.constant 0 : index
    %c256 = arith.constant 256 : index
    %137 = vector.load %arg5[%c0_73, %c0_74, %c256] : memref<1x256x384xi32, #tpu.memory_space<vmem>>, vector<1x256x128xi32>
    %138 = vector.shape_cast %137 : vector<1x256x128xi32> to vector<256x128xi32>
    %139 = vector.shape_cast %136 : vector<256x128xi32> to vector<1x256x128xi32>
    tpu.vector_store %arg5[%c0_73, %c0_74, %c256], %139 {strides = array<i32>} : memref<1x256x384xi32, #tpu.memory_space<vmem>>, vector<1x256x128xi32>,
    return
  }
  func.func @transform_0(%arg0: i32, %arg1: i32) -> (i32, i32) {
    %c0_i32 = arith.constant 0 : i32
    %c0_i32_0 = arith.constant 0 : i32
    return %arg1, %c0_i32 : i32, i32
  }
  func.func @transform_1(%arg0: i32, %arg1: i32) -> (i32, i32, i32, i32) {
    %c0_i32 = arith.constant 0 : i32
    %c0_i32_0 = arith.constant 0 : i32
    %c0_i32_1 = arith.constant 0 : i32
    %c0_i32_2 = arith.constant 0 : i32
    return %c0_i32, %arg0, %c0_i32_0, %c0_i32_1 : i32, i32, i32, i32
  }
  func.func @transform_2(%arg0: i32, %arg1: i32) -> (i32, i32) {
    %c0_i32 = arith.constant 0 : i32
    %c0_i32_0 = arith.constant 0 : i32
    %c0_i32_1 = arith.constant 0 : i32
    return %c0_i32, %c0_i32_0 : i32, i32
  }
  func.func @transform_3(%arg0: i32, %arg1: i32) -> (i32, i32, i32) {
    %c0_i32 = arith.constant 0 : i32
    %c0_i32_0 = arith.constant 0 : i32
    return %arg0, %arg1, %c0_i32 : i32, i32, i32
  }
}

</mosaic_0001>

<bundles_post_ra>
// kernel: parse_model_forward.3
= control target key start
LH: loop header
LB: loop body
LE: loop exit
PB: predicated region body
PF: predicated region fallthrough
CT: control target
= control target key end

     0   :  { %vm67_vm0 = vcmask 1042432   ;;  %v496_v3 = vmov 0.0   ;;  %v497_v8 = vmov 0   ;;  %vm498_vm1 = vmmov 1   ;;  %s712_s1 = inlined_call_operand.vmem [shape: f32[27,1024], index: 1, kind: input, shape index: {}]   ;;  %s713_s0 = inlined_call_operand.vmem [shape: f32[16,27], index: 0, kind: input, shape index: {}]   ;;  %s714_s2 = inlined_call_operand.vmem [shape: f32[16,1], index: 2, kind: input, shape index: {}]   ;;  %s715_s3 = inlined_call_operand.vmem [shape: f32[16,1024], index: 3, kind: output, shape index: {}]  }
   0x1   :  { %v17_v0 = vld [vmem:[%s712_s1 + $0x8] sm:$0xff]  ;;  %v19_v2 = vld [vmem:[%s712_s1 + $0x18] sm:$0xff]  ;;  %156 = vmatprep.mubr.f32.mxu0 %v496_v3  ;;  %233 = vmatprep.mubr.f32.mxu1 %v496_v3  ;;  %v16_v6 = vld [vmem:[%s712_s1] sm:$0xff]  ;;  %vm60_vm3 = vcmask 220160  }
   0x2   :  { %v25_v1 = vld [vmem:[%s712_s1 + $0x48] sm:$0xff]  ;;  %v27_v5 = vld [vmem:[%s712_s1 + $0x58] sm:$0xff]  ;;  %v24_v7 = vld [vmem:[%s712_s1 + $0x40] sm:$0xff]  ;;  %495 = vset.pattern.permute.xlu0 %v497_v8 }
   0x3   :  { %v452_v4 = vpack.c.bf16 %v25_v1, %v17_v0  ;;  %v462_v9 = vpack.c.bf16 %v27_v5, %v19_v2  ;;  %v454_v10 = vpack.c.bf16 %v24_v7, %v16_v6  ;;  %v18_v11 = vld [vmem:[%s712_s1 + $0x10] sm:$0xff]  ;;  %v33_v13 = vld [vmem:[%s712_s1 + $0x88] sm:$0xff]  ;;  %vm552_vm2 = vmpackc.low %vm67_vm0, %vm498_vm1 }
   0x4   :  { %v26_v12 = vld [vmem:[%s712_s1 + $0x50] sm:$0xff]  ;;  %v41_v15 = vld [vmem:[%s712_s1 + $0xc8] sm:$0x7]  ;;  %v35_v17 = vld [vmem:[%s712_s1 + $0x98] sm:$0xff] }
   0x5   :  { %453 = vmatprep.subr.bf16.mxu0 %v452_v4  ;;  %v464_v14 = vpack.c.bf16 %v26_v12, %v18_v11  ;;  %463 = vmatprep.subr.bf16.mxu1 %v462_v9  ;;  %v456_v18 = vpack.c.bf16 %v41_v15, %v33_v13  ;;  %v43_v19 = vld [vmem:[%s712_s1 + $0xd8] sm:$0x7]  ;;  %v32_v20 = vld [vmem:[%s712_s1 + $0x80] sm:$0xff]  ;;  %v34_v24 = vld [vmem:[%s712_s1 + $0x90] sm:$0xff] }
   0x6   :  { %455 = vmatpush1.bf16.msra.mxu0 %v454_v10  ;;  %v40_v21 = vld [vmem:[%s712_s1 + $0xc0] sm:$0x7]  ;;  %v466_v22 = vpack.c.bf16 %v43_v19, %v35_v17  ;;  %v42_v25 = vld [vmem:[%s712_s1 + $0xd0] sm:$0x7]  ;;  %v21_v27 = vld [vmem:[%s712_s1 + $0x28] sm:$0xff] }
   0x7   :  { %465 = vmatpush1.bf16.msra.mxu1 %v464_v14  ;;  %v459_v23 = vpack.c.bf16 %v40_v21, %v32_v20  ;;  %458 = vmatprep.subr.msk.bf16.mxu0 %vm552_vm2, %v456_v18  ;;  %v469_v26 = vpack.c.bf16 %v42_v25, %v34_v24  ;;  %v29_v28 = vld [vmem:[%s712_s1 + $0x68] sm:$0xff]  ;;  %v23_v29 = vld [vmem:[%s712_s1 + $0x38] sm:$0xff]  ;;  %v20_v32 = vld [vmem:[%s712_s1 + $0x20] sm:$0xff] }
   0x8   :  { %468 = vmatprep.subr.msk.bf16.mxu1 %vm552_vm2, %v466_v22  ;;  %v472_v30 = vpack.c.bf16 %v29_v28, %v21_v27  ;;  %v31_v31 = vld [vmem:[%s712_s1 + $0x78] sm:$0xff]  ;;  %v28_v33 = vld [vmem:[%s712_s1 + $0x60] sm:$0xff]  ;;  %v22_v37 = vld [vmem:[%s712_s1 + $0x30] sm:$0xff] }
   0x9   :  { %v14_v34 = vld [vmem:[%s713_s0] sm:$0xff]  ;;  %v482_v35 = vpack.c.bf16 %v31_v31, %v23_v29  ;;  %v474_v36 = vpack.c.bf16 %v28_v33, %v20_v32  ;;  %v30_v38 = vld [vmem:[%s712_s1 + $0x70] sm:$0xff]  ;;  %v37_v40 = vld [vmem:[%s712_s1 + $0xa8] sm:$0xff] }
   0xa   :  { %461 = vmatpush1.bf16.msk.msra.mxu0 %vm552_vm2, %v459_v23  ;;  %v484_v39 = vpack.c.bf16 %v30_v38, %v22_v37  ;;  %v45_v41 = vld [vmem:[%s712_s1 + $0xe8] sm:$0x7]  ;;  %v39_v42 = vld [vmem:[%s712_s1 + $0xb8] sm:$0xff]  ;;  %v36_v45 = vld [vmem:[%s712_s1 + $0xa0] sm:$0xff] }
   0xb   :  { %471 = vmatpush1.bf16.msk.msra.mxu1 %vm552_vm2, %v469_v26  ;;  %473 = vmatprep.subr.bf16.mxu0 %v472_v30  ;;  %v476_v43 = vpack.c.bf16 %v45_v41, %v37_v40  ;;  %v47_v44 = vld [vmem:[%s712_s1 + $0xf8] sm:$0x7]  ;;  %v44_v46 = vld [vmem:[%s712_s1 + $0xe0] sm:$0x7]  ;;  %v38_v48 = vld [vmem:[%s712_s1 + $0xb0] sm:$0xff] }
   0xc   :  { %483 = vmatprep.subr.bf16.mxu1 %v482_v35  ;;  %v486_v47 = vpack.c.bf16 %v47_v44, %v39_v42  ;;  %v46_v49 = vld [vmem:[%s712_s1 + $0xf0] sm:$0x7]  ;;  %v15_v50 = vld [vmem:[%s713_s0 + $0x8] sm:$0xff]  ;;  %v479_v51 = vpack.c.bf16 %v44_v46, %v36_v45  ;;  %v48_v53 = vld [vmem:[%s714_s2] sm:$0xff] }
   0xd   :  { %438 = vmatmul.mubr.msk.f32.vlgmr.msra.gmra.mrb[0].mxu0 %vm60_vm3, %v14_v34  ;;  %v489_v52 = vpack.c.bf16 %v46_v49, %v38_v48  ;;  %52 = vperm.xlu0 %495, %v48_v53   ;;  %v49_v54 = vld [vmem:[%s714_s2 + $0x8] sm:$0xff] }
   0xe   :  { %442 = vmatmul.mubr.msk.f32.vlgmr.msra.gmra.mrb[0].mxu1 %vm60_vm3, %v14_v34  ;;  %475 = vmatpush1.bf16.msra.mxu0 %v474_v36 }
   0xf   :  { %485 = vmatpush1.bf16.msra.mxu1 %v484_v39  ;;  %162 = vmatprep.mubr.f32.mxu0 %v496_v3 }
  0x10   :  { %239 = vmatprep.mubr.f32.mxu1 %v496_v3  ;;  %478 = vmatprep.subr.msk.bf16.mxu0 %vm552_vm2, %v476_v43 }
  0x11   :  { %439 = vmatmul.mubr.msk.f32.gmra.mrb[2].mxu0 %vm60_vm3, %v15_v50  ;;  %488 = vmatprep.subr.msk.bf16.mxu1 %vm552_vm2, %v486_v47 }
  0x12   :  { %443 = vmatmul.mubr.msk.f32.gmra.mrb[2].mxu1 %vm60_vm3, %v15_v50  ;;  %481 = vmatpush1.bf16.msk.msra.mxu0 %vm552_vm2, %v479_v51 }
  0x13   :  { %491 = vmatpush1.bf16.msk.msra.mxu1 %vm552_vm2, %v489_v52  ;;  %310 = vmatprep.mubr.f32.mxu0 %v496_v3 }
  0x14   :  { %387 = vmatprep.mubr.f32.mxu1 %v496_v3  ;;  %57 = vperm.xlu0 %495, %v49_v54  }
  0x15   :  { %446 = vmatmul.mubr.msk.f32.vlgmr.msra.gmra.mrb[4].mxu0 %vm60_vm3, %v14_v34 }
  0x16   :  { %450 = vmatmul.mubr.msk.f32.vlgmr.msra.gmra.mrb[4].mxu1 %vm60_vm3, %v14_v34  ;;  %316 = vmatprep.mubr.f32.mxu0 %v496_v3 }
  0x17   :  { %393 = vmatprep.mubr.f32.mxu1 %v496_v3 }
  0x19   :  { %447 = vmatmul.mubr.msk.f32.gmra.mrb[6].mxu0 %vm60_vm3, %v15_v50 }
  0x1a   :  { %451 = vmatmul.mubr.msk.f32.gmra.mrb[6].mxu1 %vm60_vm3, %v15_v50 }
  0x8c   :  { %v53_v55 = vpop.permute.xlu0 %52 }
  0x93   :  { %v58_v63 = vpop.permute.xlu0 %57 }
  0xe0   :  { %v158_v56 = vpop.f32.mrb[0].mxu0 }
  0xe1   :  { %v235_v57 = vpop.f32.mrb[0].mxu1  ;;  %v159_v58 = vadd.f32 %v158_v56, %v53_v55  ;;  %v160_v59 = vpop.f32.mrb[1].mxu0 }
  0xe2   :  { %v236_v60 = vadd.f32 %v235_v57, %v53_v55  ;;  %v161_v61 = vadd.f32 %v160_v59, %v53_v55  ;;  %v237_v62 = vpop.f32.mrb[1].mxu1 }
  0xe3   :  { %v400_v0 = vmax.f32 %v159_v58, 0.0  ;;  %v238_v1 = vadd.f32 %v237_v62, %v53_v55 }
  0xe4   :  { %v402_v2 = vmax.f32 %v236_v60, 0.0  ;;  %v401_v4 = vmax.f32 %v161_v61, 0.0  ;;  %v164_v5 = vpop.f32.mrb[2].mxu0 }
  0xe5   :  { %416 = vst [vmem:[%s715_s3] sm:$0xff] %v400_v0  ;;  %v403_v3 = vmax.f32 %v238_v1, 0.0  ;;  %v241_v6 = vpop.f32.mrb[2].mxu1  ;;  %v165_v7 = vadd.f32 %v164_v5, %v58_v63  ;;  %v166_v8 = vpop.f32.mrb[3].mxu0 }
  0xe6   :  { %418 = vst [vmem:[%s715_s3 + $0x10] sm:$0xff] %v402_v2  ;;  %417 = vst [vmem:[%s715_s3 + $0x8] sm:$0xff] %v401_v4  ;;  %v242_v9 = vadd.f32 %v241_v6, %v58_v63  ;;  %v167_v10 = vadd.f32 %v166_v8, %v58_v63  ;;  %v243_v11 = vpop.f32.mrb[3].mxu1 }
  0xe7   :  { %419 = vst [vmem:[%s715_s3 + $0x18] sm:$0xff] %v403_v3  ;;  %v408_v12 = vmax.f32 %v165_v7, 0.0  ;;  %v244_v13 = vadd.f32 %v243_v11, %v58_v63 }
  0xe8   :  { %v410_v14 = vmax.f32 %v242_v9, 0.0  ;;  %v409_v15 = vmax.f32 %v167_v10, 0.0  ;;  %v312_v16 = vpop.f32.mrb[4].mxu0 }
  0xe9   :  { %424 = vst [vmem:[%s715_s3 + $0x40] sm:$0xff] %v408_v12  ;;  %v411_v17 = vmax.f32 %v244_v13, 0.0  ;;  %v313_v18 = vadd.f32 %v312_v16, %v53_v55  ;;  %v389_v19 = vpop.f32.mrb[4].mxu1  ;;  %v314_v20 = vpop.f32.mrb[5].mxu0 }
  0xea   :  { %426 = vst [vmem:[%s715_s3 + $0x50] sm:$0xff] %v410_v14  ;;  %425 = vst [vmem:[%s715_s3 + $0x48] sm:$0xff] %v409_v15  ;;  %v390_v21 = vadd.f32 %v389_v19, %v53_v55  ;;  %v315_v22 = vadd.f32 %v314_v20, %v53_v55  ;;  %v391_v23 = vpop.f32.mrb[5].mxu1 }
  0xeb   :  { %427 = vst [vmem:[%s715_s3 + $0x58] sm:$0xff] %v411_v17  ;;  %v404_v24 = vmax.f32 %v313_v18, 0.0  ;;  %v392_v25 = vadd.f32 %v391_v23, %v53_v55 }
  0xec   :  { %v406_v26 = vmax.f32 %v390_v21, 0.0  ;;  %v405_v27 = vmax.f32 %v315_v22, 0.0  ;;  %v318_v28 = vpop.f32.mrb[6].mxu0 }
  0xed   :  { %420 = vst [vmem:[%s715_s3 + $0x20] sm:$0xff] %v404_v24  ;;  %v407_v29 = vmax.f32 %v392_v25, 0.0  ;;  %v319_v30 = vadd.f32 %v318_v28, %v58_v63  ;;  %v395_v31 = vpop.f32.mrb[6].mxu1  ;;  %v320_v32 = vpop.f32.mrb[7].mxu0 }
  0xee   :  { %422 = vst [vmem:[%s715_s3 + $0x30] sm:$0xff] %v406_v26  ;;  %421 = vst [vmem:[%s715_s3 + $0x28] sm:$0xff] %v405_v27  ;;  %v396_v33 = vadd.f32 %v395_v31, %v58_v63  ;;  %v321_v34 = vadd.f32 %v320_v32, %v58_v63  ;;  %v397_v35 = vpop.f32.mrb[7].mxu1 }
  0xef   :  { %423 = vst [vmem:[%s715_s3 + $0x38] sm:$0xff] %v407_v29  ;;  %v412_v36 = vmax.f32 %v319_v30, 0.0  ;;  %v398_v37 = vadd.f32 %v397_v35, %v58_v63 }
  0xf0   :  { %v414_v38 = vmax.f32 %v396_v33, 0.0  ;;  %v413_v39 = vmax.f32 %v321_v34, 0.0 }
  0xf1   :  { %428 = vst [vmem:[%s715_s3 + $0x60] sm:$0xff] %v412_v36  ;;  %v415_v40 = vmax.f32 %v398_v37, 0.0 }
  0xf2   :  { %430 = vst [vmem:[%s715_s3 + $0x70] sm:$0xff] %v414_v38  ;;  %429 = vst [vmem:[%s715_s3 + $0x68] sm:$0xff] %v413_v39 }
  0xf3   :  { %431 = vst [vmem:[%s715_s3 + $0x78] sm:$0xff] %v415_v40 }

// kernel: parse_model_forward.4
= control target key start
LH: loop header
LB: loop body
LE: loop exit
PB: predicated region body
PF: predicated region fallthrough
CT: control target
= control target key end

     0   :  { %v178_v3 = vmov 0   ;;  %vm58_vm0 = vcmask 130048   ;;  %s322_s1 = inlined_call_operand.vmem [shape: f32[144,256], index: 1, kind: input, shape index: {}]   ;;  %s323_s0 = inlined_call_operand.vmem [shape: f32[7,144], index: 0, kind: input, shape index: {}]   ;;  %s324_s2 = inlined_call_operand.vmem [shape: f32[7,1], index: 2, kind: input, shape index: {}]   ;;  %s325_s3 = inlined_call_operand.vmem [shape: f32[7,256], index: 3, kind: output, shape index: {}]  }
   0x1   :  { %v17_v0 = vld [vmem:[%s322_s1 + $0x8] sm:$0xff]  ;;  %v19_v1 = vld [vmem:[%s322_s1 + $0x18] sm:$0xff]  ;;  %v16_v2 = vld [vmem:[%s322_s1] sm:$0xff]  ;;  %177 = vset.pattern.permute.xlu0 %v178_v3 }
   0x2   :  { %v140_v4 = vpack.c.bf16 %v19_v1, %v17_v0  ;;  %v18_v5 = vld [vmem:[%s322_s1 + $0x10] sm:$0xff]  ;;  %v21_v6 = vld [vmem:[%s322_s1 + $0x28] sm:$0xff]  ;;  %v23_v7 = vld [vmem:[%s322_s1 + $0x38] sm:$0xff] }
   0x3   :  { %v142_v8 = vpack.c.bf16 %v18_v5, %v16_v2  ;;  %v144_v9 = vpack.c.bf16 %v23_v7, %v21_v6  ;;  %v20_v10 = vld [vmem:[%s322_s1 + $0x20] sm:$0xff]  ;;  %v22_v11 = vld [vmem:[%s322_s1 + $0x30] sm:$0xff]  ;;  %v25_v12 = vld [vmem:[%s322_s1 + $0x48] sm:$0xff] }
   0x4   :  { %141 = vmatprep.subr.bf16.mxu0 %v140_v4  ;;  %v27_v13 = vld [vmem:[%s322_s1 + $0x58] sm:$0xff]  ;;  %v146_v14 = vpack.c.bf16 %v22_v11, %v20_v10  ;;  %v24_v16 = vld [vmem:[%s322_s1 + $0x40] sm:$0xff]  ;;  %v26_v17 = vld [vmem:[%s322_s1 + $0x50] sm:$0xff] }
   0x5   :  { %143 = vmatpush1.bf16.msra.mxu0 %v142_v8  ;;  %v148_v15 = vpack.c.bf16 %v27_v13, %v25_v12  ;;  %v29_v18 = vld [vmem:[%s322_s1 + $0x68] sm:$0xff]  ;;  %v31_v19 = vld [vmem:[%s322_s1 + $0x78] sm:$0xff]  ;;  %v150_v20 = vpack.c.bf16 %v26_v17, %v24_v16  ;;  %v28_v22 = vld [vmem:[%s322_s1 + $0x60] sm:$0xff] }
   0x6   :  { %145 = vmatprep.subr.bf16.mxu0 %v144_v9  ;;  %v152_v21 = vpack.c.bf16 %v31_v19, %v29_v18  ;;  %v30_v23 = vld [vmem:[%s322_s1 + $0x70] sm:$0xff]  ;;  %v33_v24 = vld [vmem:[%s322_s1 + $0x88] sm:$0xff]  ;;  %v35_v25 = vld [vmem:[%s322_s1 + $0x98] sm:$0xff] }
   0x7   :  { %v154_v26 = vpack.c.bf16 %v30_v23, %v28_v22  ;;  %v15_v27 = vld [vmem:[%s323_s0 + $0x8] sm:$0x7f]  ;;  %v52_v28 = vld [vmem:[%s324_s2] sm:$0x7f]  ;;  %v156_v29 = vpack.c.bf16 %v35_v25, %v33_v24  ;;  %v34_v31 = vld [vmem:[%s322_s1 + $0x90] sm:$0xff] }
   0x8   :  { %v32_v30 = vld [vmem:[%s322_s1 + $0x80] sm:$0xff]  ;;  %139 = vmatprep.mubr.msk.f32.mxu0 %vm58_vm0, %v15_v27  ;;  %v37_v32 = vld [vmem:[%s322_s1 + $0xa8] sm:$0xff]  ;;  %v39_v33 = vld [vmem:[%s322_s1 + $0xb8] sm:$0xff]  ;;  %55 = vperm.xlu0 %177, %v52_v28  }
   0x9   :  { %147 = vmatpush1.bf16.msra.mxu0 %v146_v14  ;;  %v158_v34 = vpack.c.bf16 %v34_v31, %v32_v30  ;;  %v160_v35 = vpack.c.bf16 %v39_v33, %v37_v32  ;;  %v36_v36 = vld [vmem:[%s322_s1 + $0xa0] sm:$0xff]  ;;  %v38_v37 = vld [vmem:[%s322_s1 + $0xb0] sm:$0xff]  ;;  %v41_v38 = vld [vmem:[%s322_s1 + $0xc8] sm:$0xff] }
   0xa   :  { %149 = vmatprep.subr.bf16.mxu0 %v148_v15  ;;  %v43_v39 = vld [vmem:[%s322_s1 + $0xd8] sm:$0xff]  ;;  %v162_v40 = vpack.c.bf16 %v38_v37, %v36_v36  ;;  %v40_v42 = vld [vmem:[%s322_s1 + $0xc0] sm:$0xff]  ;;  %v42_v43 = vld [vmem:[%s322_s1 + $0xd0] sm:$0xff] }
   0xb   :  { %v164_v41 = vpack.c.bf16 %v43_v39, %v41_v38  ;;  %v45_v44 = vld [vmem:[%s322_s1 + $0xe8] sm:$0xff]  ;;  %v47_v45 = vld [vmem:[%s322_s1 + $0xf8] sm:$0xff]  ;;  %v166_v46 = vpack.c.bf16 %v42_v43, %v40_v42  ;;  %v44_v48 = vld [vmem:[%s322_s1 + $0xe0] sm:$0xff] }
   0xc   :  { %v168_v47 = vpack.c.bf16 %v47_v45, %v45_v44  ;;  %v46_v49 = vld [vmem:[%s322_s1 + $0xf0] sm:$0xff]  ;;  %v49_v50 = vld [vmem:[%s322_s1 + $0x108] sm:$0xff]  ;;  %v51_v51 = vld [vmem:[%s322_s1 + $0x118] sm:$0xff] }
   0xd   :  { %151 = vmatpush1.bf16.msra.mxu0 %v150_v20  ;;  %v170_v52 = vpack.c.bf16 %v46_v49, %v44_v48  ;;  %v172_v53 = vpack.c.bf16 %v51_v51, %v49_v50  ;;  %v48_v54 = vld [vmem:[%s322_s1 + $0x100] sm:$0xff]  ;;  %v50_v55 = vld [vmem:[%s322_s1 + $0x110] sm:$0xff] }
   0xe   :  { %153 = vmatprep.subr.bf16.mxu0 %v152_v21  ;;  %v174_v56 = vpack.c.bf16 %v50_v55, %v48_v54  ;;  %v14_v57 = vld [vmem:[%s323_s0] sm:$0x7f] }
  0x11   :  { %155 = vmatpush1.bf16.msra.mxu0 %v154_v26 }
  0x12   :  { %157 = vmatprep.subr.bf16.mxu0 %v156_v29 }
  0x15   :  { %159 = vmatpush1.bf16.msra.mxu0 %v158_v34 }
  0x16   :  { %161 = vmatprep.subr.bf16.mxu0 %v160_v35 }
  0x19   :  { %163 = vmatpush1.bf16.msra.mxu0 %v162_v40 }
  0x1a   :  { %165 = vmatprep.subr.bf16.mxu0 %v164_v41 }
  0x1d   :  { %167 = vmatpush1.bf16.msra.mxu0 %v166_v46 }
  0x1e   :  { %169 = vmatprep.subr.bf16.mxu0 %v168_v47 }
  0x21   :  { %171 = vmatpush1.bf16.msra.mxu0 %v170_v52 }
  0x22   :  { %173 = vmatprep.subr.bf16.mxu0 %v172_v53 }
  0x25   :  { %175 = vmatpush1.bf16.msra.mxu0 %v174_v56 }
  0x28   :  { %127 = vmatmul.mubr.f32.vlgmr.msra.gmra.mrb[0].mxu0 %v14_v57 }
  0x87   :  { %v56_v58 = vpop.permute.xlu0 %55 }
  0xfb   :  { %v128_v59 = vpop.f32.mrb[0].mxu0 }
  0xfc   :  { %v129_v60 = vadd.f32 %v128_v59, %v56_v58  ;;  %v130_v61 = vpop.f32.mrb[1].mxu0 }
  0xfd   :  { %v131_v62 = vadd.f32 %v130_v61, %v56_v58 }
  0xfe   :  { %133 = vst [vmem:[%s325_s3] sm:$0x7f] %v129_v60 }
  0xff   :  { %134 = vst [vmem:[%s325_s3 + $0x8] sm:$0x7f] %v131_v62 }

// kernel: parse_model_forward.5
= control target key start
LH: loop header
LB: loop body
LE: loop exit
PB: predicated region body
PF: predicated region fallthrough
CT: control target
= control target key end

     0   :  { %s7062_s12 = smov 0   ;;  %s7064_s13 = smov 0   ;;  %s13221_s0 = inlined_call_operand.vmem [shape: f32[512,16], index: 0, kind: input, shape index: {}]   ;;  %s13222_s1 = inlined_call_operand.vmem [shape: f32[7,1,16,16], index: 1, kind: input, shape index: {}]   ;;  %s13223_s2 = inlined_call_operand.vmem [shape: f32[16,384], index: 2, kind: input, shape index: {}]   ;;  %s13224_s3 = inlined_call_operand.vmem [shape: s32[1,512,384], index: 3, kind: output, shape index: {}]  }
   0x1   :  { %s7066_s14 = smov 0  }
   0x2 LB: > { %s22_s15 = sadd.s32 1, %s7034_s13  ;;  %p6229_p0 = scmp.ge.s32.totalorder %s7038_s14, 1  ;;  %s7038_s14 = sphi %s7066_s14, %s13_s14   ;;  %s7034_s13 = sphi %s7064_s13, %s15350_s13   ;;  %s7030_s12 = sphi %s7062_s12, %s15349_s12  }
   0x3   : > { %p23_p1 = scmp.ge.s32.totalorder %s22_s15, 2  ;;  %p162_p2 = scmp.lt.s32.totalorder %s7038_s14, 3 }
   0x5   : > { %s15352_s15 = smov (%p23_p1, %s22_s15), 0  ;;  %p163_p3 = pnand %p6229_p0, %p162_p2 }
   0x7   : > { %166 = sbr.rel (%p163_p3) target bundleno = 1148 (0x47c), region = 32 }
   0xe   : > { %v221_v0 = vld [vmem:[%s13223_s2 + $0x8] sm:$0xff]  ;;  %v224_v1 = vld [vmem:[%s13223_s2 + $0x20] sm:$0xff]  ;;  %v222_v2 = vld [vmem:[%s13223_s2 + $0x10] sm:$0xff]  ;;  %v13283_v7 = vmov 0.0   ;;  %vm226_vm0 = vcmask 130048   ;;  %s6230_s6 = sshll.u32 %s7030_s12, 5 }
   0xf   : > { %v7091_v3 = vpack.c.bf16 %v224_v1, %v221_v0  ;;  %v225_v4 = vld [vmem:[%s13223_s2 + $0x28] sm:$0xff]  ;;  %v220_v5 = vld [vmem:[%s13223_s2] sm:$0xff]  ;;  %v223_v6 = vld [vmem:[%s13223_s2 + $0x18] sm:$0xff]  ;;  %297 = vmatprep.mubr.f32.mxu0 %v13283_v7  ;;  %p197_p4 = scmp.lt.s32.totalorder %s6230_s6, 63 }
  0x10   : > { %v7103_v8 = vpack.c.bf16 %v225_v4, %v222_v2  ;;  %v7105_v9 = vpack.c.bf16 %v223_v6, %v220_v5  ;;  %v218_v10 = vld [vmem:[%s13222_s1] sm:$0xff]  ;;  %v219_v11 = vld [vmem:[%s13222_s1 + $0x8] sm:$0xff]  ;;  %v6238_v12 = vld [vmem:[%s13222_s1 + $0x10] sm:$0xff] }
  0x11   : > { %6792 = vmatprep.subr.bf16.mxu0 %v7091_v3  ;;  %6694 = vmatprep.mubr.msk.f32.mxu1 %vm226_vm0, %v218_v10  ;;  %v6239_v13 = vld [vmem:[%s13222_s1 + $0x18] sm:$0xff]  ;;  %v6244_v14 = vld [vmem:[%s13222_s1 + $0x20] sm:$0xff]  ;;  %v6245_v15 = vld [vmem:[%s13222_s1 + $0x28] sm:$0xff]  ;;  %s15354_s6 = smov (!%p197_p4, %s6230_s6), 63 }
  0x12   : > { %6796 = vmatprep.subr.bf16.mxu1 %v7103_v8  ;;  %6794 = vmatpush1.bf16.msra.mxu0 %v7105_v9  ;;  %v6250_v16 = vld [vmem:[%s13222_s1 + $0x30] sm:$0xff]  ;;  %v6251_v17 = vld [vmem:[%s13222_s1 + $0x38] sm:$0xff]  ;;  %v6256_v18 = vld [vmem:[%s13222_s1 + $0x40] sm:$0xff]  ;;  %s6231_s7 = sshll.u32 %s15354_s6, 3  ;;  %s6893_s10 = smul.u32 24, %s15354_s6 }
  0x13   : > { %6798 = vmatpush3.bf16.msra.mxu1 %v7103_v8  ;;  %6804 = vmatprep.subr.bf16.mxu0 %v7103_v8  ;;  %v6257_v19 = vld [vmem:[%s13222_s1 + $0x48] sm:$0xff]  ;;  %v6262_v20 = vld [vmem:[%s13222_s1 + $0x50] sm:$0xff]  ;;  %v6263_v21 = vld [vmem:[%s13222_s1 + $0x58] sm:$0xff]  ;;  %s7227_s12 = scalar_lea.vmem %s13221_s0, %s6231_s7 }
  0x14   : > { %6800 = vmatprep.subr.bf16.mxu1 %v7091_v3  ;;  %v6268_v22 = vld [vmem:[%s13222_s1 + $0x60] sm:$0xff]  ;;  %v6269_v23 = vld [vmem:[%s13222_s1 + $0x68] sm:$0xff]  ;;  %v7233_v42 = vld [vmem:[%s7227_s12 + $0x38] sm:$0xff]  ;;  %s12661_s17 = scalar_lea.vmem %s13224_s3, %s6893_s10 }
  0x15   : > { %6234 = vmatmul.mubr.msk.f32.vlgmr.msra.gmra.mrb[0].mxu0 %vm226_vm0, %v218_v10  ;;  %v7230_v38 = vld [vmem:[%s7227_s12] sm:$0xff]  ;;  %v7242_v45 = vld [vmem:[%s7227_s12 + $0x8] sm:$0xff]  ;;  %v7261_v52 = vld [vmem:[%s7227_s12 + $0x10] sm:$0xff] }
  0x16   : > { %6695 = vmatmul.mubr.msk.f32.vlgmr.msra.gmra.mrb[0].mxu1 %vm226_vm0, %v219_v11  ;;  %303 = vmatprep.mubr.f32.mxu0 %v13283_v7  ;;  %v7247_v48 = vld [vmem:[%s7227_s12 + $0x40] sm:$0xff]  ;;  %v7266_v56 = vld [vmem:[%s7227_s12 + $0x48] sm:$0xff]  ;;  %v7276_v59 = vld [vmem:[%s7227_s12 + $0x18] sm:$0xff] }
  0x17   : > { %6802 = vmatpush1.bf16.msra.mxu1 %v7105_v9  ;;  %470 = vmatprep.mubr.f32.mxu1 %v13283_v7  ;;  %v7280_v61 = vld [vmem:[%s7227_s12 + $0x50] sm:$0xff]  ;;  %v7292_v1 = vld [vmem:[%s7227_s12 + $0x20] sm:$0xff]  ;;  %v7296_v2 = vld [vmem:[%s7227_s12 + $0x58] sm:$0xff] }
  0x18   : > { %6806 = vmatpush3.bf16.msra.mxu0 %v7103_v8  ;;  %6812 = vmatprep.subr.bf16.mxu1 %v7103_v8  ;;  %v7308_v4 = vld [vmem:[%s7227_s12 + $0x60] sm:$0xff]  ;;  %v7316_v5 = vld [vmem:[%s7227_s12 + $0x30] sm:$0xff] }
  0x19   : > { %6235 = vmatmul.mubr.msk.f32.gmra.mrb[2].mxu0 %vm226_vm0, %v219_v11  ;;  %6808 = vmatprep.subr.bf16.mxu0 %v7091_v3  ;;  %v7329_v11 = vld [vmem:[%s7227_s12 + $0x70] sm:$0xff] }
  0x1a   : > { %6240 = vmatmul.mubr.msk.f32.vlgmr.msra.gmra.mrb[2].mxu1 %vm226_vm0, %v6238_v12  ;;  %6701 = vmatprep.mubr.msk.f32.mxu0 %vm226_vm0, %v6238_v12  ;;  %v7338_v12 = vld [vmem:[%s7227_s12 + $0x78] sm:$0xff] }
  0x1b   : > { %476 = vmatprep.mubr.f32.mxu1 %v13283_v7  ;;  %6814 = vmatpush3.bf16.msra.mxu1 %v7103_v8 }
  0x1c   : > { %6816 = vmatprep.subr.bf16.mxu1 %v7091_v3 }
  0x1d   : > { %6702 = vmatmul.mubr.msk.f32.vlgmr.msra.gmra.mrb[4].mxu0 %vm226_vm0, %v6239_v13 }
  0x1e   : > { %6241 = vmatmul.mubr.msk.f32.gmra.mrb[4].mxu1 %vm226_vm0, %v6239_v13  ;;  %6810 = vmatpush1.bf16.msra.mxu0 %v7105_v9  ;;  %v7347_v13 = vld [vmem:[%s7227_s12 + $0x80] sm:$0xff] }
  0x1f   : > { %643 = vmatprep.mubr.f32.mxu0 %v13283_v7  ;;  %6708 = vmatprep.mubr.msk.f32.mxu1 %vm226_vm0, %v6244_v14 }
  0x20   : > { %6820 = vmatprep.subr.bf16.mxu0 %v7103_v8 }
  0x21   : > { %6246 = vmatmul.mubr.msk.f32.vlgmr.msra.gmra.mrb[6].mxu0 %vm226_vm0, %v6244_v14  ;;  %v7356_v14 = vld [vmem:[%s7227_s12 + $0x88] sm:$0xff] }
  0x22   : > { %649 = vmatprep.mubr.f32.mxu0 %v13283_v7  ;;  %6709 = vmatmul.mubr.msk.f32.vlgmr.msra.gmra.mrb[6].mxu1 %vm226_vm0, %v6245_v15 }
  0x23   : > { %6818 = vmatpush1.bf16.msra.mxu1 %v7105_v9  ;;  %816 = vmatprep.mubr.f32.mxu1 %v13283_v7 }
  0x24   : > { %6822 = vmatpush3.bf16.msra.mxu0 %v7103_v8  ;;  %6828 = vmatprep.subr.bf16.mxu1 %v7103_v8 }
  0x25   : > { %6247 = vmatmul.mubr.msk.f32.gmra.mrb[8].mxu0 %vm226_vm0, %v6245_v15  ;;  %6824 = vmatprep.subr.bf16.mxu0 %v7091_v3  ;;  %v7365_v15 = vld [vmem:[%s7227_s12 + $0x90] sm:$0xff] }
  0x26   : > { %6252 = vmatmul.mubr.msk.f32.vlgmr.msra.gmra.mrb[8].mxu1 %vm226_vm0, %v6250_v16  ;;  %6715 = vmatprep.mubr.msk.f32.mxu0 %vm226_vm0, %v6250_v16  ;;  %v7374_v16 = vld [vmem:[%s7227_s12 + $0x98] sm:$0xff] }
  0x27   : > { %822 = vmatprep.mubr.f32.mxu1 %v13283_v7  ;;  %6830 = vmatpush3.bf16.msra.mxu1 %v7103_v8 }
  0x28   : > { %6832 = vmatprep.subr.bf16.mxu1 %v7091_v3 }
  0x29   : > { %6716 = vmatmul.mubr.msk.f32.vlgmr.msra.gmra.mrb[10].mxu0 %vm226_vm0, %v6251_v17 }
  0x2a   : > { %6253 = vmatmul.mubr.msk.f32.gmra.mrb[10].mxu1 %vm226_vm0, %v6251_v17  ;;  %6826 = vmatpush1.bf16.msra.mxu0 %v7105_v9  ;;  %v7383_v17 = vld [vmem:[%s7227_s12 + $0xa0] sm:$0xff] }
  0x2b   : > { %989 = vmatprep.mubr.f32.mxu0 %v13283_v7  ;;  %6722 = vmatprep.mubr.msk.f32.mxu1 %vm226_vm0, %v6256_v18 }
  0x2c   : > { %6836 = vmatprep.subr.bf16.mxu0 %v7103_v8 }
  0x2d   : > { %6258 = vmatmul.mubr.msk.f32.vlgmr.msra.gmra.mrb[12].mxu0 %vm226_vm0, %v6256_v18  ;;  %v7392_v18 = vld [vmem:[%s7227_s12 + $0xa8] sm:$0xff] }
  0x2e   : > { %6723 = vmatmul.mubr.msk.f32.vlgmr.msra.gmra.mrb[12].mxu1 %vm226_vm0, %v6257_v19  ;;  %995 = vmatprep.mubr.f32.mxu0 %v13283_v7 }
  0x2f   : > { %6834 = vmatpush1.bf16.msra.mxu1 %v7105_v9  ;;  %1162 = vmatprep.mubr.f32.mxu1 %v13283_v7 }
  0x30   : > { %6838 = vmatpush3.bf16.msra.mxu0 %v7103_v8  ;;  %6844 = vmatprep.subr.bf16.mxu1 %v7103_v8 }
  0x31   : > { %6259 = vmatmul.mubr.msk.f32.gmra.mrb[14].mxu0 %vm226_vm0, %v6257_v19  ;;  %6840 = vmatprep.subr.bf16.mxu0 %v7091_v3  ;;  %v7304_v3 = vld [vmem:[%s7227_s12 + $0x28] sm:$0xff]  ;;  %v7401_v19 = vld [vmem:[%s7227_s12 + $0xb0] sm:$0xff] }
  0x32   : > { %6264 = vmatmul.mubr.msk.f32.vlgmr.msra.gmra.mrb[14].mxu1 %vm226_vm0, %v6262_v20  ;;  %6729 = vmatprep.mubr.msk.f32.mxu0 %vm226_vm0, %v6262_v20  ;;  %v7410_v20 = vld [vmem:[%s7227_s12 + $0xb8] sm:$0xff] }
  0x33   : > { %1168 = vmatprep.mubr.f32.mxu1 %v13283_v7  ;;  %6846 = vmatpush3.bf16.msra.mxu1 %v7103_v8  ;;  %v7320_v8 = vld [vmem:[%s7227_s12 + $0x68] sm:$0xff] }
  0x35   : > { %6730 = vmatmul.mubr.msk.f32.vlgmr.msra.gmra.mrb[16].mxu0 %vm226_vm0, %v6263_v21 }
  0x36   : > { %6265 = vmatmul.mubr.msk.f32.gmra.mrb[16].mxu1 %vm226_vm0, %v6263_v21  ;;  %6842 = vmatpush1.bf16.msra.mxu0 %v7105_v9 }
  0x37   : > { %1335 = vmatprep.mubr.f32.mxu0 %v13283_v7  ;;  %6736 = vmatprep.mubr.msk.f32.mxu1 %vm226_vm0, %v6268_v22 }
  0x39   : > { %6270 = vmatmul.mubr.msk.f32.vlgmr.msra.gmra.mrb[18].mxu0 %vm226_vm0, %v6268_v22  ;;  %v7421_v22 = vld [vmem:[%s7227_s12 + $0xc0] sm:$0xff] }
  0x3a   : > { %1341 = vmatprep.mubr.f32.mxu0 %v13283_v7  ;;  %6737 = vmatmul.mubr.msk.f32.vlgmr.msra.gmra.mrb[18].mxu1 %vm226_vm0, %v6269_v23 }
  0x3b   : > { %1705 = vmatprep.mubr.f32.mxu1 %v13283_v7 }
  0x3d   : > { %6271 = vmatmul.mubr.msk.f32.gmra.mrb[20].mxu0 %vm226_vm0, %v6269_v23 }
  0x3e   : > { %1663 = vmatprep.mubr.f32.mxu0 %v13283_v7 }
  0xe8   : > { %v299_v24 = vpop.f32.mrb[0].mxu0 }
  0xe9   : > { %v6696_v25 = vpop.f32.mrb[0].mxu1  ;;  %v301_v26 = vpop.f32.mrb[1].mxu0 }
  0xea   : > { %v376_v27 = vpop.f32.mrb[1].mxu1 }
  0xeb   : > { %v6853_v28 = vpack.c.bf16 %v6696_v25, %v376_v27  ;;  %v7438_v27 = vld [vmem:[%s7227_s12 + $0xc8] sm:$0xff] }
  0xec   : > { %v305_v29 = vpop.f32.mrb[2].mxu0 }
  0xed   : > { %v6849_v30 = vpack.c.bf16 %v305_v29, %v299_v24  ;;  %v472_v31 = vpop.f32.mrb[2].mxu1  ;;  %v307_v32 = vpop.f32.mrb[3].mxu0 }
  0xee   : > { %v6847_v33 = vpack.c.bf16 %v307_v32, %v301_v26  ;;  %v474_v34 = vpop.f32.mrb[3].mxu1 }
  0xf0   : > { %v6703_v35 = vpop.f32.mrb[4].mxu0  ;;  %6848 = vmatprep.subr.bf16.mxu0 %v6847_v33  ;;  %6891 = vmatprep.subr.bf16.mxu1 %v6847_v33 }
  0xf1   : > { %v478_v36 = vpop.f32.mrb[4].mxu1  ;;  %v549_v37 = vpop.f32.mrb[5].mxu0  ;;  %6850 = vmatpush1.bf16.msra.mxu0 %v6849_v30  ;;  %6892 = vmatpush1.bf16.msra.mxu1 %v6849_v30 }
  0xf2   : > { %v6851_v39 = vpack.c.bf16 %v478_v36, %v472_v31  ;;  %v480_v40 = vpop.f32.mrb[5].mxu1  ;;  %v6855_v41 = vpack.c.bf16 %v6703_v35, %v549_v37 }
  0xf3   : > { %v6857_v43 = vpack.c.bf16 %v480_v40, %v474_v34 }
  0xf4   : > { %6852 = vmatprep.subr.bf16.mxu0 %v6851_v39  ;;  %6274 = vmatmul.mubr.msk.f32.vlgmr.msra.gmra.mrb[22].mxu0 %vm226_vm0, %v7230_v38  ;;  %v7237_v44 = vpop.f32.mrb[6].mxu0  ;;  %v7461_v39 = vld [vmem:[%s7227_s12 + $0xd0] sm:$0xff] }
  0xf5   : > { %6281 = vmatmul.mubr.msk.f32.vlgmr.msra.gmra.mrb[20].mxu1 %vm226_vm0, %v7233_v42  ;;  %6856 = vmatprep.subr.bf16.mxu1 %v6855_v41  ;;  %v647_v46 = vpop.f32.mrb[7].mxu0  ;;  %v7244_v47 = vpop.f32.mrb[6].mxu1  ;;  %v7472_v41 = vld [vmem:[%s7227_s12 + $0xd8] sm:$0xff] }
  0xf6   : > { %6854 = vmatpush1.bf16.msra.mxu0 %v6853_v28  ;;  %6858 = vmatpush1.bf16.msra.mxu1 %v6857_v43  ;;  %v7249_v49 = vpop.f32.mrb[7].mxu1 }
  0xf7   : > { %1669 = vmatprep.mubr.f32.mxu0 %v13283_v7  ;;  %1711 = vmatprep.mubr.f32.mxu1 %v13283_v7  ;;  %v6865_v50 = vpack.c.bf16 %v7244_v47, %v7249_v49 }
  0xf8   : > { %6275 = vmatmul.mubr.msk.f32.gmra.mrb[24].mxu0 %vm226_vm0, %v7242_v45  ;;  %v651_v51 = vpop.f32.mrb[8].mxu0 }
  0xf9   : > { %6282 = vmatmul.mubr.msk.f32.gmra.mrb[22].mxu1 %vm226_vm0, %v7247_v48  ;;  %1675 = vmatprep.mubr.f32.mxu0 %v13283_v7  ;;  %v6861_v53 = vpack.c.bf16 %v651_v51, %v7237_v44  ;;  %v653_v54 = vpop.f32.mrb[9].mxu0  ;;  %v818_v55 = vpop.f32.mrb[8].mxu1 }
  0xfa   : > { %1717 = vmatprep.mubr.f32.mxu1 %v13283_v7  ;;  %v6859_v57 = vpack.c.bf16 %v653_v54, %v647_v46  ;;  %v7268_v58 = vpop.f32.mrb[9].mxu1 }
  0xfc   : > { %6276 = vmatmul.mubr.msk.f32.gmra.mrb[26].mxu0 %vm226_vm0, %v7261_v52  ;;  %6860 = vmatprep.subr.bf16.mxu0 %v6859_v57  ;;  %v6717_v6 = vpop.f32.mrb[10].mxu0 }
  0xfd   : > { %6283 = vmatmul.mubr.msk.f32.gmra.mrb[24].mxu1 %vm226_vm0, %v7266_v56  ;;  %1681 = vmatprep.mubr.f32.mxu0 %v13283_v7  ;;  %v824_v60 = vpop.f32.mrb[10].mxu1  ;;  %v895_v9 = vpop.f32.mrb[11].mxu0 }
  0xfe   : > { %1723 = vmatprep.mubr.f32.mxu1 %v13283_v7  ;;  %v6863_v62 = vpack.c.bf16 %v824_v60, %v818_v55  ;;  %v7282_v63 = vpop.f32.mrb[11].mxu1  ;;  %v6867_v10 = vpack.c.bf16 %v6717_v6, %v895_v9  ;;  %v7489_v55 = vld [vmem:[%s7227_s12 + $0xe0] sm:$0xff] }
  0xff   : > { %v6869_v0 = vpack.c.bf16 %v7282_v63, %v7268_v58 }
 0x100   : > { %6277 = vmatmul.mubr.msk.f32.gmra.mrb[28].mxu0 %vm226_vm0, %v7276_v59  ;;  %6864 = vmatprep.subr.bf16.mxu1 %v6863_v62  ;;  %v7432_v25 = vpop.f32.mrb[12].mxu0 }
 0x101   : > { %6284 = vmatmul.mubr.msk.f32.gmra.mrb[26].mxu1 %vm226_vm0, %v7280_v61  ;;  %1687 = vmatprep.mubr.f32.mxu0 %v13283_v7  ;;  %v7417_v21 = vpop.f32.mrb[12].mxu1  ;;  %v993_v28 = vpop.f32.mrb[13].mxu0 }
 0x102   : > { %1729 = vmatprep.mubr.f32.mxu1 %v13283_v7  ;;  %v7423_v23 = vpop.f32.mrb[13].mxu1 }
 0x104   : > { %6278 = vmatmul.mubr.msk.f32.gmra.mrb[30].mxu0 %vm226_vm0, %v7292_v1  ;;  %v7442_v30 = vpop.f32.mrb[14].mxu0 }
 0x105   : > { %6285 = vmatmul.mubr.msk.f32.gmra.mrb[28].mxu1 %vm226_vm0, %v7296_v2  ;;  %1693 = vmatprep.mubr.f32.mxu0 %v13283_v7  ;;  %v7434_v26 = vpop.f32.mrb[14].mxu1  ;;  %v999_v34 = vpop.f32.mrb[15].mxu0 }
 0x106   : > { %1735 = vmatprep.mubr.f32.mxu1 %v13283_v7  ;;  %v7440_v29 = vpop.f32.mrb[15].mxu1  ;;  %v6871_v36 = vpack.c.bf16 %v999_v34, %v993_v28  ;;  %v7517_v28 = vld [vmem:[%s7227_s12 + $0xf0] sm:$0xff]  ;;  %v7526_v34 = vld [vmem:[%s7227_s12 + $0xf8] sm:$0xff] }
 0x107   : > { %13753 = vst [vmem:[#allocation3_spill] sm:$0xff] %v7440_v29 }
 0x108   : > { %6279 = vmatmul.mubr.msk.f32.gmra.mrb[32].mxu0 %vm226_vm0, %v7304_v3  ;;  %v7468_v40 = vpop.f32.mrb[16].mxu0 }
 0x109   : > { %6286 = vmatmul.mubr.msk.f32.gmra.mrb[30].mxu1 %vm226_vm0, %v7308_v4  ;;  %1699 = vmatprep.mubr.f32.mxu0 %v13283_v7  ;;  %v7444_v31 = vpop.f32.mrb[16].mxu1  ;;  %v7474_v44 = vpop.f32.mrb[17].mxu0 }
 0x10a   : > { %1741 = vmatprep.mubr.f32.mxu1 %v13283_v7  ;;  %v6875_v33 = vpack.c.bf16 %v7444_v31, %v7434_v26  ;;  %v7452_v35 = vpop.f32.mrb[17].mxu1  ;;  %v13776_v29 = vpack.c.bf16 %v7468_v40, %v7474_v44 }
 0x10b   : > { %13754 = vst [vmem:[#allocation4_spill] sm:$0xff] %v7452_v35 }
 0x10c   : > { %6280 = vmatmul.mubr.msk.f32.gmra.mrb[34].mxu0 %vm226_vm0, %v7316_v5  ;;  %v7485_v54 = vpop.f32.mrb[18].mxu0 }
 0x10d   : > { %6287 = vmatmul.mubr.msk.f32.gmra.mrb[32].mxu1 %vm226_vm0, %v7320_v8  ;;  %1920 = vmatprep.mubr.f32.mxu0 %v13283_v7  ;;  %v6738_v43 = vpop.f32.mrb[18].mxu1  ;;  %13756 = vst [vmem:[#allocation6_spill] sm:$0xff] %v7485_v54  ;;  %v7491_v57 = vpop.f32.mrb[19].mxu0 }
 0x10e   : > { %1747 = vmatprep.mubr.f32.mxu1 %v13283_v7  ;;  %v1414_v51 = vpop.f32.mrb[19].mxu1 }
 0x110   : > { %6306 = vmatmul.mubr.msk.f32.vlgmr.msra.gmra.mrb[36].mxu0 %vm226_vm0, %v7230_v38  ;;  %v7493_v60 = vpop.f32.mrb[20].mxu0 }
 0x111   : > { %6288 = vmatmul.mubr.msk.f32.gmra.mrb[34].mxu1 %vm226_vm0, %v7329_v11  ;;  %1926 = vmatprep.mubr.f32.mxu0 %v13283_v7  ;;  %13757 = vst [vmem:[#allocation7_spill] sm:$0xff] %v7493_v60  ;;  %v7499_v6 = vpop.f32.mrb[21].mxu0 }
 0x112   : > { %1753 = vmatprep.mubr.f32.mxu1 %v13283_v7  ;;  %6862 = vmatpush1.bf16.msra.mxu0 %v6861_v53  ;;  %v7480_v53 = vpack.c.bf16 %v6738_v43, %v1414_v51 }
 0x113   : > { %6868 = vmatprep.subr.bf16.mxu0 %v6867_v10  ;;  %v7508_v10 = vld [vmem:[%s7227_s12 + $0xe8] sm:$0xff] }
 0x114   : > { %6307 = vmatmul.mubr.msk.f32.gmra.mrb[38].mxu0 %vm226_vm0, %v7242_v45  ;;  %13755 = vst [vmem:[#allocation5_spill] sm:$0xff] %v7480_v53  ;;  %v13775_v53 = vpack.c.bf16 %v7442_v30, %v7432_v25 }
 0x115   : > { %6289 = vmatmul.mubr.msk.f32.gmra.mrb[36].mxu1 %vm226_vm0, %v7338_v12  ;;  %1932 = vmatprep.mubr.f32.mxu0 %v13283_v7 }
 0x116   : > { %1759 = vmatprep.mubr.f32.mxu1 %v13283_v7 }
 0x118   : > { %6308 = vmatmul.mubr.msk.f32.gmra.mrb[40].mxu0 %vm226_vm0, %v7261_v52 }
 0x119   : > { %6290 = vmatmul.mubr.msk.f32.gmra.mrb[38].mxu1 %vm226_vm0, %v7347_v13  ;;  %1938 = vmatprep.mubr.f32.mxu0 %v13283_v7 }
 0x11a   : > { %1765 = vmatprep.mubr.f32.mxu1 %v13283_v7 }
 0x11c   : > { %6309 = vmatmul.mubr.msk.f32.gmra.mrb[42].mxu0 %vm226_vm0, %v7276_v59 }
 0x11d   : > { %6291 = vmatmul.mubr.msk.f32.gmra.mrb[40].mxu1 %vm226_vm0, %v7356_v14  ;;  %1944 = vmatprep.mubr.f32.mxu0 %v13283_v7 }
 0x11e   : > { %1771 = vmatprep.mubr.f32.mxu1 %v13283_v7 }
 0x120   : > { %6310 = vmatmul.mubr.msk.f32.gmra.mrb[44].mxu0 %vm226_vm0, %v7292_v1 }
 0x121   : > { %6292 = vmatmul.mubr.msk.f32.gmra.mrb[42].mxu1 %vm226_vm0, %v7365_v15  ;;  %1950 = vmatprep.mubr.f32.mxu0 %v13283_v7 }
 0x122   : > { %1777 = vmatprep.mubr.f32.mxu1 %v13283_v7 }
 0x124   : > { %6311 = vmatmul.mubr.msk.f32.gmra.mrb[46].mxu0 %vm226_vm0, %v7304_v3 }
 0x125   : > { %6293 = vmatmul.mubr.msk.f32.gmra.mrb[44].mxu1 %vm226_vm0, %v7374_v16  ;;  %1956 = vmatprep.mubr.f32.mxu0 %v13283_v7 }
 0x126   : > { %1783 = vmatprep.mubr.f32.mxu1 %v13283_v7 }
 0x128   : > { %6312 = vmatmul.mubr.msk.f32.gmra.mrb[48].mxu0 %vm226_vm0, %v7316_v5 }
 0x129   : > { %6294 = vmatmul.mubr.msk.f32.gmra.mrb[46].mxu1 %vm226_vm0, %v7383_v17  ;;  %1962 = vmatprep.mubr.f32.mxu0 %v13283_v7 }
 0x12a   : > { %1789 = vmatprep.mubr.f32.mxu1 %v13283_v7 }
 0x12c   : > { %6313 = vmatmul.mubr.msk.f32.gmra.mrb[50].mxu0 %vm226_vm0, %v7233_v42 }
 0x12d   : > { %6295 = vmatmul.mubr.msk.f32.gmra.mrb[48].mxu1 %vm226_vm0, %v7392_v18  ;;  %1968 = vmatprep.mubr.f32.mxu0 %v13283_v7 }
 0x12e   : > { %1795 = vmatprep.mubr.f32.mxu1 %v13283_v7 }
 0x130   : > { %6314 = vmatmul.mubr.msk.f32.gmra.mrb[52].mxu0 %vm226_vm0, %v7247_v48 }
 0x131   : > { %6296 = vmatmul.mubr.msk.f32.gmra.mrb[50].mxu1 %vm226_vm0, %v7401_v19  ;;  %1974 = vmatprep.mubr.f32.mxu0 %v13283_v7 }
 0x132   : > { %1801 = vmatprep.mubr.f32.mxu1 %v13283_v7 }
 0x134   : > { %6315 = vmatmul.mubr.msk.f32.gmra.mrb[54].mxu0 %vm226_vm0, %v7266_v56 }
 0x135   : > { %6297 = vmatmul.mubr.msk.f32.gmra.mrb[52].mxu1 %vm226_vm0, %v7410_v20  ;;  %1980 = vmatprep.mubr.f32.mxu0 %v13283_v7 }
 0x136   : > { %1807 = vmatprep.mubr.f32.mxu1 %v13283_v7 }
 0x138   : > { %6316 = vmatmul.mubr.msk.f32.gmra.mrb[56].mxu0 %vm226_vm0, %v7280_v61 }
 0x139   : > { %6298 = vmatmul.mubr.msk.f32.gmra.mrb[54].mxu1 %vm226_vm0, %v7421_v22  ;;  %1986 = vmatprep.mubr.f32.mxu0 %v13283_v7 }
 0x13a   : > { %1813 = vmatprep.mubr.f32.mxu1 %v13283_v7 }
 0x13c   : > { %6317 = vmatmul.mubr.msk.f32.gmra.mrb[58].mxu0 %vm226_vm0, %v7296_v2 }
 0x13d   : > { %6299 = vmatmul.mubr.msk.f32.gmra.mrb[56].mxu1 %vm226_vm0, %v7438_v27  ;;  %1992 = vmatprep.mubr.f32.mxu0 %v13283_v7 }
 0x13e   : > { %1819 = vmatprep.mubr.f32.mxu1 %v13283_v7 }
 0x140   : > { %6318 = vmatmul.mubr.msk.f32.gmra.mrb[60].mxu0 %vm226_vm0, %v7308_v4 }
 0x141   : > { %6300 = vmatmul.mubr.msk.f32.gmra.mrb[58].mxu1 %vm226_vm0, %v7461_v39  ;;  %1998 = vmatprep.mubr.f32.mxu0 %v13283_v7 }
 0x142   : > { %1825 = vmatprep.mubr.f32.mxu1 %v13283_v7 }
 0x144   : > { %6319 = vmatmul.mubr.msk.f32.gmra.mrb[62].mxu0 %vm226_vm0, %v7320_v8 }
 0x145   : > { %6301 = vmatmul.mubr.msk.f32.gmra.mrb[60].mxu1 %vm226_vm0, %v7472_v41  ;;  %2004 = vmatprep.mubr.f32.mxu0 %v13283_v7 }
 0x146   : > { %1831 = vmatprep.mubr.f32.mxu1 %v13283_v7 }
 0x148   : > { %6320 = vmatmul.mubr.msk.f32.gmra.mrb[64].mxu0 %vm226_vm0, %v7329_v11 }
 0x149   : > { %6302 = vmatmul.mubr.msk.f32.gmra.mrb[62].mxu1 %vm226_vm0, %v7489_v55  ;;  %2010 = vmatprep.mubr.f32.mxu0 %v13283_v7 }
 0x14a   : > { %1837 = vmatprep.mubr.f32.mxu1 %v13283_v7 }
 0x14c   : > { %6321 = vmatmul.mubr.msk.f32.gmra.mrb[66].mxu0 %vm226_vm0, %v7338_v12 }
 0x14d   : > { %6303 = vmatmul.mubr.msk.f32.gmra.mrb[64].mxu1 %vm226_vm0, %v7508_v10  ;;  %2016 = vmatprep.mubr.f32.mxu0 %v13283_v7 }
 0x14e   : > { %1843 = vmatprep.mubr.f32.mxu1 %v13283_v7 }
 0x150   : > { %6322 = vmatmul.mubr.msk.f32.gmra.mrb[68].mxu0 %vm226_vm0, %v7347_v13 }
 0x151   : > { %6304 = vmatmul.mubr.msk.f32.gmra.mrb[66].mxu1 %vm226_vm0, %v7517_v28  ;;  %2022 = vmatprep.mubr.f32.mxu0 %v13283_v7 }
 0x152   : > { %1849 = vmatprep.mubr.f32.mxu1 %v13283_v7 }
 0x154   : > { %6323 = vmatmul.mubr.msk.f32.gmra.mrb[70].mxu0 %vm226_vm0, %v7356_v14 }
 0x155   : > { %6305 = vmatmul.mubr.msk.f32.gmra.mrb[68].mxu1 %vm226_vm0, %v7526_v34  ;;  %2028 = vmatprep.mubr.f32.mxu0 %v13283_v7 }
 0x156   : > { %2177 = vmatprep.mubr.f32.mxu1 %v13283_v7 }
 0x158   : > { %6324 = vmatmul.mubr.msk.f32.gmra.mrb[72].mxu0 %vm226_vm0, %v7365_v15 }
 0x159   : > { %6338 = vmatmul.mubr.msk.f32.vlgmr.msra.gmra.mrb[70].mxu1 %vm226_vm0, %v7230_v38  ;;  %2034 = vmatprep.mubr.f32.mxu0 %v13283_v7 }
 0x15a   : > { %6866 = vmatpush1.bf16.msra.mxu1 %v6865_v50  ;;  %2183 = vmatprep.mubr.f32.mxu1 %v13283_v7 }
 0x15b   : > { %6872 = vmatprep.subr.bf16.mxu1 %v6871_v36 }
 0x15c   : > { %6325 = vmatmul.mubr.msk.f32.gmra.mrb[74].mxu0 %vm226_vm0, %v7374_v16 }
 0x15d   : > { %6339 = vmatmul.mubr.msk.f32.gmra.mrb[72].mxu1 %vm226_vm0, %v7242_v45  ;;  %2040 = vmatprep.mubr.f32.mxu0 %v13283_v7 }
 0x15e   : > { %2189 = vmatprep.mubr.f32.mxu1 %v13283_v7 }
 0x160   : > { %6326 = vmatmul.mubr.msk.f32.gmra.mrb[76].mxu0 %vm226_vm0, %v7383_v17 }
 0x161   : > { %6340 = vmatmul.mubr.msk.f32.gmra.mrb[74].mxu1 %vm226_vm0, %v7261_v52  ;;  %2046 = vmatprep.mubr.f32.mxu0 %v13283_v7 }
 0x162   : > { %2195 = vmatprep.mubr.f32.mxu1 %v13283_v7 }
 0x164   : > { %6327 = vmatmul.mubr.msk.f32.gmra.mrb[78].mxu0 %vm226_vm0, %v7392_v18 }
 0x165   : > { %6341 = vmatmul.mubr.msk.f32.gmra.mrb[76].mxu1 %vm226_vm0, %v7276_v59  ;;  %2052 = vmatprep.mubr.f32.mxu0 %v13283_v7 }
 0x166   : > { %2201 = vmatprep.mubr.f32.mxu1 %v13283_v7 }
 0x168   : > { %6328 = vmatmul.mubr.msk.f32.gmra.mrb[80].mxu0 %vm226_vm0, %v7401_v19 }
 0x169   : > { %6342 = vmatmul.mubr.msk.f32.gmra.mrb[78].mxu1 %vm226_vm0, %v7292_v1  ;;  %2058 = vmatprep.mubr.f32.mxu0 %v13283_v7 }
 0x16a   : > { %2207 = vmatprep.mubr.f32.mxu1 %v13283_v7 }
 0x16c   : > { %6329 = vmatmul.mubr.msk.f32.gmra.mrb[82].mxu0 %vm226_vm0, %v7410_v20 }
 0x16d   : > { %6343 = vmatmul.mubr.msk.f32.gmra.mrb[80].mxu1 %vm226_vm0, %v7304_v3  ;;  %2064 = vmatprep.mubr.f32.mxu0 %v13283_v7 }
 0x16e   : > { %2213 = vmatprep.mubr.f32.mxu1 %v13283_v7 }
 0x170   : > { %6330 = vmatmul.mubr.msk.f32.gmra.mrb[84].mxu0 %vm226_vm0, %v7421_v22 }
 0x171   : > { %6344 = vmatmul.mubr.msk.f32.gmra.mrb[82].mxu1 %vm226_vm0, %v7316_v5  ;;  %2070 = vmatprep.mubr.f32.mxu0 %v13283_v7 }
 0x172   : > { %2219 = vmatprep.mubr.f32.mxu1 %v13283_v7 }
 0x174   : > { %6331 = vmatmul.mubr.msk.f32.gmra.mrb[86].mxu0 %vm226_vm0, %v7438_v27 }
 0x175   : > { %6345 = vmatmul.mubr.msk.f32.gmra.mrb[84].mxu1 %vm226_vm0, %v7233_v42  ;;  %2076 = vmatprep.mubr.f32.mxu0 %v13283_v7 }
 0x176   : > { %2225 = vmatprep.mubr.f32.mxu1 %v13283_v7 }
 0x178   : > { %6332 = vmatmul.mubr.msk.f32.gmra.mrb[88].mxu0 %vm226_vm0, %v7461_v39 }
 0x179   : > { %6346 = vmatmul.mubr.msk.f32.gmra.mrb[86].mxu1 %vm226_vm0, %v7247_v48  ;;  %2082 = vmatprep.mubr.f32.mxu0 %v13283_v7 }
 0x17a   : > { %2231 = vmatprep.mubr.f32.mxu1 %v13283_v7 }
 0x17c   : > { %6333 = vmatmul.mubr.msk.f32.gmra.mrb[90].mxu0 %vm226_vm0, %v7472_v41 }
 0x17d   : > { %6347 = vmatmul.mubr.msk.f32.gmra.mrb[88].mxu1 %vm226_vm0, %v7266_v56  ;;  %2088 = vmatprep.mubr.f32.mxu0 %v13283_v7 }
 0x17e   : > { %2237 = vmatprep.mubr.f32.mxu1 %v13283_v7 }
 0x180   : > { %6334 = vmatmul.mubr.msk.f32.gmra.mrb[92].mxu0 %vm226_vm0, %v7489_v55 }
 0x181   : > { %6348 = vmatmul.mubr.msk.f32.gmra.mrb[90].mxu1 %vm226_vm0, %v7280_v61  ;;  %2094 = vmatprep.mubr.f32.mxu0 %v13283_v7 }
 0x182   : > { %2243 = vmatprep.mubr.f32.mxu1 %v13283_v7 }
 0x184   : > { %6335 = vmatmul.mubr.msk.f32.gmra.mrb[94].mxu0 %vm226_vm0, %v7508_v10 }
 0x185   : > { %6349 = vmatmul.mubr.msk.f32.gmra.mrb[92].mxu1 %vm226_vm0, %v7296_v2  ;;  %2100 = vmatprep.mubr.f32.mxu0 %v13283_v7 }
 0x186   : > { %2249 = vmatprep.mubr.f32.mxu1 %v13283_v7 }
 0x188   : > { %6336 = vmatmul.mubr.msk.f32.gmra.mrb[96].mxu0 %vm226_vm0, %v7517_v28 }
 0x189   : > { %6350 = vmatmul.mubr.msk.f32.gmra.mrb[94].mxu1 %vm226_vm0, %v7308_v4  ;;  %2106 = vmatprep.mubr.f32.mxu0 %v13283_v7 }
 0x18a   : > { %2255 = vmatprep.mubr.f32.mxu1 %v13283_v7 }
 0x18c   : > { %6337 = vmatmul.mubr.msk.f32.gmra.mrb[98].mxu0 %vm226_vm0, %v7526_v34 }
 0x18d   : > { %6351 = vmatmul.mubr.msk.f32.gmra.mrb[96].mxu1 %vm226_vm0, %v7320_v8  ;;  %2434 = vmatprep.mubr.f32.mxu0 %v13283_v7 }
 0x18e   : > { %2261 = vmatprep.mubr.f32.mxu1 %v13283_v7 }
 0x190   : > { %6370 = vmatmul.mubr.msk.f32.vlgmr.msra.gmra.mrb[100].mxu0 %vm226_vm0, %v7230_v38 }
 0x191   : > { %6352 = vmatmul.mubr.msk.f32.gmra.mrb[98].mxu1 %vm226_vm0, %v7329_v11  ;;  %6870 = vmatpush1.bf16.msra.mxu0 %v6869_v0 }
 0x192   : > { %2267 = vmatprep.mubr.f32.mxu1 %v13283_v7  ;;  %2440 = vmatprep.mubr.f32.mxu0 %v13283_v7 }
 0x193   : > { %6876 = vmatprep.subr.bf16.mxu0 %v6875_v33 }
 0x194   : > { %6371 = vmatmul.mubr.msk.f32.gmra.mrb[102].mxu0 %vm226_vm0, %v7242_v45 }
 0x195   : > { %6353 = vmatmul.mubr.msk.f32.gmra.mrb[100].mxu1 %vm226_vm0, %v7338_v12  ;;  %2446 = vmatprep.mubr.f32.mxu0 %v13283_v7 }
 0x196   : > { %2273 = vmatprep.mubr.f32.mxu1 %v13283_v7 }
 0x198   : > { %6372 = vmatmul.mubr.msk.f32.gmra.mrb[104].mxu0 %vm226_vm0, %v7261_v52 }
 0x199   : > { %6354 = vmatmul.mubr.msk.f32.gmra.mrb[102].mxu1 %vm226_vm0, %v7347_v13  ;;  %2452 = vmatprep.mubr.f32.mxu0 %v13283_v7 }
 0x19a   : > { %2279 = vmatprep.mubr.f32.mxu1 %v13283_v7 }
 0x19c   : > { %6373 = vmatmul.mubr.msk.f32.gmra.mrb[106].mxu0 %vm226_vm0, %v7276_v59 }
 0x19d   : > { %6355 = vmatmul.mubr.msk.f32.gmra.mrb[104].mxu1 %vm226_vm0, %v7356_v14  ;;  %2458 = vmatprep.mubr.f32.mxu0 %v13283_v7 }
 0x19e   : > { %2285 = vmatprep.mubr.f32.mxu1 %v13283_v7 }
 0x1a0   : > { %6374 = vmatmul.mubr.msk.f32.gmra.mrb[108].mxu0 %vm226_vm0, %v7292_v1 }
 0x1a1   : > { %6356 = vmatmul.mubr.msk.f32.gmra.mrb[106].mxu1 %vm226_vm0, %v7365_v15  ;;  %2464 = vmatprep.mubr.f32.mxu0 %v13283_v7 }
 0x1a2   : > { %2291 = vmatprep.mubr.f32.mxu1 %v13283_v7 }
 0x1a4   : > { %6375 = vmatmul.mubr.msk.f32.gmra.mrb[110].mxu0 %vm226_vm0, %v7304_v3 }
 0x1a5   : > { %6357 = vmatmul.mubr.msk.f32.gmra.mrb[108].mxu1 %vm226_vm0, %v7374_v16  ;;  %2470 = vmatprep.mubr.f32.mxu0 %v13283_v7 }
 0x1a6   : > { %2297 = vmatprep.mubr.f32.mxu1 %v13283_v7 }
 0x1a8   : > { %6376 = vmatmul.mubr.msk.f32.gmra.mrb[112].mxu0 %vm226_vm0, %v7316_v5 }
 0x1a9   : > { %6358 = vmatmul.mubr.msk.f32.gmra.mrb[110].mxu1 %vm226_vm0, %v7383_v17  ;;  %2476 = vmatprep.mubr.f32.mxu0 %v13283_v7 }
 0x1aa   : > { %2303 = vmatprep.mubr.f32.mxu1 %v13283_v7 }
 0x1ac   : > { %6377 = vmatmul.mubr.msk.f32.gmra.mrb[114].mxu0 %vm226_vm0, %v7233_v42 }
 0x1ad   : > { %6359 = vmatmul.mubr.msk.f32.gmra.mrb[112].mxu1 %vm226_vm0, %v7392_v18  ;;  %2482 = vmatprep.mubr.f32.mxu0 %v13283_v7 }
 0x1ae   : > { %2309 = vmatprep.mubr.f32.mxu1 %v13283_v7 }
 0x1b0   : > { %6378 = vmatmul.mubr.msk.f32.gmra.mrb[116].mxu0 %vm226_vm0, %v7247_v48 }
 0x1b1   : > { %6360 = vmatmul.mubr.msk.f32.gmra.mrb[114].mxu1 %vm226_vm0, %v7401_v19  ;;  %2488 = vmatprep.mubr.f32.mxu0 %v13283_v7 }
 0x1b2   : > { %2315 = vmatprep.mubr.f32.mxu1 %v13283_v7 }
 0x1b4   : > { %6379 = vmatmul.mubr.msk.f32.gmra.mrb[118].mxu0 %vm226_vm0, %v7266_v56 }
 0x1b5   : > { %6361 = vmatmul.mubr.msk.f32.gmra.mrb[116].mxu1 %vm226_vm0, %v7410_v20  ;;  %2494 = vmatprep.mubr.f32.mxu0 %v13283_v7 }
 0x1b6   : > { %2321 = vmatprep.mubr.f32.mxu1 %v13283_v7 }
 0x1b8   : > { %6380 = vmatmul.mubr.msk.f32.gmra.mrb[120].mxu0 %vm226_vm0, %v7280_v61 }
 0x1b9   : > { %6362 = vmatmul.mubr.msk.f32.gmra.mrb[118].mxu1 %vm226_vm0, %v7421_v22  ;;  %2500 = vmatprep.mubr.f32.mxu0 %v13283_v7 }
 0x1ba   : > { %2327 = vmatprep.mubr.f32.mxu1 %v13283_v7 }
 0x1bc   : > { %6381 = vmatmul.mubr.msk.f32.gmra.mrb[122].mxu0 %vm226_vm0, %v7296_v2 }
 0x1bd   : > { %6363 = vmatmul.mubr.msk.f32.gmra.mrb[120].mxu1 %vm226_vm0, %v7438_v27  ;;  %2506 = vmatprep.mubr.f32.mxu0 %v13283_v7 }
 0x1be   : > { %2333 = vmatprep.mubr.f32.mxu1 %v13283_v7 }
 0x1c0   : > { %6382 = vmatmul.mubr.msk.f32.gmra.mrb[124].mxu0 %vm226_vm0, %v7308_v4 }
 0x1c1   : > { %6364 = vmatmul.mubr.msk.f32.gmra.mrb[122].mxu1 %vm226_vm0, %v7461_v39  ;;  %2512 = vmatprep.mubr.f32.mxu0 %v13283_v7 }
 0x1c2   : > { %2339 = vmatprep.mubr.f32.mxu1 %v13283_v7 }
 0x1c4   : > { %6383 = vmatmul.mubr.msk.f32.gmra.mrb[126].mxu0 %vm226_vm0, %v7320_v8 }
 0x1c5   : > { %6365 = vmatmul.mubr.msk.f32.gmra.mrb[124].mxu1 %vm226_vm0, %v7472_v41  ;;  %2518 = vmatprep.mubr.f32.mxu0 %v13283_v7 }
 0x1c6   : > { %2345 = vmatprep.mubr.f32.mxu1 %v13283_v7 }
 0x1c7   : > { %v7711_v47 = vpop.f32.mrb[22].mxu0 }
 0x1c8   : > { %13758 = vst [vmem:[#allocation8_spill] sm:$0xff] %v7711_v47  ;;  %v7713_v49 = vpop.f32.mrb[20].mxu1  ;;  %6384 = vmatmul.mubr.msk.f32.gmra.mrb[128].mxu0 %vm226_vm0, %v7329_v11  ;;  %v7717_v50 = vpop.f32.mrb[23].mxu0 }
 0x1c9   : > { %13759 = vst [vmem:[#allocation9_spill] sm:$0xff] %v7713_v49  ;;  %v7719_v58 = vpop.f32.mrb[21].mxu1  ;;  %6366 = vmatmul.mubr.msk.f32.gmra.mrb[126].mxu1 %vm226_vm0, %v7489_v55  ;;  %2524 = vmatprep.mubr.f32.mxu0 %v13283_v7 }
 0x1ca   : > { %13760 = vst [vmem:[#allocation10_spill] sm:$0xff] %v7719_v58  ;;  %2351 = vmatprep.mubr.f32.mxu1 %v13283_v7 }
 0x1cb   : > { %v7725_v63 = vpop.f32.mrb[24].mxu0 }
 0x1cc   : > { %13761 = vst [vmem:[#allocation11_spill] sm:$0xff] %v7725_v63  ;;  %v7727_v0 = vpop.f32.mrb[22].mxu1  ;;  %6385 = vmatmul.mubr.msk.f32.gmra.mrb[130].mxu0 %vm226_vm0, %v7338_v12  ;;  %v7731_v26 = vpop.f32.mrb[25].mxu0 }
 0x1cd   : > { %13762 = vst [vmem:[#allocation12_spill] sm:$0xff] %v7727_v0  ;;  %v7733_v31 = vpop.f32.mrb[23].mxu1  ;;  %6367 = vmatmul.mubr.msk.f32.gmra.mrb[128].mxu1 %vm226_vm0, %v7508_v10  ;;  %2530 = vmatprep.mubr.f32.mxu0 %v13283_v7 }
 0x1ce   : > { %13763 = vst [vmem:[#allocation13_spill] sm:$0xff] %v7733_v31  ;;  %2357 = vmatprep.mubr.f32.mxu1 %v13283_v7 }
 0x1cf   : > { %v7739_v33 = vpop.f32.mrb[26].mxu0 }
 0x1d0   : > { %13764 = vst [vmem:[#allocation14_spill] sm:$0xff] %v7739_v33  ;;  %v7741_v36 = vpop.f32.mrb[24].mxu1  ;;  %6386 = vmatmul.mubr.msk.f32.gmra.mrb[132].mxu0 %vm226_vm0, %v7347_v13  ;;  %v7745_v43 = vpop.f32.mrb[27].mxu0 }
 0x1d1   : > { %13765 = vst [vmem:[#allocation15_spill] sm:$0xff] %v7741_v36  ;;  %v7747_v51 = vpop.f32.mrb[25].mxu1  ;;  %6368 = vmatmul.mubr.msk.f32.gmra.mrb[130].mxu1 %vm226_vm0, %v7517_v28  ;;  %2536 = vmatprep.mubr.f32.mxu0 %v13283_v7 }
 0x1d2   : > { %13766 = vst [vmem:[#allocation16_spill] sm:$0xff] %v7747_v51  ;;  %2363 = vmatprep.mubr.f32.mxu1 %v13283_v7 }
 0x1d3   : > { %v7753_v62 = vpop.f32.mrb[28].mxu0 }
 0x1d4   : > { %13767 = vst [vmem:[#allocation17_spill] sm:$0xff] %v7753_v62  ;;  %v7755_v37 = vpop.f32.mrb[26].mxu1  ;;  %6387 = vmatmul.mubr.msk.f32.gmra.mrb[134].mxu0 %vm226_vm0, %v7356_v14  ;;  %v7759_v9 = vpop.f32.mrb[29].mxu0 }
 0x1d5   : > { %13768 = vst [vmem:[#allocation18_spill] sm:$0xff] %v7755_v37  ;;  %13769 = vst [vmem:[#allocation19_spill] sm:$0xff] %v7759_v9  ;;  %v7761_v24 = vpop.f32.mrb[27].mxu1  ;;  %6369 = vmatmul.mubr.msk.f32.gmra.mrb[132].mxu1 %vm226_vm0, %v7526_v34  ;;  %2542 = vmatprep.mubr.f32.mxu0 %v13283_v7 }
 0x1d6   : > { %13770 = vst [vmem:[#allocation20_spill] sm:$0xff] %v7761_v24  ;;  %2691 = vmatprep.mubr.f32.mxu1 %v13283_v7 }
 0x1d7   : > { %v7767_v46 = vpop.f32.mrb[30].mxu0 }
 0x1d8   : > { %13771 = vst [vmem:[#allocation21_spill] sm:$0xff] %v7767_v46  ;;  %v7769_v32 = vpop.f32.mrb[28].mxu1  ;;  %6388 = vmatmul.mubr.msk.f32.gmra.mrb[136].mxu0 %vm226_vm0, %v7365_v15  ;;  %v7773_v54 = vpop.f32.mrb[31].mxu0 }
 0x1d9   : > { %13772 = vst [vmem:[#allocation22_spill] sm:$0xff] %v7769_v32  ;;  %13773 = vst [vmem:[#allocation23_spill] sm:$0xff] %v7773_v54  ;;  %v7775_v60 = vpop.f32.mrb[29].mxu1  ;;  %6402 = vmatmul.mubr.msk.f32.vlgmr.msra.gmra.mrb[134].mxu1 %vm226_vm0, %v7230_v38  ;;  %2548 = vmatprep.mubr.f32.mxu0 %v13283_v7 }
 0x1da   : > { %13774 = vst [vmem:[#allocation24_spill] sm:$0xff] %v7775_v60  ;;  %6874 = vmatpush1.bf16.msra.mxu1 %v13775_v53  ;;  %2697 = vmatprep.mubr.f32.mxu1 %v13283_v7 }
 0x1db   : > { %6880 = vmatprep.subr.bf16.mxu1 %v13776_v29  ;;  %v7787_v35 = vpop.f32.mrb[32].mxu0 }
 0x1dc   : > { %13777 = vst [vmem:[#allocation25_spill] sm:$0xff] %v7787_v35  ;;  %v7789_v24 = vpop.f32.mrb[30].mxu1  ;;  %6389 = vmatmul.mubr.msk.f32.gmra.mrb[138].mxu0 %vm226_vm0, %v7374_v16  ;;  %v7793_v60 = vpop.f32.mrb[33].mxu0 }
 0x1dd   : > { %13778 = vst [vmem:[#allocation26_spill] sm:$0xff] %v7789_v24  ;;  %13779 = vst [vmem:[#allocation27_spill] sm:$0xff] %v7793_v60  ;;  %v7795_v51 = vpop.f32.mrb[31].mxu1  ;;  %6403 = vmatmul.mubr.msk.f32.gmra.mrb[136].mxu1 %vm226_vm0, %v7242_v45  ;;  %2554 = vmatprep.mubr.f32.mxu0 %v13283_v7 }
 0x1de   : > { %13780 = vst [vmem:[#allocation28_spill] sm:$0xff] %v7795_v51  ;;  %2703 = vmatprep.mubr.f32.mxu1 %v13283_v7 }
 0x1df   : > { %v7801_v25 = vpop.f32.mrb[34].mxu0 }
 0x1e0   : > { %13781 = vst [vmem:[#allocation29_spill] sm:$0xff] %v7801_v25  ;;  %v7803_v29 = vpop.f32.mrb[32].mxu1  ;;  %6390 = vmatmul.mubr.msk.f32.gmra.mrb[140].mxu0 %vm226_vm0, %v7383_v17  ;;  %v7807_v30 = vpop.f32.mrb[35].mxu0 }
 0x1e1   : > { %13782 = vst [vmem:[#allocation30_spill] sm:$0xff] %v7803_v29  ;;  %13783 = vst [vmem:[#allocation31_spill] sm:$0xff] %v7807_v30  ;;  %v7809_v40 = vpop.f32.mrb[33].mxu1  ;;  %6404 = vmatmul.mubr.msk.f32.gmra.mrb[138].mxu1 %vm226_vm0, %v7261_v52  ;;  %2560 = vmatprep.mubr.f32.mxu0 %v13283_v7 }
 0x1e2   : > { %13784 = vst [vmem:[#allocation32_spill] sm:$0xff] %v7809_v40  ;;  %2709 = vmatprep.mubr.f32.mxu1 %v13283_v7 }
 0x1e3   : > { %v7815_v44 = vpop.f32.mrb[36].mxu0 }
 0x1e4   : > { %13785 = vst [vmem:[#allocation33_spill] sm:$0xff] %v7815_v44  ;;  %v7817_v53 = vpop.f32.mrb[34].mxu1  ;;  %v7819_v51 = vpop.f32.mrb[37].mxu0  ;;  %6391 = vmatmul.mubr.msk.f32.gmra.mrb[142].mxu0 %vm226_vm0, %v7392_v18 }
 0x1e5   : > { %13786 = vst [vmem:[#allocation34_spill] sm:$0xff] %v7817_v53  ;;  %13787 = vst [vmem:[#allocation35_spill] sm:$0xff] %v7819_v51  ;;  %v7823_v31 = vpop.f32.mrb[35].mxu1  ;;  %6405 = vmatmul.mubr.msk.f32.gmra.mrb[140].mxu1 %vm226_vm0, %v7276_v59  ;;  %2566 = vmatprep.mubr.f32.mxu0 %v13283_v7  ;;  %vm4394_vm1 = vcmp.gt.f32.partialorder %v7819_v51, %v7711_v47 }
 0x1e6   : > { %13788 = vst [vmem:[#allocation36_spill] sm:$0xff] %v7823_v31  ;;  %2715 = vmatprep.mubr.f32.mxu1 %v13283_v7  ;;  %v7836_v40 = vsel %vm4394_vm1, %v7819_v51, %v7711_v47 }
 0x1e7   : > { %13789 = vst [vmem:[#allocation37_spill] sm:$0xff] %v7836_v40  ;;  %v7838_v58 = vpop.f32.mrb[38].mxu0 }
 0x1e8   : > { %13790 = vst [vmem:[#allocation38_spill] sm:$0xff] %v7838_v58  ;;  %v7840_v31 = vpop.f32.mrb[36].mxu1  ;;  %v7842_v30 = vpop.f32.mrb[39].mxu0  ;;  %6392 = vmatmul.mubr.msk.f32.gmra.mrb[144].mxu0 %vm226_vm0, %v7401_v19 }
 0x1e9   : > { %13791 = vst [vmem:[#allocation39_spill] sm:$0xff] %v7840_v31  ;;  %13792 = vst [vmem:[#allocation40_spill] sm:$0xff] %v7842_v30  ;;  %v7846_v60 = vpop.f32.mrb[37].mxu1  ;;  %6406 = vmatmul.mubr.msk.f32.gmra.mrb[142].mxu1 %vm226_vm0, %v7292_v1  ;;  %2572 = vmatprep.mubr.f32.mxu0 %v13283_v7  ;;  %vm4395_vm2 = vcmp.gt.f32.partialorder %v7842_v30, %v7725_v63 }
 0x1ea   : > { %13793 = vst [vmem:[#allocation41_spill] sm:$0xff] %v7846_v60  ;;  %2721 = vmatprep.mubr.f32.mxu1 %v13283_v7  ;;  %v7859_v40 = vsel %vm4395_vm2, %v7842_v30, %v7725_v63 }
 0x1eb   : > { %13794 = vst [vmem:[#allocation42_spill] sm:$0xff] %v7859_v40  ;;  %v7861_v47 = vpop.f32.mrb[40].mxu0 }
 0x1ec   : > { %13795 = vst [vmem:[#allocation43_spill] sm:$0xff] %v7861_v47  ;;  %v7863_v60 = vpop.f32.mrb[38].mxu1  ;;  %v7865_v51 = vpop.f32.mrb[41].mxu0  ;;  %6393 = vmatmul.mubr.msk.f32.gmra.mrb[146].mxu0 %vm226_vm0, %v7410_v20 }
 0x1ed   : > { %13796 = vst [vmem:[#allocation44_spill] sm:$0xff] %v7863_v60  ;;  %13797 = vst [vmem:[#allocation45_spill] sm:$0xff] %v7865_v51  ;;  %v7869_v54 = vpop.f32.mrb[39].mxu1  ;;  %6407 = vmatmul.mubr.msk.f32.gmra.mrb[144].mxu1 %vm226_vm0, %v7304_v3  ;;  %2578 = vmatprep.mubr.f32.mxu0 %v13283_v7  ;;  %vm4396_vm3 = vcmp.gt.f32.partialorder %v7865_v51, %v7739_v33 }
 0x1ee   : > { %13798 = vst [vmem:[#allocation46_spill] sm:$0xff] %v7869_v54  ;;  %2727 = vmatprep.mubr.f32.mxu1 %v13283_v7  ;;  %v7882_v40 = vsel %vm4396_vm3, %v7865_v51, %v7739_v33 }
 0x1ef   : > { %13799 = vst [vmem:[#allocation47_spill] sm:$0xff] %v7882_v40  ;;  %v7884_v63 = vpop.f32.mrb[42].mxu0 }
 0x1f0   : > { %13800 = vst [vmem:[#allocation48_spill] sm:$0xff] %v7884_v63  ;;  %v7886_v54 = vpop.f32.mrb[40].mxu1  ;;  %v7888_v30 = vpop.f32.mrb[43].mxu0  ;;  %6394 = vmatmul.mubr.msk.f32.gmra.mrb[148].mxu0 %vm226_vm0, %v7421_v22 }
 0x1f1   : > { %13801 = vst [vmem:[#allocation49_spill] sm:$0xff] %v7886_v54  ;;  %13802 = vst [vmem:[#allocation50_spill] sm:$0xff] %v7888_v30  ;;  %v7892_v9 = vpop.f32.mrb[41].mxu1  ;;  %6408 = vmatmul.mubr.msk.f32.gmra.mrb[146].mxu1 %vm226_vm0, %v7316_v5  ;;  %2584 = vmatprep.mubr.f32.mxu0 %v13283_v7  ;;  %vm4397_vm4 = vcmp.gt.f32.partialorder %v7888_v30, %v7753_v62 }
 0x1f2   : > { %13803 = vst [vmem:[#allocation51_spill] sm:$0xff] %v7892_v9  ;;  %2733 = vmatprep.mubr.f32.mxu1 %v13283_v7  ;;  %v7905_v40 = vsel %vm4397_vm4, %v7888_v30, %v7753_v62 }
 0x1f3   : > { %13804 = vst [vmem:[#allocation52_spill] sm:$0xff] %v7905_v40  ;;  %v7907_v33 = vpop.f32.mrb[44].mxu0 }
 0x1f4   : > { %13805 = vst [vmem:[#allocation53_spill] sm:$0xff] %v7907_v33  ;;  %v7909_v9 = vpop.f32.mrb[42].mxu1  ;;  %v7911_v51 = vpop.f32.mrb[45].mxu0  ;;  %6395 = vmatmul.mubr.msk.f32.gmra.mrb[150].mxu0 %vm226_vm0, %v7438_v27 }
 0x1f5   : > { %13806 = vst [vmem:[#allocation54_spill] sm:$0xff] %v7909_v9  ;;  %13807 = vst [vmem:[#allocation55_spill] sm:$0xff] %v7911_v51  ;;  %v7915_v63 = vpop.f32.mrb[43].mxu1  ;;  %6409 = vmatmul.mubr.msk.f32.gmra.mrb[148].mxu1 %vm226_vm0, %v7233_v42  ;;  %2590 = vmatprep.mubr.f32.mxu0 %v13283_v7  ;;  %vm4398_vm5 = vcmp.gt.f32.partialorder %v7911_v51, %v7767_v46 }
 0x1f6   : > { %13808 = vst [vmem:[#allocation56_spill] sm:$0xff] %v7915_v63  ;;  %2739 = vmatprep.mubr.f32.mxu1 %v13283_v7  ;;  %v7928_v40 = vsel %vm4398_vm5, %v7911_v51, %v7767_v46 }
 0x1f7   : > { %13809 = vst [vmem:[#allocation57_spill] sm:$0xff] %v7928_v40  ;;  %v7930_v62 = vpop.f32.mrb[46].mxu0 }
 0x1f8   : > { %13810 = vst [vmem:[#allocation58_spill] sm:$0xff] %v7930_v62  ;;  %v7932_v63 = vpop.f32.mrb[44].mxu1  ;;  %v7934_v30 = vpop.f32.mrb[47].mxu0  ;;  %6396 = vmatmul.mubr.msk.f32.gmra.mrb[152].mxu0 %vm226_vm0, %v7461_v39 }
 0x1f9   : > { %13811 = vst [vmem:[#allocation59_spill] sm:$0xff] %v7932_v63  ;;  %13812 = vst [vmem:[#allocation60_spill] sm:$0xff] %v7934_v30  ;;  %v7938_v42 = vpop.f32.mrb[45].mxu1  ;;  %6410 = vmatmul.mubr.msk.f32.gmra.mrb[150].mxu1 %vm226_vm0, %v7247_v48  ;;  %2596 = vmatprep.mubr.f32.mxu0 %v13283_v7  ;;  %vm4399_vm6 = vcmp.gt.f32.partialorder %v7934_v30, %v7787_v35 }
 0x1fa   : > { %13813 = vst [vmem:[#allocation61_spill] sm:$0xff] %v7938_v42  ;;  %2745 = vmatprep.mubr.f32.mxu1 %v13283_v7  ;;  %v7951_v40 = vsel %vm4399_vm6, %v7934_v30, %v7787_v35 }
 0x1fb   : > { %13814 = vst [vmem:[#allocation62_spill] sm:$0xff] %v7951_v40  ;;  %v7953_v46 = vpop.f32.mrb[48].mxu0 }
 0x1fc   : > { %13815 = vst [vmem:[#allocation63_spill] sm:$0xff] %v7953_v46  ;;  %v7955_v42 = vpop.f32.mrb[46].mxu1  ;;  %v7957_v51 = vpop.f32.mrb[49].mxu0  ;;  %6397 = vmatmul.mubr.msk.f32.gmra.mrb[154].mxu0 %vm226_vm0, %v7472_v41 }
 0x1fd   : > { %13816 = vst [vmem:[#allocation64_spill] sm:$0xff] %v7955_v42  ;;  %13817 = vst [vmem:[#allocation65_spill] sm:$0xff] %v7957_v51  ;;  %v7961_v48 = vpop.f32.mrb[47].mxu1  ;;  %6411 = vmatmul.mubr.msk.f32.gmra.mrb[152].mxu1 %vm226_vm0, %v7266_v56  ;;  %2602 = vmatprep.mubr.f32.mxu0 %v13283_v7  ;;  %vm13372_vm7 = vcmp.gt.f32.partialorder %v7957_v51, %v7801_v25 }
 0x1fe   : > { %13818 = vst [vmem:[#allocation66_spill] sm:$0xff] %v7961_v48  ;;  %2751 = vmatprep.mubr.f32.mxu1 %v13283_v7  ;;  %v7974_v40 = vsel %vm13372_vm7, %v7957_v51, %v7801_v25 }
 0x1ff   : > { %13819 = vst [vmem:[#allocation67_spill] sm:$0xff] %v7974_v40  ;;  %v7976_v35 = vpop.f32.mrb[50].mxu0 }
 0x200   : > { %13820 = vst [vmem:[#allocation68_spill] sm:$0xff] %v7976_v35  ;;  %v7978_v48 = vpop.f32.mrb[48].mxu1  ;;  %v7980_v30 = vpop.f32.mrb[51].mxu0  ;;  %6398 = vmatmul.mubr.msk.f32.gmra.mrb[156].mxu0 %vm226_vm0, %v7489_v55 }
 0x201   : > { %13821 = vst [vmem:[#allocation69_spill] sm:$0xff] %v7978_v48  ;;  %13822 = vst [vmem:[#allocation70_spill] sm:$0xff] %v7980_v30  ;;  %v7984_v56 = vpop.f32.mrb[49].mxu1  ;;  %6412 = vmatmul.mubr.msk.f32.gmra.mrb[154].mxu1 %vm226_vm0, %v7280_v61  ;;  %2608 = vmatprep.mubr.f32.mxu0 %v13283_v7  ;;  %vm13361_vm8 = vcmp.gt.f32.partialorder %v7980_v30, %v7713_v49 }
 0x202   : > { %13823 = vst [vmem:[#allocation71_spill] sm:$0xff] %v7984_v56  ;;  %2757 = vmatprep.mubr.f32.mxu1 %v13283_v7  ;;  %v7997_v40 = vsel %vm13361_vm8, %v7980_v30, %v7713_v49 }
 0x203   : > { %13824 = vst [vmem:[#allocation72_spill] sm:$0xff] %v7997_v40  ;;  %v7999_v25 = vpop.f32.mrb[52].mxu0 }
 0x204   : > { %13825 = vst [vmem:[#allocation73_spill] sm:$0xff] %v7999_v25  ;;  %v8001_v56 = vpop.f32.mrb[50].mxu1  ;;  %v8003_v51 = vpop.f32.mrb[53].mxu0  ;;  %6399 = vmatmul.mubr.msk.f32.gmra.mrb[158].mxu0 %vm226_vm0, %v7508_v10 }
 0x205   : > { %13826 = vst [vmem:[#allocation74_spill] sm:$0xff] %v8001_v56  ;;  %13827 = vst [vmem:[#allocation75_spill] sm:$0xff] %v8003_v51  ;;  %v8007_v61 = vpop.f32.mrb[51].mxu1  ;;  %6413 = vmatmul.mubr.msk.f32.gmra.mrb[156].mxu1 %vm226_vm0, %v7296_v2  ;;  %2614 = vmatprep.mubr.f32.mxu0 %v13283_v7  ;;  %vm13350_vm9 = vcmp.gt.f32.partialorder %v8003_v51, %v7727_v0 }
 0x206   : > { %13828 = vst [vmem:[#allocation76_spill] sm:$0xff] %v8007_v61  ;;  %2763 = vmatprep.mubr.f32.mxu1 %v13283_v7  ;;  %v8020_v40 = vsel %vm13350_vm9, %v8003_v51, %v7727_v0 }
 0x207   : > { %13829 = vst [vmem:[#allocation77_spill] sm:$0xff] %v8020_v40  ;;  %v8022_v49 = vpop.f32.mrb[54].mxu0 }
 0x208   : > { %13830 = vst [vmem:[#allocation78_spill] sm:$0xff] %v8022_v49  ;;  %v8024_v61 = vpop.f32.mrb[52].mxu1  ;;  %v8026_v30 = vpop.f32.mrb[55].mxu0  ;;  %6400 = vmatmul.mubr.msk.f32.gmra.mrb[160].mxu0 %vm226_vm0, %v7517_v28 }
 0x209   : > { %13831 = vst [vmem:[#allocation79_spill] sm:$0xff] %v8024_v61  ;;  %13832 = vst [vmem:[#allocation80_spill] sm:$0xff] %v8026_v30  ;;  %v8030_v2 = vpop.f32.mrb[53].mxu1  ;;  %6414 = vmatmul.mubr.msk.f32.gmra.mrb[158].mxu1 %vm226_vm0, %v7308_v4  ;;  %2620 = vmatprep.mubr.f32.mxu0 %v13283_v7  ;;  %vm13338_vm10 = vcmp.gt.f32.partialorder %v8026_v30, %v7741_v36 }
 0x20a   : > { %13833 = vst [vmem:[#allocation81_spill] sm:$0xff] %v8030_v2  ;;  %2769 = vmatprep.mubr.f32.mxu1 %v13283_v7  ;;  %v8043_v40 = vsel %vm13338_vm10, %v8026_v30, %v7741_v36 }
 0x20b   : > { %13834 = vst [vmem:[#allocation82_spill] sm:$0xff] %v8043_v40  ;;  %v8045_v0 = vpop.f32.mrb[56].mxu0 }
 0x20c   : > { %13835 = vst [vmem:[#allocation83_spill] sm:$0xff] %v8045_v0  ;;  %v8047_v2 = vpop.f32.mrb[54].mxu1  ;;  %v8049_v51 = vpop.f32.mrb[57].mxu0  ;;  %6401 = vmatmul.mubr.msk.f32.gmra.mrb[162].mxu0 %vm226_vm0, %v7526_v34 }
 0x20d   : > { %13836 = vst [vmem:[#allocation84_spill] sm:$0xff] %v8047_v2  ;;  %13837 = vst [vmem:[#allocation85_spill] sm:$0xff] %v8049_v51  ;;  %v8053_v4 = vpop.f32.mrb[55].mxu1  ;;  %6415 = vmatmul.mubr.msk.f32.gmra.mrb[160].mxu1 %vm226_vm0, %v7320_v8  ;;  %2948 = vmatprep.mubr.f32.mxu0 %v13283_v7  ;;  %vm13327_vm11 = vcmp.gt.f32.partialorder %v8049_v51, %v7755_v37 }
 0x20e   : > { %13838 = vst [vmem:[#allocation86_spill] sm:$0xff] %v8053_v4  ;;  %2775 = vmatprep.mubr.f32.mxu1 %v13283_v7  ;;  %v8066_v40 = vsel %vm13327_vm11, %v8049_v51, %v7755_v37  ;;  %v13844_v7 = vpack.c.bf16 %v7417_v21, %v7423_v23  ;;  %v13846_v37 = vmov 0.0  }
 0x20f   : > { %13839 = vst [vmem:[#allocation87_spill] sm:$0xff] %v8066_v40  ;;  %v8068_v36 = vpop.f32.mrb[58].mxu0  ;;  %v13845_v40 = vpack.c.bf16 %v7499_v6, %v7491_v57 }
 0x210   : > { %13840 = vst [vmem:[#allocation88_spill] sm:$0xff] %v8068_v36  ;;  %v8070_v4 = vpop.f32.mrb[56].mxu1  ;;  %v8072_v30 = vpop.f32.mrb[59].mxu0  ;;  %6434 = vmatmul.mubr.msk.f32.vlgmr.msra.gmra.mrb[164].mxu0 %vm226_vm0, %v7230_v38 }
 0x211   : > { %13841 = vst [vmem:[#allocation89_spill] sm:$0xff] %v8070_v4  ;;  %13842 = vst [vmem:[#allocation90_spill] sm:$0xff] %v8072_v30  ;;  %v8076_v8 = vpop.f32.mrb[57].mxu1  ;;  %6416 = vmatmul.mubr.msk.f32.gmra.mrb[162].mxu1 %vm226_vm0, %v7329_v11  ;;  %6878 = vmatpush1.bf16.msra.mxu0 %v13844_v7  ;;  %vm13317_vm12 = vcmp.gt.f32.partialorder %v8072_v30, %v7769_v32 }
 0x212   : > { %13843 = vst [vmem:[#allocation91_spill] sm:$0xff] %v8076_v8  ;;  %6884 = vmatprep.subr.bf16.mxu0 %v13845_v40  ;;  %2781 = vmatprep.mubr.f32.mxu1 %v13846_v37  ;;  %v8094_v38 = vsel %vm13317_vm12, %v8072_v30, %v7769_v32  ;;  %v8455_v30 = vld [vmem:[%s7227_s12 + $0x60] sm:$0xff] }
 0x213   : > { %13847 = vst [vmem:[#allocation92_spill] sm:$0xff] %v8094_v38  ;;  %v8096_v11 = vpop.f32.mrb[60].mxu0  ;;  %2954 = vmatprep.mubr.f32.mxu0 %v13846_v37  ;;  %v8411_v38 = vld [vmem:[%s7227_s12 + $0x58] sm:$0xff] }
 0x214   : > { %13848 = vst [vmem:[#allocation93_spill] sm:$0xff] %v8096_v11  ;;  %v8099_v7 = vpop.f32.mrb[58].mxu1  ;;  %v8101_v21 = vpop.f32.mrb[61].mxu0  ;;  %6435 = vmatmul.mubr.msk.f32.gmra.mrb[166].mxu0 %vm226_vm0, %v7242_v45 }
 0x215   : > { %13849 = vst [vmem:[#allocation94_spill] sm:$0xff] %v8099_v7  ;;  %13850 = vst [vmem:[#allocation95_spill] sm:$0xff] %v8101_v21  ;;  %v8105_v23 = vpop.f32.mrb[59].mxu1  ;;  %6417 = vmatmul.mubr.msk.f32.gmra.mrb[164].mxu1 %vm226_vm0, %v7338_v12  ;;  %2960 = vmatprep.mubr.f32.mxu0 %v13846_v37  ;;  %vm13310_vm13 = vcmp.gt.f32.partialorder %v8101_v21, %v7789_v24 }
 0x216   : > { %13851 = vst [vmem:[#allocation96_spill] sm:$0xff] %v8105_v23  ;;  %2787 = vmatprep.mubr.f32.mxu1 %v13846_v37  ;;  %v8118_v57 = vsel %vm13310_vm13, %v8101_v21, %v7789_v24  ;;  %v8367_v24 = vld [vmem:[%s7227_s12 + $0x50] sm:$0xff] }
 0x217   : > { %13852 = vst [vmem:[#allocation97_spill] sm:$0xff] %v8118_v57  ;;  %v8120_v45 = vpop.f32.mrb[62].mxu0 }
 0x218   : > { %13853 = vst [vmem:[#allocation98_spill] sm:$0xff] %v8120_v45  ;;  %v8122_v6 = vpop.f32.mrb[60].mxu1  ;;  %v8124_v40 = vpop.f32.mrb[63].mxu0  ;;  %6436 = vmatmul.mubr.msk.f32.gmra.mrb[168].mxu0 %vm226_vm0, %v7261_v52 }
 0x219   : > { %13854 = vst [vmem:[#allocation99_spill] sm:$0xff] %v8122_v6  ;;  %13855 = vst [vmem:[#allocation100_spill] sm:$0xff] %v8124_v40  ;;  %v8128_v12 = vpop.f32.mrb[61].mxu1  ;;  %6418 = vmatmul.mubr.msk.f32.gmra.mrb[166].mxu1 %vm226_vm0, %v7347_v13  ;;  %2966 = vmatprep.mubr.f32.mxu0 %v13846_v37  ;;  %vm13307_vm14 = vcmp.gt.f32.partialorder %v8124_v40, %v7803_v29 }
 0x21a   : > { %13856 = vst [vmem:[#allocation101_spill] sm:$0xff] %v8128_v12  ;;  %2793 = vmatprep.mubr.f32.mxu1 %v13846_v37  ;;  %v8141_v23 = vsel %vm13307_vm14, %v8124_v40, %v7803_v29  ;;  %v8323_v40 = vld [vmem:[%s7227_s12 + $0x48] sm:$0xff] }
 0x21b   : > { %13857 = vst [vmem:[#allocation102_spill] sm:$0xff] %v8141_v23  ;;  %v8143_v52 = vpop.f32.mrb[64].mxu0 }
 0x21c   : > { %13858 = vst [vmem:[#allocation103_spill] sm:$0xff] %v8143_v52  ;;  %v8145_v12 = vpop.f32.mrb[62].mxu1  ;;  %v8147_v57 = vpop.f32.mrb[65].mxu0  ;;  %6437 = vmatmul.mubr.msk.f32.gmra.mrb[170].mxu0 %vm226_vm0, %v7276_v59 }
 0x21d   : > { %13859 = vst [vmem:[#allocation104_spill] sm:$0xff] %v8145_v12  ;;  %13860 = vst [vmem:[#allocation105_spill] sm:$0xff] %v8147_v57  ;;  %v8151_v13 = vpop.f32.mrb[63].mxu1  ;;  %6419 = vmatmul.mubr.msk.f32.gmra.mrb[168].mxu1 %vm226_vm0, %v7356_v14  ;;  %2972 = vmatprep.mubr.f32.mxu0 %v13846_v37  ;;  %vm13293_vm15 = vcmp.gt.f32.partialorder %v8147_v57, %v7817_v53 }
 0x21e   : > { %13861 = vst [vmem:[#allocation106_spill] sm:$0xff] %v8151_v13  ;;  %2799 = vmatprep.mubr.f32.mxu1 %v13846_v37  ;;  %v8164_v23 = vsel %vm13293_vm15, %v8147_v57, %v7817_v53  ;;  %v8279_v57 = vld [vmem:[%s7227_s12 + $0x40] sm:$0xff] }
 0x21f   : > { %13862 = vst [vmem:[#allocation107_spill] sm:$0xff] %v8164_v23  ;;  %v8166_v59 = vpop.f32.mrb[66].mxu0 }
 0x220   : > { %13863 = vst [vmem:[#allocation108_spill] sm:$0xff] %v8166_v59  ;;  %v8168_v13 = vpop.f32.mrb[64].mxu1  ;;  %v8170_v29 = vpop.f32.mrb[67].mxu0  ;;  %6438 = vmatmul.mubr.msk.f32.gmra.mrb[172].mxu0 %vm226_vm0, %v7292_v1 }
 0x221   : > { %13864 = vst [vmem:[#allocation109_spill] sm:$0xff] %v8168_v13  ;;  %13865 = vst [vmem:[#allocation110_spill] sm:$0xff] %v8170_v29  ;;  %v8174_v14 = vpop.f32.mrb[65].mxu1  ;;  %6420 = vmatmul.mubr.msk.f32.gmra.mrb[170].mxu1 %vm226_vm0, %v7365_v15  ;;  %2978 = vmatprep.mubr.f32.mxu0 %v13846_v37  ;;  %vm13297_vm15 = vcmp.gt.f32.partialorder %v8170_v29, %v7840_v31 }
 0x222   : > { %13866 = vst [vmem:[#allocation111_spill] sm:$0xff] %v8174_v14  ;;  %2805 = vmatprep.mubr.f32.mxu1 %v13846_v37  ;;  %v8187_v23 = vsel %vm13297_vm15, %v8170_v29, %v7840_v31 }
 0x223   : > { %13867 = vst [vmem:[#allocation112_spill] sm:$0xff] %v8187_v23  ;;  %v8189_v1 = vpop.f32.mrb[68].mxu0 }
 0x224   : > { %13868 = vst [vmem:[#allocation113_spill] sm:$0xff] %v8189_v1  ;;  %v8191_v14 = vpop.f32.mrb[66].mxu1  ;;  %v8193_v53 = vpop.f32.mrb[69].mxu0  ;;  %6439 = vmatmul.mubr.msk.f32.gmra.mrb[174].mxu0 %vm226_vm0, %v7304_v3 }
 0x225   : > { %13869 = vst [vmem:[#allocation114_spill] sm:$0xff] %v8191_v14  ;;  %13870 = vst [vmem:[#allocation115_spill] sm:$0xff] %v8193_v53  ;;  %v8197_v15 = vpop.f32.mrb[67].mxu1  ;;  %6421 = vmatmul.mubr.msk.f32.gmra.mrb[172].mxu1 %vm226_vm0, %v7374_v16  ;;  %2984 = vmatprep.mubr.f32.mxu0 %v13846_v37  ;;  %vm13301_vm15 = vcmp.gt.f32.partialorder %v8193_v53, %v7863_v60 }
 0x226   : > { %13871 = vst [vmem:[#allocation116_spill] sm:$0xff] %v8197_v15  ;;  %2811 = vmatprep.mubr.f32.mxu1 %v13846_v37  ;;  %v8210_v23 = vsel %vm13301_vm15, %v8193_v53, %v7863_v60  ;;  %v8242_v60 = vld [vmem:[%s7227_s12 + $0x38] sm:$0xff] }
 0x227   : > { %13872 = vst [vmem:[#allocation117_spill] sm:$0xff] %v8210_v23  ;;  %v8212_v3 = vpop.f32.mrb[70].mxu0 }
 0x228   : > { %13873 = vst [vmem:[#allocation118_spill] sm:$0xff] %v8212_v3  ;;  %v8214_v15 = vpop.f32.mrb[68].mxu1  ;;  %v8216_v16 = vpop.f32.mrb[71].mxu0  ;;  %6440 = vmatmul.mubr.msk.f32.gmra.mrb[176].mxu0 %vm226_vm0, %v7316_v5 }
 0x229   : > { %13874 = vst [vmem:[#allocation119_spill] sm:$0xff] %v8214_v15  ;;  %13875 = vst [vmem:[#allocation120_spill] sm:$0xff] %v8216_v16  ;;  %v8220_v31 = vpop.f32.mrb[69].mxu1  ;;  %6422 = vmatmul.mubr.msk.f32.gmra.mrb[174].mxu1 %vm226_vm0, %v7383_v17  ;;  %2990 = vmatprep.mubr.f32.mxu0 %v13846_v37  ;;  %vm13306_vm15 = vcmp.gt.f32.partialorder %v8216_v16, %v7886_v54 }
 0x22a   : > { %13876 = vst [vmem:[#allocation121_spill] sm:$0xff] %v8220_v31  ;;  %2817 = vmatprep.mubr.f32.mxu1 %v13846_v37  ;;  %v8233_v23 = vsel %vm13306_vm15, %v8216_v16, %v7886_v54 }
 0x22b   : > { %13877 = vst [vmem:[#allocation122_spill] sm:$0xff] %v8233_v23  ;;  %v8235_v5 = vpop.f32.mrb[72].mxu0 }
 0x22c   : > { %13878 = vst [vmem:[#allocation123_spill] sm:$0xff] %v8235_v5  ;;  %v8237_v31 = vpop.f32.mrb[70].mxu1  ;;  %v8239_v17 = vpop.f32.mrb[73].mxu0  ;;  %6441 = vmatmul.mubr.msk.f32.gmra.mrb[178].mxu0 %vm226_vm0, %v8242_v60 }
 0x22d   : > { %13879 = vst [vmem:[#allocation124_spill] sm:$0xff] %v8239_v17  ;;  %v8246_v53 = vpop.f32.mrb[71].mxu1  ;;  %6423 = vmatmul.mubr.msk.f32.gmra.mrb[176].mxu1 %vm226_vm0, %v7392_v18  ;;  %2996 = vmatprep.mubr.f32.mxu0 %v13846_v37  ;;  %vm4970_vm15 = vcmp.gt.f32.partialorder %v8237_v31, %v7717_v50  ;;  %vm13316_vm14 = vcmp.gt.f32.partialorder %v8239_v17, %v7909_v9 }
 0x22e   : > { %13880 = vst [vmem:[#allocation125_spill] sm:$0xff] %v8246_v53  ;;  %2823 = vmatprep.mubr.f32.mxu1 %v13846_v37  ;;  %v8261_v23 = vsel %vm4970_vm15, %v8237_v31, %v7717_v50  ;;  %v8268_v18 = vsel %vm13316_vm14, %v8239_v17, %v7909_v9  ;;  %vm13320_vm13 = vcmp.gt.f32.partialorder %v8246_v53, %v7815_v44  ;;  %v8889_v50 = vld [vmem:[%s7227_s12 + $0x18] sm:$0xff]  ;;  %v13986_v31 = vld [vmem:[#allocation36_spill] sm:$0xff] }
 0x22f   : > { %13881 = vst [vmem:[#allocation126_spill] sm:$0xff] %v8268_v18  ;;  %v8270_v54 = vpop.f32.mrb[74].mxu0  ;;  %v8288_v18 = vsel %vm13320_vm13, %v8246_v53, %v7815_v44 }
 0x230   : > { %13882 = vst [vmem:[#allocation127_spill] sm:$0xff] %v8270_v54  ;;  %v8274_v16 = vpop.f32.mrb[72].mxu1  ;;  %v8276_v29 = vpop.f32.mrb[75].mxu0  ;;  %6442 = vmatmul.mubr.msk.f32.gmra.mrb[180].mxu0 %vm226_vm0, %v8279_v57  ;;  %13884 = vst [vmem:[#allocation129_spill] sm:$0xff] %v8288_v18 }
 0x231   : > { %13883 = vst [vmem:[#allocation128_spill] sm:$0xff] %v8276_v29  ;;  %v8290_v9 = vpop.f32.mrb[73].mxu1  ;;  %6424 = vmatmul.mubr.msk.f32.gmra.mrb[178].mxu1 %vm226_vm0, %v7401_v19  ;;  %3002 = vmatprep.mubr.f32.mxu0 %v13846_v37  ;;  %vm4971_vm14 = vcmp.gt.f32.partialorder %v8274_v16, %v7731_v26  ;;  %vm13326_vm12 = vcmp.gt.f32.partialorder %v8276_v29, %v7932_v63 }
 0x232   : > { %13885 = vst [vmem:[#allocation130_spill] sm:$0xff] %v8290_v9  ;;  %2829 = vmatprep.mubr.f32.mxu1 %v13846_v37  ;;  %v8305_v18 = vsel %vm4971_vm14, %v8274_v16, %v7731_v26  ;;  %v8312_v19 = vsel %vm13326_vm12, %v8276_v29, %v7932_v63  ;;  %vm13330_vm13 = vcmp.gt.f32.partialorder %v8290_v9, %v7838_v58  ;;  %v8943_v26 = vld [vmem:[%s7227_s12 + $0x20] sm:$0xff]  ;;  %v13998_v16 = vld [vmem:[#allocation41_spill] sm:$0xff] }
 0x233   : > { %13886 = vst [vmem:[#allocation131_spill] sm:$0xff] %v8312_v19  ;;  %v8314_v44 = vpop.f32.mrb[76].mxu0  ;;  %v8332_v19 = vsel %vm13330_vm13, %v8290_v9, %v7838_v58 }
 0x234   : > { %13887 = vst [vmem:[#allocation132_spill] sm:$0xff] %v8314_v44  ;;  %v8318_v53 = vpop.f32.mrb[74].mxu1  ;;  %v8320_v17 = vpop.f32.mrb[77].mxu0  ;;  %6443 = vmatmul.mubr.msk.f32.gmra.mrb[182].mxu0 %vm226_vm0, %v8323_v40  ;;  %13889 = vst [vmem:[#allocation134_spill] sm:$0xff] %v8332_v19 }
 0x235   : > { %13888 = vst [vmem:[#allocation133_spill] sm:$0xff] %v8320_v17  ;;  %v8334_v63 = vpop.f32.mrb[75].mxu1  ;;  %6425 = vmatmul.mubr.msk.f32.gmra.mrb[180].mxu1 %vm226_vm0, %v7410_v20  ;;  %3008 = vmatprep.mubr.f32.mxu0 %v13846_v37  ;;  %vm4972_vm12 = vcmp.gt.f32.partialorder %v8318_v53, %v7745_v43  ;;  %vm13337_vm11 = vcmp.gt.f32.partialorder %v8320_v17, %v7955_v42 }
 0x236   : > { %13890 = vst [vmem:[#allocation135_spill] sm:$0xff] %v8334_v63  ;;  %2835 = vmatprep.mubr.f32.mxu1 %v13846_v37  ;;  %v8349_v19 = vsel %vm4972_vm12, %v8318_v53, %v7745_v43  ;;  %v8356_v20 = vsel %vm13337_vm11, %v8320_v17, %v7955_v42  ;;  %vm13342_vm13 = vcmp.gt.f32.partialorder %v8334_v63, %v7861_v47  ;;  %v13896_v17 = vld [vmem:[#allocation19_spill] sm:$0xff]  ;;  %v9049_v43 = vld [vmem:[%s7227_s12 + $0x30] sm:$0xff] }
 0x237   : > { %13891 = vst [vmem:[#allocation136_spill] sm:$0xff] %v8356_v20  ;;  %v8358_v58 = vpop.f32.mrb[78].mxu0  ;;  %v8376_v20 = vsel %vm13342_vm13, %v8334_v63, %v7861_v47  ;;  %v13899_v63 = vld [vmem:[#allocation48_spill] sm:$0xff] }
 0x238   : > { %13892 = vst [vmem:[#allocation137_spill] sm:$0xff] %v8358_v58  ;;  %v8362_v9 = vpop.f32.mrb[76].mxu1  ;;  %v8364_v29 = vpop.f32.mrb[79].mxu0  ;;  %6444 = vmatmul.mubr.msk.f32.gmra.mrb[184].mxu0 %vm226_vm0, %v8367_v24  ;;  %13894 = vst [vmem:[#allocation139_spill] sm:$0xff] %v8376_v20 }
 0x239   : > { %13893 = vst [vmem:[#allocation138_spill] sm:$0xff] %v8364_v29  ;;  %v8378_v42 = vpop.f32.mrb[77].mxu1  ;;  %6426 = vmatmul.mubr.msk.f32.gmra.mrb[182].mxu1 %vm226_vm0, %v7421_v22  ;;  %3014 = vmatprep.mubr.f32.mxu0 %v13846_v37  ;;  %vm4973_vm11 = vcmp.gt.f32.partialorder %v8362_v9, %v13896_v17  ;;  %vm13349_vm10 = vcmp.gt.f32.partialorder %v8364_v29, %v7978_v48 }
 0x23a   : > { %13895 = vst [vmem:[#allocation140_spill] sm:$0xff] %v8378_v42  ;;  %2841 = vmatprep.mubr.f32.mxu1 %v13846_v37  ;;  %v8393_v20 = vsel %vm4973_vm11, %v8362_v9, %v13896_v17  ;;  %v8400_v22 = vsel %vm13349_vm10, %v8364_v29, %v7978_v48  ;;  %vm13353_vm13 = vcmp.gt.f32.partialorder %v8378_v42, %v13899_v63  ;;  %v13903_v29 = vld [vmem:[#allocation23_spill] sm:$0xff] }
 0x23b   : > { %13897 = vst [vmem:[#allocation19_spill] sm:$0xff] %v8400_v22  ;;  %v8402_v47 = vpop.f32.mrb[80].mxu0  ;;  %v8420_v22 = vsel %vm13353_vm13, %v8378_v42, %v13899_v63 }
 0x23c   : > { %13898 = vst [vmem:[#allocation141_spill] sm:$0xff] %v8402_v47  ;;  %v8406_v21 = vpop.f32.mrb[78].mxu1  ;;  %v8408_v8 = vpop.f32.mrb[81].mxu0  ;;  %6445 = vmatmul.mubr.msk.f32.gmra.mrb[186].mxu0 %vm226_vm0, %v8411_v38  ;;  %13901 = vst [vmem:[#allocation143_spill] sm:$0xff] %v8420_v22 }
 0x23d   : > { %13900 = vst [vmem:[#allocation142_spill] sm:$0xff] %v8408_v8  ;;  %v8422_v48 = vpop.f32.mrb[79].mxu1  ;;  %6427 = vmatmul.mubr.msk.f32.gmra.mrb[184].mxu1 %vm226_vm0, %v7438_v27  ;;  %3020 = vmatprep.mubr.f32.mxu0 %v13846_v37  ;;  %vm4974_vm10 = vcmp.gt.f32.partialorder %v8406_v21, %v13903_v29  ;;  %vm13360_vm9 = vcmp.gt.f32.partialorder %v8408_v8, %v8001_v56 }
 0x23e   : > { %13902 = vst [vmem:[#allocation144_spill] sm:$0xff] %v8422_v48  ;;  %2847 = vmatprep.mubr.f32.mxu1 %v13846_v37  ;;  %v8437_v22 = vsel %vm4974_vm10, %v8406_v21, %v13903_v29  ;;  %v8444_v27 = vsel %vm13360_vm9, %v8408_v8, %v8001_v56  ;;  %vm13364_vm13 = vcmp.gt.f32.partialorder %v8422_v48, %v7907_v33  ;;  %v13909_v8 = vld [vmem:[#allocation27_spill] sm:$0xff] }
 0x23f   : > { %13904 = vst [vmem:[#allocation23_spill] sm:$0xff] %v8444_v27  ;;  %v8446_v63 = vpop.f32.mrb[82].mxu0  ;;  %v8464_v27 = vsel %vm13364_vm13, %v8422_v48, %v7907_v33 }
 0x240   : > { %13905 = vst [vmem:[#allocation145_spill] sm:$0xff] %v8446_v63  ;;  %v8450_v42 = vpop.f32.mrb[80].mxu1  ;;  %v8452_v32 = vpop.f32.mrb[83].mxu0  ;;  %6446 = vmatmul.mubr.msk.f32.gmra.mrb[188].mxu0 %vm226_vm0, %v8455_v30  ;;  %13907 = vst [vmem:[#allocation147_spill] sm:$0xff] %v8464_v27  ;;  %v8499_v63 = vld [vmem:[%s7227_s12 + $0x68] sm:$0xff] }
 0x241   : > { %13906 = vst [vmem:[#allocation146_spill] sm:$0xff] %v8452_v32  ;;  %v8466_v56 = vpop.f32.mrb[81].mxu1  ;;  %6428 = vmatmul.mubr.msk.f32.gmra.mrb[186].mxu1 %vm226_vm0, %v7461_v39  ;;  %3026 = vmatprep.mubr.f32.mxu0 %v13846_v37  ;;  %vm4975_vm9 = vcmp.gt.f32.partialorder %v8450_v42, %v13909_v8  ;;  %vm13371_vm8 = vcmp.gt.f32.partialorder %v8452_v32, %v8024_v61  ;;  %13913 = vst [vmem:[#allocation151_spill] sm:$0xff] %v8499_v63 }
 0x242   : > { %13908 = vst [vmem:[#allocation148_spill] sm:$0xff] %v8466_v56  ;;  %2853 = vmatprep.mubr.f32.mxu1 %v13846_v37  ;;  %v8481_v27 = vsel %vm4975_vm9, %v8450_v42, %v13909_v8  ;;  %v8488_v39 = vsel %vm13371_vm8, %v8452_v32, %v8024_v61  ;;  %vm13375_vm13 = vcmp.gt.f32.partialorder %v8466_v56, %v7930_v62  ;;  %v13916_v32 = vld [vmem:[#allocation31_spill] sm:$0xff]  ;;  %v14042_v42 = vld [vmem:[#allocation65_spill] sm:$0xff] }
 0x243   : > { %13910 = vst [vmem:[#allocation27_spill] sm:$0xff] %v8488_v39  ;;  %v8490_v33 = vpop.f32.mrb[84].mxu0  ;;  %v8508_v39 = vsel %vm13375_vm13, %v8466_v56, %v7930_v62  ;;  %v14043_v8 = vld [vmem:[#allocation29_spill] sm:$0xff] }
 0x244   : > { %13911 = vst [vmem:[#allocation149_spill] sm:$0xff] %v8490_v33  ;;  %v8494_v48 = vpop.f32.mrb[82].mxu1  ;;  %v8496_v51 = vpop.f32.mrb[85].mxu0  ;;  %6447 = vmatmul.mubr.msk.f32.gmra.mrb[190].mxu0 %vm226_vm0, %v8499_v63  ;;  %13914 = vst [vmem:[#allocation152_spill] sm:$0xff] %v8508_v39  ;;  %v8543_v63 = vld [vmem:[%s7227_s12 + $0x70] sm:$0xff] }
 0x245   : > { %13912 = vst [vmem:[#allocation150_spill] sm:$0xff] %v8496_v51  ;;  %v8510_v61 = vpop.f32.mrb[83].mxu1  ;;  %6429 = vmatmul.mubr.msk.f32.gmra.mrb[188].mxu1 %vm226_vm0, %v7472_v41  ;;  %3032 = vmatprep.mubr.f32.mxu0 %v13846_v37  ;;  %vm13383_vm8 = vcmp.gt.f32.partialorder %v8494_v48, %v13916_v32  ;;  %vm13382_vm7 = vcmp.gt.f32.partialorder %v8496_v51, %v8047_v2  ;;  %13920 = vst [vmem:[#allocation156_spill] sm:$0xff] %v8543_v63 }
 0x246   : > { %13915 = vst [vmem:[#allocation153_spill] sm:$0xff] %v8510_v61  ;;  %2859 = vmatprep.mubr.f32.mxu1 %v13846_v37  ;;  %v8525_v39 = vsel %vm13383_vm8, %v8494_v48, %v13916_v32  ;;  %v8532_v41 = vsel %vm13382_vm7, %v8496_v51, %v8047_v2  ;;  %vm13386_vm13 = vcmp.gt.f32.partialorder %v8510_v61, %v7953_v46  ;;  %v13923_v51 = vld [vmem:[#allocation10_spill] sm:$0xff] }
 0x247   : > { %13917 = vst [vmem:[#allocation31_spill] sm:$0xff] %v8532_v41  ;;  %v8534_v62 = vpop.f32.mrb[86].mxu0  ;;  %v8552_v41 = vsel %vm13386_vm13, %v8510_v61, %v7953_v46 }
 0x248   : > { %13918 = vst [vmem:[#allocation154_spill] sm:$0xff] %v8534_v62  ;;  %v8538_v56 = vpop.f32.mrb[84].mxu1  ;;  %v8540_v33 = vpop.f32.mrb[87].mxu0  ;;  %6448 = vmatmul.mubr.msk.f32.gmra.mrb[192].mxu0 %vm226_vm0, %v8543_v63  ;;  %13921 = vst [vmem:[#allocation157_spill] sm:$0xff] %v8552_v41  ;;  %v8587_v63 = vld [vmem:[%s7227_s12 + $0x78] sm:$0xff] }
 0x249   : > { %13919 = vst [vmem:[#allocation155_spill] sm:$0xff] %v8540_v33  ;;  %v8554_v2 = vpop.f32.mrb[85].mxu1  ;;  %6430 = vmatmul.mubr.msk.f32.gmra.mrb[190].mxu1 %vm226_vm0, %v7489_v55  ;;  %3038 = vmatprep.mubr.f32.mxu0 %v13846_v37  ;;  %vm13394_vm7 = vcmp.gt.f32.partialorder %v8538_v56, %v13923_v51  ;;  %vm13393_vm8 = vcmp.gt.f32.partialorder %v8540_v33, %v8070_v4  ;;  %13927 = vst [vmem:[#allocation161_spill] sm:$0xff] %v8587_v63 }
 0x24a   : > { %13922 = vst [vmem:[#allocation158_spill] sm:$0xff] %v8554_v2  ;;  %2865 = vmatprep.mubr.f32.mxu1 %v13846_v37  ;;  %v8569_v41 = vsel %vm13394_vm7, %v8538_v56, %v13923_v51  ;;  %v8576_v55 = vsel %vm13393_vm8, %v8540_v33, %v8070_v4  ;;  %vm13397_vm13 = vcmp.gt.f32.partialorder %v8554_v2, %v7976_v35  ;;  %v13930_v33 = vld [vmem:[#allocation13_spill] sm:$0xff] }
 0x24b   : > { %13924 = vst [vmem:[#allocation10_spill] sm:$0xff] %v8576_v55  ;;  %v8578_v46 = vpop.f32.mrb[88].mxu0  ;;  %v8596_v55 = vsel %vm13397_vm13, %v8554_v2, %v7976_v35 }
 0x24c   : > { %13925 = vst [vmem:[#allocation159_spill] sm:$0xff] %v8578_v46  ;;  %v8582_v61 = vpop.f32.mrb[86].mxu1  ;;  %v8584_v62 = vpop.f32.mrb[89].mxu0  ;;  %6449 = vmatmul.mubr.msk.f32.gmra.mrb[194].mxu0 %vm226_vm0, %v8587_v63  ;;  %13928 = vst [vmem:[#allocation162_spill] sm:$0xff] %v8596_v55  ;;  %v8631_v63 = vld [vmem:[%s7227_s12 + $0x80] sm:$0xff] }
 0x24d   : > { %13926 = vst [vmem:[#allocation160_spill] sm:$0xff] %v8584_v62  ;;  %v8598_v4 = vpop.f32.mrb[87].mxu1  ;;  %6431 = vmatmul.mubr.msk.f32.gmra.mrb[192].mxu1 %vm226_vm0, %v7508_v10  ;;  %3044 = vmatprep.mubr.f32.mxu0 %v13846_v37  ;;  %vm13405_vm8 = vcmp.gt.f32.partialorder %v8582_v61, %v13930_v33  ;;  %vm13404_vm7 = vcmp.gt.f32.partialorder %v8584_v62, %v8099_v7  ;;  %13934 = vst [vmem:[#allocation166_spill] sm:$0xff] %v8631_v63 }
 0x24e   : > { %13929 = vst [vmem:[#allocation163_spill] sm:$0xff] %v8598_v4  ;;  %2871 = vmatprep.mubr.f32.mxu1 %v13846_v37  ;;  %v8613_v55 = vsel %vm13405_vm8, %v8582_v61, %v13930_v33  ;;  %v8620_v10 = vsel %vm13404_vm7, %v8584_v62, %v8099_v7  ;;  %vm13408_vm13 = vcmp.gt.f32.partialorder %v8598_v4, %v7999_v25  ;;  %v13937_v62 = vld [vmem:[#allocation16_spill] sm:$0xff] }
 0x24f   : > { %13931 = vst [vmem:[#allocation13_spill] sm:$0xff] %v8620_v10  ;;  %v8622_v35 = vpop.f32.mrb[90].mxu0  ;;  %v8640_v10 = vsel %vm13408_vm13, %v8598_v4, %v7999_v25 }
 0x250   : > { %13932 = vst [vmem:[#allocation164_spill] sm:$0xff] %v8622_v35  ;;  %v8626_v2 = vpop.f32.mrb[88].mxu1  ;;  %v8628_v46 = vpop.f32.mrb[91].mxu0  ;;  %6450 = vmatmul.mubr.msk.f32.gmra.mrb[196].mxu0 %vm226_vm0, %v8631_v63  ;;  %13935 = vst [vmem:[#allocation167_spill] sm:$0xff] %v8640_v10  ;;  %v8675_v63 = vld [vmem:[%s7227_s12 + $0x88] sm:$0xff] }
 0x251   : > { %13933 = vst [vmem:[#allocation165_spill] sm:$0xff] %v8628_v46  ;;  %v8642_v7 = vpop.f32.mrb[89].mxu1  ;;  %6432 = vmatmul.mubr.msk.f32.gmra.mrb[194].mxu1 %vm226_vm0, %v7517_v28  ;;  %3050 = vmatprep.mubr.f32.mxu0 %v13846_v37  ;;  %vm13416_vm7 = vcmp.gt.f32.partialorder %v8626_v2, %v13937_v62  ;;  %vm13415_vm8 = vcmp.gt.f32.partialorder %v8628_v46, %v8122_v6  ;;  %13941 = vst [vmem:[#allocation171_spill] sm:$0xff] %v8675_v63 }
 0x252   : > { %13936 = vst [vmem:[#allocation168_spill] sm:$0xff] %v8642_v7  ;;  %2877 = vmatprep.mubr.f32.mxu1 %v13846_v37  ;;  %v8657_v10 = vsel %vm13416_vm7, %v8626_v2, %v13937_v62  ;;  %v8664_v28 = vsel %vm13415_vm8, %v8628_v46, %v8122_v6  ;;  %vm13419_vm13 = vcmp.gt.f32.partialorder %v8642_v7, %v8022_v49  ;;  %v13944_v46 = vld [vmem:[#allocation20_spill] sm:$0xff] }
 0x253   : > { %13938 = vst [vmem:[#allocation16_spill] sm:$0xff] %v8664_v28  ;;  %v8666_v25 = vpop.f32.mrb[92].mxu0  ;;  %v8684_v28 = vsel %vm13419_vm13, %v8642_v7, %v8022_v49 }
 0x254   : > { %13939 = vst [vmem:[#allocation169_spill] sm:$0xff] %v8666_v25  ;;  %v8670_v4 = vpop.f32.mrb[90].mxu1  ;;  %v8672_v35 = vpop.f32.mrb[93].mxu0  ;;  %6451 = vmatmul.mubr.msk.f32.gmra.mrb[198].mxu0 %vm226_vm0, %v8675_v63  ;;  %13942 = vst [vmem:[#allocation172_spill] sm:$0xff] %v8684_v28  ;;  %v8719_v63 = vld [vmem:[%s7227_s12 + $0x90] sm:$0xff] }
 0x255   : > { %13940 = vst [vmem:[#allocation170_spill] sm:$0xff] %v8672_v35  ;;  %v8686_v6 = vpop.f32.mrb[91].mxu1  ;;  %6433 = vmatmul.mubr.msk.f32.gmra.mrb[196].mxu1 %vm226_vm0, %v7526_v34  ;;  %3056 = vmatprep.mubr.f32.mxu0 %v13846_v37  ;;  %vm13428_vm8 = vcmp.gt.f32.partialorder %v8670_v4, %v13944_v46  ;;  %vm13427_vm7 = vcmp.gt.f32.partialorder %v8672_v35, %v8145_v12  ;;  %13948 = vst [vmem:[#allocation177_spill] sm:$0xff] %v8719_v63 }
 0x256   : > { %13943 = vst [vmem:[#allocation173_spill] sm:$0xff] %v8686_v6  ;;  %3205 = vmatprep.mubr.f32.mxu1 %v13846_v37  ;;  %v8701_v28 = vsel %vm13428_vm8, %v8670_v4, %v13944_v46  ;;  %v8708_v34 = vsel %vm13427_vm7, %v8672_v35, %v8145_v12  ;;  %vm13435_vm13 = vcmp.gt.f32.partialorder %v8686_v6, %v8045_v0  ;;  %v8733_v35 = vld [vmem:[%s7227_s12] sm:$0xff]  ;;  %v13957_v46 = vld [vmem:[#allocation5_spill] sm:$0xff] }
 0x257   : > { %13945 = vst [vmem:[#allocation174_spill] sm:$0xff] %v8708_v34  ;;  %v8710_v49 = vpop.f32.mrb[94].mxu0  ;;  %v8728_v34 = vsel %vm13435_vm13, %v8686_v6, %v8045_v0  ;;  %13951 = vst [vmem:[#allocation180_spill] sm:$0xff] %v8733_v35  ;;  %v13954_v0 = vld [vmem:[#allocation3_spill] sm:$0xff] }
 0x258   : > { %13946 = vst [vmem:[#allocation175_spill] sm:$0xff] %v8710_v49  ;;  %v8714_v7 = vpop.f32.mrb[92].mxu1  ;;  %v8716_v25 = vpop.f32.mrb[95].mxu0  ;;  %6452 = vmatmul.mubr.msk.f32.gmra.mrb[200].mxu0 %vm226_vm0, %v8719_v63  ;;  %13949 = vst [vmem:[#allocation178_spill] sm:$0xff] %v8728_v34  ;;  %v13952_v49 = vld [vmem:[#allocation24_spill] sm:$0xff] }
 0x259   : > { %13947 = vst [vmem:[#allocation176_spill] sm:$0xff] %v8716_v25  ;;  %v8730_v12 = vpop.f32.mrb[93].mxu1  ;;  %6466 = vmatmul.mubr.msk.f32.vlgmr.msra.gmra.mrb[198].mxu1 %vm226_vm0, %v8733_v35  ;;  %3062 = vmatprep.mubr.f32.mxu0 %v13846_v37  ;;  %vm13441_vm7 = vcmp.gt.f32.partialorder %v8714_v7, %v13952_v49  ;;  %vm13440_vm8 = vcmp.gt.f32.partialorder %v8716_v25, %v8168_v13  ;;  %v13953_v63 = vld [vmem:[#allocation4_spill] sm:$0xff] }
 0x25a   : > { %13950 = vst [vmem:[#allocation179_spill] sm:$0xff] %v8730_v12  ;;  %v13955_v34 = vpack.c.bf16 %v13953_v63, %v13954_v0  ;;  %3211 = vmatprep.mubr.f32.mxu1 %v13846_v37  ;;  %v8751_v6 = vsel %vm13441_vm7, %v8714_v7, %v13952_v49  ;;  %v8758_v35 = vsel %vm13440_vm8, %v8716_v25, %v8168_v13  ;;  %v8770_v49 = vld [vmem:[%s7227_s12 + $0x98] sm:$0xff]  ;;  %v8784_v13 = vld [vmem:[%s7227_s12 + $0x8] sm:$0xff] }
 0x25b   : > { %13956 = vst [vmem:[#allocation4_spill] sm:$0xff] %v8758_v35  ;;  %v8761_v63 = vpop.f32.mrb[96].mxu0  ;;  %vm13445_vm13 = vcmp.gt.f32.partialorder %v8730_v12, %v8068_v36  ;;  %13961 = vst [vmem:[#allocation183_spill] sm:$0xff] %v8770_v49  ;;  %v13965_v25 = vld [vmem:[#allocation28_spill] sm:$0xff] }
 0x25c   : > { %6882 = vmatpush1.bf16.msra.mxu1 %v13955_v34  ;;  %13958 = vst [vmem:[#allocation3_spill] sm:$0xff] %v8761_v63  ;;  %v8765_v0 = vpop.f32.mrb[94].mxu1  ;;  %v8767_v34 = vpop.f32.mrb[97].mxu0  ;;  %6453 = vmatmul.mubr.msk.f32.gmra.mrb[202].mxu0 %vm226_vm0, %v8770_v49  ;;  %13964 = vst [vmem:[#allocation186_spill] sm:$0xff] %v8784_v13 }
 0x25d   : > { %6888 = vmatprep.subr.bf16.mxu1 %v13957_v46  ;;  %13959 = vst [vmem:[#allocation181_spill] sm:$0xff] %v8765_v0  ;;  %13960 = vst [vmem:[#allocation182_spill] sm:$0xff] %v8767_v34  ;;  %v8779_v46 = vsel %vm13445_vm13, %v8730_v12, %v8068_v36  ;;  %v8781_v35 = vpop.f32.mrb[95].mxu1  ;;  %6467 = vmatmul.mubr.msk.f32.gmra.mrb[200].mxu1 %vm226_vm0, %v8784_v13  ;;  %vm13454_vm8 = vcmp.gt.f32.partialorder %v8765_v0, %v13965_v25  ;;  %v8817_v13 = vld [vmem:[%s7227_s12 + $0xa0] sm:$0xff] }
 0x25e   : > { %13962 = vst [vmem:[#allocation184_spill] sm:$0xff] %v8779_v46  ;;  %13963 = vst [vmem:[#allocation185_spill] sm:$0xff] %v8781_v35  ;;  %3068 = vmatprep.mubr.f32.mxu0 %v13846_v37  ;;  %vm13453_vm7 = vcmp.gt.f32.partialorder %v8767_v34, %v8191_v14  ;;  %3217 = vmatprep.mubr.f32.mxu1 %v13846_v37  ;;  %v8799_v46 = vsel %vm13454_vm8, %v8765_v0, %v13965_v25 }
 0x25f   : > { %13966 = vst [vmem:[#allocation187_spill] sm:$0xff] %v8799_v46  ;;  %v8806_v36 = vsel %vm13453_vm7, %v8767_v34, %v8191_v14  ;;  %v8808_v12 = vpop.f32.mrb[98].mxu0  ;;  %vm13458_vm13 = vcmp.gt.f32.partialorder %v8781_v35, %v8096_v11  ;;  %13971 = vst [vmem:[#allocation192_spill] sm:$0xff] %v8817_v13  ;;  %v8831_v34 = vld [vmem:[%s7227_s12 + $0x10] sm:$0xff] }
 0x260   : > { %13967 = vst [vmem:[#allocation188_spill] sm:$0xff] %v8806_v36  ;;  %13968 = vst [vmem:[#allocation189_spill] sm:$0xff] %v8808_v12  ;;  %v8812_v63 = vpop.f32.mrb[96].mxu1  ;;  %v8814_v49 = vpop.f32.mrb[99].mxu0  ;;  %6454 = vmatmul.mubr.msk.f32.gmra.mrb[204].mxu0 %vm226_vm0, %v8817_v13  ;;  %v8826_v36 = vsel %vm13458_vm13, %v8781_v35, %v8096_v11  ;;  %v13975_v12 = vld [vmem:[#allocation32_spill] sm:$0xff] }
 0x261   : > { %13969 = vst [vmem:[#allocation190_spill] sm:$0xff] %v8812_v63  ;;  %13970 = vst [vmem:[#allocation191_spill] sm:$0xff] %v8814_v49  ;;  %v8828_v14 = vpop.f32.mrb[97].mxu1  ;;  %6468 = vmatmul.mubr.msk.f32.gmra.mrb[202].mxu1 %vm226_vm0, %v8831_v34  ;;  %3074 = vmatprep.mubr.f32.mxu0 %v13846_v37  ;;  %vm13465_vm7 = vcmp.gt.f32.partialorder %v8812_v63, %v13975_v12  ;;  %vm13538_vm8 = vcmp.gt.f32.partialorder %v8814_v49, %v8214_v15 }
 0x262   : > { %13972 = vst [vmem:[#allocation193_spill] sm:$0xff] %v8826_v36  ;;  %13973 = vst [vmem:[#allocation194_spill] sm:$0xff] %v8828_v14  ;;  %3223 = vmatprep.mubr.f32.mxu1 %v13846_v37  ;;  %v8846_v36 = vsel %vm13465_vm7, %v8812_v63, %v13975_v12  ;;  %v8853_v11 = vsel %vm13538_vm8, %v8814_v49, %v8214_v15  ;;  %vm13529_vm13 = vcmp.gt.f32.partialorder %v8828_v14, %v8120_v45  ;;  %v13980_v63 = vld [vmem:[#allocation37_spill] sm:$0xff]  ;;  %v8869_v15 = vld [vmem:[%s7227_s12 + $0xa8] sm:$0xff] }
 0x263   : > { %13974 = vst [vmem:[#allocation195_spill] sm:$0xff] %v8831_v34  ;;  %13976 = vst [vmem:[#allocation196_spill] sm:$0xff] %v8846_v36  ;;  %v2436_v35 = vpop.f32.mrb[100].mxu0  ;;  %v13471_v34 = vmov 0   ;;  %v8878_v25 = vsel %vm13529_vm13, %v8828_v14, %v8120_v45 }
 0x264   : > { %13977 = vst [vmem:[#allocation197_spill] sm:$0xff] %v8853_v11  ;;  %v8857_v13 = vpop.f32.mrb[98].mxu1  ;;  %v4458_v12 = vsel %vm4394_vm1, 1, %v13471_v34  ;;  %vm4490_vm7 = vcmp.gt.f32.partialorder %v2436_v35, %v13980_v63  ;;  %v2438_v36 = vpop.f32.mrb[101].mxu0  ;;  %v5034_v11 = vsel %vm4970_vm15, 1, %v13471_v34  ;;  %13981 = vst [vmem:[#allocation35_spill] sm:$0xff] %v8869_v15  ;;  %6455 = vmatmul.mubr.msk.f32.gmra.mrb[206].mxu0 %vm226_vm0, %v8869_v15 }
 0x265   : > { %13982 = vst [vmem:[#allocation8_spill] sm:$0xff] %v8878_v25  ;;  %v8881_v0 = vsel %vm4490_vm7, %v2436_v35, %v13980_v63  ;;  %v8883_v49 = vsel %vm4490_vm7, 2, %v4458_v12  ;;  %v8885_v46 = vpop.f32.mrb[99].mxu1  ;;  %vm5066_vm1 = vcmp.gt.f32.partialorder %v2438_v36, %v8261_v23  ;;  %6469 = vmatmul.mubr.msk.f32.gmra.mrb[204].mxu1 %vm226_vm0, %v8889_v50  ;;  %3080 = vmatprep.mubr.f32.mxu0 %v13846_v37 }
 0x266   : > { %13983 = vst [vmem:[#allocation37_spill] sm:$0xff] %v8881_v0  ;;  %13984 = vst [vmem:[#allocation198_spill] sm:$0xff] %v8883_v49  ;;  %vm4984_vm15 = vcmp.gt.f32.partialorder %v8857_v13, %v13986_v31  ;;  %v8897_v35 = vsel %vm5066_vm1, %v2438_v36, %v8261_v23  ;;  %v8899_v12 = vsel %vm5066_vm1, 2, %v5034_v11  ;;  %3229 = vmatprep.mubr.f32.mxu1 %v13846_v37  ;;  %v13989_v36 = vmov 0   ;;  %v8923_v49 = vld [vmem:[%s7227_s12 + $0xb0] sm:$0xff] }
 0x267   : > { %13985 = vst [vmem:[#allocation199_spill] sm:$0xff] %v8885_v46  ;;  %13987 = vst [vmem:[#allocation36_spill] sm:$0xff] %v8897_v35  ;;  %v8907_v63 = vsel %vm4984_vm15, %v8857_v13, %v13986_v31  ;;  %v2442_v34 = vpop.f32.mrb[102].mxu0  ;;  %vm13484_vm7 = vcmp.gt.f32.partialorder %v8885_v46, %v8143_v52  ;;  %v13992_v35 = vld [vmem:[#allocation42_spill] sm:$0xff]  ;;  %v5035_v14 = vsel %vm4971_vm14, 1, %v13989_v36  ;;  %v5037_v53 = vsel %vm4973_vm11, 1, %v13989_v36 }
 0x268   : > { %13988 = vst [vmem:[#allocation200_spill] sm:$0xff] %v8899_v12  ;;  %v8911_v25 = vpop.f32.mrb[100].mxu1  ;;  %v4459_v12 = vsel %vm4395_vm2, 1, %v13989_v36  ;;  %vm4491_vm1 = vcmp.gt.f32.partialorder %v2442_v34, %v13992_v35  ;;  %v2444_v45 = vpop.f32.mrb[103].mxu0  ;;  %13993 = vst [vmem:[#allocation40_spill] sm:$0xff] %v8923_v49  ;;  %6456 = vmatmul.mubr.msk.f32.gmra.mrb[208].mxu0 %vm226_vm0, %v8923_v49  ;;  %v8932_v23 = vsel %vm13484_vm7, %v8885_v46, %v8143_v52  ;;  %v8973_v46 = vld [vmem:[%s7227_s12 + $0xb8] sm:$0xff] }
 0x269   : > { %13994 = vst [vmem:[#allocation11_spill] sm:$0xff] %v8932_v23  ;;  %v8935_v11 = vsel %vm4491_vm1, %v2442_v34, %v13992_v35  ;;  %v8937_v0 = vsel %vm4491_vm1, 2, %v4459_v12  ;;  %v8939_v15 = vpop.f32.mrb[101].mxu1  ;;  %vm5067_vm2 = vcmp.gt.f32.partialorder %v2444_v45, %v8305_v18  ;;  %6470 = vmatmul.mubr.msk.f32.gmra.mrb[206].mxu1 %vm226_vm0, %v8943_v26  ;;  %3086 = vmatprep.mubr.f32.mxu0 %v13846_v37  ;;  %14004 = vst [vmem:[#allocation45_spill] sm:$0xff] %v8973_v46  ;;  %v14177_v13 = vld [vmem:[#allocation110_spill] sm:$0xff]  ;;  %v14178_v31 = vld [vmem:[#allocation39_spill] sm:$0xff] }
 0x26a   : > { %13995 = vst [vmem:[#allocation42_spill] sm:$0xff] %v8935_v11  ;;  %13996 = vst [vmem:[#allocation201_spill] sm:$0xff] %v8937_v0  ;;  %vm4985_vm14 = vcmp.gt.f32.partialorder %v8911_v25, %v13998_v16  ;;  %v8951_v34 = vsel %vm5067_vm2, %v2444_v45, %v8305_v18  ;;  %v8953_v35 = vsel %vm5067_vm2, 2, %v5035_v14  ;;  %3235 = vmatprep.mubr.f32.mxu1 %v13846_v37  ;;  %v4460_v18 = vsel %vm4396_vm3, 1, %v13989_v36  ;;  %v14006_v11 = vld [vmem:[#allocation46_spill] sm:$0xff] }
 0x26b   : > { %13997 = vst [vmem:[#allocation202_spill] sm:$0xff] %v8939_v15  ;;  %13999 = vst [vmem:[#allocation41_spill] sm:$0xff] %v8951_v34  ;;  %v8961_v12 = vsel %vm4985_vm14, %v8911_v25, %v13998_v16  ;;  %v2448_v23 = vpop.f32.mrb[104].mxu0  ;;  %vm13523_vm1 = vcmp.gt.f32.partialorder %v8939_v15, %v8166_v59  ;;  %v14189_v25 = vld [vmem:[#allocation115_spill] sm:$0xff]  ;;  %v14190_v16 = vld [vmem:[#allocation44_spill] sm:$0xff] }
 0x26c   : > { %14000 = vst [vmem:[#allocation203_spill] sm:$0xff] %v8953_v35  ;;  %v8965_v52 = vpop.f32.mrb[102].mxu1  ;;  %v14003_v35 = vld [vmem:[#allocation47_spill] sm:$0xff]  ;;  %v2450_v34 = vpop.f32.mrb[105].mxu0  ;;  %6457 = vmatmul.mubr.msk.f32.gmra.mrb[210].mxu0 %vm226_vm0, %v8973_v46  ;;  %v8982_v0 = vsel %vm13523_vm1, %v8939_v15, %v8166_v59  ;;  %v8995_v46 = vld [vmem:[%s7227_s12 + $0x28] sm:$0xff] }
 0x26d   : > { %vm4492_vm2 = vcmp.gt.f32.partialorder %v2448_v23, %v14003_v35  ;;  %14005 = vst [vmem:[#allocation14_spill] sm:$0xff] %v8982_v0  ;;  %vm4986_vm7 = vcmp.gt.f32.partialorder %v8965_v52, %v14006_v11  ;;  %v8991_v49 = vpop.f32.mrb[103].mxu1  ;;  %vm5068_vm3 = vcmp.gt.f32.partialorder %v2450_v34, %v8349_v19  ;;  %6471 = vmatmul.mubr.msk.f32.gmra.mrb[208].mxu1 %vm226_vm0, %v8995_v46 }
 0x26e   : > { %v8987_v45 = vsel %vm4492_vm2, %v2448_v23, %v14003_v35  ;;  %v8989_v14 = vsel %vm4492_vm2, 2, %v4460_v18  ;;  %14009 = vst [vmem:[#allocation204_spill] sm:$0xff] %v8991_v49  ;;  %3092 = vmatprep.mubr.f32.mxu0 %v13846_v37  ;;  %v9005_v23 = vsel %vm4986_vm7, %v8965_v52, %v14006_v11  ;;  %vm13517_vm2 = vcmp.gt.f32.partialorder %v8991_v49, %v8189_v1 }
 0x26f   : > { %14007 = vst [vmem:[#allocation47_spill] sm:$0xff] %v8987_v45  ;;  %14008 = vst [vmem:[#allocation46_spill] sm:$0xff] %v8989_v14  ;;  %v5036_v35 = vsel %vm4972_vm12, 1, %v13989_v36  ;;  %v9014_v18 = vsel %vm5068_vm3, %v2450_v34, %v8349_v19  ;;  %3241 = vmatprep.mubr.f32.mxu1 %v13846_v37  ;;  %v9022_v0 = vsel %vm13517_vm2, %v8991_v49, %v8189_v1  ;;  %v2454_v15 = vpop.f32.mrb[106].mxu0  ;;  %v4461_v19 = vsel %vm4397_vm4, 1, %v13989_v36  ;;  %v14015_v34 = vld [vmem:[#allocation52_spill] sm:$0xff] }
 0x270   : > { %14010 = vst [vmem:[#allocation205_spill] sm:$0xff] %v9014_v18  ;;  %14011 = vst [vmem:[#allocation206_spill] sm:$0xff] %v9022_v0  ;;  %v9024_v59 = vsel %vm5068_vm3, 2, %v5036_v35  ;;  %v9026_v14 = vpop.f32.mrb[104].mxu1  ;;  %vm4493_vm12 = vcmp.gt.f32.partialorder %v2454_v15, %v14015_v34  ;;  %v2456_v18 = vpop.f32.mrb[107].mxu0  ;;  %v9034_v45 = vld [vmem:[%s7227_s12 + $0xc0] sm:$0xff] }
 0x271   : > { %14012 = vst [vmem:[#allocation207_spill] sm:$0xff] %v9024_v59  ;;  %14016 = vst [vmem:[#allocation50_spill] sm:$0xff] %v9034_v45  ;;  %6458 = vmatmul.mubr.msk.f32.gmra.mrb[212].mxu0 %vm226_vm0, %v9034_v45  ;;  %v14017_v1 = vld [vmem:[#allocation51_spill] sm:$0xff]  ;;  %v9041_v35 = vsel %vm4493_vm12, %v2454_v15, %v14015_v34  ;;  %v9043_v59 = vsel %vm4493_vm12, 2, %v4461_v19  ;;  %v9045_v0 = vpop.f32.mrb[105].mxu1  ;;  %vm5069_vm4 = vcmp.gt.f32.partialorder %v2456_v18, %v8393_v20  ;;  %6472 = vmatmul.mubr.msk.f32.gmra.mrb[210].mxu1 %vm226_vm0, %v9049_v43  ;;  %v9088_v45 = vld [vmem:[%s7227_s12 + $0xc8] sm:$0xff] }
 0x272   : > { %vm4987_vm3 = vcmp.gt.f32.partialorder %v9026_v14, %v14017_v1  ;;  %14018 = vst [vmem:[#allocation17_spill] sm:$0xff] %v9041_v35  ;;  %14019 = vst [vmem:[#allocation52_spill] sm:$0xff] %v9043_v59  ;;  %3098 = vmatprep.mubr.f32.mxu0 %v13846_v37  ;;  %vm13511_vm12 = vcmp.gt.f32.partialorder %v9045_v0, %v8212_v3  ;;  %v9068_v19 = vsel %vm5069_vm4, %v2456_v18, %v8393_v20  ;;  %v14026_v18 = vld [vmem:[#allocation57_spill] sm:$0xff] }
 0x273   : > { %14020 = vst [vmem:[#allocation51_spill] sm:$0xff] %v9045_v0  ;;  %v9059_v15 = vsel %vm4987_vm3, %v9026_v14, %v14017_v1  ;;  %14021 = vst [vmem:[#allocation208_spill] sm:$0xff] %v9068_v19  ;;  %3247 = vmatprep.mubr.f32.mxu1 %v13846_v37  ;;  %v9076_v34 = vsel %vm13511_vm12, %v9045_v0, %v8212_v3  ;;  %v9078_v49 = vsel %vm5069_vm4, 2, %v5037_v53  ;;  %v2460_v59 = vpop.f32.mrb[108].mxu0  ;;  %v4462_v20 = vsel %vm4398_vm5, 1, %v13989_v36  ;;  %v14027_v3 = vld [vmem:[#allocation56_spill] sm:$0xff] }
 0x274   : > { %14022 = vst [vmem:[#allocation209_spill] sm:$0xff] %v9076_v34  ;;  %14023 = vst [vmem:[#allocation210_spill] sm:$0xff] %v9078_v49  ;;  %v9080_v35 = vpop.f32.mrb[106].mxu1  ;;  %vm4494_vm11 = vcmp.gt.f32.partialorder %v2460_v59, %v14026_v18  ;;  %v2462_v19 = vpop.f32.mrb[109].mxu0 }
 0x275   : > { %6459 = vmatmul.mubr.msk.f32.gmra.mrb[214].mxu0 %vm226_vm0, %v9088_v45  ;;  %vm4988_vm4 = vcmp.gt.f32.partialorder %v9080_v35, %v14027_v3  ;;  %v9095_v53 = vsel %vm4494_vm11, %v2460_v59, %v14026_v18  ;;  %v9097_v49 = vsel %vm4494_vm11, 2, %v4462_v20  ;;  %v9099_v34 = vpop.f32.mrb[107].mxu1  ;;  %vm5070_vm5 = vcmp.gt.f32.partialorder %v2462_v19, %v8437_v22  ;;  %6473 = vmatmul.mubr.msk.f32.gmra.mrb[212].mxu1 %vm226_vm0, %v8242_v60 }
 0x276   : > { %14028 = vst [vmem:[#allocation55_spill] sm:$0xff] %v9097_v49  ;;  %14029 = vst [vmem:[#allocation21_spill] sm:$0xff] %v9099_v34  ;;  %3104 = vmatprep.mubr.f32.mxu0 %v13846_v37  ;;  %v9110_v9 = vsel %vm4988_vm4, %v9080_v35, %v14027_v3  ;;  %vm13505_vm11 = vcmp.gt.f32.partialorder %v9099_v34, %v8235_v5  ;;  %v5038_v59 = vsel %vm4974_vm10, 1, %v13989_v36  ;;  %3253 = vmatprep.mubr.f32.mxu1 %v13846_v37  ;;  %v9139_v49 = vld [vmem:[%s7227_s12 + $0xd0] sm:$0xff] }
 0x277   : > { %v9119_v17 = vsel %vm5070_vm5, %v2462_v19, %v8437_v22  ;;  %v9127_v60 = vsel %vm13505_vm11, %v9099_v34, %v8235_v5  ;;  %v9129_v20 = vsel %vm5070_vm5, 2, %v5038_v59  ;;  %v2466_v18 = vpop.f32.mrb[110].mxu0  ;;  %v4463_v22 = vsel %vm4399_vm6, 1, %v13989_v36  ;;  %v14035_v19 = vld [vmem:[#allocation62_spill] sm:$0xff]  ;;  %v14036_v5 = vld [vmem:[#allocation61_spill] sm:$0xff] }
 0x278   : > { %14030 = vst [vmem:[#allocation57_spill] sm:$0xff] %v9119_v17  ;;  %14031 = vst [vmem:[#allocation56_spill] sm:$0xff] %v9127_v60  ;;  %v9131_v0 = vpop.f32.mrb[108].mxu1  ;;  %vm4495_vm10 = vcmp.gt.f32.partialorder %v2466_v18, %v14035_v19  ;;  %v2468_v17 = vpop.f32.mrb[111].mxu0 }
 0x279   : > { %14032 = vst [vmem:[#allocation211_spill] sm:$0xff] %v9129_v20  ;;  %6460 = vmatmul.mubr.msk.f32.gmra.mrb[216].mxu0 %vm226_vm0, %v9139_v49  ;;  %vm4989_vm5 = vcmp.gt.f32.partialorder %v9131_v0, %v14036_v5  ;;  %v9146_v59 = vsel %vm4495_vm10, %v2466_v18, %v14035_v19  ;;  %v9148_v20 = vsel %vm4495_vm10, 2, %v4463_v22  ;;  %v9150_v60 = vpop.f32.mrb[109].mxu1  ;;  %vm5071_vm6 = vcmp.gt.f32.partialorder %v2468_v17, %v8481_v27 }
 0x27a   : > { %14037 = vst [vmem:[#allocation60_spill] sm:$0xff] %v9148_v20  ;;  %14038 = vst [vmem:[#allocation25_spill] sm:$0xff] %v9150_v60  ;;  %6474 = vmatmul.mubr.msk.f32.gmra.mrb[214].mxu1 %vm226_vm0, %v8279_v57  ;;  %3110 = vmatprep.mubr.f32.mxu0 %v13846_v37  ;;  %v9161_v29 = vsel %vm4989_vm5, %v9131_v0, %v14036_v5  ;;  %vm13509_vm10 = vcmp.gt.f32.partialorder %v9150_v60, %v8270_v54  ;;  %v5039_v18 = vsel %vm4975_vm9, 1, %v13989_v36  ;;  %v9190_v20 = vld [vmem:[%s7227_s12 + $0xd8] sm:$0xff] }
 0x27b   : > { %v9170_v21 = vsel %vm5071_vm6, %v2468_v17, %v8481_v27  ;;  %3259 = vmatprep.mubr.f32.mxu1 %v13846_v37  ;;  %v9178_v57 = vsel %vm13509_vm10, %v9150_v60, %v8270_v54  ;;  %v9180_v22 = vsel %vm5071_vm6, 2, %v5039_v18  ;;  %v2472_v19 = vpop.f32.mrb[112].mxu0  ;;  %vm14044_vm9 = vcmp.gt.f32.partialorder %v14042_v42, %v14043_v8  ;;  %v14045_v17 = vld [vmem:[#allocation67_spill] sm:$0xff]  ;;  %v14046_v54 = vld [vmem:[#allocation66_spill] sm:$0xff] }
 0x27c   : > { %14039 = vst [vmem:[#allocation62_spill] sm:$0xff] %v9170_v21  ;;  %14040 = vst [vmem:[#allocation61_spill] sm:$0xff] %v9178_v57  ;;  %v9182_v34 = vpop.f32.mrb[110].mxu1  ;;  %v4464_v27 = vsel %vm14044_vm9, 1, %v13989_v36  ;;  %vm4496_vm11 = vcmp.gt.f32.partialorder %v2472_v19, %v14045_v17  ;;  %v2474_v21 = vpop.f32.mrb[113].mxu0  ;;  %vm14049_vm10 = vcmp.gt.f32.partialorder %v8494_v48, %v13916_v32  ;;  %v14053_v32 = vld [vmem:[#allocation70_spill] sm:$0xff] }
 0x27d   : > { %14041 = vst [vmem:[#allocation212_spill] sm:$0xff] %v9180_v22  ;;  %6461 = vmatmul.mubr.msk.f32.gmra.mrb[218].mxu0 %vm226_vm0, %v9190_v20  ;;  %vm4990_vm6 = vcmp.gt.f32.partialorder %v9182_v34, %v14046_v54  ;;  %v9197_v18 = vsel %vm4496_vm11, %v2472_v19, %v14045_v17  ;;  %v9199_v22 = vsel %vm4496_vm11, 2, %v4464_v27  ;;  %v9201_v57 = vpop.f32.mrb[111].mxu1  ;;  %vm5072_vm9 = vcmp.gt.f32.partialorder %v2474_v21, %v8525_v39  ;;  %v14054_v48 = vld [vmem:[#allocation9_spill] sm:$0xff]  ;;  %v14241_v0 = vld [vmem:[#allocation134_spill] sm:$0xff] }
 0x27e   : > { %14047 = vst [vmem:[#allocation65_spill] sm:$0xff] %v9199_v22  ;;  %14048 = vst [vmem:[#allocation29_spill] sm:$0xff] %v9201_v57  ;;  %6475 = vmatmul.mubr.msk.f32.gmra.mrb[216].mxu1 %vm226_vm0, %v8323_v40  ;;  %3116 = vmatprep.mubr.f32.mxu0 %v13846_v37  ;;  %v9212_v42 = vsel %vm4990_vm6, %v9182_v34, %v14046_v54  ;;  %vm13515_vm11 = vcmp.gt.f32.partialorder %v9201_v57, %v8314_v44  ;;  %v5040_v19 = vsel %vm14049_vm10, 1, %v13989_v36  ;;  %v9241_v22 = vld [vmem:[%s7227_s12 + $0xe0] sm:$0xff] }
 0x27f   : > { %v9221_v8 = vsel %vm5072_vm9, %v2474_v21, %v8525_v39  ;;  %3265 = vmatprep.mubr.f32.mxu1 %v13846_v37  ;;  %v9229_v40 = vsel %vm13515_vm11, %v9201_v57, %v8314_v44  ;;  %v9231_v27 = vsel %vm5072_vm9, 2, %v5040_v19  ;;  %v2478_v17 = vpop.f32.mrb[114].mxu0  ;;  %vm14055_vm10 = vcmp.gt.f32.partialorder %v14053_v32, %v14054_v48  ;;  %v14056_v21 = vld [vmem:[#allocation72_spill] sm:$0xff]  ;;  %v14057_v44 = vld [vmem:[#allocation71_spill] sm:$0xff] }
 0x280   : > { %14050 = vst [vmem:[#allocation67_spill] sm:$0xff] %v9221_v8  ;;  %14051 = vst [vmem:[#allocation66_spill] sm:$0xff] %v9229_v40  ;;  %v9233_v60 = vpop.f32.mrb[112].mxu1  ;;  %v4465_v39 = vsel %vm14055_vm10, 1, %v13989_v36  ;;  %vm4497_vm12 = vcmp.gt.f32.partialorder %v2478_v17, %v14056_v21  ;;  %v2480_v8 = vpop.f32.mrb[115].mxu0  ;;  %vm14060_vm11 = vcmp.gt.f32.partialorder %v8538_v56, %v13923_v51  ;;  %v14064_v51 = vld [vmem:[#allocation75_spill] sm:$0xff] }
 0x281   : > { %14052 = vst [vmem:[#allocation213_spill] sm:$0xff] %v9231_v27  ;;  %6462 = vmatmul.mubr.msk.f32.gmra.mrb[220].mxu0 %vm226_vm0, %v9241_v22  ;;  %vm4991_vm9 = vcmp.gt.f32.partialorder %v9233_v60, %v14057_v44  ;;  %v9248_v19 = vsel %vm4497_vm12, %v2478_v17, %v14056_v21  ;;  %v9250_v27 = vsel %vm4497_vm12, 2, %v4465_v39  ;;  %v9252_v40 = vpop.f32.mrb[113].mxu1  ;;  %vm5073_vm10 = vcmp.gt.f32.partialorder %v2480_v8, %v8569_v41  ;;  %v14065_v56 = vld [vmem:[#allocation12_spill] sm:$0xff]  ;;  %v14258_v34 = vld [vmem:[#allocation139_spill] sm:$0xff] }
 0x282   : > { %14058 = vst [vmem:[#allocation70_spill] sm:$0xff] %v9250_v27  ;;  %14059 = vst [vmem:[#allocation9_spill] sm:$0xff] %v9252_v40  ;;  %6476 = vmatmul.mubr.msk.f32.gmra.mrb[218].mxu1 %vm226_vm0, %v8367_v24  ;;  %3122 = vmatprep.mubr.f32.mxu0 %v13846_v37  ;;  %v9263_v32 = vsel %vm4991_vm9, %v9233_v60, %v14057_v44  ;;  %vm13521_vm12 = vcmp.gt.f32.partialorder %v9252_v40, %v8358_v58  ;;  %v5041_v17 = vsel %vm14060_vm11, 1, %v13989_v36  ;;  %v9292_v27 = vld [vmem:[%s7227_s12 + $0xe8] sm:$0xff]  ;;  %v14275_v60 = vld [vmem:[#allocation143_spill] sm:$0xff] }
 0x283   : > { %v9272_v48 = vsel %vm5073_vm10, %v2480_v8, %v8569_v41  ;;  %3271 = vmatprep.mubr.f32.mxu1 %v13846_v37  ;;  %v9280_v24 = vsel %vm13521_vm12, %v9252_v40, %v8358_v58  ;;  %v9282_v39 = vsel %vm5073_vm10, 2, %v5041_v17  ;;  %v2484_v21 = vpop.f32.mrb[116].mxu0  ;;  %vm14066_vm11 = vcmp.gt.f32.partialorder %v14064_v51, %v14065_v56  ;;  %v14067_v8 = vld [vmem:[#allocation77_spill] sm:$0xff]  ;;  %14068 = vst [vmem:[#allocation75_spill] sm:$0xff] %v9292_v27  ;;  %v14069_v58 = vld [vmem:[#allocation76_spill] sm:$0xff] }
 0x284   : > { %14061 = vst [vmem:[#allocation72_spill] sm:$0xff] %v9272_v48  ;;  %14062 = vst [vmem:[#allocation71_spill] sm:$0xff] %v9280_v24  ;;  %v9284_v57 = vpop.f32.mrb[114].mxu1  ;;  %v4466_v41 = vsel %vm14066_vm11, 1, %v13989_v36  ;;  %vm4498_vm2 = vcmp.gt.f32.partialorder %v2484_v21, %v14067_v8  ;;  %v2486_v48 = vpop.f32.mrb[117].mxu0  ;;  %vm14073_vm12 = vcmp.gt.f32.partialorder %v8582_v61, %v13930_v33  ;;  %v14077_v33 = vld [vmem:[#allocation80_spill] sm:$0xff] }
 0x285   : > { %14063 = vst [vmem:[#allocation214_spill] sm:$0xff] %v9282_v39  ;;  %6463 = vmatmul.mubr.msk.f32.gmra.mrb[222].mxu0 %vm226_vm0, %v9292_v27  ;;  %vm4992_vm10 = vcmp.gt.f32.partialorder %v9284_v57, %v14069_v58  ;;  %v9299_v17 = vsel %vm4498_vm2, %v2484_v21, %v14067_v8  ;;  %v9301_v39 = vsel %vm4498_vm2, 2, %v4466_v41  ;;  %v9303_v24 = vpop.f32.mrb[115].mxu1  ;;  %vm5074_vm11 = vcmp.gt.f32.partialorder %v2486_v48, %v8613_v55  ;;  %v14078_v61 = vld [vmem:[#allocation15_spill] sm:$0xff]  ;;  %v14132_v27 = vld [vmem:[#allocation96_spill] sm:$0xff] }
 0x286   : > { %14070 = vst [vmem:[#allocation12_spill] sm:$0xff] %v9299_v17  ;;  %14071 = vst [vmem:[#allocation77_spill] sm:$0xff] %v9301_v39  ;;  %6477 = vmatmul.mubr.msk.f32.gmra.mrb[220].mxu1 %vm226_vm0, %v8411_v38  ;;  %3128 = vmatprep.mubr.f32.mxu0 %v13846_v37  ;;  %v9314_v51 = vsel %vm4992_vm10, %v9284_v57, %v14069_v58  ;;  %vm13527_vm2 = vcmp.gt.f32.partialorder %v9303_v24, %v8402_v47  ;;  %v5042_v21 = vsel %vm14073_vm12, 1, %v13989_v36  ;;  %v9343_v39 = vld [vmem:[%s7227_s12 + $0xf0] sm:$0xff]  ;;  %v14112_v17 = vld [vmem:[#allocation91_spill] sm:$0xff] }
 0x287   : > { %14072 = vst [vmem:[#allocation76_spill] sm:$0xff] %v9303_v24  ;;  %v9323_v56 = vsel %vm5074_vm11, %v2486_v48, %v8613_v55  ;;  %3277 = vmatprep.mubr.f32.mxu1 %v13846_v37  ;;  %v9331_v38 = vsel %vm13527_vm2, %v9303_v24, %v8402_v47  ;;  %v9333_v41 = vsel %vm5074_vm11, 2, %v5042_v21  ;;  %v2490_v8 = vpop.f32.mrb[118].mxu0  ;;  %vm14079_vm12 = vcmp.gt.f32.partialorder %v14077_v33, %v14078_v61  ;;  %v14080_v48 = vld [vmem:[#allocation82_spill] sm:$0xff]  ;;  %v14082_v47 = vld [vmem:[#allocation81_spill] sm:$0xff]  ;;  %v14290_v57 = vld [vmem:[#allocation147_spill] sm:$0xff] }
 0x288   : > { %14074 = vst [vmem:[#allocation215_spill] sm:$0xff] %v9323_v56  ;;  %14075 = vst [vmem:[#allocation216_spill] sm:$0xff] %v9331_v38  ;;  %v9335_v40 = vpop.f32.mrb[116].mxu1  ;;  %v4467_v55 = vsel %vm14079_vm12, 1, %v13989_v36  ;;  %vm4499_vm1 = vcmp.gt.f32.partialorder %v2490_v8, %v14080_v48  ;;  %v2492_v56 = vpop.f32.mrb[119].mxu0  ;;  %vm14087_vm2 = vcmp.gt.f32.partialorder %v8626_v2, %v13937_v62  ;;  %v14091_v62 = vld [vmem:[#allocation85_spill] sm:$0xff] }
 0x289   : > { %14076 = vst [vmem:[#allocation217_spill] sm:$0xff] %v9333_v41  ;;  %14081 = vst [vmem:[#allocation80_spill] sm:$0xff] %v9343_v39  ;;  %6464 = vmatmul.mubr.msk.f32.gmra.mrb[224].mxu0 %vm226_vm0, %v9343_v39  ;;  %vm4993_vm11 = vcmp.gt.f32.partialorder %v9335_v40, %v14082_v47  ;;  %v9350_v21 = vsel %vm4499_vm1, %v2490_v8, %v14080_v48  ;;  %v9352_v41 = vsel %vm4499_vm1, 2, %v4467_v55  ;;  %v9354_v38 = vpop.f32.mrb[117].mxu1  ;;  %v14086_v8 = vld [vmem:[#allocation145_spill] sm:$0xff]  ;;  %v5043_v61 = vsel %vm14087_vm2, 1, %v13989_v36 }
 0x28a   : > { %14083 = vst [vmem:[#allocation15_spill] sm:$0xff] %v9350_v21  ;;  %14084 = vst [vmem:[#allocation82_spill] sm:$0xff] %v9352_v41  ;;  %vm5075_vm12 = vcmp.gt.f32.partialorder %v2492_v56, %v8657_v10  ;;  %6478 = vmatmul.mubr.msk.f32.gmra.mrb[222].mxu1 %vm226_vm0, %v8455_v30  ;;  %3134 = vmatprep.mubr.f32.mxu0 %v13846_v37  ;;  %v9365_v33 = vsel %vm4993_vm11, %v9335_v40, %v14082_v47  ;;  %v14092_v2 = vld [vmem:[#allocation18_spill] sm:$0xff]  ;;  %v14111_v39 = vld [vmem:[#allocation180_spill] sm:$0xff] }
 0x28b   : > { %14085 = vst [vmem:[#allocation81_spill] sm:$0xff] %v9354_v38  ;;  %vm13534_vm1 = vcmp.gt.f32.partialorder %v9354_v38, %v14086_v8  ;;  %v9374_v55 = vsel %vm5075_vm12, %v2492_v56, %v8657_v10  ;;  %3283 = vmatprep.mubr.f32.mxu1 %v13846_v37  ;;  %v9384_v48 = vsel %vm5075_vm12, 2, %v5043_v61  ;;  %v2496_v24 = vpop.f32.mrb[120].mxu0  ;;  %vm14093_vm2 = vcmp.gt.f32.partialorder %v14091_v62, %v14092_v2  ;;  %v14094_v56 = vld [vmem:[#allocation87_spill] sm:$0xff]  ;;  %v9394_v21 = vld [vmem:[%s7227_s12 + $0xf8] sm:$0xff]  ;;  %v14303_v40 = vld [vmem:[#allocation152_spill] sm:$0xff] }
 0x28c   : > { %14088 = vst [vmem:[#allocation218_spill] sm:$0xff] %v9374_v55  ;;  %v9382_v30 = vsel %vm13534_vm1, %v9354_v38, %v14086_v8  ;;  %14090 = vst [vmem:[#allocation220_spill] sm:$0xff] %v9384_v48  ;;  %v9386_v41 = vpop.f32.mrb[118].mxu1  ;;  %v4468_v10 = vsel %vm14093_vm2, 1, %v13989_v36  ;;  %vm4500_vm13 = vcmp.gt.f32.partialorder %v2496_v24, %v14094_v56  ;;  %v2498_v55 = vpop.f32.mrb[121].mxu0  ;;  %v14096_v8 = vld [vmem:[#allocation86_spill] sm:$0xff] }
 0x28d   : > { %14089 = vst [vmem:[#allocation219_spill] sm:$0xff] %v9382_v30  ;;  %14095 = vst [vmem:[#allocation85_spill] sm:$0xff] %v9394_v21  ;;  %6465 = vmatmul.mubr.msk.f32.gmra.mrb[226].mxu0 %vm226_vm0, %v9394_v21  ;;  %vm4994_vm12 = vcmp.gt.f32.partialorder %v9386_v41, %v14096_v8  ;;  %v9401_v61 = vsel %vm4500_vm13, %v2496_v24, %v14094_v56  ;;  %v9403_v48 = vsel %vm4500_vm13, 2, %v4468_v10  ;;  %v9405_v30 = vpop.f32.mrb[119].mxu1  ;;  %v14100_v62 = vld [vmem:[#allocation151_spill] sm:$0xff]  ;;  %v14101_v24 = vld [vmem:[#allocation149_spill] sm:$0xff] }
 0x28e   : > { %14097 = vst [vmem:[#allocation18_spill] sm:$0xff] %v9401_v61  ;;  %14098 = vst [vmem:[#allocation87_spill] sm:$0xff] %v9403_v48  ;;  %vm5076_vm2 = vcmp.gt.f32.partialorder %v2498_v55, %v8701_v28  ;;  %6479 = vmatmul.mubr.msk.f32.gmra.mrb[224].mxu1 %vm226_vm0, %v14100_v62  ;;  %3462 = vmatprep.mubr.f32.mxu0 %v13846_v37  ;;  %v9416_v2 = vsel %vm4994_vm12, %v9386_v41, %v14096_v8  ;;  %v14102_v10 = vld [vmem:[#allocation20_spill] sm:$0xff]  ;;  %v14316_v8 = vld [vmem:[#allocation157_spill] sm:$0xff] }
 0x28f   : > { %14099 = vst [vmem:[#allocation86_spill] sm:$0xff] %v9405_v30  ;;  %vm13542_vm13 = vcmp.gt.f32.partialorder %v9405_v30, %v14101_v24  ;;  %vm14103_vm1 = vcmp.gt.f32.partialorder %v8670_v4, %v14102_v10  ;;  %v9425_v38 = vsel %vm5076_vm2, %v2498_v55, %v8701_v28  ;;  %3289 = vmatprep.mubr.f32.mxu1 %v13846_v37  ;;  %v2502_v61 = vpop.f32.mrb[122].mxu0  ;;  %v14107_v4 = vld [vmem:[#allocation90_spill] sm:$0xff]  ;;  %v14110_v55 = vld [vmem:[#allocation92_spill] sm:$0xff] }
 0x290   : > { %v5044_v56 = vsel %vm14103_vm1, 1, %v13989_v36  ;;  %14104 = vst [vmem:[#allocation151_spill] sm:$0xff] %v9425_v38  ;;  %v9433_v62 = vsel %vm13542_vm13, %v9405_v30, %v14101_v24  ;;  %v9437_v21 = vpop.f32.mrb[120].mxu1  ;;  %v14108_v10 = vld [vmem:[#allocation22_spill] sm:$0xff]  ;;  %vm4501_vm8 = vcmp.gt.f32.partialorder %v2502_v61, %v14110_v55  ;;  %v2504_v38 = vpop.f32.mrb[123].mxu0 }
 0x291   : > { %14105 = vst [vmem:[#allocation20_spill] sm:$0xff] %v9433_v62  ;;  %v9435_v48 = vsel %vm5076_vm2, 2, %v5044_v56  ;;  %vm14109_vm1 = vcmp.gt.f32.partialorder %v14107_v4, %v14108_v10  ;;  %6498 = vmatmul.mubr.msk.f32.vlgmr.msra.gmra.mrb[228].mxu0 %vm226_vm0, %v14111_v39  ;;  %vm13546_vm13 = vcmp.gt.f32.partialorder %v9437_v21, %v14112_v17  ;;  %v9449_v56 = vsel %vm4501_vm8, %v2502_v61, %v14110_v55  ;;  %v9453_v62 = vpop.f32.mrb[121].mxu1  ;;  %v14116_v4 = vld [vmem:[#allocation156_spill] sm:$0xff]  ;;  %v14117_v10 = vld [vmem:[#allocation7_spill] sm:$0xff]  ;;  %v14118_v24 = vld [vmem:[#allocation6_spill] sm:$0xff] }
 0x292   : > { %14106 = vst [vmem:[#allocation221_spill] sm:$0xff] %v9435_v48  ;;  %v4469_v28 = vsel %vm14109_vm1, 1, %v13989_v36  ;;  %14113 = vst [vmem:[#allocation90_spill] sm:$0xff] %v9449_v56  ;;  %vm5077_vm2 = vcmp.gt.f32.partialorder %v2504_v38, %v8751_v6  ;;  %6480 = vmatmul.mubr.msk.f32.gmra.mrb[226].mxu1 %vm226_vm0, %v14116_v4  ;;  %v14119_v30 = vpack.c.bf16 %v14117_v10, %v14118_v24  ;;  %v14120_v61 = vld [vmem:[#allocation154_spill] sm:$0xff]  ;;  %3468 = vmatprep.mubr.f32.mxu0 %v13846_v37 }
 0x293   : > { %v9451_v48 = vsel %vm4501_vm8, 2, %v4469_v28  ;;  %14115 = vst [vmem:[#allocation92_spill] sm:$0xff] %v9453_v62  ;;  %v9466_v39 = vsel %vm13546_vm13, %v9437_v21, %v14112_v17  ;;  %vm13550_vm8 = vcmp.gt.f32.partialorder %v9453_v62, %v14120_v61  ;;  %v14121_v28 = vld [vmem:[#allocation24_spill] sm:$0xff]  ;;  %v9475_v4 = vsel %vm5077_vm2, %v2504_v38, %v8751_v6  ;;  %3295 = vmatprep.mubr.f32.mxu1 %v13846_v37  ;;  %v2508_v10 = vpop.f32.mrb[124].mxu0  ;;  %v14128_v6 = vld [vmem:[#allocation26_spill] sm:$0xff] }
 0x294   : > { %14114 = vst [vmem:[#allocation22_spill] sm:$0xff] %v9451_v48  ;;  %6886 = vmatpush1.bf16.msra.mxu0 %v14119_v30  ;;  %vm14122_vm1 = vcmp.gt.f32.partialorder %v8714_v7, %v14121_v28  ;;  %14123 = vst [vmem:[#allocation180_spill] sm:$0xff] %v9475_v4  ;;  %v9484_v30 = vsel %vm13550_vm8, %v9453_v62, %v14120_v61  ;;  %v9488_v48 = vpop.f32.mrb[122].mxu1  ;;  %v14127_v7 = vld [vmem:[#allocation95_spill] sm:$0xff]  ;;  %v14130_v28 = vld [vmem:[#allocation97_spill] sm:$0xff]  ;;  %v2510_v4 = vpop.f32.mrb[125].mxu0 }
 0x295   : > { %v5045_v55 = vsel %vm14122_vm1, 1, %v13989_v36  ;;  %14124 = vst [vmem:[#allocation91_spill] sm:$0xff] %v9484_v30  ;;  %14126 = vst [vmem:[#allocation7_spill] sm:$0xff] %v9488_v48  ;;  %vm14129_vm1 = vcmp.gt.f32.partialorder %v14127_v7, %v14128_v6  ;;  %vm4502_vm13 = vcmp.gt.f32.partialorder %v2508_v10, %v14130_v28  ;;  %v14131_v56 = vld [vmem:[#allocation186_spill] sm:$0xff]  ;;  %vm13556_vm8 = vcmp.gt.f32.partialorder %v9488_v48, %v14132_v27  ;;  %v9504_v30 = vpop.f32.mrb[123].mxu1  ;;  %v14136_v61 = vld [vmem:[#allocation187_spill] sm:$0xff] }
 0x296   : > { %v9486_v24 = vsel %vm5077_vm2, 2, %v5045_v55  ;;  %v4470_v38 = vsel %vm14129_vm1, 1, %v13989_v36  ;;  %6499 = vmatmul.mubr.msk.f32.gmra.mrb[230].mxu0 %vm226_vm0, %v14131_v56  ;;  %v9500_v55 = vsel %vm4502_vm13, %v2508_v10, %v14130_v28  ;;  %14135 = vst [vmem:[#allocation95_spill] sm:$0xff] %v9504_v30  ;;  %vm5078_vm2 = vcmp.gt.f32.partialorder %v2510_v4, %v14136_v61  ;;  %v14137_v7 = vld [vmem:[#allocation161_spill] sm:$0xff]  ;;  %v14139_v10 = vld [vmem:[#allocation159_spill] sm:$0xff] }
 0x297   : > { %14125 = vst [vmem:[#allocation156_spill] sm:$0xff] %v9486_v24  ;;  %14133 = vst [vmem:[#allocation6_spill] sm:$0xff] %v9500_v55  ;;  %v9502_v24 = vsel %vm4502_vm13, 2, %v4470_v38  ;;  %6481 = vmatmul.mubr.msk.f32.gmra.mrb[228].mxu1 %vm226_vm0, %v14137_v7  ;;  %3474 = vmatprep.mubr.f32.mxu0 %v13846_v37  ;;  %v9515_v56 = vsel %vm13556_vm8, %v9488_v48, %v14132_v27  ;;  %vm13560_vm13 = vcmp.gt.f32.partialorder %v9504_v30, %v14139_v10  ;;  %v14140_v6 = vld [vmem:[#allocation181_spill] sm:$0xff]  ;;  %v14141_v38 = vld [vmem:[#allocation28_spill] sm:$0xff]  ;;  %v2514_v55 = vpop.f32.mrb[126].mxu0 }
 0x298   : > { %14134 = vst [vmem:[#allocation24_spill] sm:$0xff] %v9502_v24  ;;  %14138 = vst [vmem:[#allocation26_spill] sm:$0xff] %v9515_v56  ;;  %vm14142_vm1 = vcmp.gt.f32.partialorder %v14140_v6, %v14141_v38  ;;  %v9524_v62 = vsel %vm5078_vm2, %v2510_v4, %v14136_v61  ;;  %3301 = vmatprep.mubr.f32.mxu1 %v13846_v37  ;;  %v9532_v7 = vsel %vm13560_vm13, %v9504_v30, %v14139_v10  ;;  %v9536_v56 = vpop.f32.mrb[124].mxu1  ;;  %v14146_v6 = vld [vmem:[#allocation100_spill] sm:$0xff]  ;;  %v14147_v38 = vld [vmem:[#allocation30_spill] sm:$0xff] }
 0x299   : > { %v5046_v28 = vsel %vm14142_vm1, 1, %v13989_v36  ;;  %14143 = vst [vmem:[#allocation97_spill] sm:$0xff] %v9524_v62  ;;  %14144 = vst [vmem:[#allocation186_spill] sm:$0xff] %v9532_v7  ;;  %vm14148_vm1 = vcmp.gt.f32.partialorder %v14146_v6, %v14147_v38  ;;  %v14149_v4 = vld [vmem:[#allocation102_spill] sm:$0xff]  ;;  %v2516_v62 = vpop.f32.mrb[127].mxu0  ;;  %v14150_v27 = vld [vmem:[#allocation195_spill] sm:$0xff] }
 0x29a   : > { %v9534_v24 = vsel %vm5078_vm2, 2, %v5046_v28  ;;  %v4471_v61 = vsel %vm14148_vm1, 1, %v13989_v36  ;;  %vm4503_vm8 = vcmp.gt.f32.partialorder %v2514_v55, %v14149_v4  ;;  %6500 = vmatmul.mubr.msk.f32.gmra.mrb[232].mxu0 %vm226_vm0, %v14150_v27  ;;  %v14151_v48 = vld [vmem:[#allocation101_spill] sm:$0xff]  ;;  %v9552_v7 = vpop.f32.mrb[125].mxu1  ;;  %v14155_v10 = vld [vmem:[#allocation196_spill] sm:$0xff]  ;;  %v14156_v6 = vld [vmem:[#allocation166_spill] sm:$0xff] }
 0x29b   : > { %14145 = vst [vmem:[#allocation187_spill] sm:$0xff] %v9534_v24  ;;  %vm13566_vm13 = vcmp.gt.f32.partialorder %v9536_v56, %v14151_v48  ;;  %v9548_v28 = vsel %vm4503_vm8, %v2514_v55, %v14149_v4  ;;  %v9550_v24 = vsel %vm4503_vm8, 2, %v4471_v61  ;;  %14154 = vst [vmem:[#allocation28_spill] sm:$0xff] %v9552_v7  ;;  %vm5079_vm2 = vcmp.gt.f32.partialorder %v2516_v62, %v14155_v10  ;;  %v14158_v55 = vld [vmem:[#allocation164_spill] sm:$0xff]  ;;  %v14159_v38 = vld [vmem:[#allocation190_spill] sm:$0xff] }
 0x29c   : > { %14152 = vst [vmem:[#allocation161_spill] sm:$0xff] %v9548_v28  ;;  %14153 = vst [vmem:[#allocation181_spill] sm:$0xff] %v9550_v24  ;;  %6482 = vmatmul.mubr.msk.f32.gmra.mrb[230].mxu1 %vm226_vm0, %v14156_v6  ;;  %3480 = vmatprep.mubr.f32.mxu0 %v13846_v37  ;;  %v9563_v27 = vsel %vm13566_vm13, %v9536_v56, %v14151_v48  ;;  %vm13569_vm8 = vcmp.gt.f32.partialorder %v9552_v7, %v14158_v55  ;;  %v14160_v61 = vld [vmem:[#allocation32_spill] sm:$0xff]  ;;  %v2520_v28 = vpop.f32.mrb[128].mxu0  ;;  %v14169_v48 = vld [vmem:[#allocation106_spill] sm:$0xff] }
 0x29d   : > { %14157 = vst [vmem:[#allocation100_spill] sm:$0xff] %v9563_v27  ;;  %vm14161_vm1 = vcmp.gt.f32.partialorder %v14159_v38, %v14160_v61  ;;  %v9572_v30 = vsel %vm5079_vm2, %v2516_v62, %v14155_v10  ;;  %3307 = vmatprep.mubr.f32.mxu1 %v13846_v37  ;;  %v9580_v6 = vsel %vm13569_vm8, %v9552_v7, %v14158_v55  ;;  %v9584_v27 = vpop.f32.mrb[126].mxu1  ;;  %v14165_v38 = vld [vmem:[#allocation105_spill] sm:$0xff]  ;;  %v14166_v61 = vld [vmem:[#allocation34_spill] sm:$0xff]  ;;  %v14168_v10 = vld [vmem:[#allocation107_spill] sm:$0xff] }
 0x29e   : > { %v5047_v4 = vsel %vm14161_vm1, 1, %v13989_v36  ;;  %14162 = vst [vmem:[#allocation30_spill] sm:$0xff] %v9572_v30  ;;  %14163 = vst [vmem:[#allocation102_spill] sm:$0xff] %v9580_v6  ;;  %vm14167_vm1 = vcmp.gt.f32.partialorder %v14165_v38, %v14166_v61  ;;  %vm4504_vm13 = vcmp.gt.f32.partialorder %v2520_v28, %v14168_v10  ;;  %v2522_v30 = vpop.f32.mrb[129].mxu0  ;;  %6501 = vmatmul.mubr.msk.f32.gmra.mrb[234].mxu0 %vm226_vm0, %v8889_v50  ;;  %v9600_v6 = vpop.f32.mrb[127].mxu1  ;;  %v14172_v38 = vld [vmem:[#allocation171_spill] sm:$0xff] }
 0x29f   : > { %v9582_v24 = vsel %vm5079_vm2, 2, %v5047_v4  ;;  %v4472_v62 = vsel %vm14167_vm1, 1, %v13989_v36  ;;  %vm4998_vm8 = vcmp.gt.f32.partialorder %v9584_v27, %v14169_v48  ;;  %v9596_v4 = vsel %vm4504_vm13, %v2520_v28, %v14168_v10  ;;  %14171 = vst [vmem:[#allocation166_spill] sm:$0xff] %v9600_v6  ;;  %3486 = vmatprep.mubr.f32.mxu0 %v13846_v37  ;;  %v14173_v28 = vld [vmem:[#allocation169_spill] sm:$0xff]  ;;  %v2526_v55 = vpop.f32.mrb[130].mxu0 }
 0x2a0   : > { %14164 = vst [vmem:[#allocation195_spill] sm:$0xff] %v9582_v24  ;;  %v9598_v24 = vsel %vm4504_vm13, 2, %v4472_v62  ;;  %vm5080_vm2 = vcmp.gt.f32.partialorder %v2522_v30, %v8907_v63  ;;  %6483 = vmatmul.mubr.msk.f32.gmra.mrb[232].mxu1 %vm226_vm0, %v14172_v38  ;;  %v9611_v50 = vsel %vm4998_vm8, %v9584_v27, %v14169_v48  ;;  %vm13574_vm13 = vcmp.gt.f32.partialorder %v9600_v6, %v14173_v28  ;;  %v9632_v7 = vpop.f32.mrb[128].mxu1  ;;  %v14391_v27 = vld [vmem:[#allocation178_spill] sm:$0xff] }
 0x2a1   : > { %14170 = vst [vmem:[#allocation196_spill] sm:$0xff] %v9598_v24  ;;  %v5048_v61 = vsel %vm4984_vm15, 1, %v13989_v36  ;;  %v9620_v62 = vsel %vm5080_vm2, %v2522_v30, %v8907_v63  ;;  %3313 = vmatprep.mubr.f32.mxu1 %v13846_v37  ;;  %v9628_v10 = vsel %vm13574_vm13, %v9600_v6, %v14173_v28  ;;  %vm14179_vm15 = vcmp.gt.f32.partialorder %v14177_v13, %v14178_v31  ;;  %v14180_v30 = vld [vmem:[#allocation112_spill] sm:$0xff]  ;;  %v14181_v24 = vld [vmem:[#allocation111_spill] sm:$0xff]  ;;  %v14184_v13 = vld [vmem:[#allocation177_spill] sm:$0xff] }
 0x2a2   : > { %14174 = vst [vmem:[#allocation190_spill] sm:$0xff] %v9620_v62  ;;  %14175 = vst [vmem:[#allocation32_spill] sm:$0xff] %v9628_v10  ;;  %v9630_v38 = vsel %vm5080_vm2, 2, %v5048_v61  ;;  %v4473_v63 = vsel %vm14179_vm15, 1, %v13989_v36  ;;  %vm4505_vm1 = vcmp.gt.f32.partialorder %v2526_v55, %v14180_v30  ;;  %v2528_v62 = vpop.f32.mrb[131].mxu0  ;;  %6502 = vmatmul.mubr.msk.f32.gmra.mrb[236].mxu0 %vm226_vm0, %v8943_v26  ;;  %vm4999_vm13 = vcmp.gt.f32.partialorder %v9632_v7, %v14181_v24  ;;  %v9648_v10 = vpop.f32.mrb[129].mxu1 }
 0x2a3   : > { %14176 = vst [vmem:[#allocation105_spill] sm:$0xff] %v9630_v38  ;;  %v9644_v61 = vsel %vm4505_vm1, %v2526_v55, %v14180_v30  ;;  %v9646_v38 = vsel %vm4505_vm1, 2, %v4473_v63  ;;  %14183 = vst [vmem:[#allocation107_spill] sm:$0xff] %v9648_v10  ;;  %vm5081_vm2 = vcmp.gt.f32.partialorder %v2528_v62, %v8961_v12  ;;  %3492 = vmatprep.mubr.f32.mxu0 %v13846_v37  ;;  %v14185_v55 = vld [vmem:[#allocation175_spill] sm:$0xff]  ;;  %v5049_v31 = vsel %vm4985_vm14, 1, %v13989_v36  ;;  %v2532_v28 = vpop.f32.mrb[132].mxu0 }
 0x2a4   : > { %14182 = vst [vmem:[#allocation34_spill] sm:$0xff] %v9646_v38  ;;  %6484 = vmatmul.mubr.msk.f32.gmra.mrb[234].mxu1 %vm226_vm0, %v14184_v13  ;;  %v9659_v26 = vsel %vm4999_vm13, %v9632_v7, %v14181_v24  ;;  %vm13579_vm15 = vcmp.gt.f32.partialorder %v9648_v10, %v14185_v55  ;;  %v9668_v63 = vsel %vm5081_vm2, %v2528_v62, %v8961_v12  ;;  %v9678_v13 = vsel %vm5081_vm2, 2, %v5049_v31  ;;  %v9680_v6 = vpop.f32.mrb[130].mxu1  ;;  %v14192_v62 = vld [vmem:[#allocation117_spill] sm:$0xff]  ;;  %v14193_v38 = vld [vmem:[#allocation116_spill] sm:$0xff] }
 0x2a5   : > { %14186 = vst [vmem:[#allocation106_spill] sm:$0xff] %v9668_v63  ;;  %3319 = vmatprep.mubr.f32.mxu1 %v13846_v37  ;;  %v9676_v30 = vsel %vm13579_vm15, %v9648_v10, %v14185_v55  ;;  %14188 = vst [vmem:[#allocation110_spill] sm:$0xff] %v9678_v13  ;;  %vm14191_vm14 = vcmp.gt.f32.partialorder %v14189_v25, %v14190_v16  ;;  %vm4506_vm1 = vcmp.gt.f32.partialorder %v2532_v28, %v14192_v62  ;;  %v2534_v63 = vpop.f32.mrb[133].mxu0  ;;  %v14196_v25 = vld [vmem:[#allocation183_spill] sm:$0xff]  ;;  %v14201_v55 = vld [vmem:[#allocation120_spill] sm:$0xff] }
 0x2a6   : > { %14187 = vst [vmem:[#allocation171_spill] sm:$0xff] %v9676_v30  ;;  %v4474_v12 = vsel %vm14191_vm14, 1, %v13989_v36  ;;  %6503 = vmatmul.mubr.msk.f32.gmra.mrb[238].mxu0 %vm226_vm0, %v8995_v46  ;;  %vm5000_vm15 = vcmp.gt.f32.partialorder %v9680_v6, %v14193_v38  ;;  %v9692_v31 = vsel %vm4506_vm1, %v2532_v28, %v14192_v62  ;;  %v9696_v30 = vpop.f32.mrb[131].mxu1  ;;  %vm5082_vm2 = vcmp.gt.f32.partialorder %v2534_v63, %v9005_v23  ;;  %v14197_v16 = vld [vmem:[#allocation3_spill] sm:$0xff]  ;;  %v14202_v10 = vld [vmem:[#allocation49_spill] sm:$0xff]  ;;  %v14409_v7 = vld [vmem:[#allocation184_spill] sm:$0xff] }
 0x2a7   : > { %v9694_v13 = vsel %vm4506_vm1, 2, %v4474_v12  ;;  %14195 = vst [vmem:[#allocation112_spill] sm:$0xff] %v9696_v30  ;;  %3498 = vmatprep.mubr.f32.mxu0 %v13846_v37  ;;  %v5050_v46 = vsel %vm4986_vm7, 1, %v13989_v36  ;;  %v9711_v28 = vsel %vm5000_vm15, %v9680_v6, %v14193_v38  ;;  %vm13584_vm14 = vcmp.gt.f32.partialorder %v9696_v30, %v14197_v16  ;;  %v2538_v62 = vpop.f32.mrb[134].mxu0  ;;  %v14427_v38 = vld [vmem:[#allocation193_spill] sm:$0xff] }
 0x2a8   : > { %14194 = vst [vmem:[#allocation39_spill] sm:$0xff] %v9694_v13  ;;  %6485 = vmatmul.mubr.msk.f32.gmra.mrb[236].mxu1 %vm226_vm0, %v14196_v25  ;;  %v9716_v12 = vsel %vm5082_vm2, %v2534_v63, %v9005_v23  ;;  %v9724_v52 = vsel %vm13584_vm14, %v9696_v30, %v14197_v16  ;;  %v9726_v11 = vsel %vm5082_vm2, 2, %v5050_v46  ;;  %v9728_v25 = vpop.f32.mrb[132].mxu1  ;;  %vm14203_vm7 = vcmp.gt.f32.partialorder %v14201_v55, %v14202_v10  ;;  %v14204_v63 = vld [vmem:[#allocation122_spill] sm:$0xff]  ;;  %v14205_v13 = vld [vmem:[#allocation121_spill] sm:$0xff]  ;;  %v14209_v10 = vld [vmem:[#allocation192_spill] sm:$0xff] }
 0x2a9   : > { %14198 = vst [vmem:[#allocation111_spill] sm:$0xff] %v9716_v12  ;;  %3325 = vmatprep.mubr.f32.mxu1 %v13846_v37  ;;  %14199 = vst [vmem:[#allocation177_spill] sm:$0xff] %v9724_v52  ;;  %v4475_v23 = vsel %vm14203_vm7, 1, %v13989_v36  ;;  %vm4507_vm1 = vcmp.gt.f32.partialorder %v2538_v62, %v14204_v63  ;;  %v2540_v12 = vpop.f32.mrb[135].mxu0  ;;  %vm5001_vm14 = vcmp.gt.f32.partialorder %v9728_v25, %v14205_v13  ;;  %v9744_v52 = vpop.f32.mrb[133].mxu1  ;;  %v14217_v16 = vld [vmem:[#allocation126_spill] sm:$0xff] }
 0x2aa   : > { %14200 = vst [vmem:[#allocation115_spill] sm:$0xff] %v9726_v11  ;;  %6504 = vmatmul.mubr.msk.f32.gmra.mrb[240].mxu0 %vm226_vm0, %v9049_v43  ;;  %v9740_v46 = vsel %vm4507_vm1, %v2538_v62, %v14204_v63  ;;  %v9742_v11 = vsel %vm4507_vm1, 2, %v4475_v23  ;;  %14208 = vst [vmem:[#allocation116_spill] sm:$0xff] %v9744_v52  ;;  %vm5083_vm2 = vcmp.gt.f32.partialorder %v2540_v12, %v9059_v15  ;;  %v5051_v43 = vsel %vm4987_vm3, 1, %v13989_v36  ;;  %v14210_v62 = vld [vmem:[#allocation189_spill] sm:$0xff] }
 0x2ab   : > { %14206 = vst [vmem:[#allocation44_spill] sm:$0xff] %v9740_v46  ;;  %14207 = vst [vmem:[#allocation117_spill] sm:$0xff] %v9742_v11  ;;  %3504 = vmatprep.mubr.f32.mxu0 %v13846_v37  ;;  %v9759_v55 = vsel %vm5001_vm14, %v9728_v25, %v14205_v13  ;;  %vm13590_vm7 = vcmp.gt.f32.partialorder %v9744_v52, %v14210_v62  ;;  %v9764_v23 = vsel %vm5083_vm2, %v2540_v12, %v9059_v15  ;;  %v2544_v63 = vpop.f32.mrb[136].mxu0  ;;  %v14214_v15 = vld [vmem:[#allocation124_spill] sm:$0xff]  ;;  %v14215_v12 = vld [vmem:[#allocation54_spill] sm:$0xff] }
 0x2ac   : > { %6486 = vmatmul.mubr.msk.f32.gmra.mrb[238].mxu1 %vm226_vm0, %v14209_v10  ;;  %14211 = vst [vmem:[#allocation183_spill] sm:$0xff] %v9764_v23  ;;  %v9772_v1 = vsel %vm13590_vm7, %v9744_v52, %v14210_v62  ;;  %v9774_v14 = vsel %vm5083_vm2, 2, %v5051_v43  ;;  %v5052_v10 = vsel %vm4988_vm4, 1, %v13989_v36  ;;  %vm14216_vm3 = vcmp.gt.f32.partialorder %v14214_v15, %v14215_v12  ;;  %v2693_v30 = vpop.f32.mrb[134].mxu1  ;;  %v14218_v11 = vld [vmem:[#allocation125_spill] sm:$0xff]  ;;  %v14225_v52 = vld [vmem:[#allocation35_spill] sm:$0xff] }
 0x2ad   : > { %3331 = vmatprep.mubr.f32.mxu1 %v13846_v37  ;;  %14212 = vst [vmem:[#allocation120_spill] sm:$0xff] %v9772_v1  ;;  %14213 = vst [vmem:[#allocation49_spill] sm:$0xff] %v9774_v14  ;;  %v4476_v23 = vsel %vm14216_vm3, 1, %v13989_v36  ;;  %vm4508_vm1 = vcmp.gt.f32.partialorder %v2544_v63, %v14217_v16  ;;  %v14219_v62 = vld [vmem:[#allocation33_spill] sm:$0xff]  ;;  %v2546_v14 = vpop.f32.mrb[137].mxu0  ;;  %v9790_v1 = vld [vmem:[%s7227_s12 + $0x38] sm:$0xff] }
 0x2ae   : > { %vm14220_vm7 = vcmp.gt.f32.partialorder %v14218_v11, %v14219_v62  ;;  %14221 = vst [vmem:[#allocation122_spill] sm:$0xff] %v9790_v1  ;;  %6505 = vmatmul.mubr.msk.f32.gmra.mrb[242].mxu0 %vm226_vm0, %v9790_v1  ;;  %v9795_v3 = vsel %vm4508_vm1, %v2544_v63, %v14217_v16  ;;  %v9797_v35 = vsel %vm4508_vm1, 2, %v4476_v23  ;;  %v14224_v15 = vld [vmem:[#allocation129_spill] sm:$0xff]  ;;  %vm5084_vm2 = vcmp.gt.f32.partialorder %v2546_v14, %v9110_v9  ;;  %v2695_v12 = vpop.f32.mrb[135].mxu1  ;;  %v9836_v46 = vld [vmem:[%s7227_s12 + $0x40] sm:$0xff]  ;;  %v14444_v25 = vld [vmem:[#allocation8_spill] sm:$0xff] }
 0x2af   : > { %v5610_v43 = vsel %vm14220_vm7, 1, %v13989_v36  ;;  %14222 = vst [vmem:[#allocation121_spill] sm:$0xff] %v9795_v3  ;;  %14223 = vst [vmem:[#allocation192_spill] sm:$0xff] %v9797_v35  ;;  %vm5642_vm4 = vcmp.gt.f32.partialorder %v2693_v30, %v14224_v15  ;;  %3510 = vmatprep.mubr.f32.mxu0 %v13846_v37  ;;  %v9810_v16 = vsel %vm5084_vm2, %v2546_v14, %v9110_v9  ;;  %v9812_v23 = vsel %vm5084_vm2, 2, %v5052_v10  ;;  %v14228_v63 = vld [vmem:[#allocation37_spill] sm:$0xff]  ;;  %v2550_v35 = vpop.f32.mrb[138].mxu0 }
 0x2b0   : > { %6487 = vmatmul.mubr.msk.f32.gmra.mrb[240].mxu1 %vm226_vm0, %v14225_v52  ;;  %v9805_v11 = vsel %vm5642_vm4, %v2693_v30, %v14224_v15  ;;  %v9807_v62 = vsel %vm5642_vm4, 2, %v5610_v43  ;;  %14226 = vst [vmem:[#allocation124_spill] sm:$0xff] %v9810_v16  ;;  %14227 = vst [vmem:[#allocation54_spill] sm:$0xff] %v9812_v23  ;;  %vm4586_vm7 = vcmp.gt.f32.partialorder %v2695_v12, %v14228_v63  ;;  %v14229_v52 = vld [vmem:[#allocation128_spill] sm:$0xff]  ;;  %v14230_v3 = vld [vmem:[#allocation59_spill] sm:$0xff]  ;;  %v5053_v9 = vsel %vm4989_vm5, 1, %v13989_v36 }
 0x2b1   : > { %3337 = vmatprep.mubr.f32.mxu1 %v13846_v37  ;;  %vm14231_vm3 = vcmp.gt.f32.partialorder %v14229_v52, %v14230_v3  ;;  %v14232_v30 = vld [vmem:[#allocation130_spill] sm:$0xff]  ;;  %v9829_v14 = vsel %vm4586_vm7, %v2695_v12, %v14228_v63  ;;  %v14238_v16 = vld [vmem:[#allocation131_spill] sm:$0xff]  ;;  %v2699_v3 = vpop.f32.mrb[136].mxu1  ;;  %v2552_v52 = vpop.f32.mrb[139].mxu0  ;;  %v14242_v63 = vld [vmem:[#allocation40_spill] sm:$0xff] }
 0x2b2   : > { %v4477_v1 = vsel %vm14231_vm3, 1, %v13989_v36  ;;  %v14233_v15 = vld [vmem:[#allocation38_spill] sm:$0xff]  ;;  %14235 = vst [vmem:[#allocation126_spill] sm:$0xff] %v9829_v14  ;;  %vm4509_vm4 = vcmp.gt.f32.partialorder %v2550_v35, %v14238_v16  ;;  %6506 = vmatmul.mubr.msk.f32.gmra.mrb[244].mxu0 %vm226_vm0, %v9836_v46  ;;  %vm5643_vm5 = vcmp.gt.f32.partialorder %v2699_v3, %v14241_v0  ;;  %vm5085_vm2 = vcmp.gt.f32.partialorder %v2552_v52, %v9161_v29  ;;  %v2701_v12 = vpop.f32.mrb[137].mxu1  ;;  %v14247_v14 = vld [vmem:[#allocation64_spill] sm:$0xff] }
 0x2b3   : > { %vm14234_vm1 = vcmp.gt.f32.partialorder %v14232_v30, %v14233_v15  ;;  %v14236_v10 = vld [vmem:[#allocation198_spill] sm:$0xff]  ;;  %v9841_v30 = vsel %vm4509_vm4, %v2550_v35, %v14238_v16  ;;  %v9843_v5 = vsel %vm4509_vm4, 2, %v4477_v1  ;;  %3516 = vmatprep.mubr.f32.mxu0 %v13846_v37  ;;  %v9851_v15 = vsel %vm5643_vm5, %v2699_v3, %v14241_v0  ;;  %v14249_v3 = vld [vmem:[#allocation135_spill] sm:$0xff] }
 0x2b4   : > { %v5611_v43 = vsel %vm14234_vm1, 1, %v13989_v36  ;;  %v9832_v23 = vsel %vm4586_vm7, 3, %v14236_v10  ;;  %14239 = vst [vmem:[#allocation33_spill] sm:$0xff] %v9841_v30  ;;  %14240 = vst [vmem:[#allocation129_spill] sm:$0xff] %v9843_v5  ;;  %6488 = vmatmul.mubr.msk.f32.gmra.mrb[242].mxu1 %vm226_vm0, %v14242_v63  ;;  %v9856_v35 = vsel %vm5085_vm2, %v2552_v52, %v9161_v29  ;;  %v9858_v1 = vsel %vm5085_vm2, 2, %v5053_v9  ;;  %v14245_v16 = vld [vmem:[#allocation42_spill] sm:$0xff] }
 0x2b5   : > { %14237 = vst [vmem:[#allocation125_spill] sm:$0xff] %v9832_v23  ;;  %v9853_v10 = vsel %vm5643_vm5, 2, %v5611_v43  ;;  %14243 = vst [vmem:[#allocation35_spill] sm:$0xff] %v9856_v35  ;;  %3343 = vmatprep.mubr.f32.mxu1 %v13846_v37  ;;  %vm4587_vm7 = vcmp.gt.f32.partialorder %v2701_v12, %v14245_v16  ;;  %v2556_v23 = vpop.f32.mrb[140].mxu0  ;;  %v14246_v63 = vld [vmem:[#allocation133_spill] sm:$0xff]  ;;  %v14250_v0 = vld [vmem:[#allocation43_spill] sm:$0xff] }
 0x2b6   : > { %14244 = vst [vmem:[#allocation37_spill] sm:$0xff] %v9858_v1  ;;  %vm14248_vm3 = vcmp.gt.f32.partialorder %v14246_v63, %v14247_v14  ;;  %vm14251_vm1 = vcmp.gt.f32.partialorder %v14249_v3, %v14250_v0  ;;  %v5054_v29 = vsel %vm4990_vm6, 1, %v13989_v36  ;;  %v9875_v9 = vsel %vm4587_vm7, %v2701_v12, %v14245_v16  ;;  %v14253_v52 = vld [vmem:[#allocation201_spill] sm:$0xff]  ;;  %v14255_v35 = vld [vmem:[#allocation136_spill] sm:$0xff]  ;;  %v2705_v14 = vpop.f32.mrb[138].mxu1  ;;  %v2558_v63 = vpop.f32.mrb[141].mxu0 }
 0x2b7   : > { %v4478_v5 = vsel %vm14248_vm3, 1, %v13989_v36  ;;  %v5612_v43 = vsel %vm14251_vm1, 1, %v13989_v36  ;;  %14252 = vst [vmem:[#allocation128_spill] sm:$0xff] %v9875_v9  ;;  %v9878_v1 = vsel %vm4587_vm7, 3, %v14253_v52  ;;  %vm4510_vm4 = vcmp.gt.f32.partialorder %v2556_v23, %v14255_v35  ;;  %v9882_v30 = vld [vmem:[%s7227_s12 + $0x48] sm:$0xff]  ;;  %v2707_v12 = vpop.f32.mrb[139].mxu1 }
 0x2b8   : > { %14254 = vst [vmem:[#allocation59_spill] sm:$0xff] %v9878_v1  ;;  %6507 = vmatmul.mubr.msk.f32.gmra.mrb[246].mxu0 %vm226_vm0, %v9882_v30  ;;  %v9887_v3 = vsel %vm4510_vm4, %v2556_v23, %v14255_v35  ;;  %v9889_v54 = vsel %vm4510_vm4, 2, %v4478_v5  ;;  %vm5644_vm6 = vcmp.gt.f32.partialorder %v2705_v14, %v14258_v34  ;;  %vm5086_vm5 = vcmp.gt.f32.partialorder %v2558_v63, %v9212_v42  ;;  %v14259_v16 = vld [vmem:[#allocation45_spill] sm:$0xff]  ;;  %v14262_v35 = vld [vmem:[#allocation47_spill] sm:$0xff]  ;;  %v2562_v1 = vpop.f32.mrb[142].mxu0 }
 0x2b9   : > { %14256 = vst [vmem:[#allocation130_spill] sm:$0xff] %v9887_v3  ;;  %14257 = vst [vmem:[#allocation38_spill] sm:$0xff] %v9889_v54  ;;  %6489 = vmatmul.mubr.msk.f32.gmra.mrb[244].mxu1 %vm226_vm0, %v14259_v16  ;;  %3522 = vmatprep.mubr.f32.mxu0 %v13846_v37  ;;  %v9897_v0 = vsel %vm5644_vm6, %v2705_v14, %v14258_v34  ;;  %v9899_v52 = vsel %vm5644_vm6, 2, %v5612_v43  ;;  %v9902_v23 = vsel %vm5086_vm5, %v2558_v63, %v9212_v42  ;;  %v14263_v16 = vld [vmem:[#allocation138_spill] sm:$0xff]  ;;  %v14264_v9 = vld [vmem:[#allocation69_spill] sm:$0xff] }
 0x2ba   : > { %14260 = vst [vmem:[#allocation198_spill] sm:$0xff] %v9902_v23  ;;  %v9904_v5 = vsel %vm5086_vm5, 2, %v5054_v29  ;;  %3349 = vmatprep.mubr.f32.mxu1 %v13846_v37  ;;  %vm4588_vm2 = vcmp.gt.f32.partialorder %v2707_v12, %v14262_v35  ;;  %vm14265_vm7 = vcmp.gt.f32.partialorder %v14263_v16, %v14264_v9  ;;  %v14266_v14 = vld [vmem:[#allocation140_spill] sm:$0xff]  ;;  %v5055_v42 = vsel %vm4991_vm9, 1, %v13989_v36  ;;  %v14270_v63 = vld [vmem:[#allocation46_spill] sm:$0xff]  ;;  %v14272_v23 = vld [vmem:[#allocation19_spill] sm:$0xff] }
 0x2bb   : > { %14261 = vst [vmem:[#allocation131_spill] sm:$0xff] %v9904_v5  ;;  %v4479_v54 = vsel %vm14265_vm7, 1, %v13989_v36  ;;  %v14267_v34 = vld [vmem:[#allocation48_spill] sm:$0xff]  ;;  %v9921_v29 = vsel %vm4588_vm2, %v2707_v12, %v14262_v35  ;;  %v9924_v5 = vsel %vm4588_vm2, 3, %v14270_v63  ;;  %vm4511_vm1 = vcmp.gt.f32.partialorder %v2562_v1, %v14272_v23  ;;  %v2711_v9 = vpop.f32.mrb[140].mxu1  ;;  %v2564_v16 = vpop.f32.mrb[143].mxu0 }
 0x2bc   : > { %vm14268_vm3 = vcmp.gt.f32.partialorder %v14266_v14, %v14267_v34  ;;  %14269 = vst [vmem:[#allocation134_spill] sm:$0xff] %v9921_v29  ;;  %14271 = vst [vmem:[#allocation40_spill] sm:$0xff] %v9924_v5  ;;  %v9928_v3 = vld [vmem:[%s7227_s12 + $0x50] sm:$0xff]  ;;  %v9933_v14 = vsel %vm4511_vm1, %v2562_v1, %v14272_v23  ;;  %v9935_v44 = vsel %vm4511_vm1, 2, %v4479_v54  ;;  %vm5645_vm9 = vcmp.gt.f32.partialorder %v2711_v9, %v14275_v60  ;;  %v2713_v12 = vpop.f32.mrb[141].mxu1  ;;  %v14276_v35 = vld [vmem:[#allocation50_spill] sm:$0xff] }
 0x2bd   : > { %v5613_v43 = vsel %vm14268_vm3, 1, %v13989_v36  ;;  %6508 = vmatmul.mubr.msk.f32.gmra.mrb[248].mxu0 %vm226_vm0, %v9928_v3  ;;  %14273 = vst [vmem:[#allocation42_spill] sm:$0xff] %v9933_v14  ;;  %14274 = vst [vmem:[#allocation133_spill] sm:$0xff] %v9935_v44  ;;  %vm5087_vm4 = vcmp.gt.f32.partialorder %v2564_v16, %v9263_v32  ;;  %6490 = vmatmul.mubr.msk.f32.gmra.mrb[246].mxu1 %vm226_vm0, %v14276_v35  ;;  %v9943_v34 = vsel %vm5645_vm9, %v2711_v9, %v14275_v60  ;;  %v14279_v23 = vld [vmem:[#allocation17_spill] sm:$0xff]  ;;  %v2568_v5 = vpop.f32.mrb[144].mxu0  ;;  %v14280_v35 = vld [vmem:[#allocation142_spill] sm:$0xff] }
 0x2be   : > { %3528 = vmatprep.mubr.f32.mxu0 %v13846_v37  ;;  %v9945_v63 = vsel %vm5645_vm9, 2, %v5613_v43  ;;  %v9948_v1 = vsel %vm5087_vm4, %v2564_v16, %v9263_v32  ;;  %v9950_v54 = vsel %vm5087_vm4, 2, %v5055_v42  ;;  %3355 = vmatprep.mubr.f32.mxu1 %v13846_v37  ;;  %vm4589_vm6 = vcmp.gt.f32.partialorder %v2713_v12, %v14279_v23  ;;  %v14281_v29 = vld [vmem:[#allocation74_spill] sm:$0xff]  ;;  %v14283_v9 = vld [vmem:[#allocation144_spill] sm:$0xff]  ;;  %v14284_v60 = vld [vmem:[#allocation53_spill] sm:$0xff] }
 0x2bf   : > { %14277 = vst [vmem:[#allocation64_spill] sm:$0xff] %v9948_v1  ;;  %14278 = vst [vmem:[#allocation135_spill] sm:$0xff] %v9950_v54  ;;  %vm14282_vm5 = vcmp.gt.f32.partialorder %v14280_v35, %v14281_v29  ;;  %vm14285_vm2 = vcmp.gt.f32.partialorder %v14283_v9, %v14284_v60  ;;  %v5056_v32 = vsel %vm4992_vm10, 1, %v13989_v36  ;;  %v9967_v42 = vsel %vm4589_vm6, %v2713_v12, %v14279_v23  ;;  %v14287_v16 = vld [vmem:[#allocation52_spill] sm:$0xff]  ;;  %v14289_v1 = vld [vmem:[#allocation23_spill] sm:$0xff]  ;;  %v2717_v29 = vpop.f32.mrb[142].mxu1 }
 0x2c0   : > { %v4480_v44 = vsel %vm14282_vm5, 1, %v13989_v36  ;;  %v5614_v43 = vsel %vm14285_vm2, 1, %v13989_v36  ;;  %14286 = vst [vmem:[#allocation43_spill] sm:$0xff] %v9967_v42  ;;  %v9970_v54 = vsel %vm4589_vm6, 3, %v14287_v16  ;;  %vm4512_vm7 = vcmp.gt.f32.partialorder %v2568_v5, %v14289_v1  ;;  %v2570_v35 = vpop.f32.mrb[145].mxu0  ;;  %v9974_v14 = vld [vmem:[%s7227_s12 + $0x58] sm:$0xff] }
 0x2c1   : > { %14288 = vst [vmem:[#allocation201_spill] sm:$0xff] %v9970_v54  ;;  %6509 = vmatmul.mubr.msk.f32.gmra.mrb[250].mxu0 %vm226_vm0, %v9974_v14  ;;  %v9979_v9 = vsel %vm4512_vm7, %v2568_v5, %v14289_v1  ;;  %v9981_v58 = vsel %vm4512_vm7, 2, %v4480_v44  ;;  %vm5646_vm10 = vcmp.gt.f32.partialorder %v2717_v29, %v14290_v57  ;;  %vm5088_vm3 = vcmp.gt.f32.partialorder %v2570_v35, %v9314_v51  ;;  %v2719_v12 = vpop.f32.mrb[143].mxu1  ;;  %v2574_v1 = vpop.f32.mrb[146].mxu0  ;;  %v14294_v16 = vld [vmem:[#allocation79_spill] sm:$0xff] }
 0x2c2   : > { %6491 = vmatmul.mubr.msk.f32.gmra.mrb[248].mxu1 %vm226_vm0, %v9088_v45  ;;  %3534 = vmatprep.mubr.f32.mxu0 %v13846_v37  ;;  %v9989_v23 = vsel %vm5646_vm10, %v2717_v29, %v14290_v57  ;;  %v9991_v60 = vsel %vm5646_vm10, 2, %v5614_v43  ;;  %v9994_v5 = vsel %vm5088_vm3, %v2570_v35, %v9314_v51  ;;  %v9996_v44 = vsel %vm5088_vm3, 2, %v5056_v32  ;;  %v14293_v45 = vld [vmem:[#allocation146_spill] sm:$0xff]  ;;  %v14296_v29 = vld [vmem:[#allocation148_spill] sm:$0xff]  ;;  %v14300_v35 = vld [vmem:[#allocation55_spill] sm:$0xff] }
 0x2c3   : > { %14291 = vst [vmem:[#allocation136_spill] sm:$0xff] %v9994_v5  ;;  %14292 = vst [vmem:[#allocation139_spill] sm:$0xff] %v9996_v44  ;;  %3361 = vmatprep.mubr.f32.mxu1 %v13846_v37  ;;  %vm4590_vm1 = vcmp.gt.f32.partialorder %v2719_v12, %v9095_v53  ;;  %vm14295_vm9 = vcmp.gt.f32.partialorder %v14293_v45, %v14294_v16  ;;  %v14297_v57 = vld [vmem:[#allocation58_spill] sm:$0xff]  ;;  %v5057_v51 = vsel %vm4993_vm11, 1, %v13989_v36  ;;  %v14302_v5 = vld [vmem:[#allocation27_spill] sm:$0xff]  ;;  %v2723_v45 = vpop.f32.mrb[144].mxu1 }
 0x2c4   : > { %v4481_v54 = vsel %vm14295_vm9, 1, %v13989_v36  ;;  %vm14298_vm4 = vcmp.gt.f32.partialorder %v14296_v29, %v14297_v57  ;;  %v10013_v32 = vsel %vm4590_vm1, %v2719_v12, %v9095_v53  ;;  %v10016_v44 = vsel %vm4590_vm1, 3, %v14300_v35  ;;  %v2576_v16 = vpop.f32.mrb[147].mxu0  ;;  %v10020_v42 = vld [vmem:[%s7227_s12 + $0x60] sm:$0xff]  ;;  %v2725_v53 = vpop.f32.mrb[145].mxu1  ;;  %v14307_v35 = vld [vmem:[#allocation84_spill] sm:$0xff] }
 0x2c5   : > { %v5615_v43 = vsel %vm14298_vm4, 1, %v13989_v36  ;;  %14299 = vst [vmem:[#allocation45_spill] sm:$0xff] %v10013_v32  ;;  %14301 = vst [vmem:[#allocation47_spill] sm:$0xff] %v10016_v44  ;;  %vm4513_vm6 = vcmp.gt.f32.partialorder %v2574_v1, %v14302_v5  ;;  %6510 = vmatmul.mubr.msk.f32.gmra.mrb[252].mxu0 %vm226_vm0, %v10020_v42  ;;  %vm5647_vm11 = vcmp.gt.f32.partialorder %v2723_v45, %v14303_v40  ;;  %v10066_v32 = vld [vmem:[%s7227_s12 + $0x68] sm:$0xff] }
 0x2c6   : > { %v10025_v29 = vsel %vm4513_vm6, %v2574_v1, %v14302_v5  ;;  %v10027_v47 = vsel %vm4513_vm6, 2, %v4481_v54  ;;  %vm5089_vm5 = vcmp.gt.f32.partialorder %v2576_v16, %v9365_v33  ;;  %6492 = vmatmul.mubr.msk.f32.gmra.mrb[250].mxu1 %vm226_vm0, %v9139_v49  ;;  %3540 = vmatprep.mubr.f32.mxu0 %v13846_v37  ;;  %v10035_v12 = vsel %vm5647_vm11, %v2723_v45, %v14303_v40  ;;  %v2580_v1 = vpop.f32.mrb[148].mxu0  ;;  %v14306_v49 = vld [vmem:[#allocation150_spill] sm:$0xff]  ;;  %v14309_v45 = vld [vmem:[#allocation153_spill] sm:$0xff]  ;;  %v14310_v40 = vld [vmem:[#allocation63_spill] sm:$0xff] }
 0x2c7   : > { %v10037_v57 = vsel %vm5647_vm11, 2, %v5615_v43  ;;  %v10040_v5 = vsel %vm5089_vm5, %v2576_v16, %v9365_v33  ;;  %v10042_v54 = vsel %vm5089_vm5, 2, %v5057_v51  ;;  %3367 = vmatprep.mubr.f32.mxu1 %v13846_v37  ;;  %vm4591_vm2 = vcmp.gt.f32.partialorder %v2725_v53, %v9146_v59  ;;  %v14313_v16 = vld [vmem:[#allocation60_spill] sm:$0xff] }
 0x2c8   : > { %14304 = vst [vmem:[#allocation138_spill] sm:$0xff] %v10040_v5  ;;  %14305 = vst [vmem:[#allocation69_spill] sm:$0xff] %v10042_v54  ;;  %vm14308_vm7 = vcmp.gt.f32.partialorder %v14306_v49, %v14307_v35  ;;  %vm14311_vm10 = vcmp.gt.f32.partialorder %v14309_v45, %v14310_v40  ;;  %v5058_v33 = vsel %vm4994_vm12, 1, %v13989_v36  ;;  %v10059_v51 = vsel %vm4591_vm2, %v2725_v53, %v9146_v59  ;;  %v14315_v5 = vld [vmem:[#allocation31_spill] sm:$0xff]  ;;  %v2729_v49 = vpop.f32.mrb[146].mxu1  ;;  %v2582_v35 = vpop.f32.mrb[149].mxu0 }
 0x2c9   : > { %v4482_v44 = vsel %vm14308_vm7, 1, %v13989_v36  ;;  %v5616_v43 = vsel %vm14311_vm10, 1, %v13989_v36  ;;  %14312 = vst [vmem:[#allocation140_spill] sm:$0xff] %v10059_v51  ;;  %v10062_v54 = vsel %vm4591_vm2, 3, %v14313_v16  ;;  %vm4514_vm3 = vcmp.gt.f32.partialorder %v2580_v1, %v14315_v5  ;;  %6511 = vmatmul.mubr.msk.f32.gmra.mrb[254].mxu0 %vm226_vm0, %v10066_v32  ;;  %v2731_v59 = vpop.f32.mrb[147].mxu1  ;;  %v14320_v16 = vld [vmem:[#allocation89_spill] sm:$0xff] }
 0x2ca   : > { %14314 = vst [vmem:[#allocation48_spill] sm:$0xff] %v10062_v54  ;;  %v10071_v45 = vsel %vm4514_vm3, %v2580_v1, %v14315_v5  ;;  %v10073_v41 = vsel %vm4514_vm3, 2, %v4482_v44  ;;  %vm5648_vm12 = vcmp.gt.f32.partialorder %v2729_v49, %v14316_v8  ;;  %vm5090_vm1 = vcmp.gt.f32.partialorder %v2582_v35, %v9416_v2  ;;  %6493 = vmatmul.mubr.msk.f32.gmra.mrb[252].mxu1 %vm226_vm0, %v9190_v20  ;;  %v2586_v1 = vpop.f32.mrb[150].mxu0  ;;  %v14319_v20 = vld [vmem:[#allocation155_spill] sm:$0xff]  ;;  %v10112_v51 = vld [vmem:[%s7227_s12 + $0x70] sm:$0xff] }
 0x2cb   : > { %3546 = vmatprep.mubr.f32.mxu0 %v13846_v37  ;;  %v10081_v53 = vsel %vm5648_vm12, %v2729_v49, %v14316_v8  ;;  %v10083_v40 = vsel %vm5648_vm12, 2, %v5616_v43  ;;  %v10086_v5 = vsel %vm5090_vm1, %v2582_v35, %v9416_v2  ;;  %v10088_v44 = vsel %vm5090_vm1, 2, %v5058_v33  ;;  %3373 = vmatprep.mubr.f32.mxu1 %v13846_v37  ;;  %v14322_v49 = vld [vmem:[#allocation158_spill] sm:$0xff]  ;;  %v14323_v8 = vld [vmem:[#allocation68_spill] sm:$0xff]  ;;  %v14327_v35 = vld [vmem:[#allocation65_spill] sm:$0xff]  ;;  %14330 = vst [vmem:[#allocation17_spill] sm:$0xff] %v10112_v51 }
 0x2cc   : > { %14317 = vst [vmem:[#allocation46_spill] sm:$0xff] %v10086_v5  ;;  %14318 = vst [vmem:[#allocation19_spill] sm:$0xff] %v10088_v44  ;;  %vm4592_vm9 = vcmp.gt.f32.partialorder %v2731_v59, %v9197_v18  ;;  %vm14321_vm4 = vcmp.gt.f32.partialorder %v14319_v20, %v14320_v16  ;;  %vm14324_vm6 = vcmp.gt.f32.partialorder %v14322_v49, %v14323_v8  ;;  %v14329_v5 = vld [vmem:[#allocation10_spill] sm:$0xff]  ;;  %v2735_v20 = vpop.f32.mrb[148].mxu1  ;;  %v2588_v16 = vpop.f32.mrb[151].mxu0 }
 0x2cd   : > { %v4483_v54 = vsel %vm14321_vm4, 1, %v13989_v36  ;;  %v5617_v43 = vsel %vm14324_vm6, 1, %v13989_v36  ;;  %vm14325_vm11 = vcmp.gt.f32.partialorder %v9437_v21, %v14112_v17  ;;  %v10105_v33 = vsel %vm4592_vm9, %v2731_v59, %v9197_v18  ;;  %6512 = vmatmul.mubr.msk.f32.gmra.mrb[0].mxu0 %vm226_vm0, %v10112_v51  ;;  %v14333_v21 = vld [vmem:[#allocation162_spill] sm:$0xff]  ;;  %v2737_v18 = vpop.f32.mrb[149].mxu1  ;;  %v10204_v51 = vld [vmem:[%s7227_s12 + $0x80] sm:$0xff] }
 0x2ce   : > { %v5059_v2 = vsel %vm14325_vm11, 1, %v13989_v36  ;;  %14326 = vst [vmem:[#allocation143_spill] sm:$0xff] %v10105_v33  ;;  %v10108_v44 = vsel %vm4592_vm9, 3, %v14327_v35  ;;  %vm4515_vm5 = vcmp.gt.f32.partialorder %v2586_v1, %v14329_v5  ;;  %vm5649_vm2 = vcmp.gt.f32.partialorder %v2735_v20, %v14333_v21  ;;  %6494 = vmatmul.mubr.msk.f32.gmra.mrb[254].mxu1 %vm226_vm0, %v9241_v22  ;;  %3552 = vmatprep.mubr.f32.mxu0 %v13846_v37  ;;  %v14336_v22 = vld [vmem:[#allocation160_spill] sm:$0xff]  ;;  %v14337_v35 = vld [vmem:[#allocation94_spill] sm:$0xff] }
 0x2cf   : > { %14328 = vst [vmem:[#allocation50_spill] sm:$0xff] %v10108_v44  ;;  %v10117_v49 = vsel %vm4515_vm5, %v2586_v1, %v14329_v5  ;;  %v10119_v17 = vsel %vm4515_vm5, 2, %v4483_v54  ;;  %vm5091_vm7 = vcmp.gt.f32.partialorder %v2588_v16, %v9466_v39  ;;  %v10127_v59 = vsel %vm5649_vm2, %v2735_v20, %v14333_v21  ;;  %3379 = vmatprep.mubr.f32.mxu1 %v13846_v37  ;;  %v2592_v1 = vpop.f32.mrb[152].mxu0  ;;  %v14339_v20 = vld [vmem:[#allocation163_spill] sm:$0xff]  ;;  %v14340_v21 = vld [vmem:[#allocation73_spill] sm:$0xff] }
 0x2d0   : > { %14331 = vst [vmem:[#allocation142_spill] sm:$0xff] %v10117_v49  ;;  %14332 = vst [vmem:[#allocation74_spill] sm:$0xff] %v10119_v17  ;;  %v10129_v8 = vsel %vm5649_vm2, 2, %v5617_v43  ;;  %v10132_v5 = vsel %vm5091_vm7, %v2588_v16, %v9466_v39  ;;  %v10134_v54 = vsel %vm5091_vm7, 2, %v5059_v2  ;;  %vm4593_vm10 = vcmp.gt.f32.partialorder %v2737_v18, %v9248_v19  ;;  %v14342_v39 = vld [vmem:[#allocation7_spill] sm:$0xff]  ;;  %v14343_v16 = vld [vmem:[#allocation96_spill] sm:$0xff] }
 0x2d1   : > { %14334 = vst [vmem:[#allocation144_spill] sm:$0xff] %v10132_v5  ;;  %14335 = vst [vmem:[#allocation53_spill] sm:$0xff] %v10134_v54  ;;  %vm14338_vm3 = vcmp.gt.f32.partialorder %v14336_v22, %v14337_v35  ;;  %vm14341_vm12 = vcmp.gt.f32.partialorder %v14339_v20, %v14340_v21  ;;  %vm14344_vm1 = vcmp.gt.f32.partialorder %v14342_v39, %v14343_v16  ;;  %v14346_v5 = vld [vmem:[#allocation70_spill] sm:$0xff]  ;;  %v14348_v17 = vld [vmem:[#allocation13_spill] sm:$0xff]  ;;  %v2741_v22 = vpop.f32.mrb[150].mxu1  ;;  %v2594_v35 = vpop.f32.mrb[153].mxu0 }
 0x2d2   : > { %v4484_v44 = vsel %vm14338_vm3, 1, %v13989_v36  ;;  %v5618_v43 = vsel %vm14341_vm12, 1, %v13989_v36  ;;  %v5060_v2 = vsel %vm14344_vm1, 1, %v13989_v36  ;;  %v10151_v54 = vsel %vm4593_vm10, %v2737_v18, %v9248_v19  ;;  %v10158_v49 = vld [vmem:[%s7227_s12 + $0x78] sm:$0xff]  ;;  %v14352_v39 = vld [vmem:[#allocation167_spill] sm:$0xff]  ;;  %v2743_v18 = vpop.f32.mrb[151].mxu1 }
 0x2d3   : > { %14345 = vst [vmem:[#allocation52_spill] sm:$0xff] %v10151_v54  ;;  %v10154_v33 = vsel %vm4593_vm10, 3, %v14346_v5  ;;  %vm4516_vm9 = vcmp.gt.f32.partialorder %v2592_v1, %v14348_v17  ;;  %14349 = vst [vmem:[#allocation147_spill] sm:$0xff] %v10158_v49  ;;  %6513 = vmatmul.mubr.msk.f32.gmra.mrb[2].mxu0 %vm226_vm0, %v10158_v49  ;;  %vm5650_vm4 = vcmp.gt.f32.partialorder %v2741_v22, %v14352_v39  ;;  %v14353_v19 = vld [vmem:[#allocation26_spill] sm:$0xff]  ;;  %v14354_v5 = vld [vmem:[#allocation75_spill] sm:$0xff]  ;;  %v2598_v54 = vpop.f32.mrb[154].mxu0 }
 0x2d4   : > { %14347 = vst [vmem:[#allocation23_spill] sm:$0xff] %v10154_v33  ;;  %v10163_v20 = vsel %vm4516_vm9, %v2592_v1, %v14348_v17  ;;  %v10165_v21 = vsel %vm4516_vm9, 2, %v4484_v44  ;;  %vm5092_vm6 = vcmp.gt.f32.partialorder %v2594_v35, %v14353_v19  ;;  %6495 = vmatmul.mubr.msk.f32.gmra.mrb[0].mxu1 %vm226_vm0, %v14354_v5  ;;  %3558 = vmatprep.mubr.f32.mxu0 %v13846_v37  ;;  %v10175_v33 = vsel %vm5650_vm4, 2, %v5618_v43  ;;  %v14357_v1 = vld [vmem:[#allocation12_spill] sm:$0xff]  ;;  %v14358_v5 = vld [vmem:[#allocation165_spill] sm:$0xff] }
 0x2d5   : > { %14350 = vst [vmem:[#allocation146_spill] sm:$0xff] %v10163_v20  ;;  %14351 = vst [vmem:[#allocation79_spill] sm:$0xff] %v10165_v21  ;;  %v10173_v16 = vsel %vm5650_vm4, %v2741_v22, %v14352_v39  ;;  %v10178_v17 = vsel %vm5092_vm6, %v2594_v35, %v14353_v19  ;;  %v10180_v44 = vsel %vm5092_vm6, 2, %v5060_v2  ;;  %3385 = vmatprep.mubr.f32.mxu1 %v13846_v37  ;;  %v14359_v21 = vld [vmem:[#allocation99_spill] sm:$0xff]  ;;  %v14361_v22 = vld [vmem:[#allocation168_spill] sm:$0xff] }
 0x2d6   : > { %14355 = vst [vmem:[#allocation148_spill] sm:$0xff] %v10178_v17  ;;  %14356 = vst [vmem:[#allocation58_spill] sm:$0xff] %v10180_v44  ;;  %vm4594_vm11 = vcmp.gt.f32.partialorder %v2743_v18, %v14357_v1  ;;  %vm14360_vm5 = vcmp.gt.f32.partialorder %v14358_v5, %v14359_v21  ;;  %v14362_v39 = vld [vmem:[#allocation78_spill] sm:$0xff]  ;;  %v14364_v35 = vld [vmem:[#allocation101_spill] sm:$0xff]  ;;  %v2747_v21 = vpop.f32.mrb[152].mxu1  ;;  %v2600_v5 = vpop.f32.mrb[155].mxu0 }
 0x2d7   : > { %v4485_v20 = vsel %vm14360_vm5, 1, %v13989_v36  ;;  %vm14363_vm2 = vcmp.gt.f32.partialorder %v14361_v22, %v14362_v39  ;;  %vm14365_vm7 = vcmp.gt.f32.partialorder %v9536_v56, %v14364_v35  ;;  %v10197_v19 = vsel %vm4594_vm11, %v2743_v18, %v14357_v1  ;;  %v14367_v44 = vld [vmem:[#allocation77_spill] sm:$0xff]  ;;  %v14369_v49 = vld [vmem:[#allocation16_spill] sm:$0xff]  ;;  %14370 = vst [vmem:[#allocation152_spill] sm:$0xff] %v10204_v51  ;;  %6514 = vmatmul.mubr.msk.f32.gmra.mrb[4].mxu0 %vm226_vm0, %v10204_v51 }
 0x2d8   : > { %v5619_v43 = vsel %vm14363_vm2, 1, %v13989_v36  ;;  %v5061_v2 = vsel %vm14365_vm7, 1, %v13989_v36  ;;  %14366 = vst [vmem:[#allocation55_spill] sm:$0xff] %v10197_v19  ;;  %v10200_v17 = vsel %vm4594_vm11, 3, %v14367_v44  ;;  %vm4517_vm10 = vcmp.gt.f32.partialorder %v2598_v54, %v14369_v49  ;;  %v14373_v39 = vld [vmem:[#allocation172_spill] sm:$0xff]  ;;  %v2749_v44 = vpop.f32.mrb[153].mxu1  ;;  %3564 = vmatprep.mubr.f32.mxu0 %v13846_v37 }
 0x2d9   : > { %14368 = vst [vmem:[#allocation27_spill] sm:$0xff] %v10200_v17  ;;  %v10209_v22 = vsel %vm4517_vm10, %v2598_v54, %v14369_v49  ;;  %v10211_v56 = vsel %vm4517_vm10, 2, %v4485_v20  ;;  %vm5651_vm3 = vcmp.gt.f32.partialorder %v2747_v21, %v14373_v39  ;;  %v14374_v18 = vld [vmem:[#allocation100_spill] sm:$0xff]  ;;  %v14378_v20 = vld [vmem:[#allocation15_spill] sm:$0xff]  ;;  %v2604_v19 = vpop.f32.mrb[156].mxu0 }
 0x2da   : > { %14371 = vst [vmem:[#allocation150_spill] sm:$0xff] %v10209_v22  ;;  %14372 = vst [vmem:[#allocation84_spill] sm:$0xff] %v10211_v56  ;;  %vm5093_vm12 = vcmp.gt.f32.partialorder %v2600_v5, %v14374_v18  ;;  %v14375_v1 = vld [vmem:[#allocation80_spill] sm:$0xff]  ;;  %v10219_v35 = vsel %vm5651_vm3, %v2747_v21, %v14373_v39  ;;  %v10221_v17 = vsel %vm5651_vm3, 2, %v5619_v43  ;;  %vm4595_vm1 = vcmp.gt.f32.partialorder %v2749_v44, %v14378_v20  ;;  %v14382_v21 = vld [vmem:[#allocation173_spill] sm:$0xff] }
 0x2db   : > { %6496 = vmatmul.mubr.msk.f32.gmra.mrb[2].mxu1 %vm226_vm0, %v14375_v1  ;;  %v10224_v49 = vsel %vm5093_vm12, %v2600_v5, %v14374_v18  ;;  %v10226_v54 = vsel %vm5093_vm12, 2, %v5061_v2  ;;  %v14379_v1 = vld [vmem:[#allocation170_spill] sm:$0xff]  ;;  %v14380_v56 = vld [vmem:[#allocation104_spill] sm:$0xff]  ;;  %v14383_v39 = vld [vmem:[#allocation83_spill] sm:$0xff]  ;;  %v5062_v2 = vsel %vm4998_vm8, 1, %v13989_v36  ;;  %v10243_v5 = vsel %vm4595_vm1, %v2749_v44, %v14378_v20 }
 0x2dc   : > { %14376 = vst [vmem:[#allocation153_spill] sm:$0xff] %v10224_v49  ;;  %14377 = vst [vmem:[#allocation63_spill] sm:$0xff] %v10226_v54  ;;  %3391 = vmatprep.mubr.f32.mxu1 %v13846_v37  ;;  %vm14381_vm9 = vcmp.gt.f32.partialorder %v14379_v1, %v14380_v56  ;;  %vm14384_vm4 = vcmp.gt.f32.partialorder %v14382_v21, %v14383_v39  ;;  %v14386_v18 = vld [vmem:[#allocation82_spill] sm:$0xff]  ;;  %v2753_v56 = vpop.f32.mrb[154].mxu1  ;;  %v2606_v1 = vpop.f32.mrb[157].mxu0  ;;  %v10250_v51 = vld [vmem:[%s7227_s12 + $0x88] sm:$0xff] }
 0x2dd   : > { %v4486_v22 = vsel %vm14381_vm9, 1, %v13989_v36  ;;  %v5620_v43 = vsel %vm14384_vm4, 1, %v13989_v36  ;;  %14385 = vst [vmem:[#allocation60_spill] sm:$0xff] %v10243_v5  ;;  %v10246_v54 = vsel %vm4595_vm1, 3, %v14386_v18  ;;  %v14388_v49 = vld [vmem:[#allocation174_spill] sm:$0xff]  ;;  %6515 = vmatmul.mubr.msk.f32.gmra.mrb[6].mxu0 %vm226_vm0, %v10250_v51  ;;  %vm5652_vm8 = vcmp.gt.f32.partialorder %v2753_v56, %v14391_v27  ;;  %v2755_v44 = vpop.f32.mrb[155].mxu1 }
 0x2de   : > { %14387 = vst [vmem:[#allocation31_spill] sm:$0xff] %v10246_v54  ;;  %vm4518_vm6 = vcmp.gt.f32.partialorder %v2604_v19, %v14388_v49  ;;  %vm5094_vm11 = vcmp.gt.f32.partialorder %v2606_v1, %v9611_v50  ;;  %v14392_v20 = vld [vmem:[#allocation85_spill] sm:$0xff]  ;;  %3570 = vmatprep.mubr.f32.mxu0 %v13846_v37  ;;  %v10265_v39 = vsel %vm5652_vm8, %v2753_v56, %v14391_v27  ;;  %v10267_v18 = vsel %vm5652_vm8, 2, %v5620_v43  ;;  %v2610_v54 = vpop.f32.mrb[158].mxu0  ;;  %v14399_v56 = vld [vmem:[#allocation179_spill] sm:$0xff]  ;;  %v14400_v43 = vld [vmem:[#allocation88_spill] sm:$0xff] }
 0x2df   : > { %v10255_v21 = vsel %vm4518_vm6, %v2604_v19, %v14388_v49  ;;  %v10257_v48 = vsel %vm4518_vm6, 2, %v4486_v22  ;;  %6497 = vmatmul.mubr.msk.f32.gmra.mrb[4].mxu1 %vm226_vm0, %v14392_v20  ;;  %v10270_v19 = vsel %vm5094_vm11, %v2606_v1, %v9611_v50  ;;  %v10272_v22 = vsel %vm5094_vm11, 2, %v5062_v2  ;;  %v14395_v49 = vld [vmem:[#allocation18_spill] sm:$0xff]  ;;  %v14396_v20 = vld [vmem:[#allocation176_spill] sm:$0xff]  ;;  %v14397_v5 = vld [vmem:[#allocation109_spill] sm:$0xff] }
 0x2e0   : > { %14389 = vst [vmem:[#allocation157_spill] sm:$0xff] %v10255_v21  ;;  %14390 = vst [vmem:[#allocation155_spill] sm:$0xff] %v10257_v48  ;;  %3719 = vmatprep.mubr.f32.mxu1 %v13846_v37  ;;  %vm4596_vm5 = vcmp.gt.f32.partialorder %v2755_v44, %v14395_v49  ;;  %vm14398_vm2 = vcmp.gt.f32.partialorder %v14396_v20, %v14397_v5  ;;  %vm14401_vm7 = vcmp.gt.f32.partialorder %v14399_v56, %v14400_v43  ;;  %v14403_v1 = vld [vmem:[#allocation87_spill] sm:$0xff]  ;;  %v2759_v5 = vpop.f32.mrb[156].mxu1  ;;  %v2612_v20 = vpop.f32.mrb[159].mxu0  ;;  %v10296_v21 = vld [vmem:[%s7227_s12 + $0x90] sm:$0xff] }
 0x2e1   : > { %14393 = vst [vmem:[#allocation89_spill] sm:$0xff] %v10270_v19  ;;  %14394 = vst [vmem:[#allocation158_spill] sm:$0xff] %v10272_v22  ;;  %v4487_v48 = vsel %vm14398_vm2, 1, %v13989_v36  ;;  %v5621_v27 = vsel %vm14401_vm7, 1, %v13989_v36  ;;  %v5063_v50 = vsel %vm4999_vm13, 1, %v13989_v36  ;;  %v10289_v2 = vsel %vm4596_vm5, %v2755_v44, %v14395_v49  ;;  %v14405_v19 = vld [vmem:[#allocation4_spill] sm:$0xff]  ;;  %6516 = vmatmul.mubr.msk.f32.gmra.mrb[8].mxu0 %vm226_vm0, %v10296_v21 }
 0x2e2   : > { %14402 = vst [vmem:[#allocation68_spill] sm:$0xff] %v10289_v2  ;;  %v10292_v22 = vsel %vm4596_vm5, 3, %v14403_v1  ;;  %vm4519_vm10 = vcmp.gt.f32.partialorder %v2610_v54, %v14405_v19  ;;  %14406 = vst [vmem:[#allocation10_spill] sm:$0xff] %v10296_v21  ;;  %vm5653_vm13 = vcmp.gt.f32.partialorder %v2759_v5, %v14409_v7  ;;  %vm5095_vm3 = vcmp.gt.f32.partialorder %v2612_v20, %v9659_v26  ;;  %v2761_v44 = vpop.f32.mrb[157].mxu1  ;;  %v10308_v49 = vld [vmem:[%s7227_s12] sm:$0xff]  ;;  %v14412_v1 = vld [vmem:[#allocation5_spill] sm:$0xff] }
 0x2e3   : > { %14404 = vst [vmem:[#allocation65_spill] sm:$0xff] %v10292_v22  ;;  %v10301_v56 = vsel %vm4519_vm10, %v2610_v54, %v14405_v19  ;;  %v10303_v24 = vsel %vm4519_vm10, 2, %v4487_v48  ;;  %6530 = vmatmul.mubr.msk.f32.vlgmr.msra.gmra.mrb[6].mxu1 %vm226_vm0, %v10308_v49  ;;  %3576 = vmatprep.mubr.f32.mxu0 %v13846_v37  ;;  %v10314_v43 = vsel %vm5653_vm13, %v2759_v5, %v14409_v7  ;;  %v10316_v54 = vsel %vm5653_vm13, 2, %v5621_v27  ;;  %v14413_v22 = vld [vmem:[#allocation90_spill] sm:$0xff]  ;;  %v2616_v2 = vpop.f32.mrb[160].mxu0  ;;  %v14417_v27 = vld [vmem:[#allocation185_spill] sm:$0xff] }
 0x2e4   : > { %14407 = vst [vmem:[#allocation162_spill] sm:$0xff] %v10301_v56  ;;  %14408 = vst [vmem:[#allocation160_spill] sm:$0xff] %v10303_v24  ;;  %v10319_v48 = vsel %vm5095_vm3, %v2612_v20, %v9659_v26  ;;  %v10321_v19 = vsel %vm5095_vm3, 2, %v5063_v50  ;;  %6890 = vmatpush3.bf16.msra.mxu1 %v14412_v1  ;;  %3725 = vmatprep.mubr.f32.mxu1 %v13846_v37  ;;  %vm4597_vm12 = vcmp.gt.f32.partialorder %v2761_v44, %v14413_v22  ;;  %v14414_v24 = vld [vmem:[#allocation182_spill] sm:$0xff]  ;;  %v14418_v7 = vld [vmem:[#allocation93_spill] sm:$0xff] }
 0x2e5   : > { %14410 = vst [vmem:[#allocation94_spill] sm:$0xff] %v10319_v48  ;;  %14411 = vst [vmem:[#allocation163_spill] sm:$0xff] %v10321_v19  ;;  %v14415_v56 = vld [vmem:[#allocation114_spill] sm:$0xff]  ;;  %vm14419_vm9 = vcmp.gt.f32.partialorder %v14417_v27, %v14418_v7  ;;  %v5064_v50 = vsel %vm5000_vm15, 1, %v13989_v36  ;;  %v10339_v20 = vsel %vm4597_vm12, %v2761_v44, %v14413_v22  ;;  %v14423_v48 = vld [vmem:[#allocation188_spill] sm:$0xff] }
 0x2e6   : > { %vm14416_vm1 = vcmp.gt.f32.partialorder %v14414_v24, %v14415_v56  ;;  %v5622_v26 = vsel %vm14419_vm9, 1, %v13989_v36  ;;  %14420 = vst [vmem:[#allocation73_spill] sm:$0xff] %v10339_v20  ;;  %v14421_v1 = vld [vmem:[#allocation22_spill] sm:$0xff]  ;;  %vm4520_vm4 = vcmp.gt.f32.partialorder %v2616_v2, %v14423_v48  ;;  %v2765_v56 = vpop.f32.mrb[158].mxu1  ;;  %v2618_v24 = vpop.f32.mrb[161].mxu0  ;;  %v10358_v44 = vld [vmem:[%s7227_s12 + $0x8] sm:$0xff] }
 0x2e7   : > { %v4488_v5 = vsel %vm14416_vm1, 1, %v13989_v36  ;;  %v10342_v19 = vsel %vm4597_vm12, 3, %v14421_v1  ;;  %v10346_v21 = vld [vmem:[%s7227_s12 + $0x98] sm:$0xff]  ;;  %v10351_v27 = vsel %vm4520_vm4, %v2616_v2, %v14423_v48  ;;  %vm5654_vm15 = vcmp.gt.f32.partialorder %v2765_v56, %v14427_v38  ;;  %v2767_v22 = vpop.f32.mrb[159].mxu1  ;;  %6531 = vmatmul.mubr.msk.f32.gmra.mrb[8].mxu1 %vm226_vm0, %v10358_v44  ;;  %v14431_v20 = vld [vmem:[#allocation191_spill] sm:$0xff] }
 0x2e8   : > { %14422 = vst [vmem:[#allocation7_spill] sm:$0xff] %v10342_v19  ;;  %14424 = vst [vmem:[#allocation96_spill] sm:$0xff] %v10346_v21  ;;  %6517 = vmatmul.mubr.msk.f32.gmra.mrb[10].mxu0 %vm226_vm0, %v10346_v21  ;;  %v10353_v6 = vsel %vm4520_vm4, 2, %v4488_v5  ;;  %vm5096_vm6 = vcmp.gt.f32.partialorder %v2618_v24, %v9711_v28  ;;  %v10364_v7 = vsel %vm5654_vm15, %v2765_v56, %v14427_v38  ;;  %v10366_v2 = vsel %vm5654_vm15, 2, %v5622_v26  ;;  %v14430_v1 = vld [vmem:[#allocation6_spill] sm:$0xff]  ;;  %v2622_v19 = vpop.f32.mrb[162].mxu0 }
 0x2e9   : > { %14425 = vst [vmem:[#allocation70_spill] sm:$0xff] %v10351_v27  ;;  %14426 = vst [vmem:[#allocation13_spill] sm:$0xff] %v10353_v6  ;;  %3582 = vmatprep.mubr.f32.mxu0 %v13846_v37  ;;  %v10369_v48 = vsel %vm5096_vm6, %v2618_v24, %v9711_v28  ;;  %v10371_v5 = vsel %vm5096_vm6, 2, %v5064_v50  ;;  %3731 = vmatprep.mubr.f32.mxu1 %v13846_v37  ;;  %vm4598_vm8 = vcmp.gt.f32.partialorder %v2767_v22, %v14430_v1  ;;  %v14432_v6 = vld [vmem:[#allocation119_spill] sm:$0xff]  ;;  %v14434_v56 = vld [vmem:[#allocation194_spill] sm:$0xff] }
 0x2ea   : > { %14428 = vst [vmem:[#allocation167_spill] sm:$0xff] %v10369_v48  ;;  %14429 = vst [vmem:[#allocation26_spill] sm:$0xff] %v10371_v5  ;;  %vm14433_vm11 = vcmp.gt.f32.partialorder %v14431_v20, %v14432_v6  ;;  %v14435_v26 = vld [vmem:[#allocation98_spill] sm:$0xff]  ;;  %v5065_v28 = vsel %vm5001_vm14, 1, %v13989_v36  ;;  %v10388_v50 = vsel %vm4598_vm8, %v2767_v22, %v14430_v1  ;;  %v14438_v24 = vld [vmem:[#allocation24_spill] sm:$0xff]  ;;  %v2771_v20 = vpop.f32.mrb[160].mxu1 }
 0x2eb   : > { %v4489_v27 = vsel %vm14433_vm11, 1, %v13989_v36  ;;  %vm14436_vm5 = vcmp.gt.f32.partialorder %v14434_v56, %v14435_v26  ;;  %14437 = vst [vmem:[#allocation75_spill] sm:$0xff] %v10388_v50  ;;  %v10391_v5 = vsel %vm4598_vm8, 3, %v14438_v24  ;;  %v14440_v48 = vld [vmem:[#allocation197_spill] sm:$0xff]  ;;  %v2624_v6 = vpop.f32.mrb[163].mxu0  ;;  %v10395_v21 = vld [vmem:[%s7227_s12 + $0xa0] sm:$0xff]  ;;  %vm5655_vm14 = vcmp.gt.f32.partialorder %v2771_v20, %v14444_v25 }
 0x2ec   : > { %v5623_v38 = vsel %vm14436_vm5, 1, %v13989_v36  ;;  %14439 = vst [vmem:[#allocation12_spill] sm:$0xff] %v10391_v5  ;;  %vm4521_vm2 = vcmp.gt.f32.partialorder %v2622_v19, %v14440_v48  ;;  %14441 = vst [vmem:[#allocation165_spill] sm:$0xff] %v10395_v21  ;;  %6518 = vmatmul.mubr.msk.f32.gmra.mrb[12].mxu0 %vm226_vm0, %v10395_v21  ;;  %vm5097_vm7 = vcmp.gt.f32.partialorder %v2624_v6, %v9759_v55  ;;  %v2773_v22 = vpop.f32.mrb[161].mxu1  ;;  %v10407_v1 = vld [vmem:[%s7227_s12 + $0x10] sm:$0xff]  ;;  %v2950_v5 = vpop.f32.mrb[164].mxu0 }
 0x2ed   : > { %v10400_v56 = vsel %vm4521_vm2, %v2622_v19, %v14440_v48  ;;  %v10402_v13 = vsel %vm4521_vm2, 2, %v4489_v27  ;;  %6532 = vmatmul.mubr.msk.f32.gmra.mrb[10].mxu1 %vm226_vm0, %v10407_v1  ;;  %3588 = vmatprep.mubr.f32.mxu0 %v13846_v37  ;;  %v10413_v26 = vsel %vm5655_vm14, %v2771_v20, %v14444_v25  ;;  %v10415_v19 = vsel %vm5655_vm14, 2, %v5623_v38  ;;  %v14447_v24 = vld [vmem:[#allocation161_spill] sm:$0xff]  ;;  %v2777_v20 = vpop.f32.mrb[162].mxu1  ;;  %v14451_v38 = vld [vmem:[#allocation199_spill] sm:$0xff] }
 0x2ee   : > { %14442 = vst [vmem:[#allocation99_spill] sm:$0xff] %v10400_v56  ;;  %14443 = vst [vmem:[#allocation168_spill] sm:$0xff] %v10402_v13  ;;  %v10418_v27 = vsel %vm5097_vm7, %v2624_v6, %v9759_v55  ;;  %v10420_v48 = vsel %vm5097_vm7, 2, %v5065_v28  ;;  %3737 = vmatprep.mubr.f32.mxu1 %v13846_v37  ;;  %vm4599_vm10 = vcmp.gt.f32.partialorder %v2773_v22, %v14447_v24  ;;  %v14449_v13 = vld [vmem:[#allocation181_spill] sm:$0xff]  ;;  %v14452_v25 = vld [vmem:[#allocation103_spill] sm:$0xff]  ;;  %v2952_v6 = vpop.f32.mrb[165].mxu0 }
 0x2ef   : > { %14445 = vst [vmem:[#allocation78_spill] sm:$0xff] %v10418_v27  ;;  %14446 = vst [vmem:[#allocation101_spill] sm:$0xff] %v10420_v48  ;;  %v10425_v50 = vsel %vm4599_vm10, %v2773_v22, %v14447_v24  ;;  %v10428_v56 = vsel %vm4599_vm10, 3, %v14449_v13  ;;  %vm14453_vm13 = vcmp.gt.f32.partialorder %v14451_v38, %v14452_v25  ;;  %v14454_v28 = vld [vmem:[#allocation36_spill] sm:$0xff]  ;;  %v14456_v27 = vld [vmem:[#allocation11_spill] sm:$0xff]  ;;  %vm5738_vm1 = vcmp.gt.f32.partialorder %v2952_v6, %v9805_v11 }
 0x2f0   : > { %14448 = vst [vmem:[#allocation77_spill] sm:$0xff] %v10425_v50  ;;  %14450 = vst [vmem:[#allocation16_spill] sm:$0xff] %v10428_v56  ;;  %v5624_v55 = vsel %vm14453_vm13, 1, %v13989_v36  ;;  %vm5162_vm3 = vcmp.gt.f32.partialorder %v2950_v5, %v14454_v28  ;;  %v10436_v48 = vld [vmem:[%s7227_s12 + $0xa8] sm:$0xff]  ;;  %vm5656_vm12 = vcmp.gt.f32.partialorder %v2777_v20, %v14456_v27  ;;  %v2779_v56 = vpop.f32.mrb[163].mxu1  ;;  %v10449_v38 = vld [vmem:[%s7227_s12 + $0x18] sm:$0xff] }
 0x2f1   : > { %14455 = vst [vmem:[#allocation172_spill] sm:$0xff] %v10436_v48  ;;  %6519 = vmatmul.mubr.msk.f32.gmra.mrb[14].mxu0 %vm226_vm0, %v10436_v48  ;;  %v10442_v22 = vsel %vm5162_vm3, %v2950_v5, %v14454_v28  ;;  %v14458_v13 = vld [vmem:[#allocation200_spill] sm:$0xff]  ;;  %6533 = vmatmul.mubr.msk.f32.gmra.mrb[12].mxu1 %vm226_vm0, %v10449_v38  ;;  %v10455_v25 = vsel %vm5656_vm12, %v2777_v20, %v14456_v27  ;;  %v10457_v50 = vsel %vm5656_vm12, 2, %v5624_v55  ;;  %v2956_v27 = vpop.f32.mrb[166].mxu0  ;;  %v2783_v20 = vpop.f32.mrb[164].mxu1  ;;  %v14465_v55 = vld [vmem:[#allocation202_spill] sm:$0xff] }
 0x2f2   : > { %14457 = vst [vmem:[#allocation100_spill] sm:$0xff] %v10442_v22  ;;  %v10445_v24 = vsel %vm5162_vm3, 3, %v14458_v13  ;;  %3594 = vmatprep.mubr.f32.mxu0 %v13846_v37  ;;  %vm4600_vm9 = vcmp.gt.f32.partialorder %v2779_v56, %v9596_v4  ;;  %v10461_v5 = vsel %vm5738_vm1, %v2952_v6, %v9805_v11  ;;  %3743 = vmatprep.mubr.f32.mxu1 %v13846_v37  ;;  %v14462_v13 = vld [vmem:[#allocation196_spill] sm:$0xff]  ;;  %v10471_v22 = vsel %vm5738_vm1, 3, %v9807_v62  ;;  %v14468_v6 = vld [vmem:[#allocation41_spill] sm:$0xff] }
 0x2f3   : > { %14459 = vst [vmem:[#allocation80_spill] sm:$0xff] %v10445_v24  ;;  %14460 = vst [vmem:[#allocation15_spill] sm:$0xff] %v10461_v5  ;;  %v10465_v28 = vsel %vm4600_vm9, %v2779_v56, %v9596_v4  ;;  %v10468_v24 = vsel %vm4600_vm9, 3, %v14462_v13  ;;  %v14466_v48 = vld [vmem:[#allocation108_spill] sm:$0xff]  ;;  %vm5163_vm15 = vcmp.gt.f32.partialorder %v2956_v27, %v14468_v6  ;;  %v2958_v5 = vpop.f32.mrb[167].mxu0  ;;  %v10479_v21 = vld [vmem:[%s7227_s12 + $0xb0] sm:$0xff] }
 0x2f4   : > { %14461 = vst [vmem:[#allocation170_spill] sm:$0xff] %v10465_v28  ;;  %14463 = vst [vmem:[#allocation104_spill] sm:$0xff] %v10468_v24  ;;  %vm14467_vm4 = vcmp.gt.f32.partialorder %v14465_v55, %v14466_v48  ;;  %v14470_v4 = vld [vmem:[#allocation14_spill] sm:$0xff]  ;;  %v10485_v62 = vsel %vm5163_vm15, %v2956_v27, %v14468_v6  ;;  %v14472_v56 = vld [vmem:[#allocation203_spill] sm:$0xff]  ;;  %v2785_v24 = vpop.f32.mrb[165].mxu1  ;;  %vm5739_vm8 = vcmp.gt.f32.partialorder %v2958_v5, %v9851_v15 }
 0x2f5   : > { %14464 = vst [vmem:[#allocation173_spill] sm:$0xff] %v10471_v22  ;;  %v5625_v11 = vsel %vm14467_vm4, 1, %v13989_v36  ;;  %14469 = vst [vmem:[#allocation83_spill] sm:$0xff] %v10479_v21  ;;  %6520 = vmatmul.mubr.msk.f32.gmra.mrb[16].mxu0 %vm226_vm0, %v10479_v21  ;;  %vm5657_vm6 = vcmp.gt.f32.partialorder %v2783_v20, %v14470_v4  ;;  %v10488_v13 = vsel %vm5163_vm15, 3, %v14472_v56  ;;  %v10492_v48 = vld [vmem:[%s7227_s12 + $0x20] sm:$0xff]  ;;  %vm4601_vm11 = vcmp.gt.f32.partialorder %v2785_v24, %v9644_v61  ;;  %v14476_v56 = vld [vmem:[#allocation34_spill] sm:$0xff] }
 0x2f6   : > { %14471 = vst [vmem:[#allocation82_spill] sm:$0xff] %v10485_v62  ;;  %14473 = vst [vmem:[#allocation174_spill] sm:$0xff] %v10488_v13  ;;  %6534 = vmatmul.mubr.msk.f32.gmra.mrb[14].mxu1 %vm226_vm0, %v10492_v48  ;;  %3600 = vmatprep.mubr.f32.mxu0 %v13846_v37  ;;  %v10498_v55 = vsel %vm5657_vm6, %v2783_v20, %v14470_v4  ;;  %v10500_v22 = vsel %vm5657_vm6, 2, %v5625_v11  ;;  %v10504_v27 = vsel %vm5739_vm8, %v2958_v5, %v9851_v15  ;;  %v2962_v20 = vpop.f32.mrb[168].mxu0  ;;  %v14479_v11 = vld [vmem:[#allocation204_spill] sm:$0xff]  ;;  %v14480_v4 = vld [vmem:[#allocation113_spill] sm:$0xff] }
 0x2f7   : > { %14474 = vst [vmem:[#allocation178_spill] sm:$0xff] %v10504_v27  ;;  %3749 = vmatprep.mubr.f32.mxu1 %v13846_v37  ;;  %v10508_v6 = vsel %vm4601_vm11, %v2785_v24, %v9644_v61  ;;  %v10511_v28 = vsel %vm4601_vm11, 3, %v14476_v56  ;;  %v10514_v13 = vsel %vm5739_vm8, 3, %v9853_v10  ;;  %vm14481_vm5 = vcmp.gt.f32.partialorder %v14479_v11, %v14480_v4  ;;  %v2789_v15 = vpop.f32.mrb[166].mxu1  ;;  %v14482_v5 = vld [vmem:[#allocation205_spill] sm:$0xff]  ;;  %v2964_v27 = vpop.f32.mrb[169].mxu0 }
 0x2f8   : > { %14475 = vst [vmem:[#allocation85_spill] sm:$0xff] %v10508_v6  ;;  %14477 = vst [vmem:[#allocation18_spill] sm:$0xff] %v10511_v28  ;;  %v5626_v62 = vsel %vm14481_vm5, 1, %v13989_v36  ;;  %vm5164_vm2 = vcmp.gt.f32.partialorder %v2962_v20, %v14482_v5  ;;  %v10522_v21 = vld [vmem:[%s7227_s12 + $0xb8] sm:$0xff]  ;;  %v14486_v24 = vld [vmem:[#allocation207_spill] sm:$0xff]  ;;  %v2791_v28 = vpop.f32.mrb[167].mxu1  ;;  %vm5740_vm7 = vcmp.gt.f32.partialorder %v2964_v27, %v9897_v0 }
 0x2f9   : > { %14478 = vst [vmem:[#allocation176_spill] sm:$0xff] %v10514_v13  ;;  %14483 = vst [vmem:[#allocation109_spill] sm:$0xff] %v10522_v21  ;;  %6521 = vmatmul.mubr.msk.f32.gmra.mrb[18].mxu0 %vm226_vm0, %v10522_v21  ;;  %v14484_v61 = vld [vmem:[#allocation206_spill] sm:$0xff]  ;;  %v10528_v10 = vsel %vm5164_vm2, %v2962_v20, %v14482_v5  ;;  %v10531_v56 = vsel %vm5164_vm2, 3, %v14486_v24  ;;  %v10535_v11 = vld [vmem:[%s7227_s12 + $0x28] sm:$0xff]  ;;  %vm4602_vm10 = vcmp.gt.f32.partialorder %v2791_v28, %v9692_v31 }
 0x2fa   : > { %vm5658_vm14 = vcmp.gt.f32.partialorder %v2789_v15, %v14484_v61  ;;  %14485 = vst [vmem:[#allocation179_spill] sm:$0xff] %v10528_v10  ;;  %14487 = vst [vmem:[#allocation88_spill] sm:$0xff] %v10531_v56  ;;  %6535 = vmatmul.mubr.msk.f32.gmra.mrb[16].mxu1 %vm226_vm0, %v10535_v11  ;;  %3606 = vmatprep.mubr.f32.mxu0 %v13846_v37  ;;  %v10547_v20 = vsel %vm5740_vm7, %v2964_v27, %v9897_v0  ;;  %v14490_v24 = vld [vmem:[#allocation39_spill] sm:$0xff]  ;;  %v10557_v56 = vsel %vm5740_vm7, 3, %v9899_v52  ;;  %v2795_v0 = vpop.f32.mrb[168].mxu1  ;;  %v14496_v27 = vld [vmem:[#allocation208_spill] sm:$0xff] }
 0x2fb   : > { %v10541_v4 = vsel %vm5658_vm14, %v2789_v15, %v14484_v61  ;;  %v10543_v13 = vsel %vm5658_vm14, 2, %v5626_v62  ;;  %14488 = vst [vmem:[#allocation87_spill] sm:$0xff] %v10547_v20  ;;  %3755 = vmatprep.mubr.f32.mxu1 %v13846_v37  ;;  %v10551_v5 = vsel %vm4602_vm10, %v2791_v28, %v9692_v31  ;;  %v10554_v6 = vsel %vm4602_vm10, 3, %v14490_v24  ;;  %14492 = vst [vmem:[#allocation5_spill] sm:$0xff] %v10557_v56  ;;  %v2968_v15 = vpop.f32.mrb[170].mxu0  ;;  %v14493_v62 = vld [vmem:[#allocation51_spill] sm:$0xff] }
 0x2fc   : > { %14489 = vst [vmem:[#allocation4_spill] sm:$0xff] %v10551_v5  ;;  %14491 = vst [vmem:[#allocation184_spill] sm:$0xff] %v10554_v6  ;;  %v14494_v61 = vld [vmem:[#allocation118_spill] sm:$0xff]  ;;  %vm5165_vm3 = vcmp.gt.f32.partialorder %v2968_v15, %v14496_v27  ;;  %v2970_v20 = vpop.f32.mrb[171].mxu0  ;;  %v10565_v21 = vld [vmem:[%s7227_s12 + $0xc0] sm:$0xff]  ;;  %v2797_v6 = vpop.f32.mrb[169].mxu1 }
 0x2fd   : > { %vm14495_vm13 = vcmp.gt.f32.partialorder %v14493_v62, %v14494_v61  ;;  %14497 = vst [vmem:[#allocation90_spill] sm:$0xff] %v10565_v21  ;;  %6522 = vmatmul.mubr.msk.f32.gmra.mrb[20].mxu0 %vm226_vm0, %v10565_v21  ;;  %v14498_v31 = vld [vmem:[#allocation209_spill] sm:$0xff]  ;;  %v10571_v52 = vsel %vm5165_vm3, %v2968_v15, %v14496_v27  ;;  %v14500_v28 = vld [vmem:[#allocation210_spill] sm:$0xff]  ;;  %vm5741_vm1 = vcmp.gt.f32.partialorder %v2970_v20, %v9943_v34  ;;  %v14503_v15 = vld [vmem:[#allocation44_spill] sm:$0xff] }
 0x2fe   : > { %v5627_v10 = vsel %vm14495_vm13, 1, %v13989_v36  ;;  %vm5659_vm12 = vcmp.gt.f32.partialorder %v2795_v0, %v14498_v31  ;;  %14499 = vst [vmem:[#allocation182_spill] sm:$0xff] %v10571_v52  ;;  %v10574_v24 = vsel %vm5165_vm3, 3, %v14500_v28  ;;  %v10578_v62 = vld [vmem:[%s7227_s12 + $0x30] sm:$0xff]  ;;  %3612 = vmatprep.mubr.f32.mxu0 %v13846_v37  ;;  %vm4603_vm9 = vcmp.gt.f32.partialorder %v2797_v6, %v14503_v15 }
 0x2ff   : > { %14501 = vst [vmem:[#allocation114_spill] sm:$0xff] %v10574_v24  ;;  %6536 = vmatmul.mubr.msk.f32.gmra.mrb[18].mxu1 %vm226_vm0, %v10578_v62  ;;  %v10584_v61 = vsel %vm5659_vm12, %v2795_v0, %v14498_v31  ;;  %v10586_v56 = vsel %vm5659_vm12, 2, %v5627_v10  ;;  %v10590_v27 = vsel %vm5741_vm1, %v2970_v20, %v9943_v34  ;;  %v10594_v28 = vsel %vm4603_vm9, %v2797_v6, %v14503_v15  ;;  %v14506_v5 = vld [vmem:[#allocation117_spill] sm:$0xff]  ;;  %v2974_v0 = vpop.f32.mrb[172].mxu0  ;;  %v14510_v31 = vld [vmem:[#allocation123_spill] sm:$0xff]  ;;  %v14514_v6 = vld [vmem:[#allocation56_spill] sm:$0xff] }
 0x300   : > { %14502 = vst [vmem:[#allocation185_spill] sm:$0xff] %v10586_v56  ;;  %14504 = vst [vmem:[#allocation93_spill] sm:$0xff] %v10590_v27  ;;  %3761 = vmatprep.mubr.f32.mxu1 %v13846_v37  ;;  %v10597_v24 = vsel %vm4603_vm9, 3, %v14506_v5  ;;  %v10600_v52 = vsel %vm5741_vm1, 3, %v9945_v63  ;;  %v14509_v10 = vld [vmem:[#allocation21_spill] sm:$0xff]  ;;  %v2801_v56 = vpop.f32.mrb[170].mxu1 }
 0x301   : > { %14505 = vst [vmem:[#allocation22_spill] sm:$0xff] %v10594_v28  ;;  %14507 = vst [vmem:[#allocation188_spill] sm:$0xff] %v10597_v24  ;;  %vm14511_vm4 = vcmp.gt.f32.partialorder %v14509_v10, %v14510_v31  ;;  %v14512_v34 = vld [vmem:[#allocation57_spill] sm:$0xff]  ;;  %v2976_v20 = vpop.f32.mrb[173].mxu0  ;;  %v10608_v27 = vld [vmem:[%s7227_s12 + $0xc8] sm:$0xff]  ;;  %vm5660_vm6 = vcmp.gt.f32.partialorder %v2801_v56, %v14514_v6  ;;  %v2803_v24 = vpop.f32.mrb[171].mxu1 }
 0x302   : > { %14508 = vst [vmem:[#allocation193_spill] sm:$0xff] %v10600_v52  ;;  %v5628_v21 = vsel %vm14511_vm4, 1, %v13989_v36  ;;  %vm5166_vm15 = vcmp.gt.f32.partialorder %v2974_v0, %v14512_v34  ;;  %14513 = vst [vmem:[#allocation6_spill] sm:$0xff] %v10608_v27  ;;  %6523 = vmatmul.mubr.msk.f32.gmra.mrb[22].mxu0 %vm226_vm0, %v10608_v27  ;;  %v14516_v5 = vld [vmem:[#allocation211_spill] sm:$0xff]  ;;  %vm5742_vm8 = vcmp.gt.f32.partialorder %v2976_v20, %v9989_v23  ;;  %v14518_v10 = vld [vmem:[#allocation122_spill] sm:$0xff]  ;;  %v2807_v27 = vpop.f32.mrb[172].mxu1 }
 0x303   : > { %v10614_v63 = vsel %vm5166_vm15, %v2974_v0, %v14512_v34  ;;  %v10617_v15 = vsel %vm5166_vm15, 3, %v14516_v5  ;;  %6537 = vmatmul.mubr.msk.f32.gmra.mrb[20].mxu1 %vm226_vm0, %v14518_v10  ;;  %3618 = vmatprep.mubr.f32.mxu0 %v13846_v37  ;;  %v10624_v31 = vsel %vm5660_vm6, %v2801_v56, %v14514_v6  ;;  %v10626_v52 = vsel %vm5660_vm6, 2, %v5628_v21  ;;  %v14519_v28 = vld [vmem:[#allocation121_spill] sm:$0xff]  ;;  %v14522_v5 = vld [vmem:[#allocation192_spill] sm:$0xff]  ;;  %v2980_v56 = vpop.f32.mrb[174].mxu0  ;;  %v14526_v6 = vld [vmem:[#allocation127_spill] sm:$0xff] }
 0x304   : > { %14515 = vst [vmem:[#allocation191_spill] sm:$0xff] %v10614_v63  ;;  %14517 = vst [vmem:[#allocation119_spill] sm:$0xff] %v10617_v15  ;;  %vm4604_vm11 = vcmp.gt.f32.partialorder %v2803_v24, %v14519_v28  ;;  %v10630_v0 = vsel %vm5742_vm8, %v2976_v20, %v9989_v23  ;;  %3767 = vmatprep.mubr.f32.mxu1 %v13846_v37  ;;  %v10640_v10 = vsel %vm5742_vm8, 3, %v9991_v60  ;;  %v14525_v21 = vld [vmem:[#allocation25_spill] sm:$0xff]  ;;  %v14528_v23 = vld [vmem:[#allocation62_spill] sm:$0xff]  ;;  %v2982_v20 = vpop.f32.mrb[175].mxu0 }
 0x305   : > { %14520 = vst [vmem:[#allocation194_spill] sm:$0xff] %v10630_v0  ;;  %v10634_v34 = vsel %vm4604_vm11, %v2803_v24, %v14519_v28  ;;  %v10637_v15 = vsel %vm4604_vm11, 3, %v14522_v5  ;;  %14524 = vst [vmem:[#allocation197_spill] sm:$0xff] %v10640_v10  ;;  %vm14527_vm5 = vcmp.gt.f32.partialorder %v14525_v21, %v14526_v6  ;;  %vm5167_vm2 = vcmp.gt.f32.partialorder %v2980_v56, %v14528_v23  ;;  %v10648_v0 = vld [vmem:[%s7227_s12 + $0xd0] sm:$0xff]  ;;  %v14531_v28 = vld [vmem:[#allocation212_spill] sm:$0xff] }
 0x306   : > { %14521 = vst [vmem:[#allocation98_spill] sm:$0xff] %v10634_v34  ;;  %14523 = vst [vmem:[#allocation24_spill] sm:$0xff] %v10637_v15  ;;  %v5629_v63 = vsel %vm14527_vm5, 1, %v13989_v36  ;;  %6524 = vmatmul.mubr.msk.f32.gmra.mrb[24].mxu0 %vm226_vm0, %v10648_v0  ;;  %v14529_v24 = vld [vmem:[#allocation61_spill] sm:$0xff]  ;;  %v10654_v60 = vsel %vm5167_vm2, %v2980_v56, %v14528_v23  ;;  %v10657_v5 = vsel %vm5167_vm2, 3, %v14531_v28  ;;  %v2809_v15 = vpop.f32.mrb[173].mxu1  ;;  %vm5743_vm7 = vcmp.gt.f32.partialorder %v2982_v20, %v10035_v12 }
 0x307   : > { %vm5661_vm14 = vcmp.gt.f32.partialorder %v2807_v27, %v14529_v24  ;;  %14530 = vst [vmem:[#allocation8_spill] sm:$0xff] %v10654_v60  ;;  %14532 = vst [vmem:[#allocation161_spill] sm:$0xff] %v10657_v5  ;;  %6538 = vmatmul.mubr.msk.f32.gmra.mrb[22].mxu1 %vm226_vm0, %v9836_v46  ;;  %3624 = vmatprep.mubr.f32.mxu0 %v13846_v37  ;;  %v14533_v10 = vld [vmem:[#allocation33_spill] sm:$0xff]  ;;  %v10670_v56 = vsel %vm5743_vm7, %v2982_v20, %v10035_v12  ;;  %v10680_v46 = vsel %vm5743_vm7, 3, %v10037_v57  ;;  %v2813_v60 = vpop.f32.mrb[174].mxu1  ;;  %v14542_v12 = vld [vmem:[#allocation67_spill] sm:$0xff] }
 0x308   : > { %v10664_v21 = vsel %vm5661_vm14, %v2807_v27, %v14529_v24  ;;  %v10666_v6 = vsel %vm5661_vm14, 2, %v5629_v63  ;;  %vm4605_vm10 = vcmp.gt.f32.partialorder %v2809_v15, %v14533_v10  ;;  %14534 = vst [vmem:[#allocation181_spill] sm:$0xff] %v10670_v56  ;;  %3773 = vmatprep.mubr.f32.mxu1 %v13846_v37  ;;  %v14536_v28 = vld [vmem:[#allocation129_spill] sm:$0xff]  ;;  %14538 = vst [vmem:[#allocation36_spill] sm:$0xff] %v10680_v46  ;;  %v2986_v27 = vpop.f32.mrb[176].mxu0  ;;  %v14540_v24 = vld [vmem:[#allocation132_spill] sm:$0xff] }
 0x309   : > { %v10674_v23 = vsel %vm4605_vm10, %v2809_v15, %v14533_v10  ;;  %v10677_v34 = vsel %vm4605_vm10, 3, %v14536_v28  ;;  %v14539_v63 = vld [vmem:[#allocation29_spill] sm:$0xff]  ;;  %vm5168_vm3 = vcmp.gt.f32.partialorder %v2986_v27, %v14542_v12  ;;  %v2988_v20 = vpop.f32.mrb[177].mxu0  ;;  %v10688_v56 = vld [vmem:[%s7227_s12 + $0xd8] sm:$0xff] }
 0x30a   : > { %14535 = vst [vmem:[#allocation199_spill] sm:$0xff] %v10674_v23  ;;  %14537 = vst [vmem:[#allocation103_spill] sm:$0xff] %v10677_v34  ;;  %vm14541_vm13 = vcmp.gt.f32.partialorder %v14539_v63, %v14540_v24  ;;  %6525 = vmatmul.mubr.msk.f32.gmra.mrb[26].mxu0 %vm226_vm0, %v10688_v56  ;;  %v14543_v15 = vld [vmem:[#allocation66_spill] sm:$0xff]  ;;  %v10694_v57 = vsel %vm5168_vm3, %v2986_v27, %v14542_v12  ;;  %v14545_v10 = vld [vmem:[#allocation213_spill] sm:$0xff]  ;;  %v2815_v34 = vpop.f32.mrb[175].mxu1  ;;  %vm5744_vm1 = vcmp.gt.f32.partialorder %v2988_v20, %v10081_v53 }
 0x30b   : > { %v5630_v5 = vsel %vm14541_vm13, 1, %v13989_v36  ;;  %vm5662_vm12 = vcmp.gt.f32.partialorder %v2813_v60, %v14543_v15  ;;  %14544 = vst [vmem:[#allocation11_spill] sm:$0xff] %v10694_v57  ;;  %v10697_v28 = vsel %vm5168_vm3, 3, %v14545_v10  ;;  %6539 = vmatmul.mubr.msk.f32.gmra.mrb[24].mxu1 %vm226_vm0, %v9882_v30  ;;  %3630 = vmatprep.mubr.f32.mxu0 %v13846_v37  ;;  %v14547_v46 = vld [vmem:[#allocation130_spill] sm:$0xff]  ;;  %v10710_v27 = vsel %vm5744_vm1, %v2988_v20, %v10081_v53  ;;  %v2819_v57 = vpop.f32.mrb[176].mxu1  ;;  %v14556_v53 = vld [vmem:[#allocation72_spill] sm:$0xff] }
 0x30c   : > { %14546 = vst [vmem:[#allocation200_spill] sm:$0xff] %v10697_v28  ;;  %v10704_v63 = vsel %vm5662_vm12, %v2813_v60, %v14543_v15  ;;  %v10706_v24 = vsel %vm5662_vm12, 2, %v5630_v5  ;;  %vm4606_vm9 = vcmp.gt.f32.partialorder %v2815_v34, %v14547_v46  ;;  %14548 = vst [vmem:[#allocation196_spill] sm:$0xff] %v10710_v27  ;;  %3779 = vmatprep.mubr.f32.mxu1 %v13846_v37  ;;  %v14550_v10 = vld [vmem:[#allocation38_spill] sm:$0xff]  ;;  %v10720_v30 = vsel %vm5744_vm1, 3, %v10083_v40  ;;  %v2992_v60 = vpop.f32.mrb[178].mxu0 }
 0x30d   : > { %v10714_v12 = vsel %vm4606_vm9, %v2815_v34, %v14547_v46  ;;  %v10717_v23 = vsel %vm4606_vm9, 3, %v14550_v10  ;;  %14552 = vst [vmem:[#allocation41_spill] sm:$0xff] %v10720_v30  ;;  %v14553_v5 = vld [vmem:[#allocation9_spill] sm:$0xff]  ;;  %vm5169_vm15 = vcmp.gt.f32.partialorder %v2992_v60, %v14556_v53  ;;  %v2994_v20 = vpop.f32.mrb[179].mxu0  ;;  %v10728_v27 = vld [vmem:[%s7227_s12 + $0xe0] sm:$0xff]  ;;  %v14559_v46 = vld [vmem:[#allocation214_spill] sm:$0xff] }
 0x30e   : > { %14549 = vst [vmem:[#allocation202_spill] sm:$0xff] %v10714_v12  ;;  %14551 = vst [vmem:[#allocation108_spill] sm:$0xff] %v10717_v23  ;;  %v14554_v15 = vld [vmem:[#allocation137_spill] sm:$0xff]  ;;  %6526 = vmatmul.mubr.msk.f32.gmra.mrb[28].mxu0 %vm226_vm0, %v10728_v27  ;;  %v14557_v34 = vld [vmem:[#allocation71_spill] sm:$0xff]  ;;  %v10734_v40 = vsel %vm5169_vm15, %v2992_v60, %v14556_v53  ;;  %v10737_v10 = vsel %vm5169_vm15, 3, %v14559_v46  ;;  %v2821_v23 = vpop.f32.mrb[177].mxu1  ;;  %vm5745_vm8 = vcmp.gt.f32.partialorder %v2994_v20, %v10127_v59 }
 0x30f   : > { %vm14555_vm4 = vcmp.gt.f32.partialorder %v14553_v5, %v14554_v15  ;;  %vm5663_vm6 = vcmp.gt.f32.partialorder %v2819_v57, %v14557_v34  ;;  %14558 = vst [vmem:[#allocation14_spill] sm:$0xff] %v10734_v40  ;;  %14560 = vst [vmem:[#allocation203_spill] sm:$0xff] %v10737_v10  ;;  %6540 = vmatmul.mubr.msk.f32.gmra.mrb[26].mxu1 %vm226_vm0, %v9928_v3  ;;  %3636 = vmatprep.mubr.f32.mxu0 %v13846_v37  ;;  %v14561_v30 = vld [vmem:[#allocation42_spill] sm:$0xff]  ;;  %v14564_v46 = vld [vmem:[#allocation133_spill] sm:$0xff]  ;;  %v10760_v3 = vsel %vm5745_vm8, 3, %v10129_v8  ;;  %v2825_v40 = vpop.f32.mrb[178].mxu1 }
 0x310   : > { %v5631_v28 = vsel %vm14555_vm4, 1, %v13989_v36  ;;  %v10744_v5 = vsel %vm5663_vm6, %v2819_v57, %v14557_v34  ;;  %vm4607_vm11 = vcmp.gt.f32.partialorder %v2821_v23, %v14561_v30  ;;  %v10750_v60 = vsel %vm5745_vm8, %v2994_v20, %v10127_v59  ;;  %3785 = vmatprep.mubr.f32.mxu1 %v13846_v37  ;;  %14566 = vst [vmem:[#allocation205_spill] sm:$0xff] %v10760_v3  ;;  %v2998_v57 = vpop.f32.mrb[180].mxu0  ;;  %v14568_v34 = vld [vmem:[#allocation141_spill] sm:$0xff]  ;;  %v14570_v59 = vld [vmem:[#allocation215_spill] sm:$0xff] }
 0x311   : > { %v10746_v15 = vsel %vm5663_vm6, 2, %v5631_v28  ;;  %14562 = vst [vmem:[#allocation34_spill] sm:$0xff] %v10750_v60  ;;  %v10754_v53 = vsel %vm4607_vm11, %v2821_v23, %v14561_v30  ;;  %v10757_v12 = vsel %vm4607_vm11, 3, %v14564_v46  ;;  %v14567_v28 = vld [vmem:[#allocation76_spill] sm:$0xff]  ;;  %vm5170_vm2 = vcmp.gt.f32.partialorder %v2998_v57, %v14570_v59  ;;  %v3000_v20 = vpop.f32.mrb[181].mxu0  ;;  %v14572_v30 = vld [vmem:[#allocation217_spill] sm:$0xff] }
 0x312   : > { %14563 = vst [vmem:[#allocation204_spill] sm:$0xff] %v10754_v53  ;;  %14565 = vst [vmem:[#allocation113_spill] sm:$0xff] %v10757_v12  ;;  %vm14569_vm5 = vcmp.gt.f32.partialorder %v14567_v28, %v14568_v34  ;;  %v10768_v60 = vld [vmem:[%s7227_s12 + $0xe8] sm:$0xff]  ;;  %v10774_v8 = vsel %vm5170_vm2, %v2998_v57, %v14570_v59  ;;  %v10777_v46 = vsel %vm5170_vm2, 3, %v14572_v30  ;;  %v2827_v12 = vpop.f32.mrb[179].mxu1  ;;  %vm5746_vm7 = vcmp.gt.f32.partialorder %v3000_v20, %v10173_v16 }
 0x313   : > { %v5632_v10 = vsel %vm14569_vm5, 1, %v13989_v36  ;;  %6527 = vmatmul.mubr.msk.f32.gmra.mrb[30].mxu0 %vm226_vm0, %v10768_v60  ;;  %v14571_v23 = vld [vmem:[#allocation216_spill] sm:$0xff]  ;;  %6541 = vmatmul.mubr.msk.f32.gmra.mrb[28].mxu1 %vm226_vm0, %v9974_v14  ;;  %vm4608_vm10 = vcmp.gt.f32.partialorder %v2827_v12, %v9979_v9  ;;  %v10790_v57 = vsel %vm5746_vm7, %v3000_v20, %v10173_v16  ;;  %v10800_v14 = vsel %vm5746_vm7, 3, %v10175_v33  ;;  %v2831_v53 = vpop.f32.mrb[180].mxu1  ;;  %v14580_v16 = vld [vmem:[#allocation218_spill] sm:$0xff] }
 0x314   : > { %vm5664_vm14 = vcmp.gt.f32.partialorder %v2825_v40, %v14571_v23  ;;  %3642 = vmatprep.mubr.f32.mxu0 %v13846_v37  ;;  %14573 = vst [vmem:[#allocation206_spill] sm:$0xff] %v10790_v57  ;;  %3791 = vmatprep.mubr.f32.mxu1 %v13846_v37  ;;  %v10794_v59 = vsel %vm4608_vm10, %v2827_v12, %v9979_v9  ;;  %v10797_v30 = vsel %vm4608_vm10, 3, %v9981_v58  ;;  %14576 = vst [vmem:[#allocation51_spill] sm:$0xff] %v10800_v14  ;;  %v10808_v57 = vld [vmem:[%s7227_s12 + $0xf0] sm:$0xff]  ;;  %v14581_v9 = vld [vmem:[#allocation219_spill] sm:$0xff] }
 0x315   : > { %v10784_v28 = vsel %vm5664_vm14, %v2825_v40, %v14571_v23  ;;  %v10786_v34 = vsel %vm5664_vm14, 2, %v5632_v10  ;;  %14574 = vst [vmem:[#allocation207_spill] sm:$0xff] %v10794_v59  ;;  %14575 = vst [vmem:[#allocation39_spill] sm:$0xff] %v10797_v30  ;;  %v3004_v40 = vpop.f32.mrb[182].mxu0  ;;  %v14577_v10 = vld [vmem:[#allocation81_spill] sm:$0xff]  ;;  %vm5665_vm12 = vcmp.gt.f32.partialorder %v2831_v53, %v14581_v9  ;;  %v14582_v33 = vld [vmem:[#allocation220_spill] sm:$0xff] }
 0x316   : > { %v14578_v23 = vld [vmem:[#allocation145_spill] sm:$0xff]  ;;  %vm5171_vm3 = vcmp.gt.f32.partialorder %v3004_v40, %v14580_v16  ;;  %v3006_v20 = vpop.f32.mrb[183].mxu0  ;;  %v2833_v30 = vpop.f32.mrb[181].mxu1 }
 0x317   : > { %vm14579_vm13 = vcmp.gt.f32.partialorder %v14577_v10, %v14578_v23  ;;  %6528 = vmatmul.mubr.msk.f32.gmra.mrb[32].mxu0 %vm226_vm0, %v10808_v57  ;;  %v10814_v58 = vsel %vm5171_vm3, %v3004_v40, %v14580_v16  ;;  %v10817_v12 = vsel %vm5171_vm3, 3, %v14582_v33  ;;  %vm5747_vm1 = vcmp.gt.f32.partialorder %v3006_v20, %v10219_v35  ;;  %6542 = vmatmul.mubr.msk.f32.gmra.mrb[30].mxu1 %vm226_vm0, %v10020_v42  ;;  %v2837_v59 = vpop.f32.mrb[182].mxu1 }
 0x318   : > { %v5633_v3 = vsel %vm14579_vm13, 1, %v13989_v36  ;;  %3648 = vmatprep.mubr.f32.mxu0 %v13846_v37  ;;  %v10824_v10 = vsel %vm5665_vm12, %v2831_v53, %v14581_v9  ;;  %vm4609_vm9 = vcmp.gt.f32.partialorder %v2833_v30, %v10025_v29  ;;  %v10830_v40 = vsel %vm5747_vm1, %v3006_v20, %v10219_v35  ;;  %3797 = vmatprep.mubr.f32.mxu1 %v13846_v37  ;;  %v3010_v53 = vpop.f32.mrb[184].mxu0  ;;  %v14588_v9 = vld [vmem:[#allocation149_spill] sm:$0xff]  ;;  %v14590_v35 = vld [vmem:[#allocation151_spill] sm:$0xff] }
 0x319   : > { %v10826_v23 = vsel %vm5665_vm12, 2, %v5633_v3  ;;  %14583 = vst [vmem:[#allocation118_spill] sm:$0xff] %v10830_v40  ;;  %v10834_v16 = vsel %vm4609_vm9, %v2833_v30, %v10025_v29  ;;  %v10837_v33 = vsel %vm4609_vm9, 3, %v10027_v47  ;;  %v10840_v42 = vsel %vm5747_vm1, 3, %v10221_v17  ;;  %v14587_v3 = vld [vmem:[#allocation86_spill] sm:$0xff]  ;;  %v3012_v20 = vpop.f32.mrb[185].mxu0 }
 0x31a   : > { %14584 = vst [vmem:[#allocation208_spill] sm:$0xff] %v10834_v16  ;;  %14585 = vst [vmem:[#allocation209_spill] sm:$0xff] %v10837_v33  ;;  %vm14589_vm4 = vcmp.gt.f32.partialorder %v14587_v3, %v14588_v9  ;;  %vm5172_vm15 = vcmp.gt.f32.partialorder %v3010_v53, %v14590_v35  ;;  %v10848_v40 = vld [vmem:[%s7227_s12 + $0xf8] sm:$0xff]  ;;  %v14591_v29 = vld [vmem:[#allocation20_spill] sm:$0xff]  ;;  %v2839_v33 = vpop.f32.mrb[183].mxu1  ;;  %vm5748_vm8 = vcmp.gt.f32.partialorder %v3012_v20, %v10265_v39 }
 0x31b   : > { %14586 = vst [vmem:[#allocation210_spill] sm:$0xff] %v10840_v42  ;;  %v5634_v14 = vsel %vm14589_vm4, 1, %v13989_v36  ;;  %6529 = vmatmul.mubr.msk.f32.gmra.mrb[34].mxu0 %vm226_vm0, %v10848_v40  ;;  %vm5666_vm6 = vcmp.gt.f32.partialorder %v2837_v59, %v14591_v29  ;;  %v10854_v47 = vsel %vm5172_vm15, %v3010_v53, %v14590_v35  ;;  %v14592_v17 = vld [vmem:[#allocation221_spill] sm:$0xff]  ;;  %6543 = vmatmul.mubr.msk.f32.gmra.mrb[32].mxu1 %vm226_vm0, %v10066_v32  ;;  %v10880_v32 = vsel %vm5748_vm8, 3, %v10267_v18  ;;  %v2843_v16 = vpop.f32.mrb[184].mxu1  ;;  %v14602_v18 = vld [vmem:[#allocation156_spill] sm:$0xff] }
 0x31c   : > { %v10857_v30 = vsel %vm5172_vm15, 3, %v14592_v17  ;;  %3976 = vmatprep.mubr.f32.mxu0 %v13846_v37  ;;  %v10864_v3 = vsel %vm5666_vm6, %v2837_v59, %v14591_v29  ;;  %v10866_v9 = vsel %vm5666_vm6, 2, %v5634_v14  ;;  %vm4610_vm11 = vcmp.gt.f32.partialorder %v2839_v33, %v10071_v45  ;;  %3803 = vmatprep.mubr.f32.mxu1 %v13846_v37  ;;  %14596 = vst [vmem:[#allocation123_spill] sm:$0xff] %v10880_v32  ;;  %v3016_v59 = vpop.f32.mrb[186].mxu0  ;;  %v14597_v14 = vld [vmem:[#allocation92_spill] sm:$0xff]  ;;  %v14598_v29 = vld [vmem:[#allocation154_spill] sm:$0xff] }
 0x31d   : > { %v10870_v53 = vsel %vm5748_vm8, %v3012_v20, %v10265_v39  ;;  %v10874_v35 = vsel %vm4610_vm11, %v2839_v33, %v10071_v45  ;;  %v10877_v17 = vsel %vm4610_vm11, 3, %v10073_v41  ;;  %vm14599_vm5 = vcmp.gt.f32.partialorder %v14597_v14, %v14598_v29  ;;  %v14600_v39 = vld [vmem:[#allocation180_spill] sm:$0xff]  ;;  %v3018_v20 = vpop.f32.mrb[187].mxu0  ;;  %v14601_v45 = vld [vmem:[#allocation91_spill] sm:$0xff]  ;;  %v14604_v14 = vld [vmem:[#allocation17_spill] sm:$0xff] }
 0x31e   : > { %14593 = vst [vmem:[#allocation44_spill] sm:$0xff] %v10870_v53  ;;  %14594 = vst [vmem:[#allocation117_spill] sm:$0xff] %v10874_v35  ;;  %v5635_v42 = vsel %vm14599_vm5, 1, %v13989_v36  ;;  %vm5173_vm2 = vcmp.gt.f32.partialorder %v3016_v59, %v14600_v39  ;;  %vm5667_vm14 = vcmp.gt.f32.partialorder %v2843_v16, %v14601_v45  ;;  %vm5749_vm7 = vcmp.gt.f32.partialorder %v3018_v20, %v10314_v43  ;;  %v14605_v32 = vld [vmem:[#allocation142_spill] sm:$0xff] }
 0x31f   : > { %14595 = vst [vmem:[#allocation21_spill] sm:$0xff] %v10877_v17  ;;  %6562 = vmatmul.mubr.msk.f32.vlgmr.msra.gmra.mrb[36].mxu0 %vm226_vm0, %v10308_v49  ;;  %v10891_v41 = vsel %vm5173_vm2, %v3016_v59, %v14600_v39  ;;  %v10894_v33 = vsel %vm5173_vm2, 3, %v14602_v18  ;;  %v2845_v17 = vpop.f32.mrb[185].mxu1  ;;  %6544 = vmatmul.mubr.msk.f32.gmra.mrb[34].mxu1 %vm226_vm0, %v14604_v14  ;;  %v10901_v29 = vsel %vm5667_vm14, %v2843_v16, %v14601_v45  ;;  %v10903_v49 = vsel %vm5667_vm14, 2, %v5635_v42  ;;  %v14608_v18 = vld [vmem:[#allocation74_spill] sm:$0xff]  ;;  %v3022_v16 = vpop.f32.mrb[188].mxu0 }
 0x320   : > { %14603 = vst [vmem:[#allocation57_spill] sm:$0xff] %v10894_v33  ;;  %3982 = vmatprep.mubr.f32.mxu0 %v13846_v37  ;;  %vm4611_vm10 = vcmp.gt.f32.partialorder %v2845_v17, %v14605_v32  ;;  %v10907_v59 = vsel %vm5749_vm7, %v3018_v20, %v10314_v43  ;;  %3809 = vmatprep.mubr.f32.mxu1 %v13846_v37  ;;  %v10917_v14 = vsel %vm5749_vm7, 3, %v10316_v54  ;;  %v14611_v42 = vld [vmem:[#allocation95_spill] sm:$0xff]  ;;  %v2849_v33 = vpop.f32.mrb[186].mxu1  ;;  %v14614_v43 = vld [vmem:[#allocation97_spill] sm:$0xff]  ;;  %v3024_v20 = vpop.f32.mrb[189].mxu0 }
 0x321   : > { %14606 = vst [vmem:[#allocation56_spill] sm:$0xff] %v10907_v59  ;;  %v10911_v39 = vsel %vm4611_vm10, %v2845_v17, %v14605_v32  ;;  %v10914_v35 = vsel %vm4611_vm10, 3, %v14608_v18  ;;  %14610 = vst [vmem:[#allocation121_spill] sm:$0xff] %v10917_v14  ;;  %v14612_v45 = vld [vmem:[#allocation159_spill] sm:$0xff]  ;;  %vm5174_vm3 = vcmp.gt.f32.partialorder %v3022_v16, %v14614_v43  ;;  %v14615_v17 = vld [vmem:[#allocation186_spill] sm:$0xff]  ;;  %vm5750_vm1 = vcmp.gt.f32.partialorder %v3024_v20, %v10364_v7 }
 0x322   : > { %14607 = vst [vmem:[#allocation211_spill] sm:$0xff] %v10911_v39  ;;  %14609 = vst [vmem:[#allocation122_spill] sm:$0xff] %v10914_v35  ;;  %vm14613_vm13 = vcmp.gt.f32.partialorder %v14611_v42, %v14612_v45  ;;  %vm5668_vm12 = vcmp.gt.f32.partialorder %v2849_v33, %v14615_v17  ;;  %v10928_v32 = vsel %vm5174_vm3, %v3022_v16, %v14614_v43  ;;  %v14616_v54 = vld [vmem:[#allocation187_spill] sm:$0xff]  ;;  %v2851_v35 = vpop.f32.mrb[187].mxu1  ;;  %v14619_v14 = vld [vmem:[#allocation146_spill] sm:$0xff] }
 0x323   : > { %v5636_v53 = vsel %vm14613_vm13, 1, %v13989_v36  ;;  %6563 = vmatmul.mubr.msk.f32.gmra.mrb[38].mxu0 %vm226_vm0, %v10358_v44  ;;  %v10931_v18 = vsel %vm5174_vm3, 3, %v14616_v54  ;;  %v14618_v42 = vld [vmem:[#allocation147_spill] sm:$0xff]  ;;  %v10938_v45 = vsel %vm5668_vm12, %v2849_v33, %v14615_v17  ;;  %vm4612_vm9 = vcmp.gt.f32.partialorder %v2851_v35, %v14619_v14  ;;  %v3028_v33 = vpop.f32.mrb[190].mxu0  ;;  %v14626_v17 = vld [vmem:[#allocation164_spill] sm:$0xff] }
 0x324   : > { %14617 = vst [vmem:[#allocation192_spill] sm:$0xff] %v10931_v18  ;;  %6545 = vmatmul.mubr.msk.f32.gmra.mrb[36].mxu1 %vm226_vm0, %v14618_v42  ;;  %3988 = vmatprep.mubr.f32.mxu0 %v13846_v37  ;;  %v10940_v44 = vsel %vm5668_vm12, 2, %v5636_v53  ;;  %v10944_v16 = vsel %vm5750_vm1, %v3024_v20, %v10364_v7  ;;  %v10948_v43 = vsel %vm4612_vm9, %v2851_v35, %v14619_v14  ;;  %v14622_v54 = vld [vmem:[#allocation79_spill] sm:$0xff]  ;;  %v10954_v42 = vsel %vm5750_vm1, 3, %v10366_v2  ;;  %v14625_v53 = vld [vmem:[#allocation28_spill] sm:$0xff]  ;;  %v2855_v18 = vpop.f32.mrb[188].mxu1 }
 0x325   : > { %14620 = vst [vmem:[#allocation25_spill] sm:$0xff] %v10944_v16  ;;  %3815 = vmatprep.mubr.f32.mxu1 %v13846_v37  ;;  %14621 = vst [vmem:[#allocation127_spill] sm:$0xff] %v10948_v43  ;;  %v10951_v39 = vsel %vm4612_vm9, 3, %v14622_v54  ;;  %vm14627_vm4 = vcmp.gt.f32.partialorder %v14625_v53, %v14626_v17  ;;  %v14628_v7 = vld [vmem:[#allocation30_spill] sm:$0xff]  ;;  %v3030_v20 = vpop.f32.mrb[191].mxu0  ;;  %v14630_v2 = vld [vmem:[#allocation195_spill] sm:$0xff] }
 0x326   : > { %14623 = vst [vmem:[#allocation62_spill] sm:$0xff] %v10951_v39  ;;  %14624 = vst [vmem:[#allocation61_spill] sm:$0xff] %v10954_v42  ;;  %v5637_v59 = vsel %vm14627_vm4, 1, %v13989_v36  ;;  %vm5175_vm15 = vcmp.gt.f32.partialorder %v3028_v33, %v14628_v7  ;;  %v14629_v35 = vld [vmem:[#allocation102_spill] sm:$0xff]  ;;  %v2857_v39 = vpop.f32.mrb[189].mxu1  ;;  %vm5751_vm8 = vcmp.gt.f32.partialorder %v3030_v20, %v10413_v26  ;;  %v14632_v53 = vld [vmem:[#allocation152_spill] sm:$0xff] }
 0x327   : > { %6564 = vmatmul.mubr.msk.f32.gmra.mrb[40].mxu0 %vm226_vm0, %v10407_v1  ;;  %vm5669_vm6 = vcmp.gt.f32.partialorder %v2855_v18, %v14629_v35  ;;  %v10965_v14 = vsel %vm5175_vm15, %v3028_v33, %v14628_v7  ;;  %v10968_v54 = vsel %vm5175_vm15, 3, %v14630_v2  ;;  %v14633_v42 = vld [vmem:[#allocation150_spill] sm:$0xff]  ;;  %v10981_v33 = vsel %vm5751_vm8, %v3030_v20, %v10413_v26  ;;  %v14636_v2 = vld [vmem:[#allocation84_spill] sm:$0xff] }
 0x328   : > { %14631 = vst [vmem:[#allocation212_spill] sm:$0xff] %v10968_v54  ;;  %6546 = vmatmul.mubr.msk.f32.gmra.mrb[38].mxu1 %vm226_vm0, %v14632_v53  ;;  %3994 = vmatprep.mubr.f32.mxu0 %v13846_v37  ;;  %v10975_v17 = vsel %vm5669_vm6, %v2855_v18, %v14629_v35  ;;  %v10977_v1 = vsel %vm5669_vm6, 2, %v5637_v59  ;;  %vm4613_vm11 = vcmp.gt.f32.partialorder %v2857_v39, %v14633_v42  ;;  %14634 = vst [vmem:[#allocation33_spill] sm:$0xff] %v10981_v33  ;;  %v3034_v18 = vpop.f32.mrb[192].mxu0  ;;  %v14639_v59 = vld [vmem:[#allocation166_spill] sm:$0xff]  ;;  %v14640_v35 = vld [vmem:[#allocation169_spill] sm:$0xff] }
 0x329   : > { %3821 = vmatprep.mubr.f32.mxu1 %v13846_v37  ;;  %v10985_v7 = vsel %vm4613_vm11, %v2857_v39, %v14633_v42  ;;  %v10988_v43 = vsel %vm4613_vm11, 3, %v14636_v2  ;;  %v10991_v53 = vsel %vm5751_vm8, 3, %v10415_v19  ;;  %vm14641_vm5 = vcmp.gt.f32.partialorder %v14639_v59, %v14640_v35  ;;  %v2861_v54 = vpop.f32.mrb[190].mxu1  ;;  %v14642_v26 = vld [vmem:[#allocation190_spill] sm:$0xff]  ;;  %v3036_v20 = vpop.f32.mrb[193].mxu0  ;;  %v14643_v39 = vld [vmem:[#allocation32_spill] sm:$0xff] }
 0x32a   : > { %14635 = vst [vmem:[#allocation129_spill] sm:$0xff] %v10985_v7  ;;  %14637 = vst [vmem:[#allocation29_spill] sm:$0xff] %v10988_v43  ;;  %v5638_v16 = vsel %vm14641_vm5, 1, %v13989_v36  ;;  %vm5176_vm2 = vcmp.gt.f32.partialorder %v3034_v18, %v14642_v26  ;;  %vm5670_vm14 = vcmp.gt.f32.partialorder %v2861_v54, %v14643_v39  ;;  %v14644_v19 = vld [vmem:[#allocation105_spill] sm:$0xff]  ;;  %v2863_v43 = vpop.f32.mrb[191].mxu1  ;;  %vm5752_vm7 = vcmp.gt.f32.partialorder %v3036_v20, %v10455_v25 }
 0x32b   : > { %14638 = vst [vmem:[#allocation132_spill] sm:$0xff] %v10991_v53  ;;  %6565 = vmatmul.mubr.msk.f32.gmra.mrb[42].mxu0 %vm226_vm0, %v10449_v38  ;;  %v11002_v42 = vsel %vm5176_vm2, %v3034_v18, %v14642_v26  ;;  %v11005_v2 = vsel %vm5176_vm2, 3, %v14644_v19  ;;  %v11012_v59 = vsel %vm5670_vm14, %v2861_v54, %v14643_v39  ;;  %v11014_v38 = vsel %vm5670_vm14, 2, %v5638_v16  ;;  %v14645_v35 = vld [vmem:[#allocation157_spill] sm:$0xff]  ;;  %v14648_v19 = vld [vmem:[#allocation155_spill] sm:$0xff]  ;;  %v3040_v54 = vpop.f32.mrb[194].mxu0 }
 0x32c   : > { %6547 = vmatmul.mubr.msk.f32.gmra.mrb[40].mxu1 %vm226_vm0, %v10250_v51  ;;  %4000 = vmatprep.mubr.f32.mxu0 %v13846_v37  ;;  %vm4614_vm10 = vcmp.gt.f32.partialorder %v2863_v43, %v14645_v35  ;;  %v11018_v18 = vsel %vm5752_vm7, %v3036_v20, %v10455_v25  ;;  %v11028_v51 = vsel %vm5752_vm7, 3, %v10457_v50  ;;  %v14651_v16 = vld [vmem:[#allocation107_spill] sm:$0xff]  ;;  %v2867_v33 = vpop.f32.mrb[192].mxu1  ;;  %v14654_v25 = vld [vmem:[#allocation106_spill] sm:$0xff]  ;;  %v3042_v20 = vpop.f32.mrb[195].mxu0 }
 0x32d   : > { %14646 = vst [vmem:[#allocation67_spill] sm:$0xff] %v11018_v18  ;;  %3827 = vmatprep.mubr.f32.mxu1 %v13846_v37  ;;  %v11022_v26 = vsel %vm4614_vm10, %v2863_v43, %v14645_v35  ;;  %v11025_v53 = vsel %vm4614_vm10, 3, %v14648_v19  ;;  %14650 = vst [vmem:[#allocation130_spill] sm:$0xff] %v11028_v51  ;;  %v14652_v39 = vld [vmem:[#allocation175_spill] sm:$0xff]  ;;  %vm5177_vm3 = vcmp.gt.f32.partialorder %v3040_v54, %v14654_v25  ;;  %v14656_v50 = vld [vmem:[#allocation110_spill] sm:$0xff] }
 0x32e   : > { %14647 = vst [vmem:[#allocation66_spill] sm:$0xff] %v11022_v26  ;;  %14649 = vst [vmem:[#allocation213_spill] sm:$0xff] %v11025_v53  ;;  %vm14653_vm13 = vcmp.gt.f32.partialorder %v14651_v16, %v14652_v39  ;;  %v14655_v43 = vld [vmem:[#allocation171_spill] sm:$0xff]  ;;  %v11039_v35 = vsel %vm5177_vm3, %v3040_v54, %v14654_v25  ;;  %v11042_v19 = vsel %vm5177_vm3, 3, %v14656_v50  ;;  %v2869_v53 = vpop.f32.mrb[193].mxu1  ;;  %vm5753_vm1 = vcmp.gt.f32.partialorder %v3042_v20, %v10498_v55  ;;  %v14658_v16 = vld [vmem:[#allocation10_spill] sm:$0xff] }
 0x32f   : > { %v5639_v7 = vsel %vm14653_vm13, 1, %v13989_v36  ;;  %6566 = vmatmul.mubr.msk.f32.gmra.mrb[44].mxu0 %vm226_vm0, %v10492_v48  ;;  %vm5671_vm12 = vcmp.gt.f32.partialorder %v2867_v33, %v14655_v43  ;;  %14657 = vst [vmem:[#allocation38_spill] sm:$0xff] %v11042_v19  ;;  %v14659_v51 = vld [vmem:[#allocation162_spill] sm:$0xff]  ;;  %v11055_v54 = vsel %vm5753_vm1, %v3042_v20, %v10498_v55  ;;  %v14662_v50 = vld [vmem:[#allocation160_spill] sm:$0xff]  ;;  %v2873_v19 = vpop.f32.mrb[194].mxu1  ;;  %v14668_v55 = vld [vmem:[#allocation111_spill] sm:$0xff] }
 0x330   : > { %6548 = vmatmul.mubr.msk.f32.gmra.mrb[42].mxu1 %vm226_vm0, %v14658_v16  ;;  %4006 = vmatprep.mubr.f32.mxu0 %v13846_v37  ;;  %v11049_v39 = vsel %vm5671_vm12, %v2867_v33, %v14655_v43  ;;  %v11051_v48 = vsel %vm5671_vm12, 2, %v5639_v7  ;;  %vm4615_vm9 = vcmp.gt.f32.partialorder %v2869_v53, %v14659_v51  ;;  %14660 = vst [vmem:[#allocation9_spill] sm:$0xff] %v11055_v54  ;;  %v11065_v16 = vsel %vm5753_vm1, 3, %v10500_v22  ;;  %v3046_v33 = vpop.f32.mrb[196].mxu0  ;;  %v14665_v7 = vld [vmem:[#allocation112_spill] sm:$0xff]  ;;  %v14666_v43 = vld [vmem:[#allocation3_spill] sm:$0xff] }
 0x331   : > { %3833 = vmatprep.mubr.f32.mxu1 %v13846_v37  ;;  %v11059_v25 = vsel %vm4615_vm9, %v2869_v53, %v14659_v51  ;;  %v11062_v26 = vsel %vm4615_vm9, 3, %v14662_v50  ;;  %14664 = vst [vmem:[#allocation71_spill] sm:$0xff] %v11065_v16  ;;  %vm14667_vm4 = vcmp.gt.f32.partialorder %v14665_v7, %v14666_v43  ;;  %vm5178_vm15 = vcmp.gt.f32.partialorder %v3046_v33, %v14668_v55  ;;  %v3048_v20 = vpop.f32.mrb[197].mxu0  ;;  %v14669_v53 = vld [vmem:[#allocation177_spill] sm:$0xff]  ;;  %v14670_v22 = vld [vmem:[#allocation115_spill] sm:$0xff]  ;;  %v14672_v7 = vld [vmem:[#allocation96_spill] sm:$0xff] }
 0x332   : > { %14661 = vst [vmem:[#allocation137_spill] sm:$0xff] %v11059_v25  ;;  %14663 = vst [vmem:[#allocation72_spill] sm:$0xff] %v11062_v26  ;;  %v5640_v18 = vsel %vm14667_vm4, 1, %v13989_v36  ;;  %vm5672_vm6 = vcmp.gt.f32.partialorder %v2873_v19, %v14669_v53  ;;  %v11076_v51 = vsel %vm5178_vm15, %v3046_v33, %v14668_v55  ;;  %v11079_v50 = vsel %vm5178_vm15, 3, %v14670_v22  ;;  %v2875_v26 = vpop.f32.mrb[195].mxu1  ;;  %v14673_v16 = vld [vmem:[#allocation70_spill] sm:$0xff] }
 0x333   : > { %6567 = vmatmul.mubr.msk.f32.gmra.mrb[46].mxu0 %vm226_vm0, %v10535_v11  ;;  %14671 = vst [vmem:[#allocation214_spill] sm:$0xff] %v11079_v50  ;;  %vm5754_vm8 = vcmp.gt.f32.partialorder %v3048_v20, %v10541_v4  ;;  %v11086_v43 = vsel %vm5672_vm6, %v2873_v19, %v14669_v53  ;;  %v11088_v11 = vsel %vm5672_vm6, 2, %v5640_v18  ;;  %vm4616_vm11 = vcmp.gt.f32.partialorder %v2875_v26, %v14673_v16  ;;  %v14676_v22 = vld [vmem:[#allocation13_spill] sm:$0xff]  ;;  %v3052_v19 = vpop.f32.mrb[198].mxu0  ;;  %v14679_v18 = vld [vmem:[#allocation116_spill] sm:$0xff]  ;;  %v2879_v50 = vpop.f32.mrb[196].mxu1 }
 0x334   : > { %6549 = vmatmul.mubr.msk.f32.gmra.mrb[44].mxu1 %vm226_vm0, %v14672_v7  ;;  %4012 = vmatprep.mubr.f32.mxu0 %v13846_v37  ;;  %v11092_v33 = vsel %vm5754_vm8, %v3048_v20, %v10541_v4  ;;  %v11096_v55 = vsel %vm4616_vm11, %v2875_v26, %v14673_v16  ;;  %v11099_v25 = vsel %vm4616_vm11, 3, %v14676_v22  ;;  %v11102_v7 = vsel %vm5754_vm8, 3, %v10543_v13  ;;  %v14680_v53 = vld [vmem:[#allocation189_spill] sm:$0xff]  ;;  %v14682_v4 = vld [vmem:[#allocation183_spill] sm:$0xff]  ;;  %v3054_v20 = vpop.f32.mrb[199].mxu0  ;;  %v14683_v26 = vld [vmem:[#allocation120_spill] sm:$0xff] }
 0x335   : > { %14674 = vst [vmem:[#allocation42_spill] sm:$0xff] %v11092_v33  ;;  %3839 = vmatprep.mubr.f32.mxu1 %v13846_v37  ;;  %14675 = vst [vmem:[#allocation133_spill] sm:$0xff] %v11096_v55  ;;  %vm14681_vm5 = vcmp.gt.f32.partialorder %v14679_v18, %v14680_v53  ;;  %vm5179_vm2 = vcmp.gt.f32.partialorder %v3052_v19, %v14682_v4  ;;  %vm5673_vm14 = vcmp.gt.f32.partialorder %v2879_v50, %v14683_v26  ;;  %v14685_v13 = vld [vmem:[#allocation49_spill] sm:$0xff]  ;;  %v14688_v53 = vld [vmem:[#allocation99_spill] sm:$0xff] }
 0x336   : > { %14677 = vst [vmem:[#allocation76_spill] sm:$0xff] %v11099_v25  ;;  %14678 = vst [vmem:[#allocation141_spill] sm:$0xff] %v11102_v7  ;;  %v5641_v54 = vsel %vm14681_vm5, 1, %v13989_v36  ;;  %v11113_v16 = vsel %vm5179_vm2, %v3052_v19, %v14682_v4  ;;  %v11116_v22 = vsel %vm5179_vm2, 3, %v14685_v13  ;;  %v2881_v25 = vpop.f32.mrb[197].mxu1  ;;  %vm5755_vm7 = vcmp.gt.f32.partialorder %v3054_v20, %v10584_v61  ;;  %v14687_v36 = vld [vmem:[#allocation165_spill] sm:$0xff] }
 0x337   : > { %6568 = vmatmul.mubr.msk.f32.gmra.mrb[48].mxu0 %vm226_vm0, %v10578_v62  ;;  %14684 = vst [vmem:[#allocation215_spill] sm:$0xff] %v11113_v16  ;;  %14686 = vst [vmem:[#allocation216_spill] sm:$0xff] %v11116_v22  ;;  %v11123_v18 = vsel %vm5673_vm14, %v2879_v50, %v14683_v26  ;;  %v11125_v62 = vsel %vm5673_vm14, 2, %v5641_v54  ;;  %vm4617_vm10 = vcmp.gt.f32.partialorder %v2881_v25, %v14688_v53  ;;  %v14691_v13 = vld [vmem:[#allocation168_spill] sm:$0xff]  ;;  %v3058_v50 = vpop.f32.mrb[200].mxu0  ;;  %v3207_v54 = vpop.f32.mrb[198].mxu1 }
 0x338   : > { %6550 = vmatmul.mubr.msk.f32.gmra.mrb[46].mxu1 %vm226_vm0, %v14687_v36  ;;  %4018 = vmatprep.mubr.f32.mxu0 %v13846_v37  ;;  %v11129_v19 = vsel %vm5755_vm7, %v3054_v20, %v10584_v61  ;;  %v11133_v4 = vsel %vm4617_vm10, %v2881_v25, %v14688_v53  ;;  %v11136_v7 = vsel %vm4617_vm10, 3, %v14691_v13  ;;  %v14693_v36 = vld [vmem:[#allocation185_spill] sm:$0xff]  ;;  %v14695_v26 = vld [vmem:[#allocation124_spill] sm:$0xff]  ;;  %v3060_v33 = vpop.f32.mrb[201].mxu0  ;;  %v11143_v22 = vld [vmem:[%s7227_s12 + $0x38] sm:$0xff]  ;;  %v3209_v13 = vpop.f32.mrb[199].mxu1 }
 0x339   : > { %14689 = vst [vmem:[#allocation217_spill] sm:$0xff] %v11129_v19  ;;  %3845 = vmatprep.mubr.f32.mxu1 %v13846_v37  ;;  %14690 = vst [vmem:[#allocation81_spill] sm:$0xff] %v11133_v4  ;;  %v11139_v55 = vsel %vm5755_vm7, 3, %v14693_v36  ;;  %vm5180_vm13 = vcmp.gt.f32.partialorder %v3058_v50, %v14695_v26  ;;  %v14697_v25 = vld [vmem:[#allocation54_spill] sm:$0xff]  ;;  %vm5756_vm12 = vcmp.gt.f32.partialorder %v3060_v33, %v10624_v31  ;;  %v14700_v36 = vld [vmem:[#allocation172_spill] sm:$0xff]  ;;  %v3064_v19 = vpop.f32.mrb[202].mxu0 }
 0x33a   : > { %14692 = vst [vmem:[#allocation145_spill] sm:$0xff] %v11136_v7  ;;  %14694 = vst [vmem:[#allocation218_spill] sm:$0xff] %v11139_v55  ;;  %v11148_v61 = vsel %vm5180_vm13, %v3058_v50, %v14695_v26  ;;  %v11151_v20 = vsel %vm5180_vm13, 3, %v14697_v25  ;;  %v14699_v53 = vld [vmem:[#allocation126_spill] sm:$0xff]  ;;  %v14701_v55 = vld [vmem:[#allocation125_spill] sm:$0xff]  ;;  %v11165_v26 = vsel %vm5756_vm12, %v3060_v33, %v10624_v31  ;;  %v11168_v25 = vsel %vm5756_vm12, 3, %v10626_v52 }
 0x33b   : > { %6569 = vmatmul.mubr.msk.f32.gmra.mrb[50].mxu0 %vm226_vm0, %v11143_v22  ;;  %14696 = vst [vmem:[#allocation219_spill] sm:$0xff] %v11148_v61  ;;  %14698 = vst [vmem:[#allocation220_spill] sm:$0xff] %v11151_v20  ;;  %vm4682_vm3 = vcmp.gt.f32.partialorder %v3207_v54, %v14699_v53  ;;  %v14704_v4 = vld [vmem:[#allocation100_spill] sm:$0xff]  ;;  %v3066_v61 = vpop.f32.mrb[203].mxu0  ;;  %v11180_v31 = vld [vmem:[%s7227_s12 + $0x40] sm:$0xff] }
 0x33c   : > { %6551 = vmatmul.mubr.msk.f32.gmra.mrb[48].mxu1 %vm226_vm0, %v14700_v36  ;;  %4024 = vmatprep.mubr.f32.mxu0 %v13846_v37  ;;  %v11159_v7 = vsel %vm4682_vm3, %v3207_v54, %v14699_v53  ;;  %v11162_v50 = vsel %vm4682_vm3, 4, %v14701_v55  ;;  %14702 = vst [vmem:[#allocation86_spill] sm:$0xff] %v11165_v26  ;;  %14703 = vst [vmem:[#allocation149_spill] sm:$0xff] %v11168_v25  ;;  %vm5258_vm1 = vcmp.gt.f32.partialorder %v3209_v13, %v14704_v4  ;;  %v14706_v20 = vld [vmem:[#allocation80_spill] sm:$0xff]  ;;  %v14708_v53 = vld [vmem:[#allocation35_spill] sm:$0xff]  ;;  %v3213_v55 = vpop.f32.mrb[200].mxu1 }
 0x33d   : > { %3851 = vmatprep.mubr.f32.mxu1 %v13846_v37  ;;  %v11173_v36 = vsel %vm5258_vm1, %v3209_v13, %v14704_v4  ;;  %v11176_v54 = vsel %vm5258_vm1, 4, %v14706_v20  ;;  %vm5181_vm9 = vcmp.gt.f32.partialorder %v3064_v19, %v14708_v53  ;;  %v14710_v33 = vld [vmem:[#allocation37_spill] sm:$0xff]  ;;  %v14712_v4 = vld [vmem:[#allocation128_spill] sm:$0xff]  ;;  %vm5757_vm15 = vcmp.gt.f32.partialorder %v3066_v61, %v10664_v21  ;;  %v3215_v20 = vpop.f32.mrb[201].mxu1  ;;  %v14713_v13 = vld [vmem:[#allocation83_spill] sm:$0xff] }
 0x33e   : > { %14705 = vst [vmem:[#allocation151_spill] sm:$0xff] %v11173_v36  ;;  %14707 = vst [vmem:[#allocation20_spill] sm:$0xff] %v11176_v54  ;;  %v11185_v52 = vsel %vm5181_vm9, %v3064_v19, %v14708_v53  ;;  %v11188_v25 = vsel %vm5181_vm9, 3, %v14710_v33  ;;  %vm4683_vm4 = vcmp.gt.f32.partialorder %v3213_v55, %v14712_v4  ;;  %v14714_v36 = vld [vmem:[#allocation59_spill] sm:$0xff]  ;;  %v11202_v53 = vsel %vm5757_vm15, %v3066_v61, %v10664_v21  ;;  %v14717_v26 = vld [vmem:[#allocation82_spill] sm:$0xff] }
 0x33f   : > { %6570 = vmatmul.mubr.msk.f32.gmra.mrb[52].mxu0 %vm226_vm0, %v11180_v31  ;;  %14709 = vst [vmem:[#allocation221_spill] sm:$0xff] %v11185_v52  ;;  %14711 = vst [vmem:[#allocation92_spill] sm:$0xff] %v11188_v25  ;;  %v11196_v54 = vsel %vm4683_vm4, %v3213_v55, %v14712_v4  ;;  %v11199_v19 = vsel %vm4683_vm4, 4, %v14714_v36  ;;  %v11205_v33 = vsel %vm5757_vm15, 3, %v10666_v6  ;;  %vm5259_vm6 = vcmp.gt.f32.partialorder %v3215_v20, %v14717_v26  ;;  %v3070_v25 = vpop.f32.mrb[204].mxu0  ;;  %v14719_v52 = vld [vmem:[#allocation174_spill] sm:$0xff] }
 0x340   : > { %6552 = vmatmul.mubr.msk.f32.gmra.mrb[50].mxu1 %vm226_vm0, %v14713_v13  ;;  %4030 = vmatprep.mubr.f32.mxu0 %v13846_v37  ;;  %14715 = vst [vmem:[#allocation154_spill] sm:$0xff] %v11202_v53  ;;  %14716 = vst [vmem:[#allocation180_spill] sm:$0xff] %v11205_v33  ;;  %v11210_v13 = vsel %vm5259_vm6, %v3215_v20, %v14717_v26  ;;  %v11213_v55 = vsel %vm5259_vm6, 4, %v14719_v52  ;;  %v14721_v4 = vld [vmem:[#allocation198_spill] sm:$0xff]  ;;  %v3219_v36 = vpop.f32.mrb[202].mxu1  ;;  %v3072_v16 = vpop.f32.mrb[205].mxu0 }
 0x341   : > { %3857 = vmatprep.mubr.f32.mxu1 %v13846_v37  ;;  %14718 = vst [vmem:[#allocation91_spill] sm:$0xff] %v11210_v13  ;;  %14720 = vst [vmem:[#allocation156_spill] sm:$0xff] %v11213_v55  ;;  %vm5182_vm8 = vcmp.gt.f32.partialorder %v3070_v25, %v14721_v4  ;;  %v11217_v21 = vld [vmem:[%s7227_s12 + $0x48] sm:$0xff]  ;;  %v14723_v61 = vld [vmem:[#allocation131_spill] sm:$0xff]  ;;  %vm5758_vm5 = vcmp.gt.f32.partialorder %v3072_v16, %v10704_v63  ;;  %v3221_v52 = vpop.f32.mrb[203].mxu1 }
 0x342   : > { %v11222_v6 = vsel %vm5182_vm8, %v3070_v25, %v14721_v4  ;;  %v11225_v33 = vsel %vm5182_vm8, 3, %v14723_v61  ;;  %v14725_v26 = vld [vmem:[#allocation134_spill] sm:$0xff]  ;;  %v14726_v20 = vld [vmem:[#allocation109_spill] sm:$0xff]  ;;  %v14727_v13 = vld [vmem:[#allocation40_spill] sm:$0xff]  ;;  %v11239_v4 = vsel %vm5758_vm5, %v3072_v16, %v10704_v63  ;;  %v11242_v61 = vsel %vm5758_vm5, 3, %v10706_v24 }
 0x343   : > { %6571 = vmatmul.mubr.msk.f32.gmra.mrb[54].mxu0 %vm226_vm0, %v11217_v21  ;;  %14722 = vst [vmem:[#allocation17_spill] sm:$0xff] %v11222_v6  ;;  %14724 = vst [vmem:[#allocation142_spill] sm:$0xff] %v11225_v33  ;;  %vm4684_vm11 = vcmp.gt.f32.partialorder %v3219_v36, %v14725_v26  ;;  %v14731_v53 = vld [vmem:[#allocation179_spill] sm:$0xff]  ;;  %v3076_v33 = vpop.f32.mrb[206].mxu0  ;;  %v14733_v6 = vld [vmem:[#allocation88_spill] sm:$0xff] }
 0x344   : > { %6553 = vmatmul.mubr.msk.f32.gmra.mrb[52].mxu1 %vm226_vm0, %v14726_v20  ;;  %4036 = vmatprep.mubr.f32.mxu0 %v13846_v37  ;;  %v11233_v55 = vsel %vm4684_vm11, %v3219_v36, %v14725_v26  ;;  %v11236_v25 = vsel %vm4684_vm11, 4, %v14727_v13  ;;  %14729 = vst [vmem:[#allocation95_spill] sm:$0xff] %v11239_v4  ;;  %14730 = vst [vmem:[#allocation159_spill] sm:$0xff] %v11242_v61  ;;  %vm5260_vm2 = vcmp.gt.f32.partialorder %v3221_v52, %v14731_v53  ;;  %v14735_v26 = vld [vmem:[#allocation64_spill] sm:$0xff]  ;;  %v3225_v13 = vpop.f32.mrb[204].mxu1  ;;  %v11254_v63 = vld [vmem:[%s7227_s12 + $0x50] sm:$0xff] }
 0x345   : > { %14728 = vst [vmem:[#allocation74_spill] sm:$0xff] %v11236_v25  ;;  %3863 = vmatprep.mubr.f32.mxu1 %v13846_v37  ;;  %v11247_v20 = vsel %vm5260_vm2, %v3221_v52, %v14731_v53  ;;  %v11250_v36 = vsel %vm5260_vm2, 4, %v14733_v6  ;;  %vm5183_vm14 = vcmp.gt.f32.partialorder %v3076_v33, %v14735_v26  ;;  %v3078_v25 = vpop.f32.mrb[207].mxu0  ;;  %v14737_v16 = vld [vmem:[#allocation135_spill] sm:$0xff]  ;;  %v3227_v6 = vpop.f32.mrb[205].mxu1  ;;  %v14740_v52 = vld [vmem:[#allocation90_spill] sm:$0xff] }
 0x346   : > { %14732 = vst [vmem:[#allocation97_spill] sm:$0xff] %v11247_v20  ;;  %14734 = vst [vmem:[#allocation186_spill] sm:$0xff] %v11250_v36  ;;  %v11259_v24 = vsel %vm5183_vm14, %v3076_v33, %v14735_v26  ;;  %v11262_v61 = vsel %vm5183_vm14, 3, %v14737_v16  ;;  %v14739_v53 = vld [vmem:[#allocation43_spill] sm:$0xff]  ;;  %vm5759_vm10 = vcmp.gt.f32.partialorder %v3078_v25, %v10744_v5  ;;  %v14741_v20 = vld [vmem:[#allocation201_spill] sm:$0xff] }
 0x347   : > { %6572 = vmatmul.mubr.msk.f32.gmra.mrb[56].mxu0 %vm226_vm0, %v11254_v63  ;;  %14736 = vst [vmem:[#allocation187_spill] sm:$0xff] %v11259_v24  ;;  %14738 = vst [vmem:[#allocation147_spill] sm:$0xff] %v11262_v61  ;;  %vm4685_vm7 = vcmp.gt.f32.partialorder %v3225_v13, %v14739_v53  ;;  %v11276_v26 = vsel %vm5759_vm10, %v3078_v25, %v10744_v5  ;;  %v11279_v16 = vsel %vm5759_vm10, 3, %v10746_v15  ;;  %v14745_v4 = vld [vmem:[#allocation182_spill] sm:$0xff]  ;;  %v3082_v61 = vpop.f32.mrb[208].mxu0  ;;  %v14751_v25 = vld [vmem:[#allocation139_spill] sm:$0xff] }
 0x348   : > { %6554 = vmatmul.mubr.msk.f32.gmra.mrb[54].mxu1 %vm226_vm0, %v14740_v52  ;;  %4042 = vmatprep.mubr.f32.mxu0 %v13846_v37  ;;  %v11270_v36 = vsel %vm4685_vm7, %v3225_v13, %v14739_v53  ;;  %v11273_v33 = vsel %vm4685_vm7, 4, %v14741_v20  ;;  %14743 = vst [vmem:[#allocation79_spill] sm:$0xff] %v11276_v26  ;;  %14744 = vst [vmem:[#allocation28_spill] sm:$0xff] %v11279_v16  ;;  %vm5261_vm13 = vcmp.gt.f32.partialorder %v3227_v6, %v14745_v4  ;;  %v14747_v24 = vld [vmem:[#allocation114_spill] sm:$0xff]  ;;  %v14749_v53 = vld [vmem:[#allocation136_spill] sm:$0xff]  ;;  %v3231_v20 = vpop.f32.mrb[206].mxu1 }
 0x349   : > { %14742 = vst [vmem:[#allocation146_spill] sm:$0xff] %v11273_v33  ;;  %3869 = vmatprep.mubr.f32.mxu1 %v13846_v37  ;;  %v11284_v52 = vsel %vm5261_vm13, %v3227_v6, %v14745_v4  ;;  %v11287_v13 = vsel %vm5261_vm13, 4, %v14747_v24  ;;  %vm5184_vm3 = vcmp.gt.f32.partialorder %v3082_v61, %v14749_v53  ;;  %v3084_v33 = vpop.f32.mrb[209].mxu0  ;;  %v11291_v5 = vld [vmem:[%s7227_s12 + $0x58] sm:$0xff]  ;;  %v14753_v4 = vld [vmem:[#allocation45_spill] sm:$0xff]  ;;  %v3233_v24 = vpop.f32.mrb[207].mxu1 }
 0x34a   : > { %14746 = vst [vmem:[#allocation164_spill] sm:$0xff] %v11284_v52  ;;  %14748 = vst [vmem:[#allocation30_spill] sm:$0xff] %v11287_v13  ;;  %v11296_v15 = vsel %vm5184_vm3, %v3082_v61, %v14749_v53  ;;  %v11299_v16 = vsel %vm5184_vm3, 3, %v14751_v25  ;;  %vm4686_vm12 = vcmp.gt.f32.partialorder %v3231_v20, %v14753_v4  ;;  %vm5760_vm1 = vcmp.gt.f32.partialorder %v3084_v33, %v10784_v28  ;;  %v14754_v6 = vld [vmem:[#allocation6_spill] sm:$0xff]  ;;  %v14755_v52 = vld [vmem:[#allocation47_spill] sm:$0xff] }
 0x34b   : > { %6573 = vmatmul.mubr.msk.f32.gmra.mrb[58].mxu0 %vm226_vm0, %v11291_v5  ;;  %14750 = vst [vmem:[#allocation102_spill] sm:$0xff] %v11296_v15  ;;  %14752 = vst [vmem:[#allocation195_spill] sm:$0xff] %v11299_v16  ;;  %v11307_v13 = vsel %vm4686_vm12, %v3231_v20, %v14753_v4  ;;  %v11310_v61 = vsel %vm4686_vm12, 4, %v14755_v52  ;;  %v11313_v53 = vsel %vm5760_vm1, %v3084_v33, %v10784_v28  ;;  %v11316_v25 = vsel %vm5760_vm1, 3, %v10786_v34  ;;  %v14759_v26 = vld [vmem:[#allocation191_spill] sm:$0xff]  ;;  %v3088_v16 = vpop.f32.mrb[210].mxu0 }
 0x34c   : > { %6555 = vmatmul.mubr.msk.f32.gmra.mrb[56].mxu1 %vm226_vm0, %v14754_v6  ;;  %4048 = vmatprep.mubr.f32.mxu0 %v13846_v37  ;;  %14756 = vst [vmem:[#allocation152_spill] sm:$0xff] %v11310_v61  ;;  %14757 = vst [vmem:[#allocation150_spill] sm:$0xff] %v11313_v53  ;;  %vm5262_vm9 = vcmp.gt.f32.partialorder %v3233_v24, %v14759_v26  ;;  %v14761_v15 = vld [vmem:[#allocation119_spill] sm:$0xff]  ;;  %v14763_v4 = vld [vmem:[#allocation138_spill] sm:$0xff]  ;;  %v3237_v52 = vpop.f32.mrb[208].mxu1  ;;  %v3090_v61 = vpop.f32.mrb[211].mxu0 }
 0x34d   : > { %14758 = vst [vmem:[#allocation84_spill] sm:$0xff] %v11316_v25  ;;  %3875 = vmatprep.mubr.f32.mxu1 %v13846_v37  ;;  %v11321_v6 = vsel %vm5262_vm9, %v3233_v24, %v14759_v26  ;;  %v11324_v20 = vsel %vm5262_vm9, 4, %v14761_v15  ;;  %vm5185_vm4 = vcmp.gt.f32.partialorder %v3088_v16, %v14763_v4  ;;  %v11328_v28 = vld [vmem:[%s7227_s12 + $0x60] sm:$0xff]  ;;  %v14765_v33 = vld [vmem:[#allocation69_spill] sm:$0xff]  ;;  %v14767_v26 = vld [vmem:[#allocation140_spill] sm:$0xff]  ;;  %vm5761_vm6 = vcmp.gt.f32.partialorder %v3090_v61, %v10824_v10  ;;  %v3239_v15 = vpop.f32.mrb[209].mxu1 }
 0x34e   : > { %14760 = vst [vmem:[#allocation166_spill] sm:$0xff] %v11321_v6  ;;  %14762 = vst [vmem:[#allocation169_spill] sm:$0xff] %v11324_v20  ;;  %v11333_v34 = vsel %vm5185_vm4, %v3088_v16, %v14763_v4  ;;  %v11336_v25 = vsel %vm5185_vm4, 3, %v14765_v33  ;;  %vm4687_vm15 = vcmp.gt.f32.partialorder %v3237_v52, %v14767_v26  ;;  %v14768_v20 = vld [vmem:[#allocation48_spill] sm:$0xff]  ;;  %v11350_v4 = vsel %vm5761_vm6, %v3090_v61, %v10824_v10  ;;  %v3094_v53 = vpop.f32.mrb[212].mxu0  ;;  %v14777_v61 = vld [vmem:[#allocation19_spill] sm:$0xff] }
 0x34f   : > { %6574 = vmatmul.mubr.msk.f32.gmra.mrb[60].mxu0 %vm226_vm0, %v11328_v28  ;;  %14764 = vst [vmem:[#allocation190_spill] sm:$0xff] %v11333_v34  ;;  %14766 = vst [vmem:[#allocation32_spill] sm:$0xff] %v11336_v25  ;;  %v11344_v24 = vsel %vm4687_vm15, %v3237_v52, %v14767_v26  ;;  %v11347_v16 = vsel %vm4687_vm15, 4, %v14768_v20  ;;  %v11353_v33 = vsel %vm5761_vm6, 3, %v10826_v23  ;;  %v14771_v6 = vld [vmem:[#allocation8_spill] sm:$0xff]  ;;  %v14773_v25 = vld [vmem:[#allocation161_spill] sm:$0xff] }
 0x350   : > { %6556 = vmatmul.mubr.msk.f32.gmra.mrb[58].mxu1 %vm226_vm0, %v10648_v0  ;;  %4054 = vmatprep.mubr.f32.mxu0 %v13846_v37  ;;  %14769 = vst [vmem:[#allocation105_spill] sm:$0xff] %v11350_v4  ;;  %14770 = vst [vmem:[#allocation157_spill] sm:$0xff] %v11353_v33  ;;  %vm5263_vm8 = vcmp.gt.f32.partialorder %v3239_v15, %v14771_v6  ;;  %v14775_v26 = vld [vmem:[#allocation46_spill] sm:$0xff]  ;;  %v3243_v20 = vpop.f32.mrb[210].mxu1  ;;  %v3096_v34 = vpop.f32.mrb[213].mxu0  ;;  %v11365_v10 = vld [vmem:[%s7227_s12 + $0x68] sm:$0xff] }
 0x351   : > { %3881 = vmatprep.mubr.f32.mxu1 %v13846_v37  ;;  %v11358_v0 = vsel %vm5263_vm8, %v3239_v15, %v14771_v6  ;;  %v11361_v52 = vsel %vm5263_vm8, 4, %v14773_v25  ;;  %vm5186_vm11 = vcmp.gt.f32.partialorder %v3094_v53, %v14775_v26  ;;  %v14779_v6 = vld [vmem:[#allocation143_spill] sm:$0xff]  ;;  %vm5762_vm2 = vcmp.gt.f32.partialorder %v3096_v34, %v10864_v3  ;;  %v3245_v25 = vpop.f32.mrb[211].mxu1  ;;  %v3100_v4 = vpop.f32.mrb[214].mxu0 }
 0x352   : > { %14772 = vst [vmem:[#allocation155_spill] sm:$0xff] %v11358_v0  ;;  %14774 = vst [vmem:[#allocation107_spill] sm:$0xff] %v11361_v52  ;;  %v11370_v23 = vsel %vm5186_vm11, %v3094_v53, %v14775_v26  ;;  %v11373_v33 = vsel %vm5186_vm11, 3, %v14777_v61  ;;  %vm4688_vm5 = vcmp.gt.f32.partialorder %v3243_v20, %v14779_v6  ;;  %v14780_v52 = vld [vmem:[#allocation50_spill] sm:$0xff]  ;;  %v11387_v26 = vsel %vm5762_vm2, %v3096_v34, %v10864_v3  ;;  %v14783_v0 = vld [vmem:[#allocation11_spill] sm:$0xff] }
 0x353   : > { %6575 = vmatmul.mubr.msk.f32.gmra.mrb[62].mxu0 %vm226_vm0, %v11365_v10  ;;  %14776 = vst [vmem:[#allocation175_spill] sm:$0xff] %v11370_v23  ;;  %14778 = vst [vmem:[#allocation106_spill] sm:$0xff] %v11373_v33  ;;  %v11381_v15 = vsel %vm4688_vm5, %v3243_v20, %v14779_v6  ;;  %v11384_v53 = vsel %vm4688_vm5, 4, %v14780_v52  ;;  %v11390_v61 = vsel %vm5762_vm2, 3, %v10866_v9  ;;  %vm5264_vm14 = vcmp.gt.f32.partialorder %v3245_v25, %v14783_v0  ;;  %v14785_v33 = vld [vmem:[#allocation200_spill] sm:$0xff]  ;;  %v3249_v52 = vpop.f32.mrb[212].mxu1 }
 0x354   : > { %6557 = vmatmul.mubr.msk.f32.gmra.mrb[60].mxu1 %vm226_vm0, %v10688_v56  ;;  %4060 = vmatprep.mubr.f32.mxu0 %v13846_v37  ;;  %14781 = vst [vmem:[#allocation171_spill] sm:$0xff] %v11387_v26  ;;  %14782 = vst [vmem:[#allocation110_spill] sm:$0xff] %v11390_v61  ;;  %v11395_v56 = vsel %vm5264_vm14, %v3245_v25, %v14783_v0  ;;  %v11398_v20 = vsel %vm5264_vm14, 4, %v14785_v33  ;;  %v14787_v6 = vld [vmem:[#allocation144_spill] sm:$0xff]  ;;  %v3102_v23 = vpop.f32.mrb[215].mxu0  ;;  %v11402_v3 = vld [vmem:[%s7227_s12 + $0x70] sm:$0xff] }
 0x355   : > { %3887 = vmatprep.mubr.f32.mxu1 %v13846_v37  ;;  %14784 = vst [vmem:[#allocation10_spill] sm:$0xff] %v11395_v56  ;;  %14786 = vst [vmem:[#allocation162_spill] sm:$0xff] %v11398_v20  ;;  %vm5187_vm7 = vcmp.gt.f32.partialorder %v3100_v4, %v14787_v6  ;;  %v14789_v34 = vld [vmem:[#allocation53_spill] sm:$0xff]  ;;  %v14791_v0 = vld [vmem:[#allocation52_spill] sm:$0xff]  ;;  %vm5763_vm13 = vcmp.gt.f32.partialorder %v3102_v23, %v10901_v29  ;;  %v3251_v33 = vpop.f32.mrb[213].mxu1  ;;  %v3106_v26 = vpop.f32.mrb[216].mxu0 }
 0x356   : > { %v11407_v9 = vsel %vm5187_vm7, %v3100_v4, %v14787_v6  ;;  %v11410_v61 = vsel %vm5187_vm7, 3, %v14789_v34  ;;  %vm4689_vm10 = vcmp.gt.f32.partialorder %v3249_v52, %v14791_v0  ;;  %v14792_v20 = vld [vmem:[#allocation23_spill] sm:$0xff]  ;;  %v11424_v6 = vsel %vm5763_vm13, %v3102_v23, %v10901_v29  ;;  %v14795_v56 = vld [vmem:[#allocation14_spill] sm:$0xff] }
 0x357   : > { %6576 = vmatmul.mubr.msk.f32.gmra.mrb[64].mxu0 %vm226_vm0, %v11402_v3  ;;  %14788 = vst [vmem:[#allocation160_spill] sm:$0xff] %v11407_v9  ;;  %14790 = vst [vmem:[#allocation112_spill] sm:$0xff] %v11410_v61  ;;  %v11418_v25 = vsel %vm4689_vm10, %v3249_v52, %v14791_v0  ;;  %v11421_v4 = vsel %vm4689_vm10, 4, %v14792_v20  ;;  %v11427_v34 = vsel %vm5763_vm13, 3, %v10903_v49  ;;  %vm5265_vm3 = vcmp.gt.f32.partialorder %v3251_v33, %v14795_v56  ;;  %v14797_v61 = vld [vmem:[#allocation203_spill] sm:$0xff]  ;;  %v14799_v0 = vld [vmem:[#allocation148_spill] sm:$0xff] }
 0x358   : > { %6558 = vmatmul.mubr.msk.f32.gmra.mrb[62].mxu1 %vm226_vm0, %v10728_v27  ;;  %4066 = vmatprep.mubr.f32.mxu0 %v13846_v37  ;;  %14793 = vst [vmem:[#allocation3_spill] sm:$0xff] %v11424_v6  ;;  %14794 = vst [vmem:[#allocation111_spill] sm:$0xff] %v11427_v34  ;;  %v11432_v27 = vsel %vm5265_vm3, %v3251_v33, %v14795_v56  ;;  %v11435_v52 = vsel %vm5265_vm3, 4, %v14797_v61  ;;  %vm5188_vm12 = vcmp.gt.f32.partialorder %v3106_v26, %v14799_v0  ;;  %v3255_v20 = vpop.f32.mrb[214].mxu1  ;;  %v3108_v9 = vpop.f32.mrb[217].mxu0  ;;  %v11439_v29 = vld [vmem:[%s7227_s12 + $0x78] sm:$0xff] }
 0x359   : > { %3893 = vmatprep.mubr.f32.mxu1 %v13846_v37  ;;  %14796 = vst [vmem:[#allocation177_spill] sm:$0xff] %v11432_v27  ;;  %14798 = vst [vmem:[#allocation115_spill] sm:$0xff] %v11435_v52  ;;  %v11444_v49 = vsel %vm5188_vm12, %v3106_v26, %v14799_v0  ;;  %v14800_v23 = vld [vmem:[#allocation58_spill] sm:$0xff]  ;;  %v14801_v56 = vld [vmem:[#allocation55_spill] sm:$0xff]  ;;  %vm5764_vm9 = vcmp.gt.f32.partialorder %v3108_v9, %v10938_v45  ;;  %v3257_v61 = vpop.f32.mrb[215].mxu1  ;;  %v3112_v27 = vpop.f32.mrb[218].mxu0 }
 0x35a   : > { %v11447_v34 = vsel %vm5188_vm12, 3, %v14800_v23  ;;  %vm4690_vm1 = vcmp.gt.f32.partialorder %v3255_v20, %v14801_v56  ;;  %v14802_v52 = vld [vmem:[#allocation27_spill] sm:$0xff]  ;;  %v11461_v0 = vsel %vm5764_vm9, %v3108_v9, %v10938_v45  ;;  %v11464_v23 = vsel %vm5764_vm9, 3, %v10940_v44  ;;  %v3114_v6 = vpop.f32.mrb[219].mxu0 }
 0x35b   : > { %6577 = vmatmul.mubr.msk.f32.gmra.mrb[66].mxu0 %vm226_vm0, %v11439_v29  ;;  %v11455_v33 = vsel %vm4690_vm1, %v3255_v20, %v14801_v56  ;;  %v11458_v26 = vsel %vm4690_vm1, 4, %v14802_v52  ;;  %14803 = vst [vmem:[#allocation96_spill] sm:$0xff] %v11461_v0  ;;  %14804 = vst [vmem:[#allocation70_spill] sm:$0xff] %v11464_v23  ;;  %vm5266_vm4 = vcmp.gt.f32.partialorder %v3257_v61, %v10774_v8  ;;  %v14807_v56 = vld [vmem:[#allocation153_spill] sm:$0xff]  ;;  %v3261_v52 = vpop.f32.mrb[216].mxu1  ;;  %v11476_v45 = vld [vmem:[%s7227_s12 + $0x80] sm:$0xff] }
 0x35c   : > { %6559 = vmatmul.mubr.msk.f32.gmra.mrb[64].mxu1 %vm226_vm0, %v10768_v60  ;;  %4072 = vmatprep.mubr.f32.mxu0 %v13846_v37  ;;  %v11469_v60 = vsel %vm5266_vm4, %v3257_v61, %v10774_v8  ;;  %v11472_v20 = vsel %vm5266_vm4, 4, %v10777_v46  ;;  %vm5189_vm15 = vcmp.gt.f32.partialorder %v3112_v27, %v14807_v56  ;;  %v14808_v9 = vld [vmem:[#allocation63_spill] sm:$0xff]  ;;  %v14809_v8 = vld [vmem:[#allocation60_spill] sm:$0xff]  ;;  %vm5765_vm8 = vcmp.gt.f32.partialorder %v3114_v6, %v10975_v17  ;;  %v3263_v46 = vpop.f32.mrb[217].mxu1 }
 0x35d   : > { %3899 = vmatprep.mubr.f32.mxu1 %v13846_v37  ;;  %14805 = vst [vmem:[#allocation13_spill] sm:$0xff] %v11469_v60  ;;  %14806 = vst [vmem:[#allocation116_spill] sm:$0xff] %v11472_v20  ;;  %v11481_v44 = vsel %vm5189_vm15, %v3112_v27, %v14807_v56  ;;  %v11484_v23 = vsel %vm5189_vm15, 3, %v14808_v9  ;;  %vm4691_vm6 = vcmp.gt.f32.partialorder %v3261_v52, %v14809_v8  ;;  %v14810_v20 = vld [vmem:[#allocation31_spill] sm:$0xff]  ;;  %v11501_v9 = vsel %vm5765_vm8, 3, %v10977_v1  ;;  %v3118_v60 = vpop.f32.mrb[220].mxu0 }
 0x35e   : > { %v11492_v61 = vsel %vm4691_vm6, %v3261_v52, %v14809_v8  ;;  %v11495_v27 = vsel %vm4691_vm6, 4, %v14810_v20  ;;  %v11498_v56 = vsel %vm5765_vm8, %v3114_v6, %v10975_v17  ;;  %14812 = vst [vmem:[#allocation183_spill] sm:$0xff] %v11501_v9  ;;  %vm5267_vm11 = vcmp.gt.f32.partialorder %v3263_v46, %v10814_v58  ;;  %v14815_v8 = vld [vmem:[#allocation89_spill] sm:$0xff]  ;;  %v3267_v20 = vpop.f32.mrb[218].mxu1  ;;  %v3120_v17 = vpop.f32.mrb[221].mxu0  ;;  %v11513_v6 = vld [vmem:[%s7227_s12 + $0x88] sm:$0xff] }
 0x35f   : > { %6578 = vmatmul.mubr.msk.f32.gmra.mrb[68].mxu0 %vm226_vm0, %v11476_v45  ;;  %14811 = vst [vmem:[#allocation189_spill] sm:$0xff] %v11498_v56  ;;  %v11509_v52 = vsel %vm5267_vm11, 4, %v10817_v12  ;;  %vm5190_vm5 = vcmp.gt.f32.partialorder %v3118_v60, %v14815_v8  ;;  %v14816_v9 = vld [vmem:[#allocation158_spill] sm:$0xff]  ;;  %vm5766_vm14 = vcmp.gt.f32.partialorder %v3120_v17, %v11012_v59  ;;  %v3269_v12 = vpop.f32.mrb[219].mxu1 }
 0x360   : > { %6560 = vmatmul.mubr.msk.f32.gmra.mrb[66].mxu1 %vm226_vm0, %v10808_v57  ;;  %4078 = vmatprep.mubr.f32.mxu0 %v13846_v37  ;;  %v11506_v57 = vsel %vm5267_vm11, %v3263_v46, %v10814_v58  ;;  %14814 = vst [vmem:[#allocation49_spill] sm:$0xff] %v11509_v52  ;;  %v11518_v1 = vsel %vm5190_vm5, %v3118_v60, %v14815_v8  ;;  %v11521_v56 = vsel %vm5190_vm5, 3, %v14816_v9  ;;  %v14817_v58 = vld [vmem:[#allocation68_spill] sm:$0xff]  ;;  %v14818_v52 = vld [vmem:[#allocation65_spill] sm:$0xff]  ;;  %v11538_v8 = vsel %vm5766_vm14, 3, %v11014_v38 }
 0x361   : > { %3905 = vmatprep.mubr.f32.mxu1 %v13846_v37  ;;  %14813 = vst [vmem:[#allocation120_spill] sm:$0xff] %v11506_v57  ;;  %vm4692_vm2 = vcmp.gt.f32.partialorder %v3267_v20, %v14817_v58  ;;  %v11535_v9 = vsel %vm5766_vm14, %v3120_v17, %v11012_v59  ;;  %14820 = vst [vmem:[#allocation99_spill] sm:$0xff] %v11538_v8  ;;  %v6995_v57 = vld [vmem:[%s7227_s12] sm:$0xff]  ;;  %vm5268_vm7 = vcmp.gt.f32.partialorder %v3269_v12, %v10854_v47  ;;  %v3273_v59 = vpop.f32.mrb[220].mxu1  ;;  %v11551_v38 = vld [vmem:[%s7227_s12 + $0x90] sm:$0xff] }
 0x362   : > { %v11529_v46 = vsel %vm4692_vm2, %v3267_v20, %v14817_v58  ;;  %v11532_v60 = vsel %vm4692_vm2, 4, %v14818_v52  ;;  %14819 = vst [vmem:[#allocation165_spill] sm:$0xff] %v11535_v9  ;;  %v11544_v0 = vsel %vm5268_vm7, %v3269_v12, %v10854_v47  ;;  %v11547_v20 = vsel %vm5268_vm7, 4, %v10857_v30  ;;  %v14823_v52 = vld [vmem:[#allocation94_spill] sm:$0xff]  ;;  %v14825_v58 = vld [vmem:[#allocation163_spill] sm:$0xff]  ;;  %v14827_v47 = vld [vmem:[#allocation73_spill] sm:$0xff] }
 0x363   : > { %6579 = vmatmul.mubr.msk.f32.gmra.mrb[70].mxu0 %vm226_vm0, %v11513_v6  ;;  %14821 = vst [vmem:[#allocation168_spill] sm:$0xff] %v11544_v0  ;;  %14822 = vst [vmem:[#allocation185_spill] sm:$0xff] %v11547_v20  ;;  %vm4693_vm13 = vcmp.gt.f32.partialorder %v3273_v59, %v14827_v47  ;;  %v3275_v30 = vpop.f32.mrb[221].mxu1  ;;  %v6997_v12 = vld [vmem:[%s7227_s12 + $0x8] sm:$0xff]  ;;  %v14828_v0 = vld [vmem:[#allocation7_spill] sm:$0xff] }
 0x364   : > { %6561 = vmatmul.mubr.msk.f32.gmra.mrb[68].mxu1 %vm226_vm0, %v10848_v40  ;;  %4084 = vmatprep.mubr.f32.mxu0 %v13846_v37  ;;  %v3124_v40 = vpop.f32.mrb[222].mxu0  ;;  %v11567_v20 = vsel %vm4693_vm13, %v3273_v59, %v14827_v47  ;;  %v6998_v9 = vld [vmem:[%s7227_s12 + $0x10] sm:$0xff]  ;;  %vm5269_vm12 = vcmp.gt.f32.partialorder %v3275_v30, %v10891_v41 }
 0x365   : > { %6743 = vmatprep.mubr.msk.f32.mxu1 %vm226_vm0, %v6995_v57  ;;  %vm5191_vm10 = vcmp.gt.f32.partialorder %v3124_v40, %v14823_v52  ;;  %v3126_v17 = vpop.f32.mrb[223].mxu0  ;;  %v14832_v59 = vld [vmem:[#allocation57_spill] sm:$0xff] }
 0x366   : > { %v11556_v57 = vsel %vm5191_vm10, %v3124_v40, %v14823_v52  ;;  %v11559_v8 = vsel %vm5191_vm10, 3, %v14825_v58  ;;  %vm5767_vm3 = vcmp.gt.f32.partialorder %v3126_v17, %v11049_v39  ;;  %v11570_v40 = vsel %vm4693_vm13, 4, %v14828_v0  ;;  %v14834_v0 = vld [vmem:[#allocation167_spill] sm:$0xff] }
 0x367   : > { %6580 = vmatmul.mubr.msk.f32.gmra.mrb[72].mxu0 %vm226_vm0, %v11551_v38  ;;  %14824 = vst [vmem:[#allocation124_spill] sm:$0xff] %v11556_v57  ;;  %14826 = vst [vmem:[#allocation54_spill] sm:$0xff] %v11559_v8  ;;  %v11573_v52 = vsel %vm5767_vm3, %v3126_v17, %v11049_v39  ;;  %v11576_v58 = vsel %vm5767_vm3, 3, %v11051_v48  ;;  %v11582_v8 = vsel %vm5269_vm12, %v3275_v30, %v10891_v41  ;;  %v11585_v47 = vsel %vm5269_vm12, 4, %v14832_v59  ;;  %v3279_v39 = vpop.f32.mrb[222].mxu1  ;;  %v11589_v48 = vld [vmem:[%s7227_s12 + $0x98] sm:$0xff] }
 0x368   : > { %6744 = vmatmul.mubr.msk.f32.vlgmr.msra.gmra.mrb[70].mxu1 %vm226_vm0, %v6997_v12  ;;  %4090 = vmatprep.mubr.f32.mxu0 %v13846_v37  ;;  %14829 = vst [vmem:[#allocation126_spill] sm:$0xff] %v11573_v52  ;;  %14830 = vst [vmem:[#allocation172_spill] sm:$0xff] %v11576_v58  ;;  %v3130_v12 = vpop.f32.mrb[224].mxu0  ;;  %v14836_v58 = vld [vmem:[#allocation26_spill] sm:$0xff]  ;;  %v14838_v41 = vld [vmem:[#allocation75_spill] sm:$0xff]  ;;  %v3281_v30 = vpop.f32.mrb[223].mxu1 }
 0x369   : > { %6746 = vmatprep.mubr.msk.f32.mxu1 %vm226_vm0, %v6998_v9  ;;  %14831 = vst [vmem:[#allocation125_spill] sm:$0xff] %v11582_v8  ;;  %14833 = vst [vmem:[#allocation100_spill] sm:$0xff] %v11585_v47  ;;  %vm5192_vm1 = vcmp.gt.f32.partialorder %v3130_v12, %v14834_v0  ;;  %v3132_v17 = vpop.f32.mrb[225].mxu0  ;;  %vm4694_vm9 = vcmp.gt.f32.partialorder %v3279_v39, %v14838_v41  ;;  %v7000_v59 = vld [vmem:[%s7227_s12 + $0x18] sm:$0xff]  ;;  %v14839_v8 = vld [vmem:[#allocation12_spill] sm:$0xff]  ;;  %vm5270_vm15 = vcmp.gt.f32.partialorder %v3281_v30, %v10928_v32 }
 0x36a   : > { %v11594_v9 = vsel %vm5192_vm1, %v3130_v12, %v14834_v0  ;;  %v11597_v52 = vsel %vm5192_vm1, 3, %v14836_v58  ;;  %vm5768_vm4 = vcmp.gt.f32.partialorder %v3132_v17, %v11086_v43  ;;  %v11605_v47 = vsel %vm4694_vm9, %v3279_v39, %v14838_v41  ;;  %v14843_v39 = vld [vmem:[#allocation192_spill] sm:$0xff]  ;;  %v14856_v57 = vld [vmem:[#allocation15_spill] sm:$0xff] }
 0x36b   : > { %6581 = vmatmul.mubr.msk.f32.gmra.mrb[74].mxu0 %vm226_vm0, %v11589_v48  ;;  %14835 = vst [vmem:[#allocation80_spill] sm:$0xff] %v11594_v9  ;;  %14837 = vst [vmem:[#allocation35_spill] sm:$0xff] %v11597_v52  ;;  %v11608_v12 = vsel %vm4694_vm9, 4, %v14839_v8  ;;  %v11611_v58 = vsel %vm5768_vm4, %v3132_v17, %v11086_v43  ;;  %v11614_v0 = vsel %vm5768_vm4, 3, %v11088_v11  ;;  %v7001_v52 = vld [vmem:[%s7227_s12 + $0x20] sm:$0xff]  ;;  %v11620_v9 = vsel %vm5270_vm15, %v3281_v30, %v10928_v32  ;;  %v14845_v8 = vld [vmem:[#allocation78_spill] sm:$0xff] }
 0x36c   : > { %6747 = vmatmul.mubr.msk.f32.gmra.mrb[72].mxu1 %vm226_vm0, %v7000_v59  ;;  %4096 = vmatprep.mubr.f32.mxu0 %v13846_v37  ;;  %14840 = vst [vmem:[#allocation37_spill] sm:$0xff] %v11611_v58  ;;  %14841 = vst [vmem:[#allocation128_spill] sm:$0xff] %v11614_v0  ;;  %v3136_v59 = vpop.f32.mrb[226].mxu0  ;;  %v11623_v41 = vsel %vm5270_vm15, 4, %v14843_v39  ;;  %v3285_v43 = vpop.f32.mrb[224].mxu1  ;;  %v11627_v11 = vld [vmem:[%s7227_s12 + $0xa0] sm:$0xff] }
 0x36d   : > { %6749 = vmatprep.mubr.msk.f32.mxu1 %vm226_vm0, %v7001_v52  ;;  %14842 = vst [vmem:[#allocation83_spill] sm:$0xff] %v11620_v9  ;;  %14844 = vst [vmem:[#allocation59_spill] sm:$0xff] %v11623_v41  ;;  %vm5193_vm6 = vcmp.gt.f32.partialorder %v3136_v59, %v14845_v8  ;;  %v3138_v17 = vpop.f32.mrb[227].mxu0  ;;  %v14847_v0 = vld [vmem:[#allocation101_spill] sm:$0xff]  ;;  %v3287_v30 = vpop.f32.mrb[225].mxu1  ;;  %v7003_v39 = vld [vmem:[%s7227_s12 + $0x28] sm:$0xff] }
 0x36e   : > { %v11632_v52 = vsel %vm5193_vm6, %v3136_v59, %v14845_v8  ;;  %v11635_v58 = vsel %vm5193_vm6, 3, %v14847_v0  ;;  %v14849_v32 = vld [vmem:[#allocation77_spill] sm:$0xff]  ;;  %vm5769_vm11 = vcmp.gt.f32.partialorder %v3138_v17, %v11123_v18  ;;  %v14850_v9 = vld [vmem:[#allocation16_spill] sm:$0xff]  ;;  %vm5271_vm5 = vcmp.gt.f32.partialorder %v3287_v30, %v10965_v14 }
 0x36f   : > { %6582 = vmatmul.mubr.msk.f32.gmra.mrb[76].mxu0 %vm226_vm0, %v11627_v11  ;;  %14846 = vst [vmem:[#allocation82_spill] sm:$0xff] %v11632_v52  ;;  %14848 = vst [vmem:[#allocation174_spill] sm:$0xff] %v11635_v58  ;;  %vm4695_vm8 = vcmp.gt.f32.partialorder %v3285_v43, %v14849_v32  ;;  %v11649_v0 = vsel %vm5769_vm11, %v3138_v17, %v11123_v18  ;;  %v11652_v8 = vsel %vm5769_vm11, 3, %v11125_v62  ;;  %v7004_v58 = vld [vmem:[%s7227_s12 + $0x30] sm:$0xff]  ;;  %v11665_v17 = vld [vmem:[%s7227_s12 + $0xa8] sm:$0xff] }
 0x370   : > { %6750 = vmatmul.mubr.msk.f32.gmra.mrb[74].mxu1 %vm226_vm0, %v7003_v39  ;;  %4102 = vmatprep.mubr.f32.mxu0 %v13846_v37  ;;  %v11643_v41 = vsel %vm4695_vm8, %v3285_v43, %v14849_v32  ;;  %v11646_v59 = vsel %vm4695_vm8, 4, %v14850_v9  ;;  %14851 = vst [vmem:[#allocation198_spill] sm:$0xff] %v11649_v0  ;;  %14852 = vst [vmem:[#allocation131_spill] sm:$0xff] %v11652_v8  ;;  %v3464_v39 = vpop.f32.mrb[228].mxu0  ;;  %v11658_v52 = vsel %vm5271_vm5, %v3287_v30, %v10965_v14  ;;  %v14854_v43 = vld [vmem:[#allocation212_spill] sm:$0xff]  ;;  %v3291_v9 = vpop.f32.mrb[226].mxu1 }
 0x371   : > { %6752 = vmatprep.mubr.msk.f32.mxu1 %vm226_vm0, %v7004_v58  ;;  %14853 = vst [vmem:[#allocation134_spill] sm:$0xff] %v11658_v52  ;;  %v11661_v32 = vsel %vm5271_vm5, 4, %v14854_v43  ;;  %vm5834_vm2 = vcmp.gt.f32.partialorder %v3464_v39, %v14856_v57  ;;  %v3466_v18 = vpop.f32.mrb[229].mxu0  ;;  %v14857_v62 = vld [vmem:[#allocation170_spill] sm:$0xff]  ;;  %v14858_v8 = vld [vmem:[#allocation173_spill] sm:$0xff]  ;;  %v3293_v30 = vpop.f32.mrb[227].mxu1 }
 0x372   : > { %14855 = vst [vmem:[#allocation109_spill] sm:$0xff] %v11661_v32  ;;  %vm4696_vm14 = vcmp.gt.f32.partialorder %v3291_v9, %v14857_v62  ;;  %v11671_v58 = vsel %vm5834_vm2, %v3464_v39, %v14856_v57  ;;  %v11674_v14 = vsel %vm5834_vm2, 4, %v14858_v8  ;;  %vm4778_vm7 = vcmp.gt.f32.partialorder %v3466_v18, %v11159_v7  ;;  %v14860_v32 = vld [vmem:[#allocation104_spill] sm:$0xff]  ;;  %v3470_v39 = vpop.f32.mrb[230].mxu0 }
 0x373   : > { %6583 = vmatmul.mubr.msk.f32.gmra.mrb[78].mxu0 %vm226_vm0, %v11665_v17  ;;  %14859 = vst [vmem:[#allocation40_spill] sm:$0xff] %v11674_v14  ;;  %v11681_v43 = vsel %vm4696_vm14, %v3291_v9, %v14857_v62  ;;  %v11684_v52 = vsel %vm4696_vm14, 4, %v14860_v32  ;;  %vm5272_vm10 = vcmp.gt.f32.partialorder %v3293_v30, %v11002_v42  ;;  %v11690_v57 = vsel %vm4778_vm7, %v3466_v18, %v11159_v7  ;;  %v3297_v32 = vpop.f32.mrb[228].mxu1  ;;  %v14865_v62 = vld [vmem:[#allocation178_spill] sm:$0xff]  ;;  %v3472_v0 = vpop.f32.mrb[231].mxu0  ;;  %v11703_v14 = vld [vmem:[%s7227_s12 + $0xb0] sm:$0xff] }
 0x374   : > { %6753 = vmatmul.mubr.msk.f32.gmra.mrb[76].mxu1 %vm226_vm0, %v11143_v22  ;;  %4108 = vmatprep.mubr.f32.mxu0 %v13846_v37  ;;  %14861 = vst [vmem:[#allocation179_spill] sm:$0xff] %v11690_v57  ;;  %v11693_v8 = vsel %vm5272_vm10, %v3293_v30, %v11002_v42  ;;  %v11696_v22 = vsel %vm5272_vm10, 4, %v11005_v2  ;;  %v11699_v9 = vsel %vm4778_vm7, 5, %v11162_v50  ;;  %vm5835_vm13 = vcmp.gt.f32.partialorder %v3470_v39, %v14865_v62  ;;  %v14866_v7 = vld [vmem:[#allocation85_spill] sm:$0xff]  ;;  %v14867_v2 = vld [vmem:[#allocation176_spill] sm:$0xff]  ;;  %v3299_v18 = vpop.f32.mrb[229].mxu1 }
 0x375   : > { %6755 = vmatprep.mubr.msk.f32.mxu1 %vm226_vm0, %v11180_v31  ;;  %14862 = vst [vmem:[#allocation88_spill] sm:$0xff] %v11693_v8  ;;  %14863 = vst [vmem:[#allocation64_spill] sm:$0xff] %v11696_v22  ;;  %vm4697_vm3 = vcmp.gt.f32.partialorder %v3297_v32, %v14866_v7  ;;  %v11709_v42 = vsel %vm5835_vm13, %v3470_v39, %v14865_v62  ;;  %v11712_v31 = vsel %vm5835_vm13, 4, %v14867_v2  ;;  %v14868_v30 = vld [vmem:[#allocation18_spill] sm:$0xff] }
 0x376   : > { %14864 = vst [vmem:[#allocation135_spill] sm:$0xff] %v11699_v9  ;;  %vm4779_vm12 = vcmp.gt.f32.partialorder %v3472_v0, %v11196_v54  ;;  %v11719_v50 = vsel %vm4697_vm3, %v3297_v32, %v14866_v7  ;;  %v11722_v22 = vsel %vm4697_vm3, 4, %v14868_v30  ;;  %vm5273_vm1 = vcmp.gt.f32.partialorder %v3299_v18, %v11039_v35  ;;  %v3476_v9 = vpop.f32.mrb[232].mxu0  ;;  %v3303_v7 = vpop.f32.mrb[230].mxu1  ;;  %v14874_v30 = vld [vmem:[#allocation87_spill] sm:$0xff]  ;;  %v11741_v57 = vld [vmem:[%s7227_s12 + $0xb8] sm:$0xff] }
 0x377   : > { %6584 = vmatmul.mubr.msk.f32.gmra.mrb[80].mxu0 %vm226_vm0, %v11703_v14  ;;  %v11728_v39 = vsel %vm4779_vm12, %v3472_v0, %v11196_v54  ;;  %v11731_v62 = vsel %vm5273_vm1, %v3299_v18, %v11039_v35  ;;  %v11737_v32 = vsel %vm4779_vm12, 5, %v11199_v19  ;;  %vm5836_vm9 = vcmp.gt.f32.partialorder %v3476_v9, %v14874_v30  ;;  %v3478_v8 = vpop.f32.mrb[233].mxu0  ;;  %v14875_v54 = vld [vmem:[#allocation4_spill] sm:$0xff]  ;;  %v3305_v18 = vpop.f32.mrb[231].mxu1 }
 0x378   : > { %6756 = vmatmul.mubr.msk.f32.gmra.mrb[78].mxu1 %vm226_vm0, %v11217_v21  ;;  %4114 = vmatprep.mubr.f32.mxu0 %v13846_v37  ;;  %14869 = vst [vmem:[#allocation43_spill] sm:$0xff] %v11728_v39  ;;  %14870 = vst [vmem:[#allocation90_spill] sm:$0xff] %v11731_v62  ;;  %v14871_v21 = vld [vmem:[#allocation38_spill] sm:$0xff]  ;;  %vm4698_vm4 = vcmp.gt.f32.partialorder %v3303_v7, %v14875_v54  ;;  %v11747_v35 = vsel %vm5836_vm9, %v3476_v9, %v14874_v30  ;;  %v14885_v62 = vld [vmem:[#allocation93_spill] sm:$0xff] }
 0x379   : > { %6758 = vmatprep.mubr.msk.f32.mxu1 %vm226_vm0, %v11254_v63  ;;  %v11734_v2 = vsel %vm5273_vm1, 4, %v14871_v21  ;;  %14873 = vst [vmem:[#allocation182_spill] sm:$0xff] %v11737_v32  ;;  %v14876_v63 = vld [vmem:[#allocation5_spill] sm:$0xff]  ;;  %vm4780_vm15 = vcmp.gt.f32.partialorder %v3478_v8, %v11233_v55  ;;  %v11757_v19 = vsel %vm4698_vm4, %v3303_v7, %v14875_v54  ;;  %v14878_v21 = vld [vmem:[#allocation184_spill] sm:$0xff]  ;;  %vm5274_vm6 = vcmp.gt.f32.partialorder %v3305_v18, %v11076_v51  ;;  %v3482_v32 = vpop.f32.mrb[234].mxu0  ;;  %v14883_v7 = vld [vmem:[#allocation74_spill] sm:$0xff] }
 0x37a   : > { %14872 = vst [vmem:[#allocation201_spill] sm:$0xff] %v11734_v2  ;;  %v11750_v0 = vsel %vm5836_vm9, 4, %v14876_v63  ;;  %v11760_v2 = vsel %vm4698_vm4, 4, %v14878_v21  ;;  %v11766_v9 = vsel %vm4780_vm15, %v3478_v8, %v11233_v55  ;;  %v11769_v30 = vsel %vm5274_vm6, %v3305_v18, %v11076_v51  ;;  %v3309_v21 = vpop.f32.mrb[232].mxu1  ;;  %v3484_v39 = vpop.f32.mrb[235].mxu0  ;;  %v14886_v55 = vld [vmem:[#allocation22_spill] sm:$0xff] }
 0x37b   : > { %6585 = vmatmul.mubr.msk.f32.gmra.mrb[82].mxu0 %vm226_vm0, %v11741_v57  ;;  %14877 = vst [vmem:[#allocation114_spill] sm:$0xff] %v11750_v0  ;;  %14879 = vst [vmem:[#allocation136_spill] sm:$0xff] %v11766_v9  ;;  %v11775_v54 = vsel %vm4780_vm15, 5, %v14883_v7  ;;  %vm5837_vm8 = vcmp.gt.f32.partialorder %v3482_v32, %v14885_v62  ;;  %v11779_v0 = vld [vmem:[%s7227_s12 + $0xc0] sm:$0xff]  ;;  %vm4699_vm11 = vcmp.gt.f32.partialorder %v3309_v21, %v14886_v55  ;;  %v3311_v18 = vpop.f32.mrb[233].mxu1  ;;  %v14890_v7 = vld [vmem:[#allocation188_spill] sm:$0xff] }
 0x37c   : > { %6759 = vmatmul.mubr.msk.f32.gmra.mrb[80].mxu1 %vm226_vm0, %v11291_v5  ;;  %4120 = vmatprep.mubr.f32.mxu0 %v13846_v37  ;;  %14880 = vst [vmem:[#allocation139_spill] sm:$0xff] %v11769_v30  ;;  %v14881_v5 = vld [vmem:[#allocation214_spill] sm:$0xff]  ;;  %14884 = vst [vmem:[#allocation6_spill] sm:$0xff] %v11775_v54  ;;  %v11785_v51 = vsel %vm5837_vm8, %v3482_v32, %v14885_v62  ;;  %vm4781_vm5 = vcmp.gt.f32.partialorder %v3484_v39, %v11270_v36  ;;  %v14891_v62 = vld [vmem:[#allocation215_spill] sm:$0xff]  ;;  %v3488_v30 = vpop.f32.mrb[236].mxu0 }
 0x37d   : > { %6761 = vmatprep.mubr.msk.f32.mxu1 %vm226_vm0, %v11328_v28  ;;  %v11772_v63 = vsel %vm5274_vm6, 4, %v14881_v5  ;;  %14887 = vst [vmem:[#allocation47_spill] sm:$0xff] %v11785_v51  ;;  %v14888_v28 = vld [vmem:[#allocation193_spill] sm:$0xff]  ;;  %v11795_v5 = vsel %vm4699_vm11, %v3309_v21, %v14886_v55  ;;  %vm5275_vm2 = vcmp.gt.f32.partialorder %v3311_v18, %v14891_v62  ;;  %v11804_v32 = vsel %vm4781_vm5, %v3484_v39, %v11270_v36  ;;  %v14896_v21 = vld [vmem:[#allocation146_spill] sm:$0xff]  ;;  %v11817_v51 = vld [vmem:[%s7227_s12 + $0xc8] sm:$0xff] }
 0x37e   : > { %14882 = vst [vmem:[#allocation45_spill] sm:$0xff] %v11772_v63  ;;  %v11788_v8 = vsel %vm5837_vm8, 4, %v14888_v28  ;;  %v11798_v63 = vsel %vm4699_vm11, 4, %v14890_v7  ;;  %14892 = vst [vmem:[#allocation119_spill] sm:$0xff] %v11804_v32  ;;  %v11807_v28 = vsel %vm5275_vm2, %v3311_v18, %v14891_v62  ;;  %v11813_v55 = vsel %vm4781_vm5, 5, %v14896_v21  ;;  %v3315_v7 = vpop.f32.mrb[234].mxu1 }
 0x37f   : > { %6586 = vmatmul.mubr.msk.f32.gmra.mrb[84].mxu0 %vm226_vm0, %v11779_v0  ;;  %14889 = vst [vmem:[#allocation191_spill] sm:$0xff] %v11788_v8  ;;  %14893 = vst [vmem:[#allocation138_spill] sm:$0xff] %v11807_v28  ;;  %v14898_v9 = vld [vmem:[#allocation194_spill] sm:$0xff]  ;;  %v3490_v8 = vpop.f32.mrb[237].mxu0  ;;  %v14901_v39 = vld [vmem:[#allocation197_spill] sm:$0xff]  ;;  %v3317_v62 = vpop.f32.mrb[235].mxu1 }
 0x380   : > { %6762 = vmatmul.mubr.msk.f32.gmra.mrb[82].mxu1 %vm226_vm0, %v11365_v10  ;;  %4126 = vmatprep.mubr.f32.mxu0 %v13846_v37  ;;  %v14894_v10 = vld [vmem:[#allocation216_spill] sm:$0xff]  ;;  %14897 = vst [vmem:[#allocation140_spill] sm:$0xff] %v11813_v55  ;;  %vm5838_vm14 = vcmp.gt.f32.partialorder %v3488_v30, %v14898_v9  ;;  %v14899_v36 = vld [vmem:[#allocation98_spill] sm:$0xff]  ;;  %vm4782_vm10 = vcmp.gt.f32.partialorder %v3490_v8, %v11307_v13  ;;  %v3494_v28 = vpop.f32.mrb[238].mxu0  ;;  %v14911_v32 = vld [vmem:[#allocation181_spill] sm:$0xff] }
 0x381   : > { %6764 = vmatprep.mubr.msk.f32.mxu1 %vm226_vm0, %v11402_v3  ;;  %v11810_v54 = vsel %vm5275_vm2, 4, %v14894_v10  ;;  %vm4700_vm7 = vcmp.gt.f32.partialorder %v3315_v7, %v14899_v36  ;;  %v11823_v3 = vsel %vm5838_vm14, %v3488_v30, %v14898_v9  ;;  %v11826_v18 = vsel %vm5838_vm14, 4, %v14901_v39  ;;  %v14903_v21 = vld [vmem:[#allocation24_spill] sm:$0xff]  ;;  %v14904_v9 = vld [vmem:[#allocation219_spill] sm:$0xff] }
 0x382   : > { %14895 = vst [vmem:[#allocation69_spill] sm:$0xff] %v11810_v54  ;;  %14900 = vst [vmem:[#allocation48_spill] sm:$0xff] %v11823_v3  ;;  %v11833_v10 = vsel %vm4700_vm7, %v3315_v7, %v14899_v36  ;;  %v11836_v54 = vsel %vm4700_vm7, 4, %v14903_v21  ;;  %vm5276_vm13 = vcmp.gt.f32.partialorder %v3317_v62, %v14904_v9  ;;  %v11842_v30 = vsel %vm4782_vm10, %v3490_v8, %v11307_v13  ;;  %v14909_v7 = vld [vmem:[#allocation152_spill] sm:$0xff]  ;;  %v3321_v21 = vpop.f32.mrb[236].mxu1  ;;  %v11855_v3 = vld [vmem:[%s7227_s12 + $0xd0] sm:$0xff] }
 0x383   : > { %6587 = vmatmul.mubr.msk.f32.gmra.mrb[86].mxu0 %vm226_vm0, %v11817_v51  ;;  %14902 = vst [vmem:[#allocation8_spill] sm:$0xff] %v11826_v18  ;;  %14905 = vst [vmem:[#allocation161_spill] sm:$0xff] %v11842_v30  ;;  %v11845_v39 = vsel %vm5276_vm13, %v3317_v62, %v14904_v9  ;;  %v11851_v36 = vsel %vm4782_vm10, 5, %v14909_v7  ;;  %vm5839_vm3 = vcmp.gt.f32.partialorder %v3494_v28, %v14911_v32  ;;  %v3496_v18 = vpop.f32.mrb[239].mxu0  ;;  %v14912_v13 = vld [vmem:[#allocation199_spill] sm:$0xff]  ;;  %v14913_v8 = vld [vmem:[#allocation36_spill] sm:$0xff] }
 0x384   : > { %6765 = vmatmul.mubr.msk.f32.gmra.mrb[84].mxu1 %vm226_vm0, %v11439_v29  ;;  %4132 = vmatprep.mubr.f32.mxu0 %v13846_v37  ;;  %14906 = vst [vmem:[#allocation46_spill] sm:$0xff] %v11845_v39  ;;  %v14907_v29 = vld [vmem:[#allocation220_spill] sm:$0xff]  ;;  %14910 = vst [vmem:[#allocation143_spill] sm:$0xff] %v11851_v36  ;;  %vm4701_vm12 = vcmp.gt.f32.partialorder %v3321_v21, %v14912_v13  ;;  %v11864_v62 = vsel %vm5839_vm3, 4, %v14913_v8  ;;  %v3323_v9 = vpop.f32.mrb[237].mxu1  ;;  %vm4783_vm1 = vcmp.gt.f32.partialorder %v3496_v18, %v11344_v24  ;;  %v14915_v7 = vld [vmem:[#allocation103_spill] sm:$0xff] }
 0x385   : > { %6767 = vmatprep.mubr.msk.f32.mxu1 %vm226_vm0, %v11476_v45  ;;  %v11848_v55 = vsel %vm5276_vm13, 4, %v14907_v29  ;;  %v11861_v45 = vsel %vm5839_vm3, %v3494_v28, %v14911_v32  ;;  %14914 = vst [vmem:[#allocation50_spill] sm:$0xff] %v11864_v62  ;;  %v11871_v29 = vsel %vm4701_vm12, %v3321_v21, %v14912_v13  ;;  %v14916_v32 = vld [vmem:[#allocation221_spill] sm:$0xff]  ;;  %v11880_v28 = vsel %vm4783_vm1, %v3496_v18, %v11344_v24  ;;  %v3500_v39 = vpop.f32.mrb[240].mxu0  ;;  %v3327_v13 = vpop.f32.mrb[238].mxu1  ;;  %v11893_v62 = vld [vmem:[%s7227_s12 + $0xd8] sm:$0xff] }
 0x386   : > { %14908 = vst [vmem:[#allocation19_spill] sm:$0xff] %v11848_v55  ;;  %v11874_v55 = vsel %vm4701_vm12, 4, %v14915_v7  ;;  %vm5277_vm9 = vcmp.gt.f32.partialorder %v3323_v9, %v14916_v32  ;;  %14917 = vst [vmem:[#allocation11_spill] sm:$0xff] %v11880_v28  ;;  %v11889_v21 = vsel %vm4783_vm1, 5, %v11347_v16  ;;  %v14922_v7 = vld [vmem:[#allocation196_spill] sm:$0xff]  ;;  %v3502_v30 = vpop.f32.mrb[241].mxu0 }
 0x387   : > { %6588 = vmatmul.mubr.msk.f32.gmra.mrb[88].mxu0 %vm226_vm0, %v11855_v3  ;;  %v11883_v8 = vsel %vm5277_vm9, %v3323_v9, %v14916_v32  ;;  %14921 = vst [vmem:[#allocation53_spill] sm:$0xff] %v11889_v21  ;;  %vm5840_vm4 = vcmp.gt.f32.partialorder %v3500_v39, %v14922_v7  ;;  %v14923_v24 = vld [vmem:[#allocation202_spill] sm:$0xff]  ;;  %v14924_v18 = vld [vmem:[#allocation41_spill] sm:$0xff]  ;;  %v3329_v32 = vpop.f32.mrb[239].mxu1  ;;  %vm4784_vm6 = vcmp.gt.f32.partialorder %v3502_v30, %v11381_v15 }
 0x388   : > { %6768 = vmatmul.mubr.msk.f32.gmra.mrb[86].mxu1 %vm226_vm0, %v11513_v6  ;;  %4138 = vmatprep.mubr.f32.mxu0 %v13846_v37  ;;  %14918 = vst [vmem:[#allocation200_spill] sm:$0xff] %v11883_v8  ;;  %v14919_v6 = vld [vmem:[#allocation92_spill] sm:$0xff]  ;;  %vm4702_vm15 = vcmp.gt.f32.partialorder %v3327_v13, %v14923_v24  ;;  %v11902_v9 = vsel %vm5840_vm4, 4, %v14924_v18  ;;  %v3506_v8 = vpop.f32.mrb[242].mxu0 }
 0x389   : > { %6770 = vmatprep.mubr.msk.f32.mxu1 %vm226_vm0, %v11551_v38  ;;  %v11886_v36 = vsel %vm5277_vm9, 4, %v14919_v6  ;;  %v11899_v38 = vsel %vm5840_vm4, %v3500_v39, %v14922_v7  ;;  %14925 = vst [vmem:[#allocation52_spill] sm:$0xff] %v11902_v9  ;;  %v11909_v16 = vsel %vm4702_vm15, %v3327_v13, %v14923_v24  ;;  %v14926_v6 = vld [vmem:[#allocation108_spill] sm:$0xff]  ;;  %v14927_v39 = vld [vmem:[#allocation17_spill] sm:$0xff]  ;;  %v11918_v7 = vsel %vm4784_vm6, %v3502_v30, %v11381_v15  ;;  %v3333_v24 = vpop.f32.mrb[240].mxu1  ;;  %v3508_v28 = vpop.f32.mrb[243].mxu0 }
 0x38a   : > { %14920 = vst [vmem:[#allocation144_spill] sm:$0xff] %v11886_v36  ;;  %v11912_v36 = vsel %vm4702_vm15, 4, %v14926_v6  ;;  %vm5278_vm8 = vcmp.gt.f32.partialorder %v3329_v32, %v14927_v39  ;;  %14928 = vst [vmem:[#allocation23_spill] sm:$0xff] %v11918_v7  ;;  %v11927_v13 = vsel %vm4784_vm6, 5, %v11384_v53  ;;  %v14933_v6 = vld [vmem:[#allocation34_spill] sm:$0xff]  ;;  %v11931_v9 = vld [vmem:[%s7227_s12 + $0xe0] sm:$0xff]  ;;  %vm4785_vm2 = vcmp.gt.f32.partialorder %v3508_v28, %v11418_v25 }
 0x38b   : > { %6589 = vmatmul.mubr.msk.f32.gmra.mrb[90].mxu0 %vm226_vm0, %v11893_v62  ;;  %v11921_v18 = vsel %vm5278_vm8, %v3329_v32, %v14927_v39  ;;  %14932 = vst [vmem:[#allocation148_spill] sm:$0xff] %v11927_v13  ;;  %vm5841_vm11 = vcmp.gt.f32.partialorder %v3506_v8, %v14933_v6  ;;  %v14934_v15 = vld [vmem:[#allocation204_spill] sm:$0xff]  ;;  %v14935_v30 = vld [vmem:[#allocation205_spill] sm:$0xff]  ;;  %v3335_v39 = vpop.f32.mrb[241].mxu1 }
 0x38c   : > { %6771 = vmatmul.mubr.msk.f32.gmra.mrb[88].mxu1 %vm226_vm0, %v11589_v48  ;;  %4144 = vmatprep.mubr.f32.mxu0 %v13846_v37  ;;  %14929 = vst [vmem:[#allocation14_spill] sm:$0xff] %v11921_v18  ;;  %v14930_v48 = vld [vmem:[#allocation142_spill] sm:$0xff]  ;;  %vm4703_vm5 = vcmp.gt.f32.partialorder %v3333_v24, %v14934_v15  ;;  %v11940_v32 = vsel %vm5841_vm11, 4, %v14935_v30  ;;  %v3512_v18 = vpop.f32.mrb[244].mxu0 }
 0x38d   : > { %6773 = vmatprep.mubr.msk.f32.mxu1 %vm226_vm0, %v11627_v11  ;;  %v11924_v21 = vsel %vm5278_vm8, 4, %v14930_v48  ;;  %v11937_v11 = vsel %vm5841_vm11, %v3506_v8, %v14933_v6  ;;  %14936 = vst [vmem:[#allocation58_spill] sm:$0xff] %v11940_v32  ;;  %v11947_v53 = vsel %vm4703_vm5, %v3333_v24, %v14934_v15  ;;  %v14937_v48 = vld [vmem:[#allocation113_spill] sm:$0xff]  ;;  %v14938_v8 = vld [vmem:[#allocation187_spill] sm:$0xff]  ;;  %v11956_v6 = vsel %vm4785_vm2, %v3508_v28, %v11418_v25  ;;  %v3339_v15 = vpop.f32.mrb[242].mxu1  ;;  %v3514_v7 = vpop.f32.mrb[245].mxu0 }
 0x38e   : > { %14931 = vst [vmem:[#allocation203_spill] sm:$0xff] %v11924_v21  ;;  %v11950_v21 = vsel %vm4703_vm5, 4, %v14937_v48  ;;  %vm5279_vm14 = vcmp.gt.f32.partialorder %v3335_v39, %v14938_v8  ;;  %14939 = vst [vmem:[#allocation55_spill] sm:$0xff] %v11956_v6  ;;  %v11965_v24 = vsel %vm4785_vm2, 5, %v11421_v4  ;;  %v14944_v48 = vld [vmem:[#allocation206_spill] sm:$0xff]  ;;  %v11969_v32 = vld [vmem:[%s7227_s12 + $0xe8] sm:$0xff]  ;;  %vm4786_vm13 = vcmp.gt.f32.partialorder %v3514_v7, %v11455_v33 }
 0x38f   : > { %6590 = vmatmul.mubr.msk.f32.gmra.mrb[92].mxu0 %vm226_vm0, %v11931_v9  ;;  %v11959_v30 = vsel %vm5279_vm14, %v3335_v39, %v14938_v8  ;;  %14943 = vst [vmem:[#allocation63_spill] sm:$0xff] %v11965_v24  ;;  %vm5842_vm7 = vcmp.gt.f32.partialorder %v3512_v18, %v14944_v48  ;;  %v14945_v25 = vld [vmem:[#allocation207_spill] sm:$0xff]  ;;  %v3341_v8 = vpop.f32.mrb[243].mxu1 }
 0x390   : > { %6774 = vmatmul.mubr.msk.f32.gmra.mrb[90].mxu1 %vm226_vm0, %v11665_v17  ;;  %4150 = vmatprep.mubr.f32.mxu0 %v13846_v37  ;;  %14940 = vst [vmem:[#allocation27_spill] sm:$0xff] %v11959_v30  ;;  %v14941_v17 = vld [vmem:[#allocation147_spill] sm:$0xff]  ;;  %vm4704_vm10 = vcmp.gt.f32.partialorder %v3339_v15, %v14945_v25  ;;  %v3518_v30 = vpop.f32.mrb[246].mxu0 }
 0x391   : > { %6776 = vmatprep.mubr.msk.f32.mxu1 %vm226_vm0, %v11703_v14  ;;  %v11962_v13 = vsel %vm5279_vm14, 4, %v14941_v17  ;;  %v11975_v14 = vsel %vm5842_vm7, %v3512_v18, %v14944_v48  ;;  %v14946_v28 = vld [vmem:[#allocation51_spill] sm:$0xff]  ;;  %v11985_v4 = vsel %vm4704_vm10, %v3339_v15, %v14945_v25  ;;  %v14949_v18 = vld [vmem:[#allocation102_spill] sm:$0xff]  ;;  %v11994_v48 = vsel %vm4786_vm13, %v3514_v7, %v11455_v33  ;;  %v3345_v25 = vpop.f32.mrb[244].mxu1  ;;  %v3520_v6 = vpop.f32.mrb[247].mxu0 }
 0x392   : > { %14942 = vst [vmem:[#allocation153_spill] sm:$0xff] %v11962_v13  ;;  %v11978_v39 = vsel %vm5842_vm7, 4, %v14946_v28  ;;  %v14948_v17 = vld [vmem:[#allocation39_spill] sm:$0xff]  ;;  %vm5280_vm3 = vcmp.gt.f32.partialorder %v3341_v8, %v14949_v18  ;;  %14950 = vst [vmem:[#allocation31_spill] sm:$0xff] %v11994_v48  ;;  %v12003_v15 = vsel %vm4786_vm13, 5, %v11458_v26  ;;  %v14957_v7 = vld [vmem:[#allocation210_spill] sm:$0xff]  ;;  %vm4787_vm9 = vcmp.gt.f32.partialorder %v3520_v6, %v11492_v61 }
 0x393   : > { %6591 = vmatmul.mubr.msk.f32.gmra.mrb[94].mxu0 %vm226_vm0, %v11969_v32  ;;  %14947 = vst [vmem:[#allocation60_spill] sm:$0xff] %v11978_v39  ;;  %v11988_v13 = vsel %vm4704_vm10, 4, %v14948_v17  ;;  %v11997_v28 = vsel %vm5280_vm3, %v3341_v8, %v14949_v18  ;;  %14954 = vst [vmem:[#allocation68_spill] sm:$0xff] %v12003_v15  ;;  %v14955_v17 = vld [vmem:[#allocation118_spill] sm:$0xff]  ;;  %v7014_v39 = vld [vmem:[%s7227_s12 + $0xf0] sm:$0xff]  ;;  %v3347_v18 = vpop.f32.mrb[245].mxu1 }
 0x394   : > { %6777 = vmatmul.mubr.msk.f32.gmra.mrb[92].mxu1 %vm226_vm0, %v11741_v57  ;;  %4156 = vmatprep.mubr.f32.mxu0 %v13846_v37  ;;  %14951 = vst [vmem:[#allocation89_spill] sm:$0xff] %v11997_v28  ;;  %v14952_v57 = vld [vmem:[#allocation195_spill] sm:$0xff]  ;;  %vm5843_vm12 = vcmp.gt.f32.partialorder %v3518_v30, %v14955_v17  ;;  %v7015_v48 = vld [vmem:[%s7227_s12 + $0xf8] sm:$0xff] }
 0x395   : > { %6779 = vmatprep.mubr.msk.f32.mxu1 %vm226_vm0, %v11779_v0  ;;  %v12000_v24 = vsel %vm5280_vm3, 4, %v14952_v57  ;;  %v14956_v0 = vld [vmem:[#allocation208_spill] sm:$0xff]  ;;  %v12010_v33 = vsel %vm5843_vm12, %v3518_v30, %v14955_v17  ;;  %v12013_v8 = vsel %vm5843_vm12, 4, %v14957_v7  ;;  %v14958_v57 = vld [vmem:[#allocation209_spill] sm:$0xff]  ;;  %v14959_v30 = vld [vmem:[#allocation190_spill] sm:$0xff]  ;;  %v12029_v17 = vsel %vm4787_vm9, %v3520_v6, %v11492_v61 }
 0x396   : > { %14953 = vst [vmem:[#allocation158_spill] sm:$0xff] %v12000_v24  ;;  %vm4705_vm1 = vcmp.gt.f32.partialorder %v3345_v25, %v14956_v0  ;;  %vm5281_vm4 = vcmp.gt.f32.partialorder %v3347_v18, %v14959_v30  ;;  %14960 = vst [vmem:[#allocation65_spill] sm:$0xff] %v12029_v17  ;;  %v14967_v6 = vld [vmem:[#allocation123_spill] sm:$0xff] }
 0x397   : > { %6592 = vmatmul.mubr.msk.f32.gmra.mrb[96].mxu0 %vm226_vm0, %v7014_v39  ;;  %v12020_v26 = vsel %vm4705_vm1, %v3345_v25, %v14956_v0  ;;  %v12023_v24 = vsel %vm4705_vm1, 4, %v14958_v57  ;;  %v12032_v7 = vsel %vm5281_vm4, %v3347_v18, %v14959_v30  ;;  %v12038_v25 = vsel %vm4787_vm9, 5, %v11495_v27  ;;  %v3351_v0 = vpop.f32.mrb[246].mxu1  ;;  %v14965_v57 = vld [vmem:[#allocation44_spill] sm:$0xff] }
 0x398   : > { %6780 = vmatmul.mubr.msk.f32.gmra.mrb[94].mxu1 %vm226_vm0, %v11817_v51  ;;  %4162 = vmatprep.mubr.f32.mxu0 %v13846_v37  ;;  %14961 = vst [vmem:[#allocation94_spill] sm:$0xff] %v12032_v7  ;;  %v14962_v51 = vld [vmem:[#allocation32_spill] sm:$0xff]  ;;  %v3524_v37 = vpop.f32.mrb[248].mxu0  ;;  %14964 = vst [vmem:[#allocation73_spill] sm:$0xff] %v12038_v25  ;;  %v3353_v30 = vpop.f32.mrb[247].mxu1  ;;  %v14970_v25 = vld [vmem:[#allocation175_spill] sm:$0xff] }
 0x399   : > { %6782 = vmatprep.mubr.msk.f32.mxu1 %vm226_vm0, %v11855_v3  ;;  %v12035_v15 = vsel %vm5281_vm4, 4, %v14962_v51  ;;  %vm5844_vm15 = vcmp.gt.f32.partialorder %v3524_v37, %v14965_v57  ;;  %v3526_v28 = vpop.f32.mrb[249].mxu0  ;;  %v14966_v3 = vld [vmem:[#allocation117_spill] sm:$0xff]  ;;  %vm5282_vm11 = vcmp.gt.f32.partialorder %v3353_v30, %v14970_v25 }
 0x39a   : > { %14963 = vst [vmem:[#allocation163_spill] sm:$0xff] %v12035_v15  ;;  %vm4706_vm6 = vcmp.gt.f32.partialorder %v3351_v0, %v14966_v3  ;;  %v12045_v61 = vsel %vm5844_vm15, %v3524_v37, %v14965_v57  ;;  %v12048_v18 = vsel %vm5844_vm15, 4, %v14967_v6  ;;  %vm4788_vm8 = vcmp.gt.f32.partialorder %v3526_v28, %v11529_v46  ;;  %v14969_v51 = vld [vmem:[#allocation21_spill] sm:$0xff]  ;;  %v14973_v6 = vld [vmem:[#allocation106_spill] sm:$0xff] }
 0x39b   : > { %6593 = vmatmul.mubr.msk.f32.gmra.mrb[98].mxu0 %vm226_vm0, %v7015_v48  ;;  %14968 = vst [vmem:[#allocation7_spill] sm:$0xff] %v12048_v18  ;;  %v12054_v27 = vsel %vm4706_vm6, %v3351_v0, %v14966_v3  ;;  %v12057_v15 = vsel %vm4706_vm6, 4, %v14969_v51  ;;  %v12063_v37 = vsel %vm4788_vm8, %v3526_v28, %v11529_v46  ;;  %v12066_v57 = vsel %vm5282_vm11, %v3353_v30, %v14970_v25  ;;  %v3357_v3 = vpop.f32.mrb[248].mxu1  ;;  %v14976_v51 = vld [vmem:[#allocation56_spill] sm:$0xff]  ;;  %v14977_v18 = vld [vmem:[#allocation211_spill] sm:$0xff]  ;;  %v14978_v46 = vld [vmem:[#allocation121_spill] sm:$0xff] }
 0x39c   : > { %6783 = vmatmul.mubr.msk.f32.gmra.mrb[96].mxu1 %vm226_vm0, %v11893_v62  ;;  %14971 = vst [vmem:[#allocation57_spill] sm:$0xff] %v12063_v37  ;;  %14972 = vst [vmem:[#allocation167_spill] sm:$0xff] %v12066_v57  ;;  %v12069_v7 = vsel %vm5282_vm11, 4, %v14973_v6  ;;  %v3530_v62 = vpop.f32.mrb[250].mxu0  ;;  %v12072_v0 = vsel %vm4788_vm8, 5, %v11532_v60  ;;  %vm4707_vm2 = vcmp.gt.f32.partialorder %v3357_v3, %v14977_v18  ;;  %v3359_v25 = vpop.f32.mrb[249].mxu1 }
 0x39d   : > { %6785 = vmatprep.mubr.msk.f32.mxu1 %vm226_vm0, %v11931_v9  ;;  %14974 = vst [vmem:[#allocation26_spill] sm:$0xff] %v12069_v7  ;;  %14975 = vst [vmem:[#allocation75_spill] sm:$0xff] %v12072_v0  ;;  %vm5845_vm5 = vcmp.gt.f32.partialorder %v3530_v62, %v14976_v51  ;;  %v3532_v17 = vpop.f32.mrb[251].mxu0  ;;  %v12086_v60 = vsel %vm4707_vm2, %v3357_v3, %v14977_v18  ;;  %v14979_v30 = vld [vmem:[#allocation122_spill] sm:$0xff]  ;;  %v14980_v7 = vld [vmem:[#allocation160_spill] sm:$0xff]  ;;  %v3363_v3 = vpop.f32.mrb[250].mxu1 }
 0x39e   : > { %v12077_v9 = vsel %vm5845_vm5, %v3530_v62, %v14976_v51  ;;  %v12080_v28 = vsel %vm5845_vm5, 4, %v14978_v46  ;;  %vm4789_vm14 = vcmp.gt.f32.partialorder %v3532_v17, %v11567_v20  ;;  %v12089_v6 = vsel %vm4707_vm2, 4, %v14979_v30  ;;  %v14983_v46 = vld [vmem:[#allocation112_spill] sm:$0xff]  ;;  %v14986_v30 = vld [vmem:[#allocation25_spill] sm:$0xff]  ;;  %v14987_v37 = vld [vmem:[#allocation127_spill] sm:$0xff] }
 0x39f   : > { %vm5283_vm7 = vcmp.gt.f32.partialorder %v3359_v25, %v14980_v7  ;;  %v12094_v62 = vsel %vm4789_vm14, %v3532_v17, %v11567_v20  ;;  %v12103_v18 = vsel %vm4789_vm14, 5, %v11570_v40  ;;  %vm4708_vm13 = vcmp.gt.f32.partialorder %v3363_v3, %v14987_v37  ;;  %v14988_v20 = vld [vmem:[#allocation61_spill] sm:$0xff] }
 0x3a0   : > { %6786 = vmatmul.mubr.msk.f32.gmra.mrb[98].mxu1 %vm226_vm0, %v11969_v32  ;;  %14981 = vst [vmem:[#allocation12_spill] sm:$0xff] %v12094_v62  ;;  %v12097_v51 = vsel %vm5283_vm7, %v3359_v25, %v14980_v7  ;;  %v12100_v0 = vsel %vm5283_vm7, 4, %v14983_v46  ;;  %v3536_v32 = vpop.f32.mrb[252].mxu0  ;;  %14985 = vst [vmem:[#allocation101_spill] sm:$0xff] %v12103_v18  ;;  %v3365_v7 = vpop.f32.mrb[251].mxu1  ;;  %v12116_v40 = vsel %vm4708_vm13, %v3363_v3, %v14987_v37  ;;  %v14989_v25 = vld [vmem:[#allocation62_spill] sm:$0xff] }
 0x3a1   : > { %6788 = vmatprep.mubr.msk.f32.mxu1 %vm226_vm0, %v7014_v39  ;;  %14982 = vst [vmem:[#allocation192_spill] sm:$0xff] %v12097_v51  ;;  %14984 = vst [vmem:[#allocation78_spill] sm:$0xff] %v12100_v0  ;;  %vm5846_vm10 = vcmp.gt.f32.partialorder %v3536_v32, %v14986_v30  ;;  %v3538_v57 = vpop.f32.mrb[253].mxu0  ;;  %v12119_v46 = vsel %vm4708_vm13, 4, %v14989_v25  ;;  %vm5284_vm12 = vcmp.gt.f32.partialorder %v3365_v7, %v11444_v49  ;;  %v3369_v37 = vpop.f32.mrb[252].mxu1  ;;  %v14994_v3 = vld [vmem:[#allocation33_spill] sm:$0xff] }
 0x3a2   : > { %v12108_v39 = vsel %vm5846_vm10, %v3536_v32, %v14986_v30  ;;  %v12111_v17 = vsel %vm5846_vm10, 4, %v14988_v20  ;;  %vm4790_vm3 = vcmp.gt.f32.partialorder %v3538_v57, %v11605_v47  ;;  %v12126_v32 = vsel %vm5284_vm12, %v3365_v7, %v11444_v49  ;;  %v3542_v20 = vpop.f32.mrb[254].mxu0  ;;  %v14995_v18 = vld [vmem:[#allocation129_spill] sm:$0xff]  ;;  %v3371_v49 = vpop.f32.mrb[253].mxu1 }
 0x3a3   : > { %v12123_v0 = vsel %vm4790_vm3, %v3538_v57, %v11605_v47  ;;  %14991 = vst [vmem:[#allocation16_spill] sm:$0xff] %v12126_v32  ;;  %v12129_v30 = vsel %vm5284_vm12, 4, %v11447_v34  ;;  %v3544_v25 = vpop.f32.mrb[255].mxu0  ;;  %vm4709_vm1 = vcmp.gt.f32.partialorder %v3369_v37, %v14995_v18  ;;  %v14996_v47 = vld [vmem:[#allocation132_spill] sm:$0xff]  ;;  %vm5285_vm4 = vcmp.gt.f32.partialorder %v3371_v49, %v11481_v44  ;;  %v15003_v32 = vld [vmem:[#allocation66_spill] sm:$0xff]  ;;  %v15022_v62 = vld [vmem:[#allocation133_spill] sm:$0xff] }
 0x3a4   : > { %6789 = vmatmul.mubr.msk.f32.gmra.mrb[100].mxu1 %vm226_vm0, %v7015_v48  ;;  %14990 = vst [vmem:[#allocation77_spill] sm:$0xff] %v12123_v0  ;;  %14992 = vst [vmem:[#allocation212_spill] sm:$0xff] %v12129_v30  ;;  %v12132_v48 = vsel %vm4790_vm3, 5, %v11608_v12  ;;  %vm5847_vm0 = vcmp.gt.f32.partialorder %v3542_v20, %v14994_v3  ;;  %vm4791_vm9 = vcmp.gt.f32.partialorder %v3544_v25, %v11643_v41  ;;  %v14997_v12 = vld [vmem:[#allocation29_spill] sm:$0xff] }
 0x3a5   : > { %14993 = vst [vmem:[#allocation15_spill] sm:$0xff] %v12132_v48  ;;  %v12137_v51 = vsel %vm5847_vm0, %v3542_v20, %v14994_v3  ;;  %v12140_v57 = vsel %vm5847_vm0, 4, %v14996_v47  ;;  %v12144_v34 = vsel %vm4709_vm1, %v3369_v37, %v14995_v18  ;;  %v12147_v7 = vsel %vm4709_vm1, 4, %v14997_v12  ;;  %v3548_v47 = vpop.f32.mrb[0].mxu0  ;;  %v3375_v18 = vpop.f32.mrb[254].mxu1  ;;  %v15002_v37 = vld [vmem:[#allocation67_spill] sm:$0xff] }
 0x3a6   : > { %v12151_v30 = vsel %vm4791_vm9, %v3544_v25, %v11643_v41  ;;  %v12154_v20 = vsel %vm5285_vm4, %v3371_v49, %v11481_v44  ;;  %v12157_v3 = vsel %vm5285_vm4, 4, %v11484_v23  ;;  %v12160_v48 = vsel %vm4791_vm9, 5, %v11646_v59  ;;  %v3550_v12 = vpop.f32.mrb[1].mxu0  ;;  %v15004_v41 = vld [vmem:[#allocation130_spill] sm:$0xff]  ;;  %v3377_v44 = vpop.f32.mrb[255].mxu1  ;;  %v15005_v59 = vld [vmem:[#allocation213_spill] sm:$0xff] }
 0x3a7   : > { %14998 = vst [vmem:[#allocation170_spill] sm:$0xff] %v12151_v30  ;;  %14999 = vst [vmem:[#allocation173_spill] sm:$0xff] %v12154_v20  ;;  %vm5848_vm15 = vcmp.gt.f32.partialorder %v3548_v47, %v15002_v37  ;;  %vm4710_vm6 = vcmp.gt.f32.partialorder %v3375_v18, %v15003_v32  ;;  %vm4792_vm8 = vcmp.gt.f32.partialorder %v3550_v12, %v11681_v43  ;;  %v15011_v20 = vld [vmem:[#allocation137_spill] sm:$0xff] }
 0x3a8   : > { %15000 = vst [vmem:[#allocation104_spill] sm:$0xff] %v12157_v3  ;;  %15001 = vst [vmem:[#allocation178_spill] sm:$0xff] %v12160_v48  ;;  %v12165_v0 = vsel %vm5848_vm15, %v3548_v47, %v15002_v37  ;;  %v12168_v25 = vsel %vm5848_vm15, 4, %v15004_v41  ;;  %v12172_v23 = vsel %vm4710_vm6, %v3375_v18, %v15003_v32  ;;  %v12175_v49 = vsel %vm4710_vm6, 4, %v15005_v59  ;;  %v3554_v41 = vpop.f32.mrb[2].mxu0  ;;  %v3381_v32 = vpop.f32.mrb[0].mxu1 }
 0x3a9   : > { %vm5286_vm11 = vcmp.gt.f32.partialorder %v3377_v44, %v11518_v1  ;;  %v12179_v3 = vsel %vm4792_vm8, %v3550_v12, %v11681_v43  ;;  %v12188_v48 = vsel %vm4792_vm8, 5, %v11684_v52  ;;  %v15010_v18 = vld [vmem:[#allocation9_spill] sm:$0xff]  ;;  %v3556_v59 = vpop.f32.mrb[3].mxu0  ;;  %vm4711_vm2 = vcmp.gt.f32.partialorder %v3381_v32, %v15011_v20  ;;  %v15012_v43 = vld [vmem:[#allocation71_spill] sm:$0xff]  ;;  %v15014_v52 = vld [vmem:[#allocation72_spill] sm:$0xff] }
 0x3aa   : > { %15006 = vst [vmem:[#allocation85_spill] sm:$0xff] %v12179_v3  ;;  %v12182_v47 = vsel %vm5286_vm11, %v3377_v44, %v11518_v1  ;;  %v12185_v37 = vsel %vm5286_vm11, 4, %v11521_v56  ;;  %15009 = vst [vmem:[#allocation38_spill] sm:$0xff] %v12188_v48  ;;  %vm5849_vm5 = vcmp.gt.f32.partialorder %v3554_v41, %v15010_v18  ;;  %v3383_v1 = vpop.f32.mrb[1].mxu1  ;;  %vm4793_vm14 = vcmp.gt.f32.partialorder %v3556_v59, %v11719_v50 }
 0x3ab   : > { %15007 = vst [vmem:[#allocation176_spill] sm:$0xff] %v12182_v47  ;;  %15008 = vst [vmem:[#allocation18_spill] sm:$0xff] %v12185_v37  ;;  %v12193_v30 = vsel %vm5849_vm5, %v3554_v41, %v15010_v18  ;;  %v12196_v12 = vsel %vm5849_vm5, 4, %v15012_v43  ;;  %v12200_v56 = vsel %vm4711_vm2, %v3381_v32, %v15011_v20  ;;  %v12203_v44 = vsel %vm4711_vm2, 4, %v15014_v52  ;;  %v15015_v37 = vld [vmem:[#allocation124_spill] sm:$0xff]  ;;  %v15018_v18 = vld [vmem:[#allocation54_spill] sm:$0xff] }
 0x3ac   : > { %15013 = vst [vmem:[#allocation87_spill] sm:$0xff] %v12196_v12  ;;  %vm5287_vm7 = vcmp.gt.f32.partialorder %v3383_v1, %v15015_v37  ;;  %v12207_v48 = vsel %vm4793_vm14, %v3556_v59, %v11719_v50  ;;  %v3560_v47 = vpop.f32.mrb[4].mxu0  ;;  %v12216_v3 = vsel %vm4793_vm14, 5, %v11722_v22  ;;  %v15021_v32 = vld [vmem:[#allocation42_spill] sm:$0xff]  ;;  %v15024_v50 = vld [vmem:[#allocation141_spill] sm:$0xff]  ;;  %v15026_v22 = vld [vmem:[#allocation76_spill] sm:$0xff] }
 0x3ad   : > { %15016 = vst [vmem:[#allocation4_spill] sm:$0xff] %v12207_v48  ;;  %v12210_v41 = vsel %vm5287_vm7, %v3383_v1, %v15015_v37  ;;  %v12213_v43 = vsel %vm5287_vm7, 4, %v15018_v18  ;;  %15020 = vst [vmem:[#allocation214_spill] sm:$0xff] %v12216_v3  ;;  %vm5850_vm10 = vcmp.gt.f32.partialorder %v3560_v47, %v15021_v32  ;;  %v3562_v52 = vpop.f32.mrb[5].mxu0 }
 0x3ae   : > { %15017 = vst [vmem:[#allocation5_spill] sm:$0xff] %v12210_v41  ;;  %15019 = vst [vmem:[#allocation184_spill] sm:$0xff] %v12213_v43  ;;  %v3387_v20 = vpop.f32.mrb[2].mxu1  ;;  %v12221_v12 = vsel %vm5850_vm10, %v3560_v47, %v15021_v32  ;;  %v12224_v59 = vsel %vm5850_vm10, 4, %v15024_v50  ;;  %vm4794_vm3 = vcmp.gt.f32.partialorder %v3562_v52, %v11757_v19  ;;  %v15027_v43 = vld [vmem:[#allocation80_spill] sm:$0xff]  ;;  %v15030_v32 = vld [vmem:[#allocation35_spill] sm:$0xff] }
 0x3af   : > { %vm4712_vm13 = vcmp.gt.f32.partialorder %v3387_v20, %v15022_v62  ;;  %15023 = vst [vmem:[#allocation74_spill] sm:$0xff] %v12221_v12  ;;  %15025 = vst [vmem:[#allocation93_spill] sm:$0xff] %v12224_v59  ;;  %v3389_v37 = vpop.f32.mrb[3].mxu1  ;;  %v12235_v3 = vsel %vm4794_vm3, %v3562_v52, %v11757_v19  ;;  %v12244_v48 = vsel %vm4794_vm3, 5, %v11760_v2  ;;  %v15034_v59 = vld [vmem:[#allocation81_spill] sm:$0xff]  ;;  %v15036_v19 = vld [vmem:[#allocation218_spill] sm:$0xff] }
 0x3b0   : > { %v12228_v1 = vsel %vm4712_vm13, %v3387_v20, %v15022_v62  ;;  %v12231_v18 = vsel %vm4712_vm13, 4, %v15026_v22  ;;  %vm5288_vm12 = vcmp.gt.f32.partialorder %v3389_v37, %v15027_v43  ;;  %15028 = vst [vmem:[#allocation22_spill] sm:$0xff] %v12235_v3  ;;  %v3566_v41 = vpop.f32.mrb[6].mxu0  ;;  %15032 = vst [vmem:[#allocation215_spill] sm:$0xff] %v12244_v48  ;;  %v15033_v20 = vld [vmem:[#allocation217_spill] sm:$0xff] }
 0x3b1   : > { %v12238_v47 = vsel %vm5288_vm12, %v3389_v37, %v15027_v43  ;;  %v12241_v50 = vsel %vm5288_vm12, 4, %v15030_v32  ;;  %vm5851_vm0 = vcmp.gt.f32.partialorder %v3566_v41, %v15033_v20  ;;  %v3568_v22 = vpop.f32.mrb[7].mxu0  ;;  %v15038_v2 = vld [vmem:[#allocation145_spill] sm:$0xff] }
 0x3b2   : > { %15029 = vst [vmem:[#allocation193_spill] sm:$0xff] %v12238_v47  ;;  %15031 = vst [vmem:[#allocation188_spill] sm:$0xff] %v12241_v50  ;;  %v3393_v62 = vpop.f32.mrb[4].mxu1  ;;  %v12249_v12 = vsel %vm5851_vm0, %v3566_v41, %v15033_v20  ;;  %v12252_v52 = vsel %vm5851_vm0, 4, %v15036_v19  ;;  %vm4795_vm9 = vcmp.gt.f32.partialorder %v3568_v22, %v11795_v5  ;;  %v15039_v50 = vld [vmem:[#allocation82_spill] sm:$0xff] }
 0x3b3   : > { %vm4713_vm1 = vcmp.gt.f32.partialorder %v3393_v62, %v15034_v59  ;;  %15035 = vst [vmem:[#allocation216_spill] sm:$0xff] %v12249_v12  ;;  %15037 = vst [vmem:[#allocation146_spill] sm:$0xff] %v12252_v52  ;;  %v3395_v43 = vpop.f32.mrb[5].mxu1  ;;  %v12263_v48 = vsel %vm4795_vm9, %v3568_v22, %v11795_v5  ;;  %v15042_v20 = vld [vmem:[#allocation174_spill] sm:$0xff]  ;;  %v12272_v3 = vsel %vm4795_vm9, 5, %v11798_v63  ;;  %v15046_v12 = vld [vmem:[#allocation149_spill] sm:$0xff] }
 0x3b4   : > { %v12256_v37 = vsel %vm4713_vm1, %v3393_v62, %v15034_v59  ;;  %v12259_v32 = vsel %vm4713_vm1, 4, %v15038_v2  ;;  %vm5289_vm4 = vcmp.gt.f32.partialorder %v3395_v43, %v15039_v50  ;;  %15040 = vst [vmem:[#allocation194_spill] sm:$0xff] %v12263_v48  ;;  %v3572_v47 = vpop.f32.mrb[8].mxu0  ;;  %15044 = vst [vmem:[#allocation24_spill] sm:$0xff] %v12272_v3  ;;  %v15045_v59 = vld [vmem:[#allocation86_spill] sm:$0xff]  ;;  %v15048_v22 = vld [vmem:[#allocation151_spill] sm:$0xff] }
 0x3b5   : > { %v12266_v41 = vsel %vm5289_vm4, %v3395_v43, %v15039_v50  ;;  %v12269_v19 = vsel %vm5289_vm4, 4, %v15042_v20  ;;  %vm5852_vm15 = vcmp.gt.f32.partialorder %v3572_v47, %v15045_v59  ;;  %v3574_v2 = vpop.f32.mrb[9].mxu0  ;;  %v15049_v43 = vld [vmem:[#allocation20_spill] sm:$0xff]  ;;  %v15055_v48 = vld [vmem:[#allocation154_spill] sm:$0xff] }
 0x3b6   : > { %15041 = vst [vmem:[#allocation98_spill] sm:$0xff] %v12266_v41  ;;  %15043 = vst [vmem:[#allocation197_spill] sm:$0xff] %v12269_v19  ;;  %v3721_v62 = vpop.f32.mrb[6].mxu1  ;;  %v12276_v52 = vsel %vm5852_vm15, %v3572_v47, %v15045_v59  ;;  %v12279_v5 = vsel %vm5852_vm15, 4, %v15046_v12  ;;  %vm4796_vm8 = vcmp.gt.f32.partialorder %v3574_v2, %v11833_v10  ;;  %v15053_v3 = vld [vmem:[#allocation40_spill] sm:$0xff] }
 0x3b7   : > { %15047 = vst [vmem:[#allocation219_spill] sm:$0xff] %v12279_v5  ;;  %vm5354_vm6 = vcmp.gt.f32.partialorder %v3721_v62, %v15048_v22  ;;  %v3723_v50 = vpop.f32.mrb[7].mxu1  ;;  %v12291_v19 = vsel %vm4796_vm8, %v3574_v2, %v11833_v10  ;;  %v12294_v12 = vsel %vm4796_vm8, 5, %v11836_v54  ;;  %v15056_v5 = vld [vmem:[#allocation180_spill] sm:$0xff]  ;;  %v15057_v2 = vld [vmem:[#allocation91_spill] sm:$0xff] }
 0x3b8   : > { %vm5930_vm11 = vcmp.gt.f32.partialorder %v3723_v50, %v11671_v58  ;;  %v12285_v63 = vsel %vm5354_vm6, %v3721_v62, %v15048_v22  ;;  %v12288_v20 = vsel %vm5354_vm6, 5, %v15049_v43  ;;  %15050 = vst [vmem:[#allocation220_spill] sm:$0xff] %v12291_v19  ;;  %15051 = vst [vmem:[#allocation152_spill] sm:$0xff] %v12294_v12  ;;  %v15063_v12 = vld [vmem:[#allocation95_spill] sm:$0xff] }
 0x3b9   : > { %v12297_v59 = vsel %vm5930_vm11, %v3723_v50, %v11671_v58  ;;  %v12300_v41 = vsel %vm5930_vm11, 5, %v15053_v3  ;;  %v15058_v3 = vld [vmem:[#allocation156_spill] sm:$0xff]  ;;  %v15064_v19 = vld [vmem:[#allocation159_spill] sm:$0xff] }
 0x3ba   : > { %15052 = vst [vmem:[#allocation181_spill] sm:$0xff] %v12297_v59  ;;  %15054 = vst [vmem:[#allocation199_spill] sm:$0xff] %v12300_v41  ;;  %v3727_v62 = vpop.f32.mrb[8].mxu1 }
 0x3bb   : > { %v3578_v47 = vpop.f32.mrb[10].mxu0  ;;  %vm5355_vm2 = vcmp.gt.f32.partialorder %v3727_v62, %v15057_v2  ;;  %v3729_v54 = vpop.f32.mrb[9].mxu1 }
 0x3bc   : > { %vm5853_vm5 = vcmp.gt.f32.partialorder %v3578_v47, %v15055_v48  ;;  %v3580_v22 = vpop.f32.mrb[11].mxu0  ;;  %vm5931_vm7 = vcmp.gt.f32.partialorder %v3729_v54, %v11709_v42  ;;  %v12313_v58 = vsel %vm5355_vm2, %v3727_v62, %v15057_v2  ;;  %v12316_v50 = vsel %vm5355_vm2, 5, %v15058_v3 }
 0x3bd   : > { %v12304_v43 = vsel %vm5853_vm5, %v3578_v47, %v15055_v48  ;;  %v12307_v10 = vsel %vm5853_vm5, 4, %v15056_v5  ;;  %vm4797_vm14 = vcmp.gt.f32.partialorder %v3580_v22, %v11871_v29  ;;  %v12322_v5 = vsel %vm5931_vm7, %v3729_v54, %v11709_v42 }
 0x3be   : > { %v12319_v41 = vsel %vm4797_vm14, %v3580_v22, %v11871_v29  ;;  %15060 = vst [vmem:[#allocation103_spill] sm:$0xff] %v12322_v5  ;;  %v12325_v47 = vsel %vm5931_vm7, 5, %v11712_v31  ;;  %v12328_v59 = vsel %vm4797_vm14, 5, %v11874_v55  ;;  %v15066_v22 = vld [vmem:[#allocation97_spill] sm:$0xff]  ;;  %v15067_v55 = vld [vmem:[#allocation186_spill] sm:$0xff]  ;;  %v15073_v5 = vld [vmem:[#allocation79_spill] sm:$0xff] }
 0x3bf   : > { %15059 = vst [vmem:[#allocation36_spill] sm:$0xff] %v12319_v41  ;;  %v3584_v48 = vpop.f32.mrb[12].mxu0  ;;  %15061 = vst [vmem:[#allocation221_spill] sm:$0xff] %v12325_v47 }
 0x3c0   : > { %15062 = vst [vmem:[#allocation92_spill] sm:$0xff] %v12328_v59  ;;  %vm5854_vm10 = vcmp.gt.f32.partialorder %v3584_v48, %v15063_v12  ;;  %v3733_v62 = vpop.f32.mrb[10].mxu1  ;;  %v3586_v2 = vpop.f32.mrb[13].mxu0 }
 0x3c1   : > { %v12332_v3 = vsel %vm5854_vm10, %v3584_v48, %v15063_v12  ;;  %v12335_v29 = vsel %vm5854_vm10, 4, %v15064_v19  ;;  %vm5356_vm13 = vcmp.gt.f32.partialorder %v3733_v62, %v15066_v22  ;;  %vm4798_vm3 = vcmp.gt.f32.partialorder %v3586_v2, %v11909_v16  ;;  %v3735_v42 = vpop.f32.mrb[11].mxu1  ;;  %v15070_v48 = vld [vmem:[#allocation114_spill] sm:$0xff] }
 0x3c2   : > { %15065 = vst [vmem:[#allocation196_spill] sm:$0xff] %v12335_v29  ;;  %vm5932_vm12 = vcmp.gt.f32.partialorder %v3735_v42, %v11747_v35  ;;  %v12341_v31 = vsel %vm5356_vm13, %v3733_v62, %v15066_v22  ;;  %v12344_v54 = vsel %vm5356_vm13, 5, %v15067_v55  ;;  %v12347_v59 = vsel %vm4798_vm3, %v3586_v2, %v11909_v16  ;;  %v15075_v29 = vld [vmem:[#allocation28_spill] sm:$0xff] }
 0x3c3   : > { %15068 = vst [vmem:[#allocation202_spill] sm:$0xff] %v12347_v59  ;;  %v12350_v19 = vsel %vm5932_vm12, %v3735_v42, %v11747_v35  ;;  %v12353_v41 = vsel %vm5932_vm12, 5, %v15070_v48  ;;  %v12356_v47 = vsel %vm4798_vm3, 5, %v11912_v36  ;;  %v15077_v2 = vld [vmem:[#allocation164_spill] sm:$0xff]  ;;  %v15078_v42 = vld [vmem:[#allocation47_spill] sm:$0xff]  ;;  %v15079_v48 = vld [vmem:[#allocation30_spill] sm:$0xff] }
 0x3c4   : > { %v3590_v12 = vpop.f32.mrb[14].mxu0  ;;  %15069 = vst [vmem:[#allocation41_spill] sm:$0xff] %v12350_v19  ;;  %15071 = vst [vmem:[#allocation108_spill] sm:$0xff] %v12353_v41  ;;  %v3739_v62 = vpop.f32.mrb[12].mxu1 }
 0x3c5   : > { %15072 = vst [vmem:[#allocation17_spill] sm:$0xff] %v12356_v47  ;;  %vm5855_vm0 = vcmp.gt.f32.partialorder %v3590_v12, %v15073_v5  ;;  %v3592_v22 = vpop.f32.mrb[15].mxu0  ;;  %vm5357_vm1 = vcmp.gt.f32.partialorder %v3739_v62, %v15077_v2  ;;  %v3741_v35 = vpop.f32.mrb[13].mxu1 }
 0x3c6   : > { %v12360_v55 = vsel %vm5855_vm0, %v3590_v12, %v15073_v5  ;;  %v12363_v16 = vsel %vm5855_vm0, 4, %v15075_v29  ;;  %vm4799_vm9 = vcmp.gt.f32.partialorder %v3592_v22, %v11947_v53  ;;  %vm5933_vm4 = vcmp.gt.f32.partialorder %v3741_v35, %v15078_v42  ;;  %v15082_v12 = vld [vmem:[#allocation191_spill] sm:$0xff] }
 0x3c7   : > { %15074 = vst [vmem:[#allocation142_spill] sm:$0xff] %v12360_v55  ;;  %15076 = vst [vmem:[#allocation34_spill] sm:$0xff] %v12363_v16  ;;  %v12369_v36 = vsel %vm5357_vm1, %v3739_v62, %v15077_v2  ;;  %v12372_v47 = vsel %vm5357_vm1, 5, %v15079_v48  ;;  %v12375_v59 = vsel %vm4799_vm9, %v3592_v22, %v11947_v53  ;;  %v12378_v29 = vsel %vm5933_vm4, %v3741_v35, %v15078_v42  ;;  %v15085_v16 = vld [vmem:[#allocation150_spill] sm:$0xff]  ;;  %v15087_v55 = vld [vmem:[#allocation84_spill] sm:$0xff] }
 0x3c8   : > { %15080 = vst [vmem:[#allocation204_spill] sm:$0xff] %v12375_v59  ;;  %v3596_v5 = vpop.f32.mrb[16].mxu0  ;;  %15081 = vst [vmem:[#allocation205_spill] sm:$0xff] %v12378_v29  ;;  %v12381_v41 = vsel %vm5933_vm4, 5, %v15082_v12  ;;  %v12384_v19 = vsel %vm4799_vm9, 5, %v11950_v21  ;;  %v15089_v22 = vld [vmem:[#allocation166_spill] sm:$0xff] }
 0x3c9   : > { %15083 = vst [vmem:[#allocation113_spill] sm:$0xff] %v12381_v41  ;;  %15084 = vst [vmem:[#allocation187_spill] sm:$0xff] %v12384_v19  ;;  %vm5856_vm15 = vcmp.gt.f32.partialorder %v3596_v5, %v15085_v16  ;;  %v3745_v62 = vpop.f32.mrb[14].mxu1  ;;  %v3598_v2 = vpop.f32.mrb[17].mxu0  ;;  %v15090_v42 = vld [vmem:[#allocation48_spill] sm:$0xff]  ;;  %v15091_v12 = vld [vmem:[#allocation169_spill] sm:$0xff] }
 0x3ca   : > { %v12388_v48 = vsel %vm5856_vm15, %v3596_v5, %v15085_v16  ;;  %v12391_v53 = vsel %vm5856_vm15, 4, %v15087_v55  ;;  %vm5358_vm6 = vcmp.gt.f32.partialorder %v3745_v62, %v15089_v22  ;;  %vm4800_vm8 = vcmp.gt.f32.partialorder %v3598_v2, %v11985_v4  ;;  %v3747_v35 = vpop.f32.mrb[15].mxu1  ;;  %v15094_v5 = vld [vmem:[#allocation8_spill] sm:$0xff] }
 0x3cb   : > { %15086 = vst [vmem:[#allocation147_spill] sm:$0xff] %v12388_v48  ;;  %15088 = vst [vmem:[#allocation206_spill] sm:$0xff] %v12391_v53  ;;  %vm5934_vm11 = vcmp.gt.f32.partialorder %v3747_v35, %v15090_v42  ;;  %v12397_v21 = vsel %vm5358_vm6, %v3745_v62, %v15089_v22  ;;  %v12400_v19 = vsel %vm5358_vm6, 5, %v15091_v12  ;;  %v12403_v59 = vsel %vm4800_vm8, %v3598_v2, %v11985_v4  ;;  %v15097_v53 = vld [vmem:[#allocation105_spill] sm:$0xff]  ;;  %v15100_v2 = vld [vmem:[#allocation155_spill] sm:$0xff] }
 0x3cc   : > { %15092 = vst [vmem:[#allocation207_spill] sm:$0xff] %v12403_v59  ;;  %v3602_v16 = vpop.f32.mrb[18].mxu0  ;;  %v12406_v55 = vsel %vm5934_vm11, %v3747_v35, %v15090_v42  ;;  %v12409_v41 = vsel %vm5934_vm11, 5, %v15094_v5  ;;  %v12412_v29 = vsel %vm4800_vm8, 5, %v11988_v13  ;;  %v15098_v48 = vld [vmem:[#allocation157_spill] sm:$0xff]  ;;  %v15101_v42 = vld [vmem:[#allocation107_spill] sm:$0xff] }
 0x3cd   : > { %15093 = vst [vmem:[#allocation51_spill] sm:$0xff] %v12406_v55  ;;  %15095 = vst [vmem:[#allocation39_spill] sm:$0xff] %v12409_v41  ;;  %vm5857_vm5 = vcmp.gt.f32.partialorder %v3602_v16, %v15097_v53  ;;  %v3751_v62 = vpop.f32.mrb[16].mxu1  ;;  %v3604_v22 = vpop.f32.mrb[19].mxu0  ;;  %v15107_v55 = vld [vmem:[#allocation171_spill] sm:$0xff] }
 0x3ce   : > { %15096 = vst [vmem:[#allocation102_spill] sm:$0xff] %v12412_v29  ;;  %v12416_v12 = vsel %vm5857_vm5, %v3602_v16, %v15097_v53  ;;  %v12419_v4 = vsel %vm5857_vm5, 4, %v15098_v48  ;;  %vm5359_vm2 = vcmp.gt.f32.partialorder %v3751_v62, %v15100_v2  ;;  %vm4801_vm14 = vcmp.gt.f32.partialorder %v3604_v22, %v12020_v26  ;;  %v3753_v35 = vpop.f32.mrb[17].mxu1  ;;  %v15104_v16 = vld [vmem:[#allocation50_spill] sm:$0xff] }
 0x3cf   : > { %15099 = vst [vmem:[#allocation195_spill] sm:$0xff] %v12419_v4  ;;  %vm5935_vm7 = vcmp.gt.f32.partialorder %v3753_v35, %v11861_v45  ;;  %v12425_v13 = vsel %vm5359_vm2, %v3751_v62, %v15100_v2  ;;  %v12428_v5 = vsel %vm5359_vm2, 5, %v15101_v42  ;;  %v12431_v29 = vsel %vm4801_vm14, %v3604_v22, %v12020_v26  ;;  %v15108_v4 = vld [vmem:[#allocation110_spill] sm:$0xff] }
 0x3d0   : > { %15102 = vst [vmem:[#allocation118_spill] sm:$0xff] %v12431_v29  ;;  %v3608_v53 = vpop.f32.mrb[20].mxu0  ;;  %v12434_v48 = vsel %vm5935_vm7, %v3753_v35, %v11861_v45  ;;  %v12437_v59 = vsel %vm5935_vm7, 5, %v15104_v16  ;;  %v12440_v41 = vsel %vm4801_vm14, 5, %v12023_v24  ;;  %v15110_v22 = vld [vmem:[#allocation10_spill] sm:$0xff] }
 0x3d1   : > { %15103 = vst [vmem:[#allocation208_spill] sm:$0xff] %v12434_v48  ;;  %15105 = vst [vmem:[#allocation210_spill] sm:$0xff] %v12437_v59  ;;  %vm5858_vm10 = vcmp.gt.f32.partialorder %v3608_v53, %v15107_v55  ;;  %v3610_v2 = vpop.f32.mrb[21].mxu0  ;;  %v15111_v35 = vld [vmem:[#allocation162_spill] sm:$0xff]  ;;  %v15117_v48 = vld [vmem:[#allocation3_spill] sm:$0xff] }
 0x3d2   : > { %15106 = vst [vmem:[#allocation209_spill] sm:$0xff] %v12440_v41  ;;  %v3757_v62 = vpop.f32.mrb[18].mxu1  ;;  %v12444_v42 = vsel %vm5858_vm10, %v3608_v53, %v15107_v55  ;;  %v12447_v26 = vsel %vm5858_vm10, 4, %v15108_v4  ;;  %vm4802_vm3 = vcmp.gt.f32.partialorder %v3610_v2, %v12054_v27  ;;  %v15114_v53 = vld [vmem:[#allocation52_spill] sm:$0xff] }
 0x3d3   : > { %15109 = vst [vmem:[#allocation190_spill] sm:$0xff] %v12447_v26  ;;  %vm5360_vm13 = vcmp.gt.f32.partialorder %v3757_v62, %v15110_v22  ;;  %v3759_v45 = vpop.f32.mrb[19].mxu1  ;;  %v12459_v41 = vsel %vm4802_vm3, %v3610_v2, %v12054_v27  ;;  %v12468_v59 = vsel %vm4802_vm3, 5, %v12057_v15  ;;  %v15118_v26 = vld [vmem:[#allocation111_spill] sm:$0xff]  ;;  %v15120_v2 = vld [vmem:[#allocation177_spill] sm:$0xff] }
 0x3d4   : > { %vm5936_vm12 = vcmp.gt.f32.partialorder %v3759_v45, %v11899_v38  ;;  %v12453_v24 = vsel %vm5360_vm13, %v3757_v62, %v15110_v22  ;;  %v12456_v16 = vsel %vm5360_vm13, 5, %v15111_v35  ;;  %15112 = vst [vmem:[#allocation32_spill] sm:$0xff] %v12459_v41  ;;  %15116 = vst [vmem:[#allocation123_spill] sm:$0xff] %v12468_v59 }
 0x3d5   : > { %v3614_v55 = vpop.f32.mrb[22].mxu0  ;;  %v12462_v4 = vsel %vm5936_vm12, %v3759_v45, %v11899_v38  ;;  %v12465_v29 = vsel %vm5936_vm12, 5, %v15114_v53  ;;  %v15121_v45 = vld [vmem:[#allocation115_spill] sm:$0xff] }
 0x3d6   : > { %15113 = vst [vmem:[#allocation44_spill] sm:$0xff] %v12462_v4  ;;  %15115 = vst [vmem:[#allocation117_spill] sm:$0xff] %v12465_v29  ;;  %vm5859_vm0 = vcmp.gt.f32.partialorder %v3614_v55, %v15117_v48  ;;  %v3763_v62 = vpop.f32.mrb[20].mxu1  ;;  %v3616_v22 = vpop.f32.mrb[23].mxu0  ;;  %v15127_v4 = vld [vmem:[#allocation96_spill] sm:$0xff] }
 0x3d7   : > { %v12472_v35 = vsel %vm5859_vm0, %v3614_v55, %v15117_v48  ;;  %v12475_v27 = vsel %vm5859_vm0, 4, %v15118_v26  ;;  %vm5361_vm1 = vcmp.gt.f32.partialorder %v3763_v62, %v15120_v2  ;;  %vm4803_vm9 = vcmp.gt.f32.partialorder %v3616_v22, %v12086_v60  ;;  %v3765_v38 = vpop.f32.mrb[21].mxu1  ;;  %v15124_v55 = vld [vmem:[#allocation58_spill] sm:$0xff] }
 0x3d8   : > { %15119 = vst [vmem:[#allocation21_spill] sm:$0xff] %v12475_v27  ;;  %vm5937_vm4 = vcmp.gt.f32.partialorder %v3765_v38, %v11937_v11  ;;  %v12481_v15 = vsel %vm5361_vm1, %v3763_v62, %v15120_v2  ;;  %v12484_v53 = vsel %vm5361_vm1, 5, %v15121_v45  ;;  %v12487_v59 = vsel %vm4803_vm9, %v3616_v22, %v12086_v60  ;;  %v15128_v27 = vld [vmem:[#allocation70_spill] sm:$0xff]  ;;  %v15130_v22 = vld [vmem:[#allocation13_spill] sm:$0xff] }
 0x3d9   : > { %15122 = vst [vmem:[#allocation175_spill] sm:$0xff] %v12487_v59  ;;  %v3620_v48 = vpop.f32.mrb[24].mxu0  ;;  %v12490_v26 = vsel %vm5937_vm4, %v3765_v38, %v11937_v11  ;;  %v12493_v41 = vsel %vm5937_vm4, 5, %v15124_v55  ;;  %v12496_v29 = vsel %vm4803_vm9, 5, %v12089_v6  ;;  %v15131_v38 = vld [vmem:[#allocation116_spill] sm:$0xff] }
 0x3da   : > { %15123 = vst [vmem:[#allocation106_spill] sm:$0xff] %v12490_v26  ;;  %15125 = vst [vmem:[#allocation56_spill] sm:$0xff] %v12493_v41  ;;  %vm5860_vm15 = vcmp.gt.f32.partialorder %v3620_v48, %v15127_v4  ;;  %v3769_v62 = vpop.f32.mrb[22].mxu1  ;;  %v3622_v2 = vpop.f32.mrb[25].mxu0  ;;  %v15137_v26 = vld [vmem:[#allocation189_spill] sm:$0xff] }
 0x3db   : > { %15126 = vst [vmem:[#allocation211_spill] sm:$0xff] %v12496_v29  ;;  %v12500_v45 = vsel %vm5860_vm15, %v3620_v48, %v15127_v4  ;;  %v12503_v60 = vsel %vm5860_vm15, 4, %v15128_v27  ;;  %vm5362_vm6 = vcmp.gt.f32.partialorder %v3769_v62, %v15130_v22  ;;  %vm4804_vm8 = vcmp.gt.f32.partialorder %v3622_v2, %v12116_v40  ;;  %v3771_v11 = vpop.f32.mrb[23].mxu1  ;;  %v15134_v48 = vld [vmem:[#allocation60_spill] sm:$0xff] }
 0x3dc   : > { %15129 = vst [vmem:[#allocation121_spill] sm:$0xff] %v12503_v60  ;;  %vm5938_vm11 = vcmp.gt.f32.partialorder %v3771_v11, %v11975_v14  ;;  %v12509_v6 = vsel %vm5362_vm6, %v3769_v62, %v15130_v22  ;;  %v12512_v55 = vsel %vm5362_vm6, 5, %v15131_v38  ;;  %v12515_v29 = vsel %vm4804_vm8, %v3622_v2, %v12116_v40  ;;  %v15138_v60 = vld [vmem:[#allocation183_spill] sm:$0xff]  ;;  %v15139_v2 = vld [vmem:[#allocation120_spill] sm:$0xff] }
 0x3dd   : > { %15132 = vst [vmem:[#allocation122_spill] sm:$0xff] %v12515_v29  ;;  %v3626_v4 = vpop.f32.mrb[26].mxu0  ;;  %v12518_v27 = vsel %vm5938_vm11, %v3771_v11, %v11975_v14  ;;  %v12521_v59 = vsel %vm5938_vm11, 5, %v15134_v48  ;;  %v12524_v41 = vsel %vm4804_vm8, 5, %v12119_v46  ;;  %v15140_v11 = vld [vmem:[#allocation49_spill] sm:$0xff] }
 0x3de   : > { %15133 = vst [vmem:[#allocation160_spill] sm:$0xff] %v12518_v27  ;;  %15135 = vst [vmem:[#allocation112_spill] sm:$0xff] %v12521_v59  ;;  %vm5861_vm5 = vcmp.gt.f32.partialorder %v3626_v4, %v15137_v26  ;;  %v3775_v62 = vpop.f32.mrb[24].mxu1  ;;  %v3628_v22 = vpop.f32.mrb[27].mxu0  ;;  %v15145_v59 = vld [vmem:[#allocation165_spill] sm:$0xff]  ;;  %v15146_v27 = vld [vmem:[#allocation99_spill] sm:$0xff] }
 0x3df   : > { %15136 = vst [vmem:[#allocation25_spill] sm:$0xff] %v12524_v41  ;;  %v12528_v38 = vsel %vm5861_vm5, %v3626_v4, %v15137_v26  ;;  %v12531_v40 = vsel %vm5861_vm5, 4, %v15138_v60  ;;  %vm5363_vm2 = vcmp.gt.f32.partialorder %v3775_v62, %v15139_v2  ;;  %vm4805_vm14 = vcmp.gt.f32.partialorder %v3628_v22, %v12144_v34  ;;  %v3777_v14 = vpop.f32.mrb[25].mxu1 }
 0x3e0   : > { %vm5939_vm7 = vcmp.gt.f32.partialorder %v3777_v14, %v12010_v33  ;;  %v12537_v46 = vsel %vm5363_vm2, %v3775_v62, %v15139_v2  ;;  %v12540_v48 = vsel %vm5363_vm2, 5, %v15140_v11  ;;  %v12543_v41 = vsel %vm4805_vm14, %v3628_v22, %v12144_v34  ;;  %v15148_v22 = vld [vmem:[#allocation168_spill] sm:$0xff] }
 0x3e1   : > { %15141 = vst [vmem:[#allocation127_spill] sm:$0xff] %v12543_v41  ;;  %v3632_v26 = vpop.f32.mrb[28].mxu0  ;;  %v12546_v60 = vsel %vm5939_vm7, %v3777_v14, %v12010_v33  ;;  %v12549_v4 = vsel %vm5939_vm7, 5, %v12013_v8  ;;  %v12552_v29 = vsel %vm4805_vm14, 5, %v12147_v7  ;;  %v15149_v7 = vld [vmem:[#allocation185_spill] sm:$0xff] }
 0x3e2   : > { %15142 = vst [vmem:[#allocation61_spill] sm:$0xff] %v12546_v60  ;;  %15143 = vst [vmem:[#allocation62_spill] sm:$0xff] %v12549_v4  ;;  %vm5862_vm10 = vcmp.gt.f32.partialorder %v3632_v26, %v15145_v59  ;;  %v3781_v62 = vpop.f32.mrb[26].mxu1  ;;  %v3634_v2 = vpop.f32.mrb[29].mxu0  ;;  %v15155_v60 = vld [vmem:[#allocation126_spill] sm:$0xff] }
 0x3e3   : > { %15144 = vst [vmem:[#allocation33_spill] sm:$0xff] %v12552_v29  ;;  %v12556_v11 = vsel %vm5862_vm10, %v3632_v26, %v15145_v59  ;;  %v12559_v34 = vsel %vm5862_vm10, 4, %v15146_v27  ;;  %vm5364_vm13 = vcmp.gt.f32.partialorder %v3781_v62, %v15148_v22  ;;  %vm4806_vm3 = vcmp.gt.f32.partialorder %v3634_v2, %v12172_v23  ;;  %v3783_v33 = vpop.f32.mrb[27].mxu1  ;;  %v15152_v26 = vld [vmem:[#allocation7_spill] sm:$0xff] }
 0x3e4   : > { %15147 = vst [vmem:[#allocation129_spill] sm:$0xff] %v12559_v34  ;;  %vm5940_vm12 = vcmp.gt.f32.partialorder %v3783_v33, %v12045_v61  ;;  %v12565_v8 = vsel %vm5364_vm13, %v3781_v62, %v15148_v22  ;;  %v12568_v14 = vsel %vm5364_vm13, 5, %v15149_v7  ;;  %v12571_v29 = vsel %vm4806_vm3, %v3634_v2, %v12172_v23  ;;  %v15156_v34 = vld [vmem:[#allocation172_spill] sm:$0xff]  ;;  %v15157_v2 = vld [vmem:[#allocation125_spill] sm:$0xff] }
 0x3e5   : > { %15150 = vst [vmem:[#allocation132_spill] sm:$0xff] %v12571_v29  ;;  %v12574_v27 = vsel %vm5940_vm12, %v3783_v33, %v12045_v61  ;;  %v12577_v41 = vsel %vm5940_vm12, 5, %v15152_v26  ;;  %v12580_v4 = vsel %vm4806_vm3, 5, %v12175_v49  ;;  %v15158_v33 = vld [vmem:[#allocation100_spill] sm:$0xff] }
 0x3e6   : > { %v3638_v59 = vpop.f32.mrb[30].mxu0  ;;  %15151 = vst [vmem:[#allocation29_spill] sm:$0xff] %v12574_v27  ;;  %15153 = vst [vmem:[#allocation67_spill] sm:$0xff] %v12577_v41  ;;  %v3787_v62 = vpop.f32.mrb[28].mxu1  ;;  %v15162_v41 = vld [vmem:[#allocation37_spill] sm:$0xff] }
 0x3e7   : > { %15154 = vst [vmem:[#allocation66_spill] sm:$0xff] %v12580_v4  ;;  %vm5863_vm0 = vcmp.gt.f32.partialorder %v3638_v59, %v15155_v60  ;;  %v3640_v22 = vpop.f32.mrb[31].mxu0  ;;  %vm5365_vm1 = vcmp.gt.f32.partialorder %v3787_v62, %v15157_v2  ;;  %v3789_v61 = vpop.f32.mrb[29].mxu1 }
 0x3e8   : > { %v12584_v7 = vsel %vm5863_vm0, %v3638_v59, %v15155_v60  ;;  %v12587_v23 = vsel %vm5863_vm0, 4, %v15156_v34  ;;  %vm4807_vm9 = vcmp.gt.f32.partialorder %v3640_v22, %v12200_v56  ;;  %vm5941_vm4 = vcmp.gt.f32.partialorder %v3789_v61, %v12077_v9 }
 0x3e9   : > { %v12593_v49 = vsel %vm5365_vm1, %v3787_v62, %v15157_v2  ;;  %v12596_v26 = vsel %vm5365_vm1, 5, %v15158_v33  ;;  %v12599_v4 = vsel %vm4807_vm9, %v3640_v22, %v12200_v56  ;;  %v12602_v34 = vsel %vm5941_vm4, %v3789_v61, %v12077_v9  ;;  %v15163_v56 = vld [vmem:[#allocation128_spill] sm:$0xff] }
 0x3ea   : > { %15159 = vst [vmem:[#allocation130_spill] sm:$0xff] %v12599_v4  ;;  %v3644_v60 = vpop.f32.mrb[32].mxu0  ;;  %v12605_v59 = vsel %vm5941_vm4, 5, %v12080_v28  ;;  %v12608_v29 = vsel %vm4807_vm9, 5, %v12203_v44  ;;  %v3793_v62 = vpop.f32.mrb[30].mxu1  ;;  %v15164_v4 = vld [vmem:[#allocation83_spill] sm:$0xff] }
 0x3eb   : > { %15160 = vst [vmem:[#allocation213_spill] sm:$0xff] %v12605_v59  ;;  %15161 = vst [vmem:[#allocation9_spill] sm:$0xff] %v12608_v29  ;;  %vm5864_vm15 = vcmp.gt.f32.partialorder %v3644_v60, %v15162_v41  ;;  %v3646_v2 = vpop.f32.mrb[33].mxu0  ;;  %vm5366_vm6 = vcmp.gt.f32.partialorder %v3793_v62, %v15164_v4  ;;  %v3795_v9 = vpop.f32.mrb[31].mxu1  ;;  %v15165_v44 = vld [vmem:[#allocation59_spill] sm:$0xff]  ;;  %v15170_v59 = vld [vmem:[#allocation198_spill] sm:$0xff] }
 0x3ec   : > { %v12612_v33 = vsel %vm5864_vm15, %v3644_v60, %v15162_v41  ;;  %v12615_v22 = vsel %vm5864_vm15, 4, %v15163_v56  ;;  %vm4808_vm8 = vcmp.gt.f32.partialorder %v3646_v2, %v12228_v1  ;;  %vm5942_vm11 = vcmp.gt.f32.partialorder %v3795_v9, %v12108_v39 }
 0x3ed   : > { %v12621_v28 = vsel %vm5366_vm6, %v3793_v62, %v15164_v4  ;;  %v12624_v61 = vsel %vm5366_vm6, 5, %v15165_v44  ;;  %v12627_v29 = vsel %vm4808_vm8, %v3646_v2, %v12228_v1  ;;  %v12631_v60 = vsel %vm5942_vm11, %v3795_v9, %v12108_v39  ;;  %v15171_v1 = vld [vmem:[#allocation131_spill] sm:$0xff] }
 0x3ee   : > { %15166 = vst [vmem:[#allocation137_spill] sm:$0xff] %v12627_v29  ;;  %v3650_v41 = vpop.f32.mrb[34].mxu0  ;;  %15167 = vst [vmem:[#allocation71_spill] sm:$0xff] %v12631_v60  ;;  %v12634_v56 = vsel %vm5942_vm11, 5, %v12111_v17  ;;  %v12637_v27 = vsel %vm4808_vm8, 5, %v12231_v18  ;;  %v3799_v4 = vpop.f32.mrb[32].mxu1 }
 0x3ef   : > { %15168 = vst [vmem:[#allocation72_spill] sm:$0xff] %v12634_v56  ;;  %15169 = vst [vmem:[#allocation124_spill] sm:$0xff] %v12637_v27  ;;  %vm5865_vm5 = vcmp.gt.f32.partialorder %v3650_v41, %v15170_v59  ;;  %v3652_v62 = vpop.f32.mrb[35].mxu0  ;;  %v15172_v29 = vld [vmem:[#allocation134_spill] sm:$0xff]  ;;  %v3801_v39 = vpop.f32.mrb[33].mxu1  ;;  %v15173_v18 = vld [vmem:[#allocation109_spill] sm:$0xff] }
 0x3f0   : > { %v12641_v44 = vsel %vm5865_vm5, %v3650_v41, %v15170_v59  ;;  %v12644_v2 = vsel %vm5865_vm5, 4, %v15171_v1  ;;  %vm5367_vm2 = vcmp.gt.f32.partialorder %v3799_v4, %v15172_v29  ;;  %vm4809_vm14 = vcmp.gt.f32.partialorder %v3652_v62, %v12256_v37 }
 0x3f1   : > { %vm5943_vm7 = vcmp.gt.f32.partialorder %v3801_v39, %v12137_v51  ;;  %v12650_v17 = vsel %vm5367_vm2, %v3799_v4, %v15172_v29  ;;  %v12653_v9 = vsel %vm5367_vm2, 5, %v15173_v18  ;;  %v12656_v27 = vsel %vm4809_vm14, %v3652_v62, %v12256_v37  ;;  %v15176_v37 = vld [vmem:[#allocation179_spill] sm:$0xff]  ;;  %v15177_v18 = vld [vmem:[#allocation88_spill] sm:$0xff] }
 0x3f2   : > { %15174 = vst [vmem:[#allocation54_spill] sm:$0xff] %v12656_v27  ;;  %v3978_v59 = vpop.f32.mrb[36].mxu0  ;;  %v12664_v41 = vsel %vm5943_vm7, %v3801_v39, %v12137_v51  ;;  %v12667_v29 = vsel %vm5943_vm7, 5, %v12140_v57  ;;  %v12670_v4 = vsel %vm4809_vm14, 5, %v12259_v32  ;;  %v3805_v1 = vpop.f32.mrb[34].mxu1  ;;  %v15178_v27 = vld [vmem:[#allocation135_spill] sm:$0xff] }
 0x3f3   : > { %15175 = vst [vmem:[#allocation42_spill] sm:$0xff] %v12670_v4  ;;  %vm4874_vm10 = vcmp.gt.f32.partialorder %v3978_v59, %v15176_v37  ;;  %v3980_v62 = vpop.f32.mrb[37].mxu0  ;;  %vm5368_vm13 = vcmp.gt.f32.partialorder %v3805_v1, %v15177_v18  ;;  %v3807_v60 = vpop.f32.mrb[35].mxu1  ;;  %v15179_v32 = vld [vmem:[#allocation64_spill] sm:$0xff]  ;;  %v15182_v37 = vld [vmem:[#allocation43_spill] sm:$0xff] }
 0x3f4   : > { %v4906_v56 = vsel %vm4874_vm10, 6, %v15178_v27  ;;  %vm5450_vm3 = vcmp.gt.f32.partialorder %v3980_v62, %v12285_v63  ;;  %vm5944_vm12 = vcmp.gt.f32.partialorder %v3807_v60, %v12165_v0  ;;  %v12680_v57 = vsel %vm5368_vm13, %v3805_v1, %v15177_v18  ;;  %v15184_v1 = vld [vmem:[#allocation182_spill] sm:$0xff] }
 0x3f5   : > { %4938 = vst [vmem:[%s12661_s17] sm:$0xff] %v4906_v56  ;;  %v5482_v51 = vsel %vm5450_vm3, 6, %v12288_v20  ;;  %v12683_v39 = vsel %vm5368_vm13, 5, %v15179_v32  ;;  %v12687_v27 = vsel %vm5944_vm12, %v3807_v60, %v12165_v0  ;;  %v12690_v63 = vsel %vm5944_vm12, 5, %v12168_v25  ;;  %v15183_v20 = vld [vmem:[#allocation90_spill] sm:$0xff]  ;;  %v15185_v60 = vld [vmem:[#allocation201_spill] sm:$0xff] }
 0x3f6   : > { %5514 = vst [vmem:[%s12661_s17 + $0x8] sm:$0xff] %v5482_v51  ;;  %v3984_v59 = vpop.f32.mrb[38].mxu0  ;;  %15180 = vst [vmem:[#allocation133_spill] sm:$0xff] %v12687_v27 }
 0x3f7   : > { %15181 = vst [vmem:[#allocation141_spill] sm:$0xff] %v12690_v63  ;;  %v3811_v56 = vpop.f32.mrb[36].mxu1  ;;  %vm4875_vm0 = vcmp.gt.f32.partialorder %v3984_v59, %v15182_v37  ;;  %v3986_v62 = vpop.f32.mrb[39].mxu0  ;;  %v15186_v37 = vld [vmem:[#allocation87_spill] sm:$0xff] }
 0x3f8   : > { %vm5369_vm1 = vcmp.gt.f32.partialorder %v3811_v56, %v15183_v20  ;;  %v4907_v18 = vsel %vm4875_vm0, 6, %v15184_v1  ;;  %v3813_v4 = vpop.f32.mrb[37].mxu1  ;;  %vm5451_vm9 = vcmp.gt.f32.partialorder %v3986_v62, %v12313_v58  ;;  %v15188_v1 = vld [vmem:[#allocation136_spill] sm:$0xff] }
 0x3f9   : > { %4939 = vst [vmem:[%s12661_s17 + $0x18] sm:$0xff] %v4907_v18  ;;  %vm5945_vm4 = vcmp.gt.f32.partialorder %v3813_v4, %v12193_v30  ;;  %v5483_v0 = vsel %vm5451_vm9, 6, %v12316_v50  ;;  %v12700_v25 = vsel %vm5369_vm1, %v3811_v56, %v15183_v20  ;;  %v12703_v51 = vsel %vm5369_vm1, 5, %v15185_v60  ;;  %v15189_v50 = vld [vmem:[#allocation139_spill] sm:$0xff]  ;;  %v15190_v56 = vld [vmem:[#allocation6_spill] sm:$0xff]  ;;  %v15192_v60 = vld [vmem:[#allocation45_spill] sm:$0xff] }
 0x3fa   : > { %5515 = vst [vmem:[%s12661_s17 + $0x20] sm:$0xff] %v5483_v0  ;;  %v3990_v32 = vpop.f32.mrb[40].mxu0  ;;  %v12707_v59 = vsel %vm5945_vm4, %v3813_v4, %v12193_v30  ;;  %v12710_v58 = vsel %vm5945_vm4, 5, %v15186_v37  ;;  %v15191_v0 = vld [vmem:[#allocation74_spill] sm:$0xff] }
 0x3fb   : > { %15187 = vst [vmem:[#allocation76_spill] sm:$0xff] %v12710_v58  ;;  %v3817_v62 = vpop.f32.mrb[38].mxu1  ;;  %vm4876_vm15 = vcmp.gt.f32.partialorder %v3990_v32, %v15188_v1  ;;  %v3992_v18 = vpop.f32.mrb[41].mxu0 }
 0x3fc   : > { %vm5370_vm6 = vcmp.gt.f32.partialorder %v3817_v62, %v15189_v50  ;;  %v4908_v20 = vsel %vm4876_vm15, 6, %v15190_v56  ;;  %v3819_v63 = vpop.f32.mrb[39].mxu1  ;;  %vm5452_vm8 = vcmp.gt.f32.partialorder %v3992_v18, %v12341_v31  ;;  %v15194_v56 = vld [vmem:[#allocation93_spill] sm:$0xff] }
 0x3fd   : > { %4940 = vst [vmem:[%s12661_s17 + $0x30] sm:$0xff] %v4908_v20  ;;  %vm5946_vm11 = vcmp.gt.f32.partialorder %v3819_v63, %v15191_v0  ;;  %v5484_v30 = vsel %vm5452_vm8, 6, %v12344_v54  ;;  %v12720_v4 = vsel %vm5370_vm6, %v3817_v62, %v15189_v50  ;;  %v12723_v37 = vsel %vm5370_vm6, 5, %v15192_v60  ;;  %v15196_v20 = vld [vmem:[#allocation119_spill] sm:$0xff]  ;;  %v15197_v54 = vld [vmem:[#allocation138_spill] sm:$0xff]  ;;  %v15198_v62 = vld [vmem:[#allocation140_spill] sm:$0xff] }
 0x3fe   : > { %5516 = vst [vmem:[%s12661_s17 + $0x38] sm:$0xff] %v5484_v30  ;;  %v3996_v32 = vpop.f32.mrb[42].mxu0  ;;  %v12727_v1 = vsel %vm5946_vm11, %v3819_v63, %v15191_v0  ;;  %v12730_v31 = vsel %vm5946_vm11, 5, %v15194_v56  ;;  %v15199_v30 = vld [vmem:[#allocation216_spill] sm:$0xff]  ;;  %v15200_v60 = vld [vmem:[#allocation69_spill] sm:$0xff] }
 0x3ff   : > { %15193 = vst [vmem:[#allocation80_spill] sm:$0xff] %v12727_v1  ;;  %15195 = vst [vmem:[#allocation35_spill] sm:$0xff] %v12730_v31  ;;  %v3823_v18 = vpop.f32.mrb[40].mxu1  ;;  %vm4877_vm5 = vcmp.gt.f32.partialorder %v3996_v32, %v15196_v20  ;;  %v3998_v27 = vpop.f32.mrb[43].mxu0 }
 0x400   : > { %vm5371_vm2 = vcmp.gt.f32.partialorder %v3823_v18, %v15197_v54  ;;  %v4909_v50 = vsel %vm4877_vm5, 6, %v15198_v62  ;;  %v3825_v58 = vpop.f32.mrb[41].mxu1  ;;  %vm5453_vm14 = vcmp.gt.f32.partialorder %v3998_v27, %v12369_v36  ;;  %v15201_v62 = vld [vmem:[#allocation146_spill] sm:$0xff] }
 0x401   : > { %4941 = vst [vmem:[%s12661_s17 + $0x48] sm:$0xff] %v4909_v50  ;;  %vm5947_vm7 = vcmp.gt.f32.partialorder %v3825_v58, %v15199_v30  ;;  %v5485_v63 = vsel %vm5453_vm14, 6, %v12372_v47  ;;  %v12740_v0 = vsel %vm5371_vm2, %v3823_v18, %v15197_v54  ;;  %v12743_v56 = vsel %vm5371_vm2, 5, %v15200_v60  ;;  %v15203_v50 = vld [vmem:[#allocation161_spill] sm:$0xff]  ;;  %v15204_v47 = vld [vmem:[#allocation46_spill] sm:$0xff]  ;;  %v15205_v18 = vld [vmem:[#allocation143_spill] sm:$0xff] }
 0x402   : > { %5517 = vst [vmem:[%s12661_s17 + $0x50] sm:$0xff] %v5485_v63  ;;  %v4002_v32 = vpop.f32.mrb[44].mxu0  ;;  %v12747_v20 = vsel %vm5947_vm7, %v3825_v58, %v15199_v30  ;;  %v12750_v36 = vsel %vm5947_vm7, 5, %v15201_v62  ;;  %v15206_v63 = vld [vmem:[#allocation19_spill] sm:$0xff] }
 0x403   : > { %15202 = vst [vmem:[#allocation217_spill] sm:$0xff] %v12750_v36  ;;  %v3829_v27 = vpop.f32.mrb[42].mxu1  ;;  %vm4878_vm10 = vcmp.gt.f32.partialorder %v4002_v32, %v15203_v50  ;;  %v4004_v31 = vpop.f32.mrb[45].mxu0  ;;  %v15207_v50 = vld [vmem:[#allocation219_spill] sm:$0xff] }
 0x404   : > { %vm5372_vm13 = vcmp.gt.f32.partialorder %v3829_v27, %v15204_v47  ;;  %v4910_v54 = vsel %vm4878_vm10, 6, %v15205_v18  ;;  %v3831_v1 = vpop.f32.mrb[43].mxu1  ;;  %vm5454_vm3 = vcmp.gt.f32.partialorder %v4004_v31, %v12397_v21  ;;  %v15209_v18 = vld [vmem:[#allocation11_spill] sm:$0xff] }
 0x405   : > { %4942 = vst [vmem:[%s12661_s17 + $0x60] sm:$0xff] %v4910_v54  ;;  %vm5948_vm12 = vcmp.gt.f32.partialorder %v3831_v1, %v12276_v52  ;;  %v5486_v58 = vsel %vm5454_vm3, 6, %v12400_v19  ;;  %v12760_v30 = vsel %vm5372_vm13, %v3829_v27, %v15204_v47  ;;  %v12763_v60 = vsel %vm5372_vm13, 5, %v15206_v63  ;;  %v15210_v19 = vld [vmem:[#allocation200_spill] sm:$0xff]  ;;  %v15211_v27 = vld [vmem:[#allocation53_spill] sm:$0xff] }
 0x406   : > { %5518 = vst [vmem:[%s12661_s17 + $0x68] sm:$0xff] %v5486_v58  ;;  %v4008_v32 = vpop.f32.mrb[46].mxu0  ;;  %v12767_v62 = vsel %vm5948_vm12, %v3831_v1, %v12276_v52  ;;  %v12770_v21 = vsel %vm5948_vm12, 5, %v15207_v50  ;;  %v15212_v58 = vld [vmem:[#allocation144_spill] sm:$0xff] }
 0x407   : > { %15208 = vst [vmem:[#allocation81_spill] sm:$0xff] %v12770_v21  ;;  %v3835_v31 = vpop.f32.mrb[44].mxu1  ;;  %vm4879_vm0 = vcmp.gt.f32.partialorder %v4008_v32, %v15209_v18  ;;  %v4010_v54 = vpop.f32.mrb[47].mxu0 }
 0x408   : > { %vm5373_vm1 = vcmp.gt.f32.partialorder %v3835_v31, %v15210_v19  ;;  %v4911_v47 = vsel %vm4879_vm0, 6, %v15211_v27  ;;  %v3837_v36 = vpop.f32.mrb[45].mxu1  ;;  %vm5455_vm9 = vcmp.gt.f32.partialorder %v4010_v54, %v12425_v13  ;;  %v15213_v54 = vld [vmem:[#allocation23_spill] sm:$0xff] }
 0x409   : > { %4943 = vst [vmem:[%s12661_s17 + $0x78] sm:$0xff] %v4911_v47  ;;  %vm5949_vm4 = vcmp.gt.f32.partialorder %v3837_v36, %v12304_v43  ;;  %v5487_v52 = vsel %vm5455_vm9, 6, %v12428_v5  ;;  %v12780_v1 = vsel %vm5373_vm1, %v3835_v31, %v15210_v19  ;;  %v12783_v63 = vsel %vm5373_vm1, 5, %v15212_v58  ;;  %v15214_v5 = vld [vmem:[#allocation14_spill] sm:$0xff]  ;;  %v15215_v31 = vld [vmem:[#allocation148_spill] sm:$0xff] }
 0x40a   : > { %5519 = vst [vmem:[%s12661_s17 + $0x80] sm:$0xff] %v5487_v52  ;;  %v4014_v32 = vpop.f32.mrb[48].mxu0  ;;  %v12787_v50 = vsel %vm5949_vm4, %v3837_v36, %v12304_v43  ;;  %v12790_v13 = vsel %vm5949_vm4, 5, %v12307_v10  ;;  %v15216_v36 = vld [vmem:[#allocation203_spill] sm:$0xff] }
 0x40b   : > { %v3841_v18 = vpop.f32.mrb[46].mxu1  ;;  %vm4880_vm15 = vcmp.gt.f32.partialorder %v4014_v32, %v15213_v54  ;;  %v4016_v27 = vpop.f32.mrb[49].mxu0  ;;  %v15218_v54 = vld [vmem:[#allocation196_spill] sm:$0xff] }
 0x40c   : > { %vm5374_vm6 = vcmp.gt.f32.partialorder %v3841_v18, %v15214_v5  ;;  %v4912_v19 = vsel %vm4880_vm15, 6, %v15215_v31  ;;  %v3843_v47 = vpop.f32.mrb[47].mxu1  ;;  %vm5456_vm8 = vcmp.gt.f32.partialorder %v4016_v27, %v12453_v24  ;;  %v15220_v31 = vld [vmem:[#allocation55_spill] sm:$0xff] }
 0x40d   : > { %4944 = vst [vmem:[%s12661_s17 + $0x90] sm:$0xff] %v4912_v19  ;;  %vm5950_vm11 = vcmp.gt.f32.partialorder %v3843_v47, %v12332_v3  ;;  %v5488_v43 = vsel %vm5456_vm8, 6, %v12456_v16  ;;  %v12800_v10 = vsel %vm5374_vm6, %v3841_v18, %v15214_v5  ;;  %v12803_v52 = vsel %vm5374_vm6, 5, %v15216_v36  ;;  %v15221_v16 = vld [vmem:[#allocation27_spill] sm:$0xff]  ;;  %v15224_v36 = vld [vmem:[#allocation153_spill] sm:$0xff] }
 0x40e   : > { %5520 = vst [vmem:[%s12661_s17 + $0x98] sm:$0xff] %v5488_v43  ;;  %v4020_v58 = vpop.f32.mrb[50].mxu0  ;;  %v12807_v32 = vsel %vm5950_vm11, %v3843_v47, %v12332_v3  ;;  %v12810_v24 = vsel %vm5950_vm11, 5, %v15218_v54  ;;  %v15222_v18 = vld [vmem:[#allocation63_spill] sm:$0xff]  ;;  %v15223_v43 = vld [vmem:[#allocation142_spill] sm:$0xff] }
 0x40f   : > { %15217 = vst [vmem:[#allocation218_spill] sm:$0xff] %v12807_v32  ;;  %15219 = vst [vmem:[#allocation145_spill] sm:$0xff] %v12810_v24  ;;  %v3847_v27 = vpop.f32.mrb[48].mxu1  ;;  %vm4881_vm5 = vcmp.gt.f32.partialorder %v4020_v58, %v15220_v31  ;;  %v4022_v19 = vpop.f32.mrb[51].mxu0 }
 0x410   : > { %vm5375_vm2 = vcmp.gt.f32.partialorder %v3847_v27, %v15221_v16  ;;  %v4913_v5 = vsel %vm4881_vm5, 6, %v15222_v18  ;;  %v3849_v21 = vpop.f32.mrb[49].mxu1  ;;  %vm5457_vm14 = vcmp.gt.f32.partialorder %v4022_v19, %v12481_v15  ;;  %v15226_v18 = vld [vmem:[#allocation34_spill] sm:$0xff] }
 0x411   : > { %4945 = vst [vmem:[%s12661_s17 + $0xa8] sm:$0xff] %v4913_v5  ;;  %vm5951_vm7 = vcmp.gt.f32.partialorder %v3849_v21, %v15223_v43  ;;  %v5489_v3 = vsel %vm5457_vm14, 6, %v12484_v53  ;;  %v12820_v47 = vsel %vm5375_vm2, %v3847_v27, %v15221_v16  ;;  %v12823_v54 = vsel %vm5375_vm2, 5, %v15224_v36  ;;  %v15228_v5 = vld [vmem:[#allocation31_spill] sm:$0xff]  ;;  %v15229_v53 = vld [vmem:[#allocation89_spill] sm:$0xff]  ;;  %v15230_v27 = vld [vmem:[#allocation68_spill] sm:$0xff] }
 0x412   : > { %5521 = vst [vmem:[%s12661_s17 + $0xb0] sm:$0xff] %v5489_v3  ;;  %v4026_v58 = vpop.f32.mrb[52].mxu0  ;;  %v12827_v31 = vsel %vm5951_vm7, %v3849_v21, %v15223_v43  ;;  %v12830_v15 = vsel %vm5951_vm7, 5, %v15226_v18  ;;  %v15231_v3 = vld [vmem:[#allocation147_spill] sm:$0xff]  ;;  %v15232_v36 = vld [vmem:[#allocation158_spill] sm:$0xff] }
 0x413   : > { %15225 = vst [vmem:[#allocation82_spill] sm:$0xff] %v12827_v31  ;;  %15227 = vst [vmem:[#allocation174_spill] sm:$0xff] %v12830_v15  ;;  %v3853_v19 = vpop.f32.mrb[50].mxu1  ;;  %vm4882_vm10 = vcmp.gt.f32.partialorder %v4026_v58, %v15228_v5  ;;  %v4028_v24 = vpop.f32.mrb[53].mxu0 }
 0x414   : > { %vm5376_vm13 = vcmp.gt.f32.partialorder %v3853_v19, %v15229_v53  ;;  %v4914_v16 = vsel %vm4882_vm10, 6, %v15230_v27  ;;  %v3855_v32 = vpop.f32.mrb[51].mxu1  ;;  %vm5458_vm3 = vcmp.gt.f32.partialorder %v4028_v24, %v12509_v6  ;;  %v15234_v27 = vld [vmem:[#allocation206_spill] sm:$0xff] }
 0x415   : > { %4946 = vst [vmem:[%s12661_s17 + $0xc0] sm:$0xff] %v4914_v16  ;;  %vm5952_vm12 = vcmp.gt.f32.partialorder %v3855_v32, %v15231_v3  ;;  %v5490_v21 = vsel %vm5458_vm3, 6, %v12512_v55  ;;  %v12840_v43 = vsel %vm5376_vm13, %v3853_v19, %v15229_v53  ;;  %v12843_v18 = vsel %vm5376_vm13, 5, %v15232_v36  ;;  %v15236_v16 = vld [vmem:[#allocation65_spill] sm:$0xff]  ;;  %v15237_v55 = vld [vmem:[#allocation94_spill] sm:$0xff] }
 0x416   : > { %5522 = vst [vmem:[%s12661_s17 + $0xc8] sm:$0xff] %v5490_v21  ;;  %v4032_v58 = vpop.f32.mrb[54].mxu0  ;;  %v12847_v5 = vsel %vm5952_vm12, %v3855_v32, %v15231_v3  ;;  %v12850_v6 = vsel %vm5952_vm12, 5, %v15234_v27  ;;  %v15238_v19 = vld [vmem:[#allocation73_spill] sm:$0xff]  ;;  %v15239_v21 = vld [vmem:[#allocation163_spill] sm:$0xff] }
 0x417   : > { %15233 = vst [vmem:[#allocation86_spill] sm:$0xff] %v12847_v5  ;;  %15235 = vst [vmem:[#allocation149_spill] sm:$0xff] %v12850_v6  ;;  %v3859_v24 = vpop.f32.mrb[52].mxu1  ;;  %vm4883_vm0 = vcmp.gt.f32.partialorder %v4032_v58, %v15236_v16  ;;  %v4034_v15 = vpop.f32.mrb[55].mxu0  ;;  %v15240_v16 = vld [vmem:[#allocation195_spill] sm:$0xff] }
 0x418   : > { %vm5377_vm1 = vcmp.gt.f32.partialorder %v3859_v24, %v15237_v55  ;;  %v4915_v53 = vsel %vm4883_vm0, 6, %v15238_v19  ;;  %v3861_v31 = vpop.f32.mrb[53].mxu1  ;;  %vm5459_vm9 = vcmp.gt.f32.partialorder %v4034_v15, %v12537_v46  ;;  %v15241_v19 = vld [vmem:[#allocation57_spill] sm:$0xff] }
 0x419   : > { %4947 = vst [vmem:[%s12661_s17 + $0xd8] sm:$0xff] %v4915_v53  ;;  %vm5953_vm4 = vcmp.gt.f32.partialorder %v3861_v31, %v12416_v12  ;;  %v5491_v32 = vsel %vm5459_vm9, 6, %v12540_v48  ;;  %v12860_v3 = vsel %vm5377_vm1, %v3859_v24, %v15237_v55  ;;  %v12863_v36 = vsel %vm5377_vm1, 5, %v15239_v21  ;;  %v15242_v48 = vld [vmem:[#allocation167_spill] sm:$0xff] }
 0x41a   : > { %5523 = vst [vmem:[%s12661_s17 + $0xe0] sm:$0xff] %v5491_v32  ;;  %v4038_v58 = vpop.f32.mrb[56].mxu0  ;;  %v12867_v27 = vsel %vm5953_vm4, %v3861_v31, %v12416_v12  ;;  %v12870_v46 = vsel %vm5953_vm4, 5, %v15240_v16  ;;  %v15243_v24 = vld [vmem:[#allocation75_spill] sm:$0xff]  ;;  %v15244_v32 = vld [vmem:[#allocation26_spill] sm:$0xff] }
 0x41b   : > { %v3865_v15 = vpop.f32.mrb[54].mxu1  ;;  %vm4884_vm15 = vcmp.gt.f32.partialorder %v4038_v58, %v15241_v19  ;;  %v4040_v53 = vpop.f32.mrb[57].mxu0  ;;  %v15246_v19 = vld [vmem:[#allocation190_spill] sm:$0xff] }
 0x41c   : > { %vm5378_vm6 = vcmp.gt.f32.partialorder %v3865_v15, %v15242_v48  ;;  %v4916_v55 = vsel %vm4884_vm15, 6, %v15243_v24  ;;  %v3867_v6 = vpop.f32.mrb[55].mxu1  ;;  %vm5460_vm8 = vcmp.gt.f32.partialorder %v4040_v53, %v12565_v8  ;;  %v15248_v24 = vld [vmem:[#allocation12_spill] sm:$0xff] }
 0x41d   : > { %4948 = vst [vmem:[%s12661_s17 + $0xf0] sm:$0xff] %v4916_v55  ;;  %vm5954_vm11 = vcmp.gt.f32.partialorder %v3867_v6, %v12444_v42  ;;  %v5492_v12 = vsel %vm5460_vm8, 6, %v12568_v14  ;;  %v12880_v31 = vsel %vm5378_vm6, %v3865_v15, %v15242_v48  ;;  %v12883_v21 = vsel %vm5378_vm6, 5, %v15244_v32  ;;  %v15249_v14 = vld [vmem:[#allocation192_spill] sm:$0xff]  ;;  %v15250_v15 = vld [vmem:[#allocation101_spill] sm:$0xff] }
 0x41e   : > { %5524 = vst [vmem:[%s12661_s17 + $0xf8] sm:$0xff] %v5492_v12  ;;  %v4044_v58 = vpop.f32.mrb[58].mxu0  ;;  %v12887_v16 = vsel %vm5954_vm11, %v3867_v6, %v12444_v42  ;;  %v12890_v8 = vsel %vm5954_vm11, 5, %v15246_v19  ;;  %v15251_v12 = vld [vmem:[#allocation78_spill] sm:$0xff] }
 0x41f   : > { %15245 = vst [vmem:[#allocation151_spill] sm:$0xff] %v12887_v16  ;;  %15247 = vst [vmem:[#allocation20_spill] sm:$0xff] %v12890_v8  ;;  %v3871_v53 = vpop.f32.mrb[56].mxu1  ;;  %vm4885_vm5 = vcmp.gt.f32.partialorder %v4044_v58, %v15248_v24  ;;  %v4046_v55 = vpop.f32.mrb[59].mxu0  ;;  %v15252_v24 = vld [vmem:[#allocation21_spill] sm:$0xff] }
 0x420   : > { %vm5379_vm2 = vcmp.gt.f32.partialorder %v3871_v53, %v15249_v14  ;;  %v4917_v48 = vsel %vm4885_vm5, 6, %v15250_v15  ;;  %v3873_v5 = vpop.f32.mrb[57].mxu1  ;;  %vm5461_vm14 = vcmp.gt.f32.partialorder %v4046_v55, %v12593_v49  ;;  %v15253_v15 = vld [vmem:[#allocation77_spill] sm:$0xff] }
 0x421   : > { %4949 = vst [vmem:[%s12661_s17 + $0x108] sm:$0xff] %v4917_v48  ;;  %vm5955_vm7 = vcmp.gt.f32.partialorder %v3873_v5, %v12472_v35  ;;  %v5493_v42 = vsel %vm5461_vm14, 6, %v12596_v26  ;;  %v12900_v6 = vsel %vm5379_vm2, %v3871_v53, %v15249_v14  ;;  %v12903_v32 = vsel %vm5379_vm2, 5, %v15251_v12  ;;  %v15254_v26 = vld [vmem:[#allocation16_spill] sm:$0xff]  ;;  %v15255_v53 = vld [vmem:[#allocation15_spill] sm:$0xff] }
 0x422   : > { %5525 = vst [vmem:[%s12661_s17 + $0x110] sm:$0xff] %v5493_v42  ;;  %v4050_v58 = vpop.f32.mrb[60].mxu0  ;;  %v12907_v19 = vsel %vm5955_vm7, %v3873_v5, %v12472_v35  ;;  %v12910_v49 = vsel %vm5955_vm7, 5, %v15252_v24  ;;  %v15256_v42 = vld [vmem:[#allocation212_spill] sm:$0xff] }
 0x423   : > { %v3877_v55 = vpop.f32.mrb[58].mxu1  ;;  %vm4886_vm10 = vcmp.gt.f32.partialorder %v4050_v58, %v15253_v15  ;;  %v4052_v48 = vpop.f32.mrb[61].mxu0  ;;  %v15257_v15 = vld [vmem:[#allocation121_spill] sm:$0xff] }
 0x424   : > { %vm5380_vm13 = vcmp.gt.f32.partialorder %v3877_v55, %v15254_v26  ;;  %v4918_v14 = vsel %vm4886_vm10, 6, %v15255_v53  ;;  %v3879_v8 = vpop.f32.mrb[59].mxu1  ;;  %vm5462_vm3 = vcmp.gt.f32.partialorder %v4052_v48, %v12621_v28  ;;  %v15259_v53 = vld [vmem:[#allocation170_spill] sm:$0xff] }
 0x425   : > { %4950 = vst [vmem:[%s12661_s17 + $0x120] sm:$0xff] %v4918_v14  ;;  %vm5956_vm12 = vcmp.gt.f32.partialorder %v3879_v8, %v12500_v45  ;;  %v5494_v35 = vsel %vm5462_vm3, 6, %v12624_v61  ;;  %v12920_v5 = vsel %vm5380_vm13, %v3877_v55, %v15254_v26  ;;  %v12923_v12 = vsel %vm5380_vm13, 5, %v15256_v42  ;;  %v15260_v61 = vld [vmem:[#allocation173_spill] sm:$0xff]  ;;  %v15261_v55 = vld [vmem:[#allocation178_spill] sm:$0xff] }
 0x426   : > { %5526 = vst [vmem:[%s12661_s17 + $0x128] sm:$0xff] %v5494_v35  ;;  %v4056_v58 = vpop.f32.mrb[62].mxu0  ;;  %v12927_v24 = vsel %vm5956_vm12, %v3879_v8, %v12500_v45  ;;  %v12930_v28 = vsel %vm5956_vm12, 5, %v15257_v15  ;;  %v15262_v35 = vld [vmem:[#allocation104_spill] sm:$0xff] }
 0x427   : > { %15258 = vst [vmem:[#allocation40_spill] sm:$0xff] %v12930_v28  ;;  %v3883_v48 = vpop.f32.mrb[60].mxu1  ;;  %vm4887_vm0 = vcmp.gt.f32.partialorder %v4056_v58, %v15259_v53  ;;  %v4058_v14 = vpop.f32.mrb[63].mxu0 }
 0x428   : > { %vm5381_vm1 = vcmp.gt.f32.partialorder %v3883_v48, %v15260_v61  ;;  %v4919_v26 = vsel %vm4887_vm0, 6, %v15261_v55  ;;  %v3885_v16 = vpop.f32.mrb[61].mxu1  ;;  %vm5463_vm9 = vcmp.gt.f32.partialorder %v4058_v14, %v12650_v17  ;;  %v15263_v14 = vld [vmem:[#allocation85_spill] sm:$0xff] }
 0x429   : > { %4951 = vst [vmem:[%s12661_s17 + $0x138] sm:$0xff] %v4919_v26  ;;  %vm5957_vm4 = vcmp.gt.f32.partialorder %v3885_v16, %v12528_v38  ;;  %v5495_v45 = vsel %vm5463_vm9, 6, %v12653_v9  ;;  %v12940_v8 = vsel %vm5381_vm1, %v3883_v48, %v15260_v61  ;;  %v12943_v42 = vsel %vm5381_vm1, 5, %v15262_v35  ;;  %v15264_v9 = vld [vmem:[#allocation176_spill] sm:$0xff]  ;;  %v15265_v48 = vld [vmem:[#allocation38_spill] sm:$0xff] }
 0x42a   : > { %5527 = vst [vmem:[%s12661_s17 + $0x140] sm:$0xff] %v5495_v45  ;;  %v4062_v58 = vpop.f32.mrb[64].mxu0  ;;  %v12947_v15 = vsel %vm5957_vm4, %v3885_v16, %v12528_v38  ;;  %v12950_v17 = vsel %vm5957_vm4, 5, %v12531_v40  ;;  %v15266_v16 = vld [vmem:[#allocation18_spill] sm:$0xff] }
 0x42b   : > { %v3889_v53 = vpop.f32.mrb[62].mxu1  ;;  %vm4888_vm15 = vcmp.gt.f32.partialorder %v4062_v58, %v15263_v14  ;;  %v4064_v55 = vpop.f32.mrb[65].mxu0  ;;  %v15267_v14 = vld [vmem:[#allocation129_spill] sm:$0xff] }
 0x42c   : > { %vm5382_vm6 = vcmp.gt.f32.partialorder %v3889_v53, %v15264_v9  ;;  %v4920_v61 = vsel %vm4888_vm15, 6, %v15265_v48  ;;  %v3891_v26 = vpop.f32.mrb[63].mxu1  ;;  %vm5464_vm8 = vcmp.gt.f32.partialorder %v4064_v55, %v12680_v57  ;;  %v15268_v48 = vld [vmem:[#allocation4_spill] sm:$0xff] }
 0x42d   : > { %4952 = vst [vmem:[%s12661_s17 + $0x150] sm:$0xff] %v4920_v61  ;;  %vm5958_vm11 = vcmp.gt.f32.partialorder %v3891_v26, %v12556_v11  ;;  %v5496_v38 = vsel %vm5464_vm8, 6, %v12683_v39  ;;  %v12960_v40 = vsel %vm5382_vm6, %v3889_v53, %v15264_v9  ;;  %v12963_v45 = vsel %vm5382_vm6, 5, %v15266_v16  ;;  %v15269_v39 = vld [vmem:[#allocation5_spill] sm:$0xff]  ;;  %v15270_v53 = vld [vmem:[#allocation214_spill] sm:$0xff] }
 0x42e   : > { %5528 = vst [vmem:[%s12661_s17 + $0x158] sm:$0xff] %v5496_v38  ;;  %v4068_v35 = vpop.f32.mrb[66].mxu0  ;;  %v12967_v58 = vsel %vm5958_vm11, %v3891_v26, %v12556_v11  ;;  %v12970_v57 = vsel %vm5958_vm11, 5, %v15267_v14  ;;  %v15271_v38 = vld [vmem:[#allocation184_spill] sm:$0xff] }
 0x42f   : > { %v3895_v55 = vpop.f32.mrb[64].mxu1  ;;  %vm4889_vm5 = vcmp.gt.f32.partialorder %v4068_v35, %v15268_v48  ;;  %v4070_v61 = vpop.f32.mrb[67].mxu0 }
 0x430   : > { %vm5383_vm2 = vcmp.gt.f32.partialorder %v3895_v55, %v15269_v39  ;;  %v4921_v9 = vsel %vm4889_vm5, 6, %v15270_v53  ;;  %v3897_v28 = vpop.f32.mrb[65].mxu1  ;;  %vm5465_vm14 = vcmp.gt.f32.partialorder %v4070_v61, %v12700_v25  ;;  %v15272_v61 = vld [vmem:[#allocation22_spill] sm:$0xff] }
 0x431   : > { %4953 = vst [vmem:[%s12661_s17 + $0x168] sm:$0xff] %v4921_v9  ;;  %vm5959_vm7 = vcmp.gt.f32.partialorder %v3897_v28, %v12584_v7  ;;  %v5497_v11 = vsel %vm5465_vm14, 6, %v12703_v51  ;;  %v12980_v26 = vsel %vm5383_vm2, %v3895_v55, %v15269_v39  ;;  %v12983_v16 = vsel %vm5383_vm2, 5, %v15271_v38  ;;  %v15273_v51 = vld [vmem:[#allocation193_spill] sm:$0xff]  ;;  %v15274_v55 = vld [vmem:[#allocation215_spill] sm:$0xff] }
 0x432   : > { %5529 = vst [vmem:[%s12661_s17 + $0x170] sm:$0xff] %v5497_v11  ;;  %v4074_v35 = vpop.f32.mrb[68].mxu0  ;;  %v12987_v14 = vsel %vm5959_vm7, %v3897_v28, %v12584_v7  ;;  %v12990_v25 = vsel %vm5959_vm7, 5, %v12587_v23  ;;  %v15275_v28 = vld [vmem:[#allocation188_spill] sm:$0xff] }
 0x433   : > { %v3901_v48 = vpop.f32.mrb[66].mxu1  ;;  %vm4890_vm10 = vcmp.gt.f32.partialorder %v4074_v35, %v15272_v61  ;;  %v4076_v53 = vpop.f32.mrb[69].mxu0 }
 0x434   : > { %vm5384_vm13 = vcmp.gt.f32.partialorder %v3901_v48, %v15273_v51  ;;  %v4922_v39 = vsel %vm4890_vm10, 6, %v15274_v55  ;;  %v3903_v9 = vpop.f32.mrb[67].mxu1  ;;  %vm5466_vm3 = vcmp.gt.f32.partialorder %v4076_v53, %v12720_v4  ;;  %v15276_v53 = vld [vmem:[#allocation194_spill] sm:$0xff] }
 0x435   : > { %4954 = vst [vmem:[%s12661_s17 + $0x180] sm:$0xff] %v4922_v39  ;;  %vm5960_vm12 = vcmp.gt.f32.partialorder %v3903_v9, %v12612_v33  ;;  %v5498_v7 = vsel %vm5466_vm3, 6, %v12723_v37  ;;  %v13000_v23 = vsel %vm5384_vm13, %v3901_v48, %v15273_v51  ;;  %v13003_v11 = vsel %vm5384_vm13, 5, %v15275_v28  ;;  %v15277_v37 = vld [vmem:[#allocation98_spill] sm:$0xff]  ;;  %v15278_v48 = vld [vmem:[#allocation24_spill] sm:$0xff] }
 0x436   : > { %5530 = vst [vmem:[%s12661_s17 + $0x188] sm:$0xff] %v5498_v7  ;;  %v4080_v38 = vpop.f32.mrb[70].mxu0  ;;  %v13007_v35 = vsel %vm5960_vm12, %v3903_v9, %v12612_v33  ;;  %v13010_v4 = vsel %vm5960_vm12, 5, %v12615_v22  ;;  %v15279_v9 = vld [vmem:[#allocation197_spill] sm:$0xff] }
 0x437   : > { %v3907_v61 = vpop.f32.mrb[68].mxu1  ;;  %vm4891_vm0 = vcmp.gt.f32.partialorder %v4080_v38, %v15276_v53  ;;  %v4082_v55 = vpop.f32.mrb[71].mxu0  ;;  %v15280_v53 = vld [vmem:[#allocation220_spill] sm:$0xff] }
 0x438   : > { %vm5385_vm1 = vcmp.gt.f32.partialorder %v3907_v61, %v15277_v37  ;;  %v4923_v51 = vsel %vm4891_vm0, 6, %v15278_v48  ;;  %v3909_v39 = vpop.f32.mrb[69].mxu1  ;;  %vm5467_vm9 = vcmp.gt.f32.partialorder %v4082_v55, %v12740_v0  ;;  %v15282_v48 = vld [vmem:[#allocation103_spill] sm:$0xff] }
 0x439   : > { %4955 = vst [vmem:[%s12661_s17 + $0x198] sm:$0xff] %v4923_v51  ;;  %vm5961_vm4 = vcmp.gt.f32.partialorder %v3909_v39, %v12641_v44  ;;  %v5499_v33 = vsel %vm5467_vm9, 6, %v12743_v56  ;;  %v13020_v22 = vsel %vm5385_vm1, %v3907_v61, %v15277_v37  ;;  %v13023_v7 = vsel %vm5385_vm1, 5, %v15279_v9  ;;  %v15281_v61 = vld [vmem:[#allocation152_spill] sm:$0xff]  ;;  %v15285_v9 = vld [vmem:[#allocation199_spill] sm:$0xff] }
 0x43a   : > { %5531 = vst [vmem:[%s12661_s17 + $0x1a0] sm:$0xff] %v5499_v33  ;;  %v4086_v28 = vpop.f32.mrb[72].mxu0  ;;  %v13027_v38 = vsel %vm5961_vm4, %v3909_v39, %v12641_v44  ;;  %v13030_v0 = vsel %vm5961_vm4, 5, %v12644_v2  ;;  %v15283_v33 = vld [vmem:[#allocation221_spill] sm:$0xff] }
 0x43b   : > { %vm4892_vm15 = vcmp.gt.f32.partialorder %v4086_v28, %v15280_v53  ;;  %v6745_v56 = vpop.f32.mrb[70].mxu1  ;;  %v4088_v55 = vpop.f32.mrb[73].mxu0  ;;  %v15284_v2 = vld [vmem:[#allocation181_spill] sm:$0xff] }
 0x43c   : > { %v4924_v37 = vsel %vm4892_vm15, 6, %v15281_v61  ;;  %vm6027_vm6 = vcmp.gt.f32.partialorder %v6745_v56, %v15282_v48  ;;  %vm5468_vm8 = vcmp.gt.f32.partialorder %v4088_v55, %v12760_v30  ;;  %v4235_v51 = vpop.f32.mrb[71].mxu1  ;;  %v15286_v56 = vld [vmem:[#allocation36_spill] sm:$0xff]  ;;  %v15288_v48 = vld [vmem:[#allocation205_spill] sm:$0xff] }
 0x43d   : > { %4956 = vst [vmem:[%s12661_s17 + $0x1b0] sm:$0xff] %v4924_v37  ;;  %v6059_v44 = vsel %vm6027_vm6, 6, %v15283_v33  ;;  %v5500_v39 = vsel %vm5468_vm8, 6, %v12763_v60  ;;  %vm6026_vm11 = vcmp.gt.f32.partialorder %v4235_v51, %v15284_v2  ;;  %v15287_v61 = vld [vmem:[#allocation92_spill] sm:$0xff]  ;;  %v15289_v51 = vld [vmem:[#allocation113_spill] sm:$0xff] }
 0x43e   : > { %6091 = vst [vmem:[%s12661_s17 + $0x28] sm:$0xff] %v6059_v44  ;;  %5532 = vst [vmem:[%s12661_s17 + $0x1b8] sm:$0xff] %v5500_v39  ;;  %v6058_v28 = vsel %vm6026_vm11, 6, %v15285_v9  ;;  %v4092_v53 = vpop.f32.mrb[74].mxu0  ;;  %v15290_v39 = vld [vmem:[#allocation41_spill] sm:$0xff]  ;;  %v15291_v2 = vld [vmem:[#allocation108_spill] sm:$0xff] }
 0x43f   : > { %6090 = vst [vmem:[%s12661_s17 + $0x10] sm:$0xff] %v6058_v28  ;;  %vm4893_vm5 = vcmp.gt.f32.partialorder %v4092_v53, %v15286_v56  ;;  %v6748_v30 = vpop.f32.mrb[72].mxu1  ;;  %v4094_v55 = vpop.f32.mrb[75].mxu0  ;;  %v15292_v53 = vld [vmem:[#allocation202_spill] sm:$0xff] }
 0x440   : > { %v4925_v37 = vsel %vm4893_vm5, 6, %v15287_v61  ;;  %vm6029_vm2 = vcmp.gt.f32.partialorder %v6748_v30, %v15288_v48  ;;  %vm5469_vm14 = vcmp.gt.f32.partialorder %v4094_v55, %v12780_v1  ;;  %v4245_v60 = vpop.f32.mrb[73].mxu1  ;;  %v15293_v30 = vld [vmem:[#allocation17_spill] sm:$0xff]  ;;  %v15294_v61 = vld [vmem:[#allocation208_spill] sm:$0xff] }
 0x441   : > { %4957 = vst [vmem:[%s12661_s17 + $0x1c8] sm:$0xff] %v4925_v37  ;;  %v6061_v33 = vsel %vm6029_vm2, 6, %v15289_v51  ;;  %v5501_v44 = vsel %vm5469_vm14, 6, %v12783_v63  ;;  %vm6028_vm7 = vcmp.gt.f32.partialorder %v4245_v60, %v15290_v39  ;;  %v15295_v37 = vld [vmem:[#allocation210_spill] sm:$0xff]  ;;  %v15296_v51 = vld [vmem:[#allocation51_spill] sm:$0xff] }
 0x442   : > { %6093 = vst [vmem:[%s12661_s17 + $0x58] sm:$0xff] %v6061_v33  ;;  %5533 = vst [vmem:[%s12661_s17 + $0x1d0] sm:$0xff] %v5501_v44  ;;  %v6060_v9 = vsel %vm6028_vm7, 6, %v15291_v2  ;;  %v4098_v28 = vpop.f32.mrb[76].mxu0  ;;  %v15297_v33 = vld [vmem:[#allocation39_spill] sm:$0xff]  ;;  %v15298_v2 = vld [vmem:[#allocation204_spill] sm:$0xff] }
 0x443   : > { %6092 = vst [vmem:[%s12661_s17 + $0x40] sm:$0xff] %v6060_v9  ;;  %vm4894_vm10 = vcmp.gt.f32.partialorder %v4098_v28, %v15292_v53  ;;  %v6751_v1 = vpop.f32.mrb[74].mxu1  ;;  %v4100_v56 = vpop.f32.mrb[77].mxu0  ;;  %v15299_v28 = vld [vmem:[#allocation187_spill] sm:$0xff] }
 0x444   : > { %v4926_v55 = vsel %vm4894_vm10, 6, %v15293_v30  ;;  %vm6031_vm13 = vcmp.gt.f32.partialorder %v6751_v1, %v15294_v61  ;;  %vm5470_vm3 = vcmp.gt.f32.partialorder %v4100_v56, %v12800_v10  ;;  %v4255_v63 = vpop.f32.mrb[75].mxu1  ;;  %v15300_v1 = vld [vmem:[#allocation106_spill] sm:$0xff]  ;;  %v15301_v56 = vld [vmem:[#allocation56_spill] sm:$0xff] }
 0x445   : > { %4958 = vst [vmem:[%s12661_s17 + $0x1e0] sm:$0xff] %v4926_v55  ;;  %v6063_v48 = vsel %vm6031_vm13, 6, %v15295_v37  ;;  %v5502_v60 = vsel %vm5470_vm3, 6, %v12803_v52  ;;  %vm6030_vm12 = vcmp.gt.f32.partialorder %v4255_v63, %v15296_v51  ;;  %v15302_v61 = vld [vmem:[#allocation44_spill] sm:$0xff]  ;;  %v15303_v63 = vld [vmem:[#allocation117_spill] sm:$0xff] }
 0x446   : > { %6095 = vst [vmem:[%s12661_s17 + $0x88] sm:$0xff] %v6063_v48  ;;  %5534 = vst [vmem:[%s12661_s17 + $0x1e8] sm:$0xff] %v5502_v60  ;;  %v6062_v44 = vsel %vm6030_vm12, 6, %v15297_v33  ;;  %v4104_v39 = vpop.f32.mrb[78].mxu0  ;;  %v15304_v60 = vld [vmem:[#allocation207_spill] sm:$0xff]  ;;  %v15305_v33 = vld [vmem:[#allocation102_spill] sm:$0xff] }
 0x447   : > { %6094 = vst [vmem:[%s12661_s17 + $0x70] sm:$0xff] %v6062_v44  ;;  %vm4895_vm0 = vcmp.gt.f32.partialorder %v4104_v39, %v15298_v2  ;;  %v6754_v10 = vpop.f32.mrb[76].mxu1  ;;  %v4106_v9 = vpop.f32.mrb[79].mxu0  ;;  %v15306_v39 = vld [vmem:[#allocation61_spill] sm:$0xff]  ;;  %v15307_v2 = vld [vmem:[#allocation62_spill] sm:$0xff] }
 0x448   : > { %v4927_v53 = vsel %vm4895_vm0, 6, %v15299_v28  ;;  %vm6033_vm1 = vcmp.gt.f32.partialorder %v6754_v10, %v15300_v1  ;;  %vm5471_vm9 = vcmp.gt.f32.partialorder %v4106_v9, %v12820_v47  ;;  %v4265_v52 = vpop.f32.mrb[77].mxu1  ;;  %v15308_v28 = vld [vmem:[#allocation160_spill] sm:$0xff] }
 0x449   : > { %4959 = vst [vmem:[%s12661_s17 + $0x1f8] sm:$0xff] %v4927_v53  ;;  %v6065_v30 = vsel %vm6033_vm1, 6, %v15301_v56  ;;  %v5503_v55 = vsel %vm5471_vm9, 6, %v12823_v54  ;;  %vm6032_vm4 = vcmp.gt.f32.partialorder %v4265_v52, %v15302_v61  ;;  %v15309_v53 = vld [vmem:[#allocation112_spill] sm:$0xff]  ;;  %v15310_v56 = vld [vmem:[#allocation118_spill] sm:$0xff] }
 0x44a   : > { %6097 = vst [vmem:[%s12661_s17 + $0xb8] sm:$0xff] %v6065_v30  ;;  %5535 = vst [vmem:[%s12661_s17 + $0x200] sm:$0xff] %v5503_v55  ;;  %v6064_v37 = vsel %vm6032_vm4, 6, %v15303_v63  ;;  %v4110_v48 = vpop.f32.mrb[80].mxu0  ;;  %v15311_v55 = vld [vmem:[#allocation209_spill] sm:$0xff] }
 0x44b   : > { %6096 = vst [vmem:[%s12661_s17 + $0xa0] sm:$0xff] %v6064_v37  ;;  %vm4896_vm15 = vcmp.gt.f32.partialorder %v4110_v48, %v15304_v60  ;;  %v6757_v47 = vpop.f32.mrb[78].mxu1  ;;  %v4112_v51 = vpop.f32.mrb[81].mxu0  ;;  %v15312_v63 = vld [vmem:[#allocation213_spill] sm:$0xff] }
 0x44c   : > { %v4928_v44 = vsel %vm4896_vm15, 6, %v15305_v33  ;;  %vm6035_vm6 = vcmp.gt.f32.partialorder %v6757_v47, %v15306_v39  ;;  %vm5472_vm8 = vcmp.gt.f32.partialorder %v4112_v51, %v12840_v43  ;;  %v4275_v54 = vpop.f32.mrb[79].mxu1  ;;  %v15313_v60 = vld [vmem:[#allocation29_spill] sm:$0xff]  ;;  %v15314_v47 = vld [vmem:[#allocation67_spill] sm:$0xff] }
 0x44d   : > { %4960 = vst [vmem:[%s12661_s17 + $0x210] sm:$0xff] %v4928_v44  ;;  %v6067_v10 = vsel %vm6035_vm6, 6, %v15307_v2  ;;  %v5504_v9 = vsel %vm5472_vm8, 6, %v12843_v18  ;;  %vm6034_vm11 = vcmp.gt.f32.partialorder %v4275_v54, %v15308_v28  ;;  %v15316_v39 = vld [vmem:[#allocation123_spill] sm:$0xff]  ;;  %v15318_v28 = vld [vmem:[#allocation72_spill] sm:$0xff] }
 0x44e   : > { %6099 = vst [vmem:[%s12661_s17 + $0xe8] sm:$0xff] %v6067_v10  ;;  %5536 = vst [vmem:[%s12661_s17 + $0x218] sm:$0xff] %v5504_v9  ;;  %v6066_v1 = vsel %vm6034_vm11, 6, %v15309_v53  ;;  %v4116_v52 = vpop.f32.mrb[82].mxu0  ;;  %v15317_v9 = vld [vmem:[#allocation71_spill] sm:$0xff] }
 0x44f   : > { %6098 = vst [vmem:[%s12661_s17 + $0xd0] sm:$0xff] %v6066_v1  ;;  %vm4897_vm5 = vcmp.gt.f32.partialorder %v4116_v52, %v15310_v56  ;;  %v6760_v43 = vpop.f32.mrb[80].mxu1  ;;  %v4118_v30 = vpop.f32.mrb[83].mxu0  ;;  %v15320_v56 = vld [vmem:[#allocation211_spill] sm:$0xff] }
 0x450   : > { %v4929_v61 = vsel %vm4897_vm5, 6, %v15311_v55  ;;  %vm6037_vm2 = vcmp.gt.f32.partialorder %v6760_v43, %v12602_v34  ;;  %vm5473_vm14 = vcmp.gt.f32.partialorder %v4118_v30, %v12860_v3  ;;  %v4285_v18 = vpop.f32.mrb[81].mxu1  ;;  %v15315_v34 = vld [vmem:[#allocation32_spill] sm:$0xff] }
 0x451   : > { %4961 = vst [vmem:[%s12661_s17 + $0x228] sm:$0xff] %v4929_v61  ;;  %v6069_v37 = vsel %vm6037_vm2, 6, %v15312_v63  ;;  %v5505_v48 = vsel %vm5473_vm14, 6, %v12863_v36  ;;  %vm6036_vm7 = vcmp.gt.f32.partialorder %v4285_v18, %v15313_v60  ;;  %v15322_v61 = vld [vmem:[#allocation133_spill] sm:$0xff] }
 0x452   : > { %6101 = vst [vmem:[%s12661_s17 + $0x118] sm:$0xff] %v6069_v37  ;;  %5537 = vst [vmem:[%s12661_s17 + $0x230] sm:$0xff] %v5505_v48  ;;  %v6068_v51 = vsel %vm6036_vm7, 6, %v15314_v47  ;;  %v4122_v33 = vpop.f32.mrb[84].mxu0  ;;  %v15323_v18 = vld [vmem:[#allocation141_spill] sm:$0xff] }
 0x453   : > { %6100 = vst [vmem:[%s12661_s17 + $0x100] sm:$0xff] %v6068_v51  ;;  %vm4898_vm10 = vcmp.gt.f32.partialorder %v4122_v33, %v15315_v34  ;;  %v6763_v3 = vpop.f32.mrb[82].mxu1  ;;  %v4124_v44 = vpop.f32.mrb[85].mxu0  ;;  %v15325_v60 = vld [vmem:[#allocation25_spill] sm:$0xff] }
 0x454   : > { %v4930_v54 = vsel %vm4898_vm10, 6, %v15316_v39  ;;  %vm6039_vm13 = vcmp.gt.f32.partialorder %v6763_v3, %v12664_v41  ;;  %vm5474_vm3 = vcmp.gt.f32.partialorder %v4124_v44, %v12880_v31  ;;  %v4295_v36 = vpop.f32.mrb[83].mxu1  ;;  %v15319_v41 = vld [vmem:[#allocation175_spill] sm:$0xff]  ;;  %v15326_v51 = vld [vmem:[#allocation217_spill] sm:$0xff]  ;;  %v15327_v3 = vld [vmem:[#allocation80_spill] sm:$0xff] }
 0x455   : > { %4962 = vst [vmem:[%s12661_s17 + $0x240] sm:$0xff] %v4930_v54  ;;  %v6071_v2 = vsel %vm6039_vm13, 6, %v12667_v29  ;;  %v5506_v10 = vsel %vm5474_vm3, 6, %v12883_v21  ;;  %vm6038_vm12 = vcmp.gt.f32.partialorder %v4295_v36, %v15317_v9  ;;  %v15321_v21 = vld [vmem:[#allocation76_spill] sm:$0xff]  ;;  %v15328_v44 = vld [vmem:[#allocation35_spill] sm:$0xff] }
 0x456   : > { %6103 = vst [vmem:[%s12661_s17 + $0x148] sm:$0xff] %v6071_v2  ;;  %5538 = vst [vmem:[%s12661_s17 + $0x248] sm:$0xff] %v5506_v10  ;;  %v6070_v53 = vsel %vm6038_vm12, 6, %v15318_v28  ;;  %v4128_v1 = vpop.f32.mrb[86].mxu0  ;;  %v15330_v2 = vld [vmem:[#allocation33_spill] sm:$0xff] }
 0x457   : > { %6102 = vst [vmem:[%s12661_s17 + $0x130] sm:$0xff] %v6070_v53  ;;  %vm4899_vm0 = vcmp.gt.f32.partialorder %v4128_v1, %v15319_v41  ;;  %v6766_v31 = vpop.f32.mrb[84].mxu1  ;;  %v4130_v52 = vpop.f32.mrb[87].mxu0  ;;  %v15331_v53 = vld [vmem:[#allocation81_spill] sm:$0xff] }
 0x458   : > { %v4931_v43 = vsel %vm4899_vm0, 6, %v15320_v56  ;;  %vm6041_vm1 = vcmp.gt.f32.partialorder %v6766_v31, %v12707_v59  ;;  %vm5475_vm9 = vcmp.gt.f32.partialorder %v4130_v52, %v12900_v6  ;;  %v4305_v29 = vpop.f32.mrb[85].mxu1  ;;  %v15324_v59 = vld [vmem:[#allocation122_spill] sm:$0xff] }
 0x459   : > { %4963 = vst [vmem:[%s12661_s17 + $0x258] sm:$0xff] %v4931_v43  ;;  %v6073_v30 = vsel %vm6041_vm1, 6, %v15321_v21  ;;  %v5507_v55 = vsel %vm5475_vm9, 6, %v12903_v32  ;;  %vm6040_vm4 = vcmp.gt.f32.partialorder %v4305_v29, %v15322_v61  ;;  %v15333_v52 = vld [vmem:[#allocation66_spill] sm:$0xff] }
 0x45a   : > { %6105 = vst [vmem:[%s12661_s17 + $0x178] sm:$0xff] %v6073_v30  ;;  %5539 = vst [vmem:[%s12661_s17 + $0x260] sm:$0xff] %v5507_v55  ;;  %v6072_v63 = vsel %vm6040_vm4, 6, %v15323_v18  ;;  %v4134_v37 = vpop.f32.mrb[88].mxu0  ;;  %v15336_v21 = vld [vmem:[#allocation218_spill] sm:$0xff]  ;;  %v15337_v30 = vld [vmem:[#allocation145_spill] sm:$0xff] }
 0x45b   : > { %6104 = vst [vmem:[%s12661_s17 + $0x160] sm:$0xff] %v6072_v63  ;;  %vm4900_vm15 = vcmp.gt.f32.partialorder %v4134_v37, %v15324_v59  ;;  %v6769_v6 = vpop.f32.mrb[86].mxu1  ;;  %v4136_v48 = vpop.f32.mrb[89].mxu0  ;;  %v15338_v18 = vld [vmem:[#allocation130_spill] sm:$0xff]  ;;  %v15339_v37 = vld [vmem:[#allocation9_spill] sm:$0xff] }
 0x45c   : > { %v4932_v47 = vsel %vm4900_vm15, 6, %v15325_v60  ;;  %vm6043_vm6 = vcmp.gt.f32.partialorder %v6769_v6, %v12747_v20  ;;  %vm5476_vm8 = vcmp.gt.f32.partialorder %v4136_v48, %v12920_v5  ;;  %v4315_v32 = vpop.f32.mrb[87].mxu1  ;;  %v15329_v20 = vld [vmem:[#allocation127_spill] sm:$0xff]  ;;  %v15340_v60 = vld [vmem:[#allocation86_spill] sm:$0xff] }
 0x45d   : > { %4964 = vst [vmem:[%s12661_s17 + $0x270] sm:$0xff] %v4932_v47  ;;  %v6075_v33 = vsel %vm6043_vm6, 6, %v15326_v51  ;;  %v5508_v34 = vsel %vm5476_vm8, 6, %v12923_v12  ;;  %vm6042_vm11 = vcmp.gt.f32.partialorder %v4315_v32, %v15327_v3  ;;  %v15341_v47 = vld [vmem:[#allocation149_spill] sm:$0xff] }
 0x45e   : > { %6107 = vst [vmem:[%s12661_s17 + $0x1a8] sm:$0xff] %v6075_v33  ;;  %5540 = vst [vmem:[%s12661_s17 + $0x278] sm:$0xff] %v5508_v34  ;;  %v6074_v39 = vsel %vm6042_vm11, 6, %v15328_v44  ;;  %v4140_v54 = vpop.f32.mrb[90].mxu0  ;;  %v15343_v34 = vld [vmem:[#allocation124_spill] sm:$0xff] }
 0x45f   : > { %6106 = vst [vmem:[%s12661_s17 + $0x190] sm:$0xff] %v6074_v39  ;;  %vm4901_vm5 = vcmp.gt.f32.partialorder %v4140_v54, %v15329_v20  ;;  %v6772_v5 = vpop.f32.mrb[88].mxu1  ;;  %v4142_v36 = vpop.f32.mrb[91].mxu0  ;;  %v15344_v39 = vld [vmem:[#allocation151_spill] sm:$0xff]  ;;  %v15345_v54 = vld [vmem:[#allocation20_spill] sm:$0xff] }
 0x460   : > { %v4933_v10 = vsel %vm4901_vm5, 6, %v15330_v2  ;;  %vm6045_vm2 = vcmp.gt.f32.partialorder %v6772_v5, %v12787_v50  ;;  %vm5477_vm14 = vcmp.gt.f32.partialorder %v4142_v36, %v12940_v8  ;;  %v4325_v12 = vpop.f32.mrb[89].mxu1  ;;  %v15332_v50 = vld [vmem:[#allocation132_spill] sm:$0xff]  ;;  %v15347_v2 = vld [vmem:[#allocation42_spill] sm:$0xff] }
 0x461   : > { %4965 = vst [vmem:[%s12661_s17 + $0x288] sm:$0xff] %v4933_v10  ;;  %v6077_v9 = vsel %vm6045_vm2, 6, %v12790_v13  ;;  %v5509_v28 = vsel %vm5477_vm14, 6, %v12943_v42  ;;  %vm6044_vm7 = vcmp.gt.f32.partialorder %v4325_v12, %v12767_v62  ;;  %v15334_v13 = vld [vmem:[#allocation82_spill] sm:$0xff] }
 0x462   : > { %6109 = vst [vmem:[%s12661_s17 + $0x1d8] sm:$0xff] %v6077_v9  ;;  %5541 = vst [vmem:[%s12661_s17 + $0x290] sm:$0xff] %v5509_v28  ;;  %v6076_v1 = vsel %vm6044_vm7, 6, %v15331_v53  ;;  %v4146_v41 = vpop.f32.mrb[92].mxu0  ;;  %v15335_v42 = vld [vmem:[#allocation174_spill] sm:$0xff]  ;;  %v15348_v9 = vld [vmem:[#allocation40_spill] sm:$0xff] }
 0x463   : > { %6108 = vst [vmem:[%s12661_s17 + $0x1c0] sm:$0xff] %v6076_v1  ;;  %vm4902_vm10 = vcmp.gt.f32.partialorder %v4146_v41, %v15332_v50  ;;  %v6775_v8 = vpop.f32.mrb[90].mxu1  ;;  %v4148_v31 = vpop.f32.mrb[93].mxu0 }
 0x464   : > { %v4934_v56 = vsel %vm4902_vm10, 6, %v15333_v52  ;;  %vm6047_vm13 = vcmp.gt.f32.partialorder %v6775_v8, %v15334_v13  ;;  %vm5478_vm3 = vcmp.gt.f32.partialorder %v4148_v31, %v12960_v40  ;;  %v4335_v62 = vpop.f32.mrb[91].mxu1 }
 0x465   : > { %4966 = vst [vmem:[%s12661_s17 + $0x2a0] sm:$0xff] %v4934_v56  ;;  %v6079_v43 = vsel %vm6047_vm13, 6, %v15335_v42  ;;  %v5510_v29 = vsel %vm5478_vm3, 6, %v12963_v45  ;;  %vm6046_vm12 = vcmp.gt.f32.partialorder %v4335_v62, %v15336_v21 }
 0x466   : > { %6111 = vst [vmem:[%s12661_s17 + $0x208] sm:$0xff] %v6079_v43  ;;  %5542 = vst [vmem:[%s12661_s17 + $0x2a8] sm:$0xff] %v5510_v29  ;;  %v6078_v55 = vsel %vm6046_vm12, 6, %v15337_v30  ;;  %v4152_v61 = vpop.f32.mrb[94].mxu0 }
 0x467   : > { %6110 = vst [vmem:[%s12661_s17 + $0x1f0] sm:$0xff] %v6078_v55  ;;  %vm4903_vm0 = vcmp.gt.f32.partialorder %v4152_v61, %v15338_v18  ;;  %v6778_v40 = vpop.f32.mrb[92].mxu1  ;;  %v4154_v63 = vpop.f32.mrb[95].mxu0 }
 0x468   : > { %v4935_v59 = vsel %vm4903_vm0, 6, %v15339_v37  ;;  %vm6049_vm1 = vcmp.gt.f32.partialorder %v6778_v40, %v12867_v27  ;;  %vm5479_vm9 = vcmp.gt.f32.partialorder %v4154_v63, %v12980_v26  ;;  %v4345_v45 = vpop.f32.mrb[93].mxu1  ;;  %v15342_v27 = vld [vmem:[#allocation137_spill] sm:$0xff] }
 0x469   : > { %4967 = vst [vmem:[%s12661_s17 + $0x2b8] sm:$0xff] %v4935_v59  ;;  %v6081_v6 = vsel %vm6049_vm1, 6, %v12870_v46  ;;  %v5511_v48 = vsel %vm5479_vm9, 6, %v12983_v16  ;;  %vm6048_vm4 = vcmp.gt.f32.partialorder %v4345_v45, %v15340_v60 }
 0x46a   : > { %6113 = vst [vmem:[%s12661_s17 + $0x238] sm:$0xff] %v6081_v6  ;;  %5543 = vst [vmem:[%s12661_s17 + $0x2c0] sm:$0xff] %v5511_v48  ;;  %v6080_v32 = vsel %vm6048_vm4, 6, %v15341_v47  ;;  %v4158_v51 = vpop.f32.mrb[96].mxu0 }
 0x46b   : > { %6112 = vst [vmem:[%s12661_s17 + $0x220] sm:$0xff] %v6080_v32  ;;  %vm4904_vm15 = vcmp.gt.f32.partialorder %v4158_v51, %v15342_v27  ;;  %v6781_v26 = vpop.f32.mrb[94].mxu1  ;;  %v4160_v33 = vpop.f32.mrb[97].mxu0 }
 0x46c   : > { %v4936_v3 = vsel %vm4904_vm15, 6, %v15343_v34  ;;  %vm6051_vm6 = vcmp.gt.f32.partialorder %v6781_v26, %v12907_v19  ;;  %vm5480_vm8 = vcmp.gt.f32.partialorder %v4160_v33, %v13000_v23  ;;  %v4355_v46 = vpop.f32.mrb[95].mxu1  ;;  %v15346_v19 = vld [vmem:[#allocation54_spill] sm:$0xff] }
 0x46d   : > { %4968 = vst [vmem:[%s12661_s17 + $0x2d0] sm:$0xff] %v4936_v3  ;;  %v6083_v16 = vsel %vm6051_vm6, 6, %v12910_v49  ;;  %v5512_v44 = vsel %vm5480_vm8, 6, %v13003_v11  ;;  %vm6050_vm11 = vcmp.gt.f32.partialorder %v4355_v46, %v15344_v39 }
 0x46e   : > { %6115 = vst [vmem:[%s12661_s17 + $0x268] sm:$0xff] %v6083_v16  ;;  %5544 = vst [vmem:[%s12661_s17 + $0x2d8] sm:$0xff] %v5512_v44  ;;  %v6082_v20 = vsel %vm6050_vm11, 6, %v15345_v54  ;;  %v4164_v5 = vpop.f32.mrb[98].mxu0 }
 0x46f   : > { %6114 = vst [vmem:[%s12661_s17 + $0x250] sm:$0xff] %v6082_v20  ;;  %vm4905_vm5 = vcmp.gt.f32.partialorder %v4164_v5, %v15346_v19  ;;  %v6784_v23 = vpop.f32.mrb[96].mxu1  ;;  %v4166_v36 = vpop.f32.mrb[99].mxu0 }
 0x470   : > { %v4937_v10 = vsel %vm4905_vm5, 6, %v15347_v2  ;;  %vm6053_vm2 = vcmp.gt.f32.partialorder %v6784_v23, %v12947_v15  ;;  %vm5481_vm14 = vcmp.gt.f32.partialorder %v4166_v36, %v13020_v22  ;;  %v4365_v49 = vpop.f32.mrb[97].mxu1 }
 0x471   : > { %4969 = vst [vmem:[%s12661_s17 + $0x2e8] sm:$0xff] %v4937_v10  ;;  %v6085_v11 = vsel %vm6053_vm2, 6, %v12950_v17  ;;  %v5513_v12 = vsel %vm5481_vm14, 6, %v13023_v7  ;;  %vm6052_vm7 = vcmp.gt.f32.partialorder %v4365_v49, %v12927_v24 }
 0x472   : > { %6117 = vst [vmem:[%s12661_s17 + $0x298] sm:$0xff] %v6085_v11  ;;  %5545 = vst [vmem:[%s12661_s17 + $0x2f0] sm:$0xff] %v5513_v12  ;;  %v6084_v28 = vsel %vm6052_vm7, 6, %v15348_v9 }
 0x473   : > { %6116 = vst [vmem:[%s12661_s17 + $0x280] sm:$0xff] %v6084_v28  ;;  %v6787_v15 = vpop.f32.mrb[98].mxu1 }
 0x474   : > { %vm6055_vm10 = vcmp.gt.f32.partialorder %v6787_v15, %v12987_v14  ;;  %v4375_v22 = vpop.f32.mrb[99].mxu1 }
 0x475   : > { %v6087_v53 = vsel %vm6055_vm10, 6, %v12990_v25  ;;  %vm6054_vm13 = vcmp.gt.f32.partialorder %v4375_v22, %v12967_v58 }
 0x476   : > { %6119 = vst [vmem:[%s12661_s17 + $0x2c8] sm:$0xff] %v6087_v53  ;;  %v6086_v17 = vsel %vm6054_vm13, 6, %v12970_v57 }
 0x477   : > { %6118 = vst [vmem:[%s12661_s17 + $0x2b0] sm:$0xff] %v6086_v17  ;;  %v6790_v24 = vpop.f32.mrb[100].mxu1 }
 0x478   : > { %vm6057_vm3 = vcmp.gt.f32.partialorder %v6790_v24, %v13027_v38  ;;  %v4385_v7 = vpop.f32.mrb[101].mxu1 }
 0x479   : > { %v6089_v1 = vsel %vm6057_vm3, 6, %v13030_v0  ;;  %vm6056_vm12 = vcmp.gt.f32.partialorder %v4385_v7, %v13007_v35 }
 0x47a   : > { %6121 = vst [vmem:[%s12661_s17 + $0x2f8] sm:$0xff] %v6089_v1  ;;  %v6088_v14 = vsel %vm6056_vm12, 6, %v13010_v4 }
 0x47b   : > { %6120 = vst [vmem:[%s12661_s17 + $0x2e0] sm:$0xff] %v6088_v14 }
 0x47c PF: > { %s13_s14 = sadd.s32 1, %s7038_s14   ;;  %s15349_s12 = smov %s7034_s13 }
 0x47d   : > { %p10_p5 = scmp.ge.s32.totalorder %s13_s14, 4   ;;  %s15350_s13 = smov %s15352_s15 }
 0x47f   :  { %12 = sbr.rel (!%p10_p5) target bundleno = 2 (0x2), region = 71 }

</bundles_post_ra>
